<compile_context>
chip_gen: v5e
topology: v5e:2x2
jax: 0.10.0
libtpu: 0.0.40
codegen_flags: <defaults>
</compile_context>

<pallas_src>
import functools

import jax
import jax.numpy as jnp
from jax.experimental import pallas as pl
from jax.experimental.pallas import tpu as pltpu


def _round_up(x, m):
    return (x + m - 1) // m * m


def _vmem_limit_bytes():
    """Generation-aware scoped-VMEM limit (128 MiB parts can use ~96 MiB, v7x ~48 MiB)."""
    try:
        info = pltpu.get_tpu_info()
        cap = getattr(info, "vmem_capacity_bytes", None)
        if cap:
            return int(min(cap * 3 // 4, 100 * 1024 * 1024))
    except Exception:
        pass
    return 32 * 1024 * 1024  # portable / v7x-safe fallback


def textcnn_kernel(ids_ref, ew_ref, bias_ref, mask_ref, fcw_ref, fcb_ref, out_ref,
                   *, kmax, vocab_pad, seq_len):
    """One batch tile: fused embed+conv as a single K=kmax*Vp one-hot MXU matmul ->
    bias -> ReLU -> masked max-over-time -> FC.  Everything lane-dense (128-padded)."""
    TB = ids_ref.shape[0]
    S = seq_len
    Cp = ew_ref.shape[-1]
    Kw = kmax * vocab_pad

    ids_halo = ids_ref[...]                                 # (TB, S + kmax - 1) int32
    # Single-vreg lane iota; the == below broadcasts it (no materialized (TB,S,Vp) const).
    iota_v = jax.lax.broadcasted_iota(jnp.int32, (1, 1, vocab_pad), 2)

    # Wide one-hot (TB*S, kmax*Vp) built band-by-band directly in the wide lane layout:
    # each band is exactly vocab_pad = 128 lanes, so the concat is vreg-aligned and the
    # tap-sum moves into the MXU K reduction (one matmul instead of kmax).
    bands = []
    for j in range(kmax):                                   # static unroll over conv taps
        ids_j = ids_halo[:, j:j + S]                        # (TB, S): token id at t + j
        bands.append((ids_j[:, :, None] == iota_v).astype(jnp.bfloat16))   # (TB, S, Vp)
    onehot = jnp.concatenate(bands, axis=-1)                # (TB, S, kmax*Vp)
    onehot = onehot.reshape(TB * S, Kw)                     # leading-dim merge, no relayout

    acc = jnp.dot(onehot, ew_ref[...], preferred_element_type=jnp.float32)  # (TB*S, Cp)

    acc = jnp.maximum(acc + bias_ref[...], 0.0)             # bias + ReLU (f32, VPU)
    # Masked max is valid only because ReLU makes everything >= 0; switch to additive
    # -inf masking if the activation ever changes.
    acc = acc.reshape(TB, S, Cp) * mask_ref[...]            # zero invalid time / pad cols
    pooled = jnp.max(acc, axis=1)                           # max-over-time -> (TB, Cp)

    # TODO(synk): nn.Dropout is identity at inference; training-mode RNG masking is
    # not implemented.
    logits = jnp.dot(pooled.astype(jnp.bfloat16), fcw_ref[...],
                     preferred_element_type=jnp.float32) + fcb_ref[...]
    out_ref[...] = logits                                   # (TB, class_pad), lane-dense


def init_params(key, vocab_size, vocab_dim, kernel_num, kernel_list, class_num):
    """PyTorch-shaped float32 parameters."""
    keys = jax.random.split(key, 1 + 2 * len(kernel_list) + 2)
    params = {"embed": jax.random.normal(keys[0], (vocab_size, vocab_dim)) * 0.1}
    i = 1
    for k in kernel_list:
        # Conv2d(1, C, (k, D)) weight, minus the singleton in_channel: (C, k, D).
        params[f"conv{k}_w"] = jax.random.normal(keys[i], (kernel_num, k, vocab_dim)) * 0.1
        params[f"conv{k}_b"] = jax.random.normal(keys[i + 1], (kernel_num,)) * 0.1
        i += 2
    fc_in = len(kernel_list) * kernel_num
    params["fc_w"] = jax.random.normal(keys[i], (class_num, fc_in)) * 0.1
    params["fc_b"] = jax.random.normal(keys[i + 1], (class_num,)) * 0.1
    return params


def textcnn_forward(x_tokens, params, kernel_list, *, batch_tile=64):
    """x_tokens: (seq_len, batch) int32 token ids (same input as the PyTorch forward)."""
    ids = x_tokens.T.astype(jnp.int32)                      # x.t() -> (B, S)
    B, S = ids.shape
    V, D = params["embed"].shape
    C = params[f"conv{kernel_list[0]}_w"].shape[0]
    class_num = params["fc_b"].shape[0]
    kmax = max(kernel_list)
    n_banks = len(kernel_list)

    # ---- lane-dense padded sizes ---------------------------------------------------
    Vp = _round_up(V, 128)                                  # per-tap K band width
    Cp = _round_up(n_banks * C, 128)                        # concat conv-feature width
    class_pad = _round_up(class_num, 128)                   # logits width
    Kw = kmax * Vp                                          # folded MXU K dimension
    TB = _round_up(min(batch_tile, max(B, 8)), 8)           # sublane-aligned batch tile
    B_pad = _round_up(B, TB)

    # ---- fold embedding into conv taps, row-stacked over taps ------------------------
    # EW[j*Vp + v, col(bank,c)] = sum_d Embed[v, d] * W_bank[c, j, d], so the wide
    # one-hot @ EW performs embed + all conv taps + tap-sum in a single matmul.
    # (f32 fold then bf16 cast: one extra rounding -> 2e-2 test tolerance, intentional.)
    # TODO(synk): if params become traced (training), hoist this fold into a separate
    # jitted prep step so it is not re-run inside every forward.
    embed = params["embed"].astype(jnp.float32)
    EW = jnp.zeros((kmax, Vp, Cp), jnp.float32)
    bias = jnp.zeros((1, Cp), jnp.float32)
    mask = jnp.zeros((S, Cp), jnp.float32)                  # valid time positions per bank
    t = jnp.arange(S)
    col = 0
    for k in kernel_list:
        w = params[f"conv{k}_w"].astype(jnp.float32)        # (C, k, D)
        for j in range(k):
            EW = EW.at[j, :V, col:col + C].set(embed @ w[:, j, :].T)
        bias = bias.at[0, col:col + C].set(params[f"conv{k}_b"])
        valid = (t <= S - k).astype(jnp.float32)[:, None]   # (S, 1)
        mask = mask.at[:, col:col + C].set(jnp.broadcast_to(valid, (S, C)))
        col += C
    EW = EW.reshape(Kw, Cp).astype(jnp.bfloat16)            # row j*Vp+v <-> one-hot band j

    fcw = jnp.zeros((Cp, class_pad), jnp.float32)
    fcw = fcw.at[:n_banks * C, :class_num].set(params["fc_w"].T).astype(jnp.bfloat16)
    fcb = jnp.zeros((1, class_pad), jnp.float32).at[0, :class_num].set(params["fc_b"])

    # ---- ids halo: ship the ids ONCE, taps derived in-kernel -------------------------
    # halo columns clamp to the last token; those taps are zeroed by `mask` before max.
    halo = kmax - 1
    if halo:
        ids_halo = jnp.concatenate(
            [ids, jnp.broadcast_to(ids[:, -1:], (B, halo))], axis=1)
    else:
        ids_halo = ids
    ids_halo = jnp.pad(ids_halo, ((0, B_pad - B), (0, 0)))  # pad rows use id 0, sliced off

    # TODO(synk): for large vocabularies the folded EW table does not fit VMEM; switch
    # to scalar-prefetched ids + manual DMA row-gather of the EW rows (esp. on v7x).

    grid = (B_pad // TB,)
    kernel = functools.partial(textcnn_kernel, kmax=kmax, vocab_pad=Vp, seq_len=S)
    out = pl.pallas_call(
        kernel,
        out_shape=jax.ShapeDtypeStruct((B_pad, class_pad), jnp.float32),
        grid_spec=pltpu.PrefetchScalarGridSpec(
            num_scalar_prefetch=0,
            grid=grid,
            in_specs=[
                pl.BlockSpec((TB, S + halo), lambda i: (i, 0)),      # ids halo (streamed)
                # The specs below have constant index maps (VMEM-resident weights).
                # On v7x with a large EW table they would benefit from single-buffering
                # (pipeline_mode=pl.Buffered(1)); at these sizes the double-buffered
                # footprint is < 0.5 MiB, so the default is kept for portability.
                pl.BlockSpec((Kw, Cp), lambda i: (0, 0)),            # packed embed*conv
                pl.BlockSpec((1, Cp), lambda i: (0, 0)),             # conv bias
                pl.BlockSpec((S, Cp), lambda i: (0, 0)),             # time-valid / pad mask
                pl.BlockSpec((Cp, class_pad), lambda i: (0, 0)),     # fc weight
                pl.BlockSpec((1, class_pad), lambda i: (0, 0)),      # fc bias
            ],
            out_specs=pl.BlockSpec((TB, class_pad), lambda i: (i, 0)),
        ),
        compiler_params=pltpu.CompilerParams(
            dimension_semantics=("parallel",),               # shard batch tiles over v7x's 2 TCs
            vmem_limit_bytes=_vmem_limit_bytes(),
        ),
    )(ids_halo, EW, bias, mask, fcw, fcb)
    return out[:B, :class_num]


def textcnn_reference(x_tokens, params, kernel_list):
    """Pure-JAX f32 re-implementation of the PyTorch forward (correctness check)."""
    ids = x_tokens.T
    emb = params["embed"][ids]                              # (B, S, D)
    S = emb.shape[1]
    feats = []
    for k in kernel_list:
        w = params[f"conv{k}_w"]                            # (C, k, D)
        L = S - k + 1
        acc = params[f"conv{k}_b"][None, None, :]
        for j in range(k):
            acc = acc + jnp.einsum("bld,cd->blc", emb[:, j:j + L, :], w[:, j, :])
        feats.append(jnp.max(jnp.maximum(acc, 0.0), axis=1))           # (B, C)
    feat = jnp.concatenate(feats, axis=1)
    return feat @ params["fc_w"].T + params["fc_b"][None, :]


if __name__ == "__main__":
    vocab_size = 50
    vocab_dim = 32
    kernel_num = 8
    kernel_list = (2, 3, 4)
    class_num = 5
    seq_len, batch = 16, 256                                 # TB=64 -> grid of 4 (even, >=2/TC)

    key = jax.random.PRNGKey(0)
    k_param, k_tok = jax.random.split(key)
    params = init_params(k_param, vocab_size, vocab_dim, kernel_num, kernel_list, class_num)

    # PyTorch forward takes x of shape (seq_len, batch) of token ids.
    x = jax.random.randint(k_tok, (seq_len, batch), 0, vocab_size, dtype=jnp.int32)

    fwd = jax.jit(functools.partial(textcnn_forward, params=params, kernel_list=kernel_list))
    y = fwd(x)
    jax.block_until_ready(y)

    assert y.shape == (batch, class_num) and y.dtype == jnp.float32
    y_ref = textcnn_reference(x, params, kernel_list)
    assert jnp.allclose(y, y_ref, rtol=2e-2, atol=2e-2), (
        f"max abs err {jnp.max(jnp.abs(y - y_ref))}")
    print("KERNEL_OK")
</pallas_src>

<mosaic_0001>
module attributes {stable_mosaic.version = 11 : i64} {
  func.func @textcnn_kernel(%arg0: i32, %arg1: memref<64x19xi32, #tpu.memory_space<vmem>>, %arg2: memref<512x128xbf16, #tpu.memory_space<vmem>>, %arg3: memref<1x128xf32, #tpu.memory_space<vmem>>, %arg4: memref<16x128xf32, #tpu.memory_space<vmem>>, %arg5: memref<128x128xbf16, #tpu.memory_space<vmem>>, %arg6: memref<1x128xf32, #tpu.memory_space<vmem>>, %arg7: memref<64x128xf32, #tpu.memory_space<vmem>>) attributes {dimension_semantics = [#tpu.dimension_semantics<parallel>], iteration_bounds = array<i64: 4>, scalar_prefetch = 0 : i64, scratch_operands = 0 : i64, tpu.core_type = #tpu.core_type<tc>, window_params = [{transform_indices = @transform_0, window_bounds = array<i64: 64, 19>}, {pipeline_mode = #tpu.pipeline_mode<synchronous>, transform_indices = @transform_1, window_bounds = array<i64: 512, 128>}, {pipeline_mode = #tpu.pipeline_mode<synchronous>, transform_indices = @transform_2, window_bounds = array<i64: 1, 128>}, {pipeline_mode = #tpu.pipeline_mode<synchronous>, transform_indices = @transform_3, window_bounds = array<i64: 16, 128>}, {pipeline_mode = #tpu.pipeline_mode<synchronous>, transform_indices = @transform_4, window_bounds = array<i64: 128, 128>}, {pipeline_mode = #tpu.pipeline_mode<synchronous>, transform_indices = @transform_5, window_bounds = array<i64: 1, 128>}, {transform_indices = @transform_6, window_bounds = array<i64: 64, 128>}]} {
    %c0 = arith.constant 0 : index
    %c0_0 = arith.constant 0 : index
    %0 = vector.load %arg1[%c0, %c0_0] : memref<64x19xi32, #tpu.memory_space<vmem>>, vector<64x19xi32>
    %1 = tpu.iota {dimensions = array<i32: 2>} : vector<1x1x128xi32>
    %2 = vector.extract_strided_slice %0 {offsets = [0, 0], sizes = [64, 16], strides = [1, 1]} : vector<64x19xi32> to vector<64x16xi32>
    %3 = vector.shape_cast %2 : vector<64x16xi32> to vector<64x16x1xi32>
    %4 = vector.broadcast %3 : vector<64x16x1xi32> to vector<64x16x128xi32>
    %5 = vector.broadcast %1 : vector<1x1x128xi32> to vector<64x16x128xi32>
    %6 = arith.cmpi eq, %4, %5 : vector<64x16x128xi32>
    %7 = arith.extui %6 : vector<64x16x128xi1> to vector<64x16x128xi32>
    %8 = arith.sitofp %7 : vector<64x16x128xi32> to vector<64x16x128xf32>
    %9 = arith.truncf %8 : vector<64x16x128xf32> to vector<64x16x128xbf16>
    %10 = vector.extract_strided_slice %0 {offsets = [0, 1], sizes = [64, 16], strides = [1, 1]} : vector<64x19xi32> to vector<64x16xi32>
    %11 = vector.shape_cast %10 : vector<64x16xi32> to vector<64x16x1xi32>
    %12 = vector.broadcast %11 : vector<64x16x1xi32> to vector<64x16x128xi32>
    %13 = vector.broadcast %1 : vector<1x1x128xi32> to vector<64x16x128xi32>
    %14 = arith.cmpi eq, %12, %13 : vector<64x16x128xi32>
    %15 = arith.extui %14 : vector<64x16x128xi1> to vector<64x16x128xi32>
    %16 = arith.sitofp %15 : vector<64x16x128xi32> to vector<64x16x128xf32>
    %17 = arith.truncf %16 : vector<64x16x128xf32> to vector<64x16x128xbf16>
    %18 = vector.extract_strided_slice %0 {offsets = [0, 2], sizes = [64, 16], strides = [1, 1]} : vector<64x19xi32> to vector<64x16xi32>
    %19 = vector.shape_cast %18 : vector<64x16xi32> to vector<64x16x1xi32>
    %20 = vector.broadcast %19 : vector<64x16x1xi32> to vector<64x16x128xi32>
    %21 = vector.broadcast %1 : vector<1x1x128xi32> to vector<64x16x128xi32>
    %22 = arith.cmpi eq, %20, %21 : vector<64x16x128xi32>
    %23 = arith.extui %22 : vector<64x16x128xi1> to vector<64x16x128xi32>
    %24 = arith.sitofp %23 : vector<64x16x128xi32> to vector<64x16x128xf32>
    %25 = arith.truncf %24 : vector<64x16x128xf32> to vector<64x16x128xbf16>
    %26 = vector.extract_strided_slice %0 {offsets = [0, 3], sizes = [64, 16], strides = [1, 1]} : vector<64x19xi32> to vector<64x16xi32>
    %27 = vector.shape_cast %26 : vector<64x16xi32> to vector<64x16x1xi32>
    %28 = vector.broadcast %27 : vector<64x16x1xi32> to vector<64x16x128xi32>
    %29 = vector.broadcast %1 : vector<1x1x128xi32> to vector<64x16x128xi32>
    %30 = arith.cmpi eq, %28, %29 : vector<64x16x128xi32>
    %31 = arith.extui %30 : vector<64x16x128xi1> to vector<64x16x128xi32>
    %32 = arith.sitofp %31 : vector<64x16x128xi32> to vector<64x16x128xf32>
    %33 = arith.truncf %32 : vector<64x16x128xf32> to vector<64x16x128xbf16>
    %34 = tpu.concatenate %9, %17, %25, %33 in 2 : vector<64x16x128xbf16>, vector<64x16x128xbf16>, vector<64x16x128xbf16>, vector<64x16x128xbf16> -> vector<64x16x512xbf16>
    %35 = vector.shape_cast %34 : vector<64x16x512xbf16> to vector<1024x512xbf16>
    %c0_1 = arith.constant 0 : index
    %c0_2 = arith.constant 0 : index
    %36 = vector.load %arg2[%c0_1, %c0_2] : memref<512x128xbf16, #tpu.memory_space<vmem>>, vector<512x128xbf16>
    %cst = arith.constant dense<0.000000e+00> : vector<1024x128xf32>
    %37 = tpu.matmul %35, %36, %cst {dimension_numbers = #tpu.dot_dimension_numbers<[1], [0], [0], [1], [0, 0, 1, 1], [], []>} : vector<1024x512xbf16>, vector<512x128xbf16>, vector<1024x128xf32> -> vector<1024x128xf32>
    %c0_3 = arith.constant 0 : index
    %c0_4 = arith.constant 0 : index
    %38 = vector.load %arg3[%c0_3, %c0_4] : memref<1x128xf32, #tpu.memory_space<vmem>>, vector<1x128xf32>
    %39 = vector.broadcast %38 : vector<1x128xf32> to vector<1024x128xf32>
    %40 = arith.addf %37, %39 : vector<1024x128xf32>
    %cst_5 = arith.constant 0.000000e+00 : f32
    %41 = vector.broadcast %cst_5 : f32 to vector<1024x128xf32>
    %42 = arith.maximumf %40, %41 : vector<1024x128xf32>
    %43 = vector.shape_cast %42 : vector<1024x128xf32> to vector<64x16x128xf32>
    %c0_6 = arith.constant 0 : index
    %c0_7 = arith.constant 0 : index
    %44 = vector.load %arg4[%c0_6, %c0_7] : memref<16x128xf32, #tpu.memory_space<vmem>>, vector<16x128xf32>
    %45 = vector.shape_cast %44 : vector<16x128xf32> to vector<1x16x128xf32>
    %46 = vector.broadcast %45 : vector<1x16x128xf32> to vector<64x16x128xf32>
    %47 = arith.mulf %43, %46 : vector<64x16x128xf32>
    %cst_8 = arith.constant dense<0xFF800000> : vector<64x128xf32>
    %48 = vector.multi_reduction <maximumf>, %47, %cst_8 [1] : vector<64x16x128xf32> to vector<64x128xf32>
    %49 = arith.truncf %48 : vector<64x128xf32> to vector<64x128xbf16>
    %c0_9 = arith.constant 0 : index
    %c0_10 = arith.constant 0 : index
    %50 = vector.load %arg5[%c0_9, %c0_10] : memref<128x128xbf16, #tpu.memory_space<vmem>>, vector<128x128xbf16>
    %cst_11 = arith.constant dense<0.000000e+00> : vector<64x128xf32>
    %51 = tpu.matmul %49, %50, %cst_11 {dimension_numbers = #tpu.dot_dimension_numbers<[1], [0], [0], [1], [0, 0, 1, 1], [], []>} : vector<64x128xbf16>, vector<128x128xbf16>, vector<64x128xf32> -> vector<64x128xf32>
    %c0_12 = arith.constant 0 : index
    %c0_13 = arith.constant 0 : index
    %52 = vector.load %arg6[%c0_12, %c0_13] : memref<1x128xf32, #tpu.memory_space<vmem>>, vector<1x128xf32>
    %53 = vector.broadcast %52 : vector<1x128xf32> to vector<64x128xf32>
    %54 = arith.addf %51, %53 : vector<64x128xf32>
    %c0_14 = arith.constant 0 : index
    %c0_15 = arith.constant 0 : index
    %55 = vector.load %arg7[%c0_14, %c0_15] : memref<64x128xf32, #tpu.memory_space<vmem>>, vector<64x128xf32>
    tpu.vector_store %arg7[%c0_14, %c0_15], %54 {strides = array<i32>} : memref<64x128xf32, #tpu.memory_space<vmem>>, vector<64x128xf32>,
    return
  }
  func.func @transform_0(%arg0: i32) -> (i32, i32) {
    %c0_i32 = arith.constant 0 : i32
    %c0_i32_0 = arith.constant 0 : i32
    return %arg0, %c0_i32 : i32, i32
  }
  func.func @transform_1(%arg0: i32) -> (i32, i32) {
    %c0_i32 = arith.constant 0 : i32
    %c0_i32_0 = arith.constant 0 : i32
    %c0_i32_1 = arith.constant 0 : i32
    return %c0_i32, %c0_i32_0 : i32, i32
  }
  func.func @transform_2(%arg0: i32) -> (i32, i32) {
    %c0_i32 = arith.constant 0 : i32
    %c0_i32_0 = arith.constant 0 : i32
    %c0_i32_1 = arith.constant 0 : i32
    return %c0_i32, %c0_i32_0 : i32, i32
  }
  func.func @transform_3(%arg0: i32) -> (i32, i32) {
    %c0_i32 = arith.constant 0 : i32
    %c0_i32_0 = arith.constant 0 : i32
    %c0_i32_1 = arith.constant 0 : i32
    return %c0_i32, %c0_i32_0 : i32, i32
  }
  func.func @transform_4(%arg0: i32) -> (i32, i32) {
    %c0_i32 = arith.constant 0 : i32
    %c0_i32_0 = arith.constant 0 : i32
    %c0_i32_1 = arith.constant 0 : i32
    return %c0_i32, %c0_i32_0 : i32, i32
  }
  func.func @transform_5(%arg0: i32) -> (i32, i32) {
    %c0_i32 = arith.constant 0 : i32
    %c0_i32_0 = arith.constant 0 : i32
    %c0_i32_1 = arith.constant 0 : i32
    return %c0_i32, %c0_i32_0 : i32, i32
  }
  func.func @transform_6(%arg0: i32) -> (i32, i32) {
    %c0_i32 = arith.constant 0 : i32
    %c0_i32_0 = arith.constant 0 : i32
    return %arg0, %c0_i32 : i32, i32
  }
}

</mosaic_0001>

<bundles_post_ra>
// kernel: textcnn_forward.1
= control target key start
LH: loop header
LB: loop body
LE: loop exit
PB: predicated region body
PF: predicated region fallthrough
CT: control target
= control target key end

     0   :  { %s10831_s21 = smov 0   ;;  %s15142_s0 = inlined_call_operand.vmem [shape: s32[256,19], index: 0, kind: input, shape index: {}]   ;;  %s15143_s1 = inlined_call_operand.vmem [shape: bf16[512,128], index: 1, kind: input, shape index: {}]   ;;  %s15144_s2 = inlined_call_operand.vmem [shape: f32[1,128], index: 2, kind: input, shape index: {}]   ;;  %s15145_s3 = inlined_call_operand.vmem [shape: f32[16,128], index: 3, kind: input, shape index: {}]   ;;  %s15146_s4 = inlined_call_operand.vmem [shape: bf16[128,128], index: 4, kind: input, shape index: {}]   ;;  %s15147_s5 = inlined_call_operand.vmem [shape: f32[1,128], index: 5, kind: input, shape index: {}]   ;;  %s15148_s6 = inlined_call_operand.vmem [shape: f32[256,128], index: 6, kind: output, shape index: {}]  }
   0x1 LB: > { %s9691_s22 = sadd.s32 4294967295, %s10793_s21   ;;  %p9695_p0 = scmp.ge.s32.totalorder %s10793_s21, 1  ;;  %s10793_s21 = sphi %s10831_s21, %s16_s21  }
   0x2   : > { %p213_p1 = scmp.lt.s32.totalorder %s10793_s21, 5 }
   0x4   : > { %p214_p2 = pnand %p9695_p0, %p213_p1 }
   0x6   : > { %217 = sbr.rel (%p214_p2) target bundleno = 3204 (0xc84), region = 44 }
   0xb   : > { %v263_v0 = vlaneseq  ;;  %s9696_s23 = sshll.u32 %s9691_s22, 3  ;;  %v10381_v46 = vld [vmem:[%s15143_s1 + $0x38] sm:$0xff]  ;;  %v10380_v48 = vld [vmem:[%s15143_s1 + $0x30] sm:$0xff]  ;;  %v10379_v50 = vld [vmem:[%s15143_s1 + $0x28] sm:$0xff] }
   0xc   : > { %p244_p3 = scmp.lt.s32.totalorder %s9696_s23, 31  ;;  %7245 = vmatpush.bf16.msra.mxu0 %v10381_v46  ;;  %10414 = vmatpush.bf16.msra.mxu1 %v10381_v46  ;;  %v10378_v51 = vld [vmem:[%s15143_s1 + $0x20] sm:$0xff]  ;;  %v10377_v55 = vld [vmem:[%s15143_s1 + $0x18] sm:$0xff]  ;;  %v10376_v56 = vld [vmem:[%s15143_s1 + $0x10] sm:$0xff] }
   0xd   : > { %v10840_v1 = vshrl.u32 %v263_v0, 7  ;;  %10415 = vmatpush.bf16.msra.mxu2 %v10381_v46  ;;  %v10375_v57 = vld [vmem:[%s15143_s1 + $0x8] sm:$0xff]  ;;  %v10374_v59 = vld [vmem:[%s15143_s1] sm:$0xff]  ;;  %v15149_v46 = vmov 0.0  }
   0xe   : > { %s16060_s23 = smov (!%p244_p3, %s9696_s23), 31 }
   0xf   : > { %15321 = vst [vmem:[#allocation2_spill] sm:$0xff] %v10840_v1  ;;  %10440 = vset.pattern.permute.xlu1 %v10840_v1  ;;  %10439 = vset.pattern.permute.xlu0 %v10840_v1  ;;  %s9697_s24 = sshll.u32 %s16060_s23, 3  ;;  %v10866_v6 = vadd.s32 8, %v10840_v1 }
  0x10   : > { %10441 = vset.pattern.permute.xlu2 %v10840_v1  ;;  %s10853_s27 = scalar_lea.vmem %s15142_s0, %s9697_s24  ;;  %7246 = vmatpush.bf16.msra.mxu0 %v10380_v48  ;;  %s14390_s29 = scalar_lea.vmem %s15148_s6, %s9697_s24 }
  0x11   : > { %v255_v2 = vld [vmem:[%s10853_s27] sm:$0xff]  ;;  %v10873_v8 = vld [vmem:[%s10853_s27 + $0x8] sm:$0xff]  ;;  %v10890_v12 = vld [vmem:[%s10853_s27 + $0x10] sm:$0xff]  ;;  %10416 = vmatpush.bf16.msra.mxu1 %v10380_v48  ;;  %10417 = vmatpush.bf16.msra.mxu2 %v10380_v48 }
  0x12   : > { %v10856_v3 = vperm.slane %v255_v2, 1  ;;  %v10858_v4 = vperm.slane %v255_v2, 0  ;;  %v10860_v5 = vperm.slane %v255_v2, 2  ;;  %v10868_v7 = vperm.slane %v255_v2, 4  ;;  %v10899_v14 = vld [vmem:[%s10853_s27 + $0x18] sm:$0xff]  ;;  %v10918_v19 = vld [vmem:[%s10853_s27 + $0x20] sm:$0xff] }
  0x13   : > { %v10877_v9 = vperm.slane %v10873_v8, 1  ;;  %v10883_v10 = vperm.slane %v10873_v8, 6  ;;  %v10885_v11 = vperm.slane %v255_v2, 3  ;;  %v10894_v13 = vperm.slane %v10890_v12, 3  ;;  %v10935_v23 = vld [vmem:[%s10853_s27 + $0x28] sm:$0xff]  ;;  %v10947_v26 = vld [vmem:[%s10853_s27 + $0x30] sm:$0xff] }
  0x14   : > { %15322 = vst [vmem:[#allocation3_spill] sm:$0xff] %v10856_v3  ;;  %v10903_v15 = vperm.slane %v10899_v14, 0  ;;  %v10905_v16 = vperm.slane %v255_v2, 5  ;;  %v10911_v17 = vperm.slane %v10899_v14, 5  ;;  %v10913_v18 = vperm.slane %v255_v2, 6  ;;  %v10965_v30 = vld [vmem:[%s10853_s27 + $0x38] sm:$0xff]  ;;  %7247 = vmatpush.bf16.msra.mxu0 %v10379_v50 }
  0x15   : > { %15323 = vst [vmem:[#allocation4_spill] sm:$0xff] %v10858_v4  ;;  %v10922_v20 = vperm.slane %v10918_v19, 2  ;;  %v10928_v21 = vperm.slane %v10918_v19, 7  ;;  %v10930_v22 = vperm.slane %v255_v2, 7  ;;  %v10939_v24 = vperm.slane %v10935_v23, 4  ;;  %10418 = vmatpush.bf16.msra.mxu1 %v10379_v50  ;;  %10419 = vmatpush.bf16.msra.mxu2 %v10379_v50 }
  0x16   : > { %15324 = vst [vmem:[#allocation5_spill] sm:$0xff] %v10860_v5  ;;  %v10942_v25 = vperm.slane %v10873_v8, 0  ;;  %v10951_v27 = vperm.slane %v10947_v26, 1  ;;  %v10957_v28 = vperm.slane %v10947_v26, 6  ;;  %v10960_v29 = vperm.slane %v10873_v8, 2 }
  0x17   : > { %283 = vperm.xlu1 %10440, %v10856_v3   ;;  %270 = vperm.xlu0 %10439, %v10858_v4   ;;  %15325 = vst [vmem:[#allocation6_spill] sm:$0xff] %v10868_v7  ;;  %v10969_v31 = vperm.slane %v10965_v30, 3  ;;  %v10972_v32 = vperm.slane %v10873_v8, 3  ;;  %v10981_v33 = vperm.slane %v10873_v8, 4  ;;  %v10989_v35 = vperm.slane %v10873_v8, 5 }
  0x18   : > { %296 = vperm.xlu2 %10441, %v10860_v5   ;;  %15326 = vst [vmem:[#allocation7_spill] sm:$0xff] %v10877_v9  ;;  %v11002_v38 = vperm.slane %v10873_v8, 7  ;;  %v11006_v39 = vperm.slane %v10890_v12, 0  ;;  %v11021_v43 = vperm.slane %v10890_v12, 1  ;;  %v11028_v45 = vperm.slane %v10890_v12, 2  ;;  %7248 = vmatpush.bf16.msra.mxu0 %v10378_v51 }
  0x19   : > { %15327 = vst [vmem:[#allocation8_spill] sm:$0xff] %v10883_v10  ;;  %v11051_v52 = vperm.slane %v10890_v12, 4  ;;  %v11055_v53 = vperm.slane %v10890_v12, 5  ;;  %10420 = vmatpush.bf16.msra.mxu1 %v10378_v51  ;;  %10421 = vmatpush.bf16.msra.mxu2 %v10378_v51  ;;  %v11082_v61 = vperm.slane %v10890_v12, 6  ;;  %v11087_v63 = vperm.slane %v10890_v12, 7 }
  0x1a   : > { %15328 = vst [vmem:[#allocation9_spill] sm:$0xff] %v10885_v11  ;;  %v11093_v8 = vand.u32 127, %v263_v0 }
  0x1b   : > { %15329 = vst [vmem:[#allocation10_spill] sm:$0xff] %v10894_v13 }
  0x1c   : > { %15330 = vst [vmem:[#allocation11_spill] sm:$0xff] %v10903_v15  ;;  %7249 = vmatpush.bf16.msra.mxu0 %v10377_v55 }
  0x1d   : > { %15331 = vst [vmem:[#allocation12_spill] sm:$0xff] %v10905_v16  ;;  %10422 = vmatpush.bf16.msra.mxu1 %v10377_v55  ;;  %10423 = vmatpush.bf16.msra.mxu2 %v10377_v55 }
  0x1e   : > { %15332 = vst [vmem:[#allocation13_spill] sm:$0xff] %v10911_v17 }
  0x1f   : > { %10442 = vset.pattern.permute.xlu1 %v10866_v6  ;;  %322 = vperm.xlu0 %10439, %v10868_v7   ;;  %15333 = vst [vmem:[#allocation14_spill] sm:$0xff] %v10913_v18 }
  0x20   : > { %10444 = vset.pattern.permute.xlu2 %v10866_v6  ;;  %15334 = vst [vmem:[#allocation15_spill] sm:$0xff] %v10922_v20  ;;  %7250 = vmatpush.bf16.msra.mxu0 %v10376_v56 }
  0x21   : > { %15335 = vst [vmem:[#allocation16_spill] sm:$0xff] %v10928_v21  ;;  %10424 = vmatpush.bf16.msra.mxu1 %v10376_v56  ;;  %10425 = vmatpush.bf16.msra.mxu2 %v10376_v56 }
  0x22   : > { %15336 = vst [vmem:[#allocation17_spill] sm:$0xff] %v10930_v22 }
  0x23   : > { %15337 = vst [vmem:[#allocation18_spill] sm:$0xff] %v10939_v24 }
  0x24   : > { %15338 = vst [vmem:[#allocation19_spill] sm:$0xff] %v10942_v25  ;;  %7251 = vmatpush.bf16.msra.mxu0 %v10375_v57 }
  0x25   : > { %15339 = vst [vmem:[#allocation20_spill] sm:$0xff] %v10951_v27  ;;  %10426 = vmatpush.bf16.msra.mxu1 %v10375_v57  ;;  %10427 = vmatpush.bf16.msra.mxu2 %v10375_v57 }
  0x26   : > { %15340 = vst [vmem:[#allocation21_spill] sm:$0xff] %v10957_v28 }
  0x27   : > { %289 = vperm.xlu1 %10442, %v10856_v3   ;;  %387 = vperm.xlu0 %10439, %v10877_v9   ;;  %15341 = vst [vmem:[#allocation22_spill] sm:$0xff] %v10960_v29 }
  0x28   : > { %302 = vperm.xlu2 %10444, %v10860_v5   ;;  %15342 = vst [vmem:[#allocation23_spill] sm:$0xff] %v10969_v31  ;;  %7252 = vmatpush.bf16.msra.mxu0 %v10374_v59 }
  0x29   : > { %15343 = vst [vmem:[#allocation24_spill] sm:$0xff] %v10972_v32  ;;  %10428 = vmatpush.bf16.msra.mxu1 %v10374_v59  ;;  %10429 = vmatpush.bf16.msra.mxu2 %v10374_v59 }
  0x2a   : > { %15344 = vst [vmem:[#allocation25_spill] sm:$0xff] %v10981_v33 }
  0x2b   : > { %15345 = vst [vmem:[#allocation26_spill] sm:$0xff] %v10989_v35 }
  0x2c   : > { %15346 = vst [vmem:[#allocation27_spill] sm:$0xff] %v11002_v38 }
  0x2d   : > { %15347 = vst [vmem:[#allocation28_spill] sm:$0xff] %v11006_v39 }
  0x2e   : > { %15348 = vst [vmem:[#allocation29_spill] sm:$0xff] %v11021_v43 }
  0x2f   : > { %10443 = vset.pattern.permute.xlu1 %v10840_v1  ;;  %452 = vperm.xlu0 %10439, %v10883_v10   ;;  %15350 = vst [vmem:[#allocation31_spill] sm:$0xff] %v11028_v45 }
  0x30   : > { %315 = vperm.xlu2 %10444, %v10885_v11   ;;  %15353 = vst [vmem:[#allocation34_spill] sm:$0xff] %v11051_v52 }
  0x31   : > { %15354 = vst [vmem:[#allocation35_spill] sm:$0xff] %v11055_v53 }
  0x32   : > { %15358 = vst [vmem:[#allocation39_spill] sm:$0xff] %v11082_v61 }
  0x33   : > { %15359 = vst [vmem:[#allocation40_spill] sm:$0xff] %v11087_v63 }
  0x37   : > { %309 = vperm.xlu1 %10443, %v10885_v11   ;;  %517 = vperm.xlu0 %10439, %v10894_v13  }
  0x38   : > { %10446 = vset.pattern.permute.xlu2 %v10840_v1 }
  0x3f   : > { %10445 = vset.pattern.permute.xlu1 %v10866_v6  ;;  %582 = vperm.xlu0 %10439, %v10903_v15  }
  0x40   : > { %335 = vperm.xlu2 %10446, %v10905_v16  }
  0x47   : > { %328 = vperm.xlu1 %10445, %v10868_v7   ;;  %647 = vperm.xlu0 %10439, %v10911_v17  }
  0x48   : > { %348 = vperm.xlu2 %10446, %v10913_v18  }
  0x4f   : > { %341 = vperm.xlu1 %10445, %v10905_v16   ;;  %712 = vperm.xlu0 %10439, %v10922_v20  }
  0x50   : > { %10448 = vset.pattern.permute.xlu2 %v10866_v6 }
  0x57   : > { %10447 = vset.pattern.permute.xlu1 %v10840_v1  ;;  %777 = vperm.xlu0 %10439, %v10928_v21  }
  0x58   : > { %367 = vperm.xlu2 %10448, %v10930_v22  }
  0x5f   : > { %361 = vperm.xlu1 %10447, %v10930_v22   ;;  %842 = vperm.xlu0 %10439, %v10939_v24  }
  0x60   : > { %380 = vperm.xlu2 %10448, %v10942_v25  }
  0x67   : > { %374 = vperm.xlu1 %10447, %v10942_v25   ;;  %907 = vperm.xlu0 %10439, %v10951_v27  }
  0x68   : > { %10450 = vset.pattern.permute.xlu2 %v10840_v1 }
  0x6f   : > { %10449 = vset.pattern.permute.xlu1 %v10866_v6  ;;  %972 = vperm.xlu0 %10439, %v10957_v28  }
  0x70   : > { %400 = vperm.xlu2 %10450, %v10960_v29  }
  0x72   : > { %v297_v62 = vpop.permute.xlu2 %296 }
  0x73   : > { %vm1101_vm4 = vcmp.eq.s32.totalorder %v297_v62, %v11093_v8 }
  0x77   : > { %393 = vperm.xlu1 %10449, %v10877_v9   ;;  %1037 = vperm.xlu0 %10439, %v10969_v31  }
  0x78   : > { %413 = vperm.xlu2 %10450, %v10972_v32  }
  0x7f   : > { %406 = vperm.xlu1 %10449, %v10960_v29   ;;  %10489 = vset.pattern.permute.xlu0 %v10866_v6 }
  0x80   : > { %10452 = vset.pattern.permute.xlu2 %v10866_v6 }
  0x82   : > { %v303_v50 = vpop.permute.xlu2 %302 }
  0x83   : > { %vm1102_vm5 = vcmp.eq.s32.totalorder %v303_v50, %v11093_v8 }
  0x87   : > { %10451 = vset.pattern.permute.xlu1 %v10840_v1  ;;  %276 = vperm.xlu0 %10489, %v10858_v4  }
  0x88   : > { %432 = vperm.xlu2 %10452, %v10981_v33  }
  0x89   : > { %v10986_v34 = vpop.permute.xlu0 %270  ;;  %v284_v51 = vpop.permute.xlu1 %283 }
  0x8a   : > { %vm1097_vm0 = vcmp.eq.s32.totalorder %v10986_v34, %v11093_v8  ;;  %v11104_v34 = vperm.slane %v10899_v14, 1  ;;  %vm1099_vm3 = vcmp.eq.s32.totalorder %v284_v51, %v11093_v8  ;;  %v9704_v51 = vsel %vm1101_vm4, 1.0, %v15149_v46 }
  0x8b   : > { %v9700_v48 = vsel %vm1097_vm0, 1.0, %v15149_v46 }
  0x8c   : > { %v1481_v12 = vpack.c.bf16 %v9700_v48, %v9700_v48  ;;  %15361 = vst [vmem:[#allocation42_spill] sm:$0xff] %v11104_v34  ;;  %v316_v48 = vpop.permute.xlu2 %315 }
  0x8d   : > { %vm1104_vm6 = vcmp.eq.s32.totalorder %v316_v48, %v11093_v8  ;;  %v11151_v48 = vperm.slane %v10899_v14, 6 }
  0x8e   : > { %v5577_v57 = vunpack.c.l.b16 %v1481_v12 }
  0x8f   : > { %426 = vperm.xlu1 %10451, %v10981_v33   ;;  %354 = vperm.xlu0 %10489, %v10913_v18   ;;  %15366 = vst [vmem:[#allocation46_spill] sm:$0xff] %v11151_v48 }
  0x90   : > { %445 = vperm.xlu2 %10452, %v10989_v35  }
  0x91   : > { %v10994_v36 = vpop.permute.xlu0 %322 }
  0x92   : > { %vm1105_vm8 = vcmp.eq.s32.totalorder %v10994_v36, %v11093_v8 }
  0x97   : > { %439 = vperm.xlu1 %10451, %v10989_v35   ;;  %419 = vperm.xlu0 %10489, %v10972_v32  }
  0x98   : > { %10454 = vset.pattern.permute.xlu2 %v10840_v1 }
  0x99   : > { %v10999_v37 = vpop.permute.xlu0 %387 }
  0x9f   : > { %10453 = vset.pattern.permute.xlu1 %v10866_v6  ;;  %484 = vperm.xlu0 %10489, %v11006_v39  }
  0xa0   : > { %465 = vperm.xlu2 %10454, %v11002_v38  }
  0xa1   : > { %v11009_v40 = vpop.permute.xlu0 %452 }
  0xa7   : > { %458 = vperm.xlu1 %10453, %v10883_v10   ;;  %549 = vperm.xlu0 %10489, %v11055_v53   ;;  %v11261_v10 = vperm.slane %v10935_v23, 0 }
  0xa8   : > { %478 = vperm.xlu2 %10454, %v11006_v39  }
  0xa9   : > { %v11014_v41 = vpop.permute.xlu0 %517  ;;  %15376 = vst [vmem:[#allocation56_spill] sm:$0xff] %v11261_v10 }
  0xaf   : > { %471 = vperm.xlu1 %10453, %v11002_v38  }
  0xb0   : > { %10456 = vset.pattern.permute.xlu2 %v10866_v6 }
  0xb1   : > { %v11018_v42 = vpop.permute.xlu0 %582 }
  0xb7   : > { %10455 = vset.pattern.permute.xlu1 %v10840_v1 }
  0xb8   : > { %497 = vperm.xlu2 %10456, %v11021_v43  }
  0xb9   : > { %v11025_v44 = vpop.permute.xlu0 %647 }
  0xba   : > { %15349 = vst [vmem:[#allocation30_spill] sm:$0xff] %v11025_v44 }
  0xbf   : > { %491 = vperm.xlu1 %10455, %v11021_v43  }
  0xc0   : > { %510 = vperm.xlu2 %10456, %v11028_v45  }
  0xc1   : > { %v11035_v47 = vpop.permute.xlu0 %712 }
  0xc2   : > { %15351 = vst [vmem:[#allocation32_spill] sm:$0xff] %v11035_v47 }
  0xc7   : > { %504 = vperm.xlu1 %10455, %v11028_v45  }
  0xc8   : > { %10458 = vset.pattern.permute.xlu2 %v10840_v1 }
  0xc9   : > { %v11042_v49 = vpop.permute.xlu0 %777 }
  0xca   : > { %15352 = vst [vmem:[#allocation33_spill] sm:$0xff] %v11042_v49 }
  0xcf   : > { %10457 = vset.pattern.permute.xlu1 %v10866_v6 }
  0xd0   : > { %530 = vperm.xlu2 %10458, %v11051_v52  }
  0xd1   : > { %v11058_v54 = vpop.permute.xlu0 %842 }
  0xd2   : > { %15355 = vst [vmem:[#allocation36_spill] sm:$0xff] %v11058_v54 }
  0xd7   : > { %523 = vperm.xlu1 %10457, %v10894_v13   ;;  %v11205_v13 = vperm.slane %v10918_v19, 4 }
  0xd8   : > { %543 = vperm.xlu2 %10458, %v11055_v53  }
  0xd9   : > { %v11072_v58 = vpop.permute.xlu0 %907  ;;  %15371 = vst [vmem:[#allocation51_spill] sm:$0xff] %v11205_v13 }
  0xda   : > { %15356 = vst [vmem:[#allocation37_spill] sm:$0xff] %v11072_v58 }
  0xdf   : > { %536 = vperm.xlu1 %10457, %v11051_v52  }
  0xe0   : > { %10460 = vset.pattern.permute.xlu2 %v10866_v6 }
  0xe1   : > { %v11079_v60 = vpop.permute.xlu0 %972 }
  0xe2   : > { %15357 = vst [vmem:[#allocation38_spill] sm:$0xff] %v11079_v60  ;;  %v11108_v60 = vperm.slane %v10899_v14, 2 }
  0xe4   : > { %15362 = vst [vmem:[#allocation43_spill] sm:$0xff] %v11108_v60  ;;  %614 = vperm.xlu0 %10489, %v11108_v60  }
  0xe7   : > { %10459 = vset.pattern.permute.xlu1 %v10840_v1 }
  0xe8   : > { %562 = vperm.xlu2 %10460, %v11082_v61  }
  0xe9   : > { %v11090_v2 = vpop.permute.xlu0 %1037 }
  0xea   : > { %15360 = vst [vmem:[#allocation41_spill] sm:$0xff] %v11090_v2  ;;  %v290_v2 = vpop.permute.xlu1 %289 }
  0xeb   : > { %vm1100_vm2 = vcmp.eq.s32.totalorder %v290_v2, %v11093_v8 }
  0xec   : > { %v9703_v12 = vsel %vm1100_vm2, 1.0, %v15149_v46  ;;  %vm1115_vm2 = vcmp.eq.s32.totalorder %v10999_v37, %v11093_v8 }
  0xef   : > { %556 = vperm.xlu1 %10459, %v11082_v61  }
  0xf0   : > { %575 = vperm.xlu2 %10460, %v11087_v63  }
  0xf7   : > { %569 = vperm.xlu1 %10459, %v11087_v63  }
  0xf8   : > { %10462 = vset.pattern.permute.xlu2 %v10840_v1 }
  0xf9   : > { %v277_v55 = vpop.permute.xlu0 %276 }
  0xfa   : > { %vm1098_vm1 = vcmp.eq.s32.totalorder %v277_v55, %v11093_v8  ;;  %v9702_v55 = vsel %vm1099_vm3, 1.0, %v15149_v46 }
  0xfb   : > { %v9701_v0 = vsel %vm1098_vm1, 1.0, %v15149_v46 }
  0xfc   : > { %v1482_v56 = vpack.c.bf16 %v9701_v0, %v9701_v0  ;;  %v1484_v0 = vpack.c.bf16 %v9703_v12, %v9703_v12  ;;  %v9705_v12 = vsel %vm1102_vm5, 1.0, %v15149_v46 }
  0xfe   : > { %v5578_v59 = vunpack.c.l.b16 %v1482_v56  ;;  %v11117_v56 = vpop.permute.xlu2 %335 }
  0xff   : > { %10461 = vset.pattern.permute.xlu1 %v10866_v6  ;;  %vm1107_vm10 = vcmp.eq.s32.totalorder %v11117_v56, %v11093_v8 }
 0x100   : > { %v5705_v58 = vpack.c.b16 %v5578_v59, %v5577_v57  ;;  %595 = vperm.xlu2 %10462, %v11104_v34   ;;  %v1483_v57 = vpack.c.bf16 %v9702_v55, %v9702_v55  ;;  %v5580_v59 = vunpack.c.l.b16 %v1484_v0  ;;  %v11129_v55 = vperm.slane %v10899_v14, 3 }
 0x101   : > { %v1485_v0 = vpack.c.bf16 %v9704_v51, %v9704_v51  ;;  %v15365_v51 = vmov 0.0  }
 0x102   : > { %7253 = vmatmul.bf16.vlgmr.msra.gmra.mxu0 %v5705_v58  ;;  %v5579_v54 = vunpack.c.l.b16 %v1483_v57  ;;  %15363 = vst [vmem:[#allocation44_spill] sm:$0xff] %v11129_v55 }
 0x103   : > { %v5581_v62 = vunpack.c.l.b16 %v1485_v0 }
 0x104   : > { %v5706_v2 = vpack.c.b16 %v5580_v59, %v5579_v54  ;;  %v1486_v54 = vpack.c.bf16 %v9705_v12, %v9705_v12  ;;  %v11136_v59 = vperm.slane %v10899_v14, 4  ;;  %v9707_v12 = vsel %vm1104_vm6, 1.0, %v15365_v51 }
 0x106   : > { %v11124_v58 = vpop.permute.xlu2 %348  ;;  %v5582_v50 = vunpack.c.l.b16 %v1486_v54  ;;  %15364 = vst [vmem:[#allocation45_spill] sm:$0xff] %v11136_v59  ;;  %v1488_v54 = vpack.c.bf16 %v9707_v12, %v9707_v12 }
 0x107   : > { %588 = vperm.xlu1 %10461, %v10903_v15   ;;  %vm1109_vm13 = vcmp.eq.s32.totalorder %v11124_v58, %v11093_v8 }
 0x108   : > { %608 = vperm.xlu2 %10462, %v11108_v60   ;;  %v5707_v46 = vpack.c.b16 %v5582_v50, %v5581_v62  ;;  %v5584_v50 = vunpack.c.l.b16 %v1488_v54 }
 0x10e   : > { %v11133_v57 = vpop.permute.xlu2 %367 }
 0x10f   : > { %601 = vperm.xlu1 %10461, %v11104_v34   ;;  %vm1112_vm14 = vcmp.eq.s32.totalorder %v11133_v57, %v11093_v8 }
 0x110   : > { %10464 = vset.pattern.permute.xlu2 %v10866_v6 }
 0x112   : > { %7258 = vmatmul.bf16.gmra.mxu0 %v5706_v2  ;;  %v310_v2 = vpop.permute.xlu1 %309 }
 0x113   : > { %vm1103_vm7 = vcmp.eq.s32.totalorder %v310_v2, %v11093_v8  ;;  %v11155_v2 = vperm.slane %v10899_v14, 7 }
 0x114   : > { %v9706_v60 = vsel %vm1103_vm7, 1.0, %v15365_v51 }
 0x115   : > { %v1487_v49 = vpack.c.bf16 %v9706_v60, %v9706_v60  ;;  %15367 = vst [vmem:[#allocation47_spill] sm:$0xff] %v11155_v2  ;;  %679 = vperm.xlu0 %10489, %v11155_v2  }
 0x116   : > { %v11144_v0 = vpop.permute.xlu2 %380 }
 0x117   : > { %10463 = vset.pattern.permute.xlu1 %v10840_v1  ;;  %v5583_v62 = vunpack.c.l.b16 %v1487_v49  ;;  %v9708_v49 = vsel %vm1105_vm8, 1.0, %v15365_v51  ;;  %vm1114_vm0 = vcmp.eq.s32.totalorder %v11144_v0, %v11093_v8 }
 0x118   : > { %627 = vperm.xlu2 %10464, %v11129_v55   ;;  %v1489_v12 = vpack.c.bf16 %v9708_v49, %v9708_v49 }
 0x119   : > { %v5708_v63 = vpack.c.b16 %v5584_v50, %v5583_v62 }
 0x11a   : > { %v5585_v62 = vunpack.c.l.b16 %v1489_v12 }
 0x11d   : > { %744 = vperm.xlu0 %10489, %v11205_v13  }
 0x11e   : > { %v11148_v15 = vpop.permute.xlu2 %400 }
 0x11f   : > { %621 = vperm.xlu1 %10463, %v11129_v55   ;;  %vm1117_vm4 = vcmp.eq.s32.totalorder %v11148_v15, %v11093_v8 }
 0x120   : > { %640 = vperm.xlu2 %10464, %v11136_v59  }
 0x122   : > { %7263 = vmatmul.bf16.gmra.mxu0 %v5707_v46  ;;  %v329_v46 = vpop.permute.xlu1 %328 }
 0x123   : > { %vm1106_vm9 = vcmp.eq.s32.totalorder %v329_v46, %v11093_v8  ;;  %v9710_v46 = vsel %vm1107_vm10, 1.0, %v15365_v51 }
 0x124   : > { %v9709_v60 = vsel %vm1106_vm9, 1.0, %v15365_v51  ;;  %v1491_v12 = vpack.c.bf16 %v9710_v46, %v9710_v46 }
 0x125   : > { %v1490_v14 = vpack.c.bf16 %v9709_v60, %v9709_v60  ;;  %v11178_v60 = vperm.slane %v10918_v19, 0 }
 0x126   : > { %v11165_v54 = vpop.permute.xlu2 %413  ;;  %v5587_v56 = vunpack.c.l.b16 %v1491_v12 }
 0x127   : > { %634 = vperm.xlu1 %10463, %v11136_v59   ;;  %v5586_v50 = vunpack.c.l.b16 %v1490_v14  ;;  %15368 = vst [vmem:[#allocation48_spill] sm:$0xff] %v11178_v60  ;;  %vm1119_vm7 = vcmp.eq.s32.totalorder %v11165_v54, %v11093_v8 }
 0x128   : > { %10466 = vset.pattern.permute.xlu2 %v10840_v1 }
 0x129   : > { %v5709_v36 = vpack.c.b16 %v5586_v50, %v5585_v62  ;;  %v11185_v50 = vperm.slane %v10918_v19, 1 }
 0x12a   : > { %v342_v59 = vpop.permute.xlu1 %341 }
 0x12b   : > { %vm1108_vm11 = vcmp.eq.s32.totalorder %v342_v59, %v11093_v8  ;;  %15369 = vst [vmem:[#allocation49_spill] sm:$0xff] %v11185_v50 }
 0x12c   : > { %v9711_v49 = vsel %vm1108_vm11, 1.0, %v15365_v51 }
 0x12d   : > { %v1492_v14 = vpack.c.bf16 %v9711_v49, %v9711_v49 }
 0x12f   : > { %10465 = vset.pattern.permute.xlu1 %v10866_v6  ;;  %v5588_v59 = vunpack.c.l.b16 %v1492_v14  ;;  %v9712_v14 = vsel %vm1109_vm13, 1.0, %v15365_v51 }
 0x130   : > { %660 = vperm.xlu2 %10466, %v11151_v48  }
 0x132   : > { %7268 = vmatmul.bf16.gmra.mxu0 %v5708_v63  ;;  %v11173_v63 = vpop.permute.xlu2 %432  ;;  %v362_v49 = vpop.permute.xlu1 %361 }
 0x133   : > { %vm1111_vm15 = vcmp.eq.s32.totalorder %v362_v49, %v11093_v8  ;;  %vm1122_vm8 = vcmp.eq.s32.totalorder %v11173_v63, %v11093_v8 }
 0x137   : > { %653 = vperm.xlu1 %10465, %v10911_v17  }
 0x138   : > { %673 = vperm.xlu2 %10466, %v11155_v2   ;;  %v5710_v2 = vpack.c.b16 %v5588_v59, %v5587_v56  ;;  %v1493_v56 = vpack.c.bf16 %v9712_v14, %v9712_v14 }
 0x13a   : > { %v11182_v62 = vpop.permute.xlu2 %445  ;;  %v375_v58 = vpop.permute.xlu1 %374 }
 0x13b   : > { %vm1113_vm1 = vcmp.eq.s32.totalorder %v375_v58, %v11093_v8  ;;  %vm1124_vm10 = vcmp.eq.s32.totalorder %v11182_v62, %v11093_v8 }
 0x13f   : > { %666 = vperm.xlu1 %10465, %v11151_v48  }
 0x140   : > { %10468 = vset.pattern.permute.xlu2 %v10866_v6 }
 0x142   : > { %7273 = vmatmul.bf16.gmra.mxu0 %v5709_v36  ;;  %v355_v36 = vpop.permute.xlu0 %354  ;;  %v11192_v46 = vpop.permute.xlu2 %465 }
 0x143   : > { %vm1110_vm12 = vcmp.eq.s32.totalorder %v355_v36, %v11093_v8  ;;  %v11201_v36 = vperm.slane %v10918_v19, 3  ;;  %v394_v14 = vpop.permute.xlu1 %393 }
 0x144   : > { %v9713_v12 = vsel %vm1110_vm12, 1.0, %v15365_v51  ;;  %vm1116_vm3 = vcmp.eq.s32.totalorder %v394_v14, %v11093_v8  ;;  %vm1125_vm12 = vcmp.eq.s32.totalorder %v11009_v40, %v11093_v8 }
 0x145   : > { %v1494_v17 = vpack.c.bf16 %v9713_v12, %v9713_v12  ;;  %15370 = vst [vmem:[#allocation50_spill] sm:$0xff] %v11201_v36  ;;  %v9714_v12 = vsel %vm1111_vm15, 1.0, %v15365_v51 }
 0x147   : > { %10467 = vset.pattern.permute.xlu1 %v10840_v1  ;;  %v5590_v59 = vunpack.c.l.b16 %v1494_v17  ;;  %v9715_v17 = vsel %vm1112_vm14, 1.0, %v15365_v51  ;;  %vm1127_vm14 = vcmp.eq.s32.totalorder %v11192_v46, %v11093_v8 }
 0x148   : > { %692 = vperm.xlu2 %10468, %v11178_v60  }
 0x14a   : > { %v11198_v53 = vpop.permute.xlu2 %478 }
 0x14f   : > { %686 = vperm.xlu1 %10467, %v11178_v60  }
 0x150   : > { %705 = vperm.xlu2 %10468, %v11185_v50  }
 0x152   : > { %7278 = vmatmul.bf16.gmra.mxu0 %v5710_v2  ;;  %v5589_v2 = vunpack.c.l.b16 %v1493_v56  ;;  %v1496_v56 = vpack.c.bf16 %v9715_v17, %v9715_v17  ;;  %v9717_v17 = vsel %vm1114_vm0, 1.0, %v15365_v51  ;;  %vm1129_vm0 = vcmp.eq.s32.totalorder %v11198_v53, %v11093_v8 }
 0x154   : > { %v5711_v45 = vpack.c.b16 %v5590_v59, %v5589_v2  ;;  %v11215_v59 = vpop.permute.xlu2 %497  ;;  %v5592_v47 = vunpack.c.l.b16 %v1496_v56 }
 0x157   : > { %699 = vperm.xlu1 %10467, %v11185_v50   ;;  %v1495_v50 = vpack.c.bf16 %v9714_v12, %v9714_v12  ;;  %v9716_v12 = vsel %vm1113_vm1, 1.0, %v15365_v51 }
 0x158   : > { %10470 = vset.pattern.permute.xlu2 %v10840_v1  ;;  %v1497_v56 = vpack.c.bf16 %v9716_v12, %v9716_v12 }
 0x159   : > { %v5591_v2 = vunpack.c.l.b16 %v1495_v50  ;;  %v11228_v50 = vperm.slane %v10918_v19, 5 }
 0x15a   : > { %v5593_v58 = vunpack.c.l.b16 %v1497_v56 }
 0x15b   : > { %v5712_v57 = vpack.c.b16 %v5592_v47, %v5591_v2  ;;  %15372 = vst [vmem:[#allocation52_spill] sm:$0xff] %v11228_v50  ;;  %v1498_v47 = vpack.c.bf16 %v9717_v17, %v9717_v17 }
 0x15c   : > { %v11223_v49 = vpop.permute.xlu2 %510 }
 0x15f   : > { %10469 = vset.pattern.permute.xlu1 %v10866_v6 }
 0x160   : > { %725 = vperm.xlu2 %10470, %v11201_v36  }
 0x162   : > { %7283 = vmatmul.bf16.gmra.mxu0 %v5711_v45  ;;  %v407_v45 = vpop.permute.xlu1 %406 }
 0x163   : > { %vm1118_vm5 = vcmp.eq.s32.totalorder %v407_v45, %v11093_v8 }
 0x164   : > { %v11234_v0 = vpop.permute.xlu2 %530 }
 0x167   : > { %718 = vperm.xlu1 %10469, %v10922_v20  }
 0x168   : > { %738 = vperm.xlu2 %10470, %v11205_v13   ;;  %v5594_v13 = vunpack.c.l.b16 %v1498_v47  ;;  %v9719_v47 = vsel %vm1116_vm3, 1.0, %v15365_v51 }
 0x16a   : > { %v11232_v2 = vpop.permute.xlu1 %426  ;;  %v5713_v39 = vpack.c.b16 %v5594_v13, %v5593_v58  ;;  %v1500_v58 = vpack.c.bf16 %v9719_v47, %v9719_v47  ;;  %v9720_v47 = vsel %vm1117_vm4, 1.0, %v15365_v51  ;;  %vm1134_vm4 = vcmp.eq.s32.totalorder %v11223_v49, %v11093_v8 }
 0x16b   : > { %vm1121_vm9 = vcmp.eq.s32.totalorder %v11232_v2, %v11093_v8 }
 0x16c   : > { %v11248_v12 = vpop.permute.xlu2 %543 }
 0x16f   : > { %731 = vperm.xlu1 %10469, %v11201_v36  }
 0x170   : > { %10472 = vset.pattern.permute.xlu2 %v10866_v6 }
 0x172   : > { %7288 = vmatmul.bf16.gmra.mxu0 %v5712_v57  ;;  %v11237_v57 = vperm.slane %v10918_v19, 6  ;;  %v11246_v17 = vpop.permute.xlu1 %439  ;;  %v9718_v19 = vsel %vm1115_vm2, 1.0, %v15365_v51  ;;  %vm1132_vm2 = vcmp.eq.s32.totalorder %v11215_v59, %v11093_v8 }
 0x173   : > { %v1499_v13 = vpack.c.bf16 %v9718_v19, %v9718_v19  ;;  %vm1123_vm11 = vcmp.eq.s32.totalorder %v11246_v17, %v11093_v8 }
 0x174   : > { %15373 = vst [vmem:[#allocation53_spill] sm:$0xff] %v11237_v57 }
 0x175   : > { %v5595_v14 = vunpack.c.l.b16 %v1499_v13  ;;  %v9721_v13 = vsel %vm1118_vm5, 1.0, %v15365_v51 }
 0x177   : > { %10471 = vset.pattern.permute.xlu1 %v10840_v1 }
 0x178   : > { %757 = vperm.xlu2 %10472, %v11228_v50  }
 0x17a   : > { %v11256_v37 = vpop.permute.xlu1 %458 }
 0x17b   : > { %vm1126_vm13 = vcmp.eq.s32.totalorder %v11256_v37, %v11093_v8 }
 0x17f   : > { %751 = vperm.xlu1 %10471, %v11228_v50   ;;  %v11240_v20 = vpop.f32.mrf.mxu0 }
 0x180   : > { %15374 = vst [vmem:[#allocation54_spill] sm:$0xff] %v11240_v20  ;;  %770 = vperm.xlu2 %10472, %v11237_v57   ;;  %v11258_v20 = vpop.permute.xlu2 %562 }
 0x182   : > { %7293 = vmatmul.bf16.gmra.mxu0 %v5713_v39  ;;  %v5596_v39 = vunpack.c.l.b16 %v1500_v58  ;;  %v11276_v58 = vpop.permute.xlu1 %471 }
 0x183   : > { %vm1128_vm15 = vcmp.eq.s32.totalorder %v11276_v58, %v11093_v8 }
 0x184   : > { %v5714_v19 = vpack.c.b16 %v5596_v39, %v5595_v14  ;;  %v1501_v14 = vpack.c.bf16 %v9720_v47, %v9720_v47  ;;  %v1502_v39 = vpack.c.bf16 %v9721_v13, %v9721_v13  ;;  %v11297_v13 = vperm.slane %v10935_v23, 2 }
 0x186   : > { %v5597_v15 = vunpack.c.l.b16 %v1501_v14  ;;  %v5598_v32 = vunpack.c.l.b16 %v1502_v39  ;;  %15381 = vst [vmem:[#allocation61_spill] sm:$0xff] %v11297_v13  ;;  %v9722_v14 = vsel %vm1119_vm7, 1.0, %v15365_v51 }
 0x187   : > { %764 = vperm.xlu1 %10471, %v11237_v57   ;;  %v11253_v56 = vpop.f32.mrf.mxu0  ;;  %v11267_v57 = vperm.slane %v10935_v23, 1 }
 0x188   : > { %15375 = vst [vmem:[#allocation55_spill] sm:$0xff] %v11253_v56  ;;  %10474 = vset.pattern.permute.xlu2 %v10840_v1  ;;  %v11281_v56 = vpop.permute.xlu2 %575 }
 0x189   : > { %15378 = vst [vmem:[#allocation58_spill] sm:$0xff] %v11267_v57  ;;  %809 = vperm.xlu0 %10489, %v11267_v57  }
 0x18a   : > { %v11284_v45 = vpop.permute.xlu1 %491 }
 0x18b   : > { %vm1131_vm3 = vcmp.eq.s32.totalorder %v11284_v45, %v11093_v8 }
 0x18f   : > { %10473 = vset.pattern.permute.xlu1 %v10866_v6  ;;  %v11264_v35 = vpop.f32.mrf.mxu0 }
 0x190   : > { %15377 = vst [vmem:[#allocation57_spill] sm:$0xff] %v11264_v35  ;;  %790 = vperm.xlu2 %10474, %v11261_v10   ;;  %v11289_v25 = vpop.permute.xlu2 %595 }
 0x192   : > { %7298 = vmatmul.bf16.gmra.mxu0 %v5714_v19  ;;  %v420_v19 = vpop.permute.xlu0 %419  ;;  %v11300_v39 = vpop.permute.xlu1 %504 }
 0x193   : > { %vm1120_vm6 = vcmp.eq.s32.totalorder %v420_v19, %v11093_v8  ;;  %vm1133_vm5 = vcmp.eq.s32.totalorder %v11300_v39, %v11093_v8 }
 0x194   : > { %v9723_v47 = vsel %vm1120_vm6, 1.0, %v15365_v51  ;;  %vm1135_vm6 = vcmp.eq.s32.totalorder %v11014_v41, %v11093_v8 }
 0x197   : > { %783 = vperm.xlu1 %10473, %v10928_v21   ;;  %v11279_v35 = vpop.f32.mrf.mxu0  ;;  %v5715_v21 = vpack.c.b16 %v5598_v32, %v5597_v15  ;;  %v1504_v15 = vpack.c.bf16 %v9723_v47, %v9723_v47 }
 0x198   : > { %15379 = vst [vmem:[#allocation59_spill] sm:$0xff] %v11279_v35  ;;  %803 = vperm.xlu2 %10474, %v11267_v57   ;;  %v11306_v19 = vpop.permute.xlu2 %608 }
 0x199   : > { %v5600_v54 = vunpack.c.l.b16 %v1504_v15  ;;  %v9724_v15 = vsel %vm1121_vm9, 1.0, %v15365_v51 }
 0x19a   : > { %v11311_v35 = vpop.permute.xlu1 %523 }
 0x19b   : > { %vm1136_vm7 = vcmp.eq.s32.totalorder %v11311_v35, %v11093_v8 }
 0x19f   : > { %796 = vperm.xlu1 %10473, %v11261_v10   ;;  %v11287_v9 = vpop.f32.mrf.mxu0 }
 0x1a0   : > { %15380 = vst [vmem:[#allocation60_spill] sm:$0xff] %v11287_v9  ;;  %10476 = vset.pattern.permute.xlu2 %v10866_v6  ;;  %v11309_v9 = vperm.slane %v10935_v23, 3  ;;  %v11321_v47 = vpop.permute.xlu2 %627 }
 0x1a2   : > { %7303 = vmatmul.bf16.gmra.mxu0 %v5715_v21  ;;  %v1503_v21 = vpack.c.bf16 %v9722_v14, %v9722_v14  ;;  %15383 = vst [vmem:[#allocation63_spill] sm:$0xff] %v11309_v9  ;;  %v9725_v14 = vsel %vm1122_vm8, 1.0, %v15365_v51  ;;  %vm1137_vm8 = vcmp.eq.s32.totalorder %v11234_v0, %v11093_v8 }
 0x1a4   : > { %v5599_v57 = vunpack.c.l.b16 %v1503_v21 }
 0x1a6   : > { %v5716_v50 = vpack.c.b16 %v5600_v54, %v5599_v57  ;;  %v1506_v57 = vpack.c.bf16 %v9725_v14, %v9725_v14  ;;  %v1505_v54 = vpack.c.bf16 %v9724_v15, %v9724_v15 }
 0x1a7   : > { %10475 = vset.pattern.permute.xlu1 %v10840_v1  ;;  %v11303_v32 = vpop.f32.mrf.mxu0 }
 0x1a8   : > { %15382 = vst [vmem:[#allocation62_spill] sm:$0xff] %v11303_v32  ;;  %822 = vperm.xlu2 %10476, %v11297_v13   ;;  %v5602_v63 = vunpack.c.l.b16 %v1506_v57  ;;  %v5601_v32 = vunpack.c.l.b16 %v1505_v54  ;;  %v11331_v2 = vpop.permute.xlu2 %640  ;;  %v9727_v57 = vsel %vm1124_vm10, 1.0, %v15365_v51  ;;  %v9726_v54 = vsel %vm1123_vm11, 1.0, %v15365_v51 }
 0x1a9   : > { %15386 = vst [vmem:[#allocation66_spill] sm:$0xff] %v11331_v2  ;;  %vm1139_vm10 = vcmp.eq.s32.totalorder %v11248_v12, %v11093_v8 }
 0x1aa   : > { %v5717_v14 = vpack.c.b16 %v5602_v63, %v5601_v32  ;;  %v1508_v63 = vpack.c.bf16 %v9727_v57, %v9727_v57 }
 0x1ac   : > { %v5604_v62 = vunpack.c.l.b16 %v1508_v63  ;;  %v11375_v63 = vperm.slane %v10935_v23, 7 }
 0x1ae   : > { %15393 = vst [vmem:[#allocation73_spill] sm:$0xff] %v11375_v63 }
 0x1af   : > { %816 = vperm.xlu1 %10475, %v11297_v13   ;;  %v11314_v44 = vpop.f32.mrf.mxu0 }
 0x1b0   : > { %15384 = vst [vmem:[#allocation64_spill] sm:$0xff] %v11314_v44  ;;  %835 = vperm.xlu2 %10476, %v11309_v9   ;;  %v11329_v44 = vpop.permute.xlu1 %536 }
 0x1b1   : > { %vm1138_vm9 = vcmp.eq.s32.totalorder %v11329_v44, %v11093_v8 }
 0x1b2   : > { %7308 = vmatmul.bf16.gmra.mxu0 %v5716_v50  ;;  %v11334_v50 = vperm.slane %v10935_v23, 5 }
 0x1b4   : > { %15387 = vst [vmem:[#allocation67_spill] sm:$0xff] %v11334_v50 }
 0x1b7   : > { %829 = vperm.xlu1 %10475, %v11309_v9   ;;  %v11326_v21 = vpop.f32.mrf.mxu0  ;;  %v11340_v9 = vperm.slane %v10935_v23, 6 }
 0x1b8   : > { %15385 = vst [vmem:[#allocation65_spill] sm:$0xff] %v11326_v21  ;;  %10478 = vset.pattern.permute.xlu2 %v10840_v1  ;;  %v11343_v15 = vpop.permute.xlu1 %556  ;;  %v1507_v21 = vpack.c.bf16 %v9726_v54, %v9726_v54  ;;  %v9729_v54 = vsel %vm1126_vm13, 1.0, %v15365_v51 }
 0x1b9   : > { %15389 = vst [vmem:[#allocation69_spill] sm:$0xff] %v11340_v9  ;;  %874 = vperm.xlu0 %10489, %v11340_v9   ;;  %vm1141_vm13 = vcmp.eq.s32.totalorder %v11343_v15, %v11093_v8 }
 0x1ba   : > { %v5603_v60 = vunpack.c.l.b16 %v1507_v21  ;;  %v9728_v21 = vsel %vm1125_vm12, 1.0, %v15365_v51  ;;  %vm1142_vm12 = vcmp.eq.s32.totalorder %v11258_v20, %v11093_v8 }
 0x1bc   : > { %v5718_v18 = vpack.c.b16 %v5604_v62, %v5603_v60  ;;  %v1509_v62 = vpack.c.bf16 %v9728_v21, %v9728_v21  ;;  %v9730_v21 = vsel %vm1127_vm14, 1.0, %v15365_v51  ;;  %vm1144_vm14 = vcmp.eq.s32.totalorder %v11281_v56, %v11093_v8 }
 0x1bf   : > { %10477 = vset.pattern.permute.xlu1 %v10866_v6  ;;  %v11337_v13 = vpop.f32.mrf.mxu0 }
 0x1c0   : > { %15388 = vst [vmem:[#allocation68_spill] sm:$0xff] %v11337_v13  ;;  %855 = vperm.xlu2 %10478, %v11334_v50   ;;  %v11352_v13 = vpop.permute.xlu2 %660  ;;  %v11358_v2 = vpop.permute.xlu1 %569 }
 0x1c2   : > { %7313 = vmatmul.bf16.gmra.mxu0 %v5717_v14 }
 0x1c7   : > { %848 = vperm.xlu1 %10477, %v10939_v24   ;;  %v11355_v32 = vpop.f32.mrf.mxu0 }
 0x1c8   : > { %15390 = vst [vmem:[#allocation70_spill] sm:$0xff] %v11355_v32  ;;  %868 = vperm.xlu2 %10478, %v11340_v9   ;;  %v11363_v14 = vpop.permute.xlu2 %673  ;;  %v11370_v57 = vpop.permute.xlu1 %588  ;;  %v1510_v9 = vpack.c.bf16 %v9729_v54, %v9729_v54  ;;  %v9731_v54 = vsel %vm1128_vm15, 1.0, %v15365_v51  ;;  %vm1143_vm15 = vcmp.eq.s32.totalorder %v11358_v2, %v11093_v8 }
 0x1c9   : > { %15392 = vst [vmem:[#allocation72_spill] sm:$0xff] %v11363_v14 }
 0x1ca   : > { %v5606_v37 = vunpack.c.l.b16 %v1510_v9 }
 0x1cf   : > { %861 = vperm.xlu1 %10477, %v11334_v50   ;;  %v11361_v17 = vpop.f32.mrf.mxu0 }
 0x1d0   : > { %15391 = vst [vmem:[#allocation71_spill] sm:$0xff] %v11361_v17  ;;  %10480 = vset.pattern.permute.xlu2 %v10866_v6  ;;  %v11381_v40 = vpop.permute.xlu2 %692  ;;  %v11383_v24 = vpop.permute.xlu1 %601  ;;  %v11386_v17 = vperm.slane %v10947_v26, 0 }
 0x1d1   : > { %15395 = vst [vmem:[#allocation75_spill] sm:$0xff] %v11381_v40 }
 0x1d2   : > { %7318 = vmatmul.bf16.gmra.mxu0 %v5718_v18  ;;  %v5605_v18 = vunpack.c.l.b16 %v1509_v62  ;;  %15396 = vst [vmem:[#allocation76_spill] sm:$0xff] %v11386_v17 }
 0x1d4   : > { %v5719_v32 = vpack.c.b16 %v5606_v37, %v5605_v18  ;;  %v1511_v37 = vpack.c.bf16 %v9730_v21, %v9730_v21 }
 0x1d6   : > { %v5607_v46 = vunpack.c.l.b16 %v1511_v37 }
 0x1d7   : > { %10479 = vset.pattern.permute.xlu1 %v10840_v1  ;;  %v11378_v60 = vpop.f32.mrf.mxu0 }
 0x1d8   : > { %15394 = vst [vmem:[#allocation74_spill] sm:$0xff] %v11378_v60  ;;  %887 = vperm.xlu2 %10480, %v11375_v63   ;;  %v11396_v9 = vpop.permute.xlu2 %705  ;;  %v11400_v62 = vpop.permute.xlu1 %621 }
 0x1d9   : > { %15398 = vst [vmem:[#allocation78_spill] sm:$0xff] %v11396_v9  ;;  %v11409_v9 = vperm.slane %v10947_v26, 2 }
 0x1db   : > { %15401 = vst [vmem:[#allocation81_spill] sm:$0xff] %v11409_v9 }
 0x1df   : > { %881 = vperm.xlu1 %10479, %v11375_v63   ;;  %v11389_v23 = vpop.f32.mrf.mxu0 }
 0x1e0   : > { %15397 = vst [vmem:[#allocation77_spill] sm:$0xff] %v11389_v23  ;;  %900 = vperm.xlu2 %10480, %v11386_v17   ;;  %v1512_v23 = vpack.c.bf16 %v9731_v54, %v9731_v54  ;;  %v11406_v58 = vpop.permute.xlu2 %725  ;;  %v11411_v40 = vpop.permute.xlu1 %634 }
 0x1e1   : > { %15400 = vst [vmem:[#allocation80_spill] sm:$0xff] %v11406_v58  ;;  %v11442_v58 = vperm.slane %v10965_v30, 5 }
 0x1e2   : > { %7323 = vmatmul.bf16.gmra.mxu0 %v5719_v32  ;;  %v5608_v60 = vunpack.c.l.b16 %v1512_v23  ;;  %v485_v32 = vpop.permute.xlu0 %484  ;;  %v9732_v23 = vsel %vm1129_vm0, 1.0, %v15365_v51  ;;  %vm1145_vm0 = vcmp.eq.s32.totalorder %v11018_v42, %v11093_v8  ;;  %v11663_v42 = vadd.s32 9, %v10840_v1 }
 0x1e3   : > { %vm1130_vm1 = vcmp.eq.s32.totalorder %v485_v32, %v11093_v8  ;;  %15408 = vst [vmem:[#allocation88_spill] sm:$0xff] %v11442_v58 }
 0x1e4   : > { %v5720_v21 = vpack.c.b16 %v5608_v60, %v5607_v46  ;;  %v9733_v54 = vsel %vm1130_vm1, 1.0, %v15365_v51  ;;  %v11434_v46 = vperm.slane %v10965_v30, 0  ;;  %v9734_v30 = vsel %vm1131_vm3, 1.0, %v15365_v51 }
 0x1e5   : > { %v1514_v53 = vpack.c.bf16 %v9733_v54, %v9733_v54  ;;  %v11457_v54 = vperm.slane %v10947_v26, 4  ;;  %v1515_v59 = vpack.c.bf16 %v9734_v30, %v9734_v30  ;;  %vm1146_vm1 = vcmp.eq.s32.totalorder %v11370_v57, %v11093_v8 }
 0x1e6   : > { %15406 = vst [vmem:[#allocation86_spill] sm:$0xff] %v11434_v46  ;;  %vm1148_vm3 = vcmp.eq.s32.totalorder %v11383_v24, %v11093_v8 }
 0x1e7   : > { %894 = vperm.xlu1 %10479, %v11386_v17   ;;  %v11403_v18 = vpop.f32.mrf.mxu0  ;;  %v11417_v17 = vperm.slane %v10947_v26, 3  ;;  %15411 = vst [vmem:[#allocation91_spill] sm:$0xff] %v11457_v54 }
 0x1e8   : > { %15399 = vst [vmem:[#allocation79_spill] sm:$0xff] %v11403_v18  ;;  %10482 = vset.pattern.permute.xlu2 %v10840_v1  ;;  %v11426_v37 = vpop.permute.xlu2 %738  ;;  %v1513_v18 = vpack.c.bf16 %v9732_v23, %v9732_v23 }
 0x1e9   : > { %15403 = vst [vmem:[#allocation83_spill] sm:$0xff] %v11417_v17  ;;  %939 = vperm.xlu0 %10489, %v11417_v17  }
 0x1ea   : > { %15404 = vst [vmem:[#allocation84_spill] sm:$0xff] %v11426_v37  ;;  %v5609_v32 = vunpack.c.l.b16 %v1513_v18  ;;  %v9735_v18 = vsel %vm1132_vm2, 1.0, %v15365_v51  ;;  %vm1147_vm2 = vcmp.eq.s32.totalorder %v11289_v25, %v11093_v8 }
 0x1ef   : > { %10481 = vset.pattern.permute.xlu1 %v10866_v6  ;;  %v11414_v14 = vpop.f32.mrf.mxu0 }
 0x1f0   : > { %15402 = vst [vmem:[#allocation82_spill] sm:$0xff] %v11414_v14  ;;  %920 = vperm.xlu2 %10482, %v11409_v9   ;;  %v11428_v14 = vpop.permute.xlu1 %653 }
 0x1f1   : > { %1004 = vperm.xlu0 %10489, %v11434_v46  }
 0x1f2   : > { %7328 = vmatmul.bf16.gmra.mxu0 %v5720_v21  ;;  %v5610_v21 = vunpack.c.l.b16 %v1514_v53 }
 0x1f7   : > { %913 = vperm.xlu1 %10481, %v10951_v27   ;;  %v11431_v60 = vpop.f32.mrf.mxu0  ;;  %v11444_v27 = vpop.permute.xlu2 %757 }
 0x1f8   : > { %15405 = vst [vmem:[#allocation85_spill] sm:$0xff] %v11431_v60  ;;  %933 = vperm.xlu2 %10482, %v11417_v17   ;;  %v5721_v60 = vpack.c.b16 %v5610_v21, %v5609_v32  ;;  %v11447_v23 = vpop.permute.xlu1 %666  ;;  %v11463_v32 = vadd.s32 1, %v10840_v1  ;;  %v1516_v21 = vpack.c.bf16 %v9735_v18, %v9735_v18 }
 0x1f9   : > { %15409 = vst [vmem:[#allocation89_spill] sm:$0xff] %v11444_v27  ;;  %1069 = vperm.xlu0 %10489, %v11442_v58   ;;  %v11472_v27 = vperm.slane %v10947_v26, 5 }
 0x1fa   : > { %15410 = vst [vmem:[#allocation90_spill] sm:$0xff] %v11447_v23  ;;  %v5612_v17 = vunpack.c.l.b16 %v1516_v21  ;;  %v9737_v21 = vsel %vm1134_vm4, 1.0, %v15365_v51  ;;  %vm1149_vm4 = vcmp.eq.s32.totalorder %v11306_v19, %v11093_v8 }
 0x1fb   : > { %15414 = vst [vmem:[#allocation94_spill] sm:$0xff] %v11472_v27 }
 0x1ff   : > { %926 = vperm.xlu1 %10481, %v11409_v9   ;;  %v11439_v37 = vpop.f32.mrf.mxu0 }
 0x200   : > { %15407 = vst [vmem:[#allocation87_spill] sm:$0xff] %v11439_v37  ;;  %10484 = vset.pattern.permute.xlu2 %v10866_v6  ;;  %v11466_v45 = vpop.permute.xlu1 %686  ;;  %v5611_v37 = vunpack.c.l.b16 %v1515_v59  ;;  %v9736_v59 = vsel %vm1133_vm5, 1.0, %v15365_v51 }
 0x201   : > { %10494 = vset.pattern.permute.xlu0 %v11463_v32 }
 0x202   : > { %7333 = vmatmul.bf16.gmra.mxu0 %v5721_v60  ;;  %v11469_v60 = vpop.permute.xlu2 %770  ;;  %v5722_v23 = vpack.c.b16 %v5612_v17, %v5611_v37  ;;  %v1518_v37 = vpack.c.bf16 %v9737_v21, %v9737_v21 }
 0x203   : > { %15413 = vst [vmem:[#allocation93_spill] sm:$0xff] %v11469_v60  ;;  %v11499_v60 = vperm.slane %v10947_v26, 7  ;;  %v9739_v26 = vsel %vm1136_vm7, 1.0, %v15365_v51  ;;  %vm1151_vm7 = vcmp.eq.s32.totalorder %v11400_v62, %v11093_v8 }
 0x204   : > { %v5614_v39 = vunpack.c.l.b16 %v1518_v37 }
 0x205   : > { %15419 = vst [vmem:[#allocation99_spill] sm:$0xff] %v11499_v60 }
 0x207   : > { %10483 = vset.pattern.permute.xlu1 %v10840_v1  ;;  %v11460_v53 = vpop.f32.mrf.mxu0 }
 0x208   : > { %15412 = vst [vmem:[#allocation92_spill] sm:$0xff] %v11460_v53  ;;  %952 = vperm.xlu2 %10484, %v11457_v54   ;;  %v11485_v30 = vpop.permute.xlu1 %699 }
 0x209   : > { %1613 = vperm.xlu0 %10494, %v10858_v4  }
 0x20a   : > { %v11483_v18 = vpop.permute.xlu2 %790 }
 0x20b   : > { %15416 = vst [vmem:[#allocation96_spill] sm:$0xff] %v11483_v18 }
 0x20f   : > { %946 = vperm.xlu1 %10483, %v11457_v54   ;;  %v11475_v53 = vpop.f32.mrf.mxu0 }
 0x210   : > { %15415 = vst [vmem:[#allocation95_spill] sm:$0xff] %v11475_v53  ;;  %965 = vperm.xlu2 %10484, %v11472_v27   ;;  %v1517_v53 = vpack.c.bf16 %v9736_v59, %v9736_v59  ;;  %v11494_v49 = vpop.permute.xlu1 %718 }
 0x211   : > { %1673 = vperm.xlu0 %10494, %v10905_v16  }
 0x212   : > { %7338 = vmatmul.bf16.gmra.mxu0 %v5722_v23  ;;  %v5613_v23 = vunpack.c.l.b16 %v1517_v53  ;;  %v11496_v18 = vpop.permute.xlu2 %803  ;;  %v9738_v53 = vsel %vm1135_vm6, 1.0, %v15365_v51  ;;  %vm1152_vm6 = vcmp.eq.s32.totalorder %v11321_v47, %v11093_v8 }
 0x213   : > { %15418 = vst [vmem:[#allocation98_spill] sm:$0xff] %v11496_v18 }
 0x217   : > { %959 = vperm.xlu1 %10483, %v11472_v27   ;;  %v11490_v17 = vpop.f32.mrf.mxu0 }
 0x218   : > { %15417 = vst [vmem:[#allocation97_spill] sm:$0xff] %v11490_v17  ;;  %10486 = vset.pattern.permute.xlu2 %v10840_v1  ;;  %v5723_v17 = vpack.c.b16 %v5614_v39, %v5613_v23  ;;  %v11512_v21 = vpop.permute.xlu1 %731  ;;  %v1519_v39 = vpack.c.bf16 %v9738_v53, %v9738_v53  ;;  %v1520_v23 = vpack.c.bf16 %v9739_v26, %v9739_v26  ;;  %v9740_v53 = vsel %vm1137_vm8, 1.0, %v15365_v51 }
 0x219   : > { %1733 = vperm.xlu0 %10494, %v10960_v29   ;;  %v9741_v26 = vsel %vm1138_vm9, 1.0, %v15365_v51  ;;  %v1521_v0 = vpack.c.bf16 %v9740_v53, %v9740_v53 }
 0x21a   : > { %v11514_v59 = vpop.permute.xlu2 %822  ;;  %v5615_v35 = vunpack.c.l.b16 %v1519_v39  ;;  %v5616_v41 = vunpack.c.l.b16 %v1520_v23  ;;  %v11537_v39 = vld [vmem:[%s10853_s27 + $0x38] sm:$0xff] }
 0x21b   : > { %15421 = vst [vmem:[#allocation101_spill] sm:$0xff] %v11514_v59  ;;  %v11540_v23 = vperm.slane %v11537_v39, 1 }
 0x21d   : > { %15425 = vst [vmem:[#allocation105_spill] sm:$0xff] %v11540_v23 }
 0x21f   : > { %10485 = vset.pattern.permute.xlu1 %v10866_v6  ;;  %v11502_v27 = vpop.f32.mrf.mxu0 }
 0x220   : > { %15420 = vst [vmem:[#allocation100_spill] sm:$0xff] %v11502_v27  ;;  %985 = vperm.xlu2 %10486, %v11499_v60  }
 0x221   : > { %1793 = vperm.xlu0 %10494, %v11002_v38  }
 0x222   : > { %7343 = vmatmul.bf16.gmra.mxu0 %v5723_v17  ;;  %v11521_v17 = vpop.permute.xlu1 %751  ;;  %v11526_v59 = vpop.permute.xlu2 %835 }
 0x223   : > { %15424 = vst [vmem:[#allocation104_spill] sm:$0xff] %v11526_v59  ;;  %v11552_v59 = vperm.slane %v11537_v39, 2 }
 0x225   : > { %15429 = vst [vmem:[#allocation109_spill] sm:$0xff] %v11552_v59 }
 0x227   : > { %978 = vperm.xlu1 %10485, %v10957_v28   ;;  %v11517_v37 = vpop.f32.mrf.mxu0  ;;  %v5724_v28 = vpack.c.b16 %v5616_v41, %v5615_v35 }
 0x228   : > { %15422 = vst [vmem:[#allocation102_spill] sm:$0xff] %v11517_v37  ;;  %998 = vperm.xlu2 %10486, %v11434_v46   ;;  %v1522_v46 = vpack.c.bf16 %v9741_v26, %v9741_v26  ;;  %v550_v37 = vpop.permute.xlu0 %549  ;;  %v9742_v26 = vsel %vm1139_vm10, 1.0, %v15365_v51  ;;  %vm1153_vm10 = vcmp.eq.s32.totalorder %v11411_v40, %v11093_v8 }
 0x229   : > { %1853 = vperm.xlu0 %10494, %v11051_v52   ;;  %vm1140_vm11 = vcmp.eq.s32.totalorder %v550_v37, %v11093_v8 }
 0x22a   : > { %v11542_v35 = vpop.permute.xlu1 %764  ;;  %v5618_v44 = vunpack.c.l.b16 %v1522_v46 }
 0x22b   : > { %15426 = vst [vmem:[#allocation106_spill] sm:$0xff] %v11542_v35 }
 0x22f   : > { %991 = vperm.xlu1 %10485, %v11499_v60   ;;  %v11524_v27 = vpop.f32.mrf.mxu0 }
 0x230   : > { %15423 = vst [vmem:[#allocation103_spill] sm:$0xff] %v11524_v27  ;;  %10488 = vset.pattern.permute.xlu2 %v10866_v6  ;;  %v11547_v27 = vpop.permute.xlu2 %855  ;;  %v11575_v12 = vpop.permute.xlu0 %614 }
 0x231   : > { %15428 = vst [vmem:[#allocation108_spill] sm:$0xff] %v11547_v27  ;;  %1913 = vperm.xlu0 %10494, %v11104_v34   ;;  %v11580_v27 = vperm.slane %v11537_v39, 4  ;;  %vm1150_vm5 = vcmp.eq.s32.totalorder %v11575_v12, %v11093_v8 }
 0x232   : > { %7348 = vmatmul.bf16.gmra.mxu0 %v5724_v28  ;;  %v5617_v28 = vunpack.c.l.b16 %v1521_v0  ;;  %v11554_v18 = vpop.permute.xlu1 %783  ;;  %v9743_v0 = vsel %vm1140_vm11, 1.0, %v15365_v51 }
 0x233   : > { %15434 = vst [vmem:[#allocation114_spill] sm:$0xff] %v11580_v27 }
 0x234   : > { %v5725_v53 = vpack.c.b16 %v5618_v44, %v5617_v28  ;;  %v1523_v28 = vpack.c.bf16 %v9742_v26, %v9742_v26  ;;  %v1524_v44 = vpack.c.bf16 %v9743_v0, %v9743_v0 }
 0x236   : > { %v5619_v37 = vunpack.c.l.b16 %v1523_v28 }
 0x237   : > { %10487 = vset.pattern.permute.xlu1 %v10840_v1  ;;  %v11545_v41 = vpop.f32.mrf.mxu0 }
 0x238   : > { %15427 = vst [vmem:[#allocation107_spill] sm:$0xff] %v11545_v41  ;;  %1017 = vperm.xlu2 %10488, %v11540_v23   ;;  %v11564_v46 = vpop.permute.xlu2 %868  ;;  %v11593_v28 = vpop.permute.xlu0 %679 }
 0x239   : > { %1973 = vperm.xlu0 %10494, %v11151_v48   ;;  %15431 = vst [vmem:[#allocation111_spill] sm:$0xff] %v11564_v46 }
 0x23a   : > { %v11572_v41 = vpop.permute.xlu1 %796 }
 0x23f   : > { %1011 = vperm.xlu1 %10487, %v11540_v23   ;;  %v11557_v35 = vpop.f32.mrf.mxu0 }
 0x240   : > { %15430 = vst [vmem:[#allocation110_spill] sm:$0xff] %v11557_v35  ;;  %1030 = vperm.xlu2 %10488, %v11552_v59   ;;  %v11577_v46 = vpop.permute.xlu2 %887  ;;  %v11604_v20 = vpop.permute.xlu0 %744 }
 0x241   : > { %2033 = vperm.xlu0 %10494, %v11201_v36   ;;  %15433 = vst [vmem:[#allocation113_spill] sm:$0xff] %v11577_v46 }
 0x242   : > { %7353 = vmatmul.bf16.gmra.mxu0 %v5725_v53  ;;  %v5620_v53 = vunpack.c.l.b16 %v1524_v44  ;;  %v11586_v0 = vpop.permute.xlu1 %816  ;;  %v9745_v44 = vsel %vm1142_vm12, 1.0, %v15365_v51 }
 0x244   : > { %v5726_v26 = vpack.c.b16 %v5620_v53, %v5619_v37 }
 0x247   : > { %1024 = vperm.xlu1 %10487, %v11552_v59   ;;  %v11569_v35 = vpop.f32.mrf.mxu0 }
 0x248   : > { %15432 = vst [vmem:[#allocation112_spill] sm:$0xff] %v11569_v35  ;;  %10491 = vset.pattern.permute.xlu2 %v10840_v1  ;;  %v11597_v37 = vpop.permute.xlu2 %900  ;;  %v1526_v35 = vpack.c.bf16 %v9745_v44, %v9745_v44  ;;  %v9746_v44 = vsel %vm1143_vm15, 1.0, %v15365_v51 }
 0x249   : > { %2093 = vperm.xlu0 %10494, %v11261_v10   ;;  %15436 = vst [vmem:[#allocation116_spill] sm:$0xff] %v11597_v37 }
 0x24a   : > { %v11606_v15 = vpop.permute.xlu1 %829 }
 0x24f   : > { %10490 = vset.pattern.permute.xlu1 %v10866_v6  ;;  %v11583_v59 = vpop.f32.mrf.mxu0 }
 0x250   : > { %15435 = vst [vmem:[#allocation115_spill] sm:$0xff] %v11583_v59  ;;  %1050 = vperm.xlu2 %10491, %v11580_v27   ;;  %v9744_v59 = vsel %vm1141_vm13, 1.0, %v15365_v51  ;;  %v11608_v36 = vpop.permute.xlu2 %920  ;;  %vm1156_vm13 = vcmp.eq.s32.totalorder %v11428_v14, %v11093_v8  ;;  %v15473_v14 = vld [vmem:[#allocation19_spill] sm:$0xff] }
 0x251   : > { %v1525_v10 = vpack.c.bf16 %v9744_v59, %v9744_v59  ;;  %2153 = vperm.xlu0 %10494, %v11334_v50   ;;  %v11619_v59 = vpop.permute.xlu0 %809 }
 0x252   : > { %7358 = vmatmul.bf16.gmra.mxu0 %v5726_v26  ;;  %v5622_v26 = vunpack.c.l.b16 %v1526_v35  ;;  %v9747_v35 = vsel %vm1144_vm14, 1.0, %v15365_v51  ;;  %vm1157_vm14 = vcmp.eq.s32.totalorder %v11352_v13, %v11093_v8 }
 0x253   : > { %v5621_v46 = vunpack.c.l.b16 %v1525_v10  ;;  %v11621_v10 = vpop.permute.xlu1 %848  ;;  %v1528_v56 = vpack.c.bf16 %v9747_v35, %v9747_v35 }
 0x255   : > { %v5624_v2 = vunpack.c.l.b16 %v1528_v56  ;;  %v9748_v56 = vsel %vm1145_vm0, 1.0, %v15365_v51 }
 0x257   : > { %1043 = vperm.xlu1 %10490, %v10969_v31   ;;  %v11600_v53 = vpop.f32.mrf.mxu0  ;;  %v5727_v31 = vpack.c.b16 %v5622_v26, %v5621_v46  ;;  %v11626_v46 = vperm.slane %v11537_v39, 6  ;;  %v1527_v26 = vpack.c.bf16 %v9746_v44, %v9746_v44 }
 0x258   : > { %15437 = vst [vmem:[#allocation117_spill] sm:$0xff] %v11600_v53  ;;  %1063 = vperm.xlu2 %10491, %v11442_v58   ;;  %v11631_v58 = vpop.permute.xlu2 %933  ;;  %v11640_v53 = vperm.slane %v11537_v39, 7 }
 0x259   : > { %2213 = vperm.xlu0 %10494, %v11409_v9   ;;  %15439 = vst [vmem:[#allocation119_spill] sm:$0xff] %v11626_v46  ;;  %v5623_v9 = vunpack.c.l.b16 %v1527_v26  ;;  %v9749_v26 = vsel %vm1146_vm1, 1.0, %v15365_v51 }
 0x25a   : > { %15441 = vst [vmem:[#allocation121_spill] sm:$0xff] %v11640_v53  ;;  %v1530_v57 = vpack.c.bf16 %v9749_v26, %v9749_v26  ;;  %v9750_v26 = vsel %vm1147_vm2, 1.0, %v15365_v51  ;;  %vm1160_vm2 = vcmp.eq.s32.totalorder %v11593_v28, %v11093_v8 }
 0x25b   : > { %v5728_v35 = vpack.c.b16 %v5624_v2, %v5623_v9 }
 0x25f   : > { %1056 = vperm.xlu1 %10490, %v11580_v27   ;;  %v11611_v37 = vpop.f32.mrf.mxu0 }
 0x260   : > { %15438 = vst [vmem:[#allocation118_spill] sm:$0xff] %v11611_v37  ;;  %10493 = vset.pattern.permute.xlu2 %v10866_v6  ;;  %v11637_v37 = vpop.permute.xlu1 %861 }
 0x261   : > { %2273 = vperm.xlu0 %10494, %v11499_v60  }
 0x262   : > { %7363 = vmatmul.bf16.gmra.mxu0 %v5727_v31  ;;  %v11635_v31 = vpop.permute.xlu0 %874  ;;  %v11651_v44 = vpop.permute.xlu2 %952 }
 0x263   : > { %15443 = vst [vmem:[#allocation123_spill] sm:$0xff] %v11651_v44 }
 0x267   : > { %10492 = vset.pattern.permute.xlu1 %v10840_v1  ;;  %v11629_v6 = vpop.f32.mrf.mxu0 }
 0x268   : > { %15440 = vst [vmem:[#allocation120_spill] sm:$0xff] %v11629_v6  ;;  %1082 = vperm.xlu2 %10493, %v11626_v46   ;;  %v11657_v9 = vpop.permute.xlu1 %881 }
 0x269   : > { %2333 = vperm.xlu0 %10494, %v11580_v27   ;;  %v1529_v27 = vpack.c.bf16 %v9748_v56, %v9748_v56 }
 0x26a   : > { %v11653_v39 = vpop.permute.xlu0 %939  ;;  %v11669_v50 = vpop.permute.xlu2 %965 }
 0x26b   : > { %15444 = vst [vmem:[#allocation124_spill] sm:$0xff] %v11653_v39  ;;  %v5625_v60 = vunpack.c.l.b16 %v1529_v27 }
 0x26c   : > { %15447 = vst [vmem:[#allocation127_spill] sm:$0xff] %v11669_v50 }
 0x26f   : > { %1076 = vperm.xlu1 %10492, %v11626_v46   ;;  %v11643_v6 = vpop.f32.mrf.mxu0 }
 0x270   : > { %15442 = vst [vmem:[#allocation122_spill] sm:$0xff] %v11643_v6  ;;  %1095 = vperm.xlu2 %10493, %v11640_v53   ;;  %v5626_v6 = vunpack.c.l.b16 %v1530_v57  ;;  %v11671_v44 = vpop.permute.xlu1 %894  ;;  %v9751_v57 = vsel %vm1148_vm3, 1.0, %v15365_v51 }
 0x271   : > { %10543 = vset.pattern.permute.xlu0 %v11663_v42  ;;  %v1532_v25 = vpack.c.bf16 %v9751_v57, %v9751_v57 }
 0x272   : > { %7368 = vmatmul.bf16.gmra.mxu0 %v5728_v35  ;;  %v11667_v35 = vpop.permute.xlu0 %1004  ;;  %v5729_v1 = vpack.c.b16 %v5626_v6, %v5625_v60 }
 0x273   : > { %15446 = vst [vmem:[#allocation126_spill] sm:$0xff] %v11667_v35  ;;  %v5628_v24 = vunpack.c.l.b16 %v1532_v25 }
 0x277   : > { %1089 = vperm.xlu1 %10492, %v11640_v53   ;;  %v11660_v2 = vpop.f32.mrf.mxu0 }
 0x278   : > { %15445 = vst [vmem:[#allocation125_spill] sm:$0xff] %v11660_v2  ;;  %10496 = vset.pattern.permute.xlu2 %v11463_v32  ;;  %v11688_v60 = vpop.permute.xlu1 %913 }
 0x279   : > { %1643 = vperm.xlu0 %10543, %v10860_v5  }
 0x27a   : > { %v11682_v27 = vpop.permute.xlu0 %1069  ;;  %v11684_v56 = vpop.permute.xlu2 %985 }
 0x27b   : > { %15449 = vst [vmem:[#allocation129_spill] sm:$0xff] %v11684_v56  ;;  %vm1220_vm8 = vcmp.eq.s32.totalorder %v11682_v27, %v11093_v8 }
 0x27f   : > { %10495 = vset.pattern.permute.xlu1 %v11663_v42  ;;  %v11674_v53 = vpop.f32.mrf.mxu0 }
 0x280   : > { %15448 = vst [vmem:[#allocation128_spill] sm:$0xff] %v11674_v53  ;;  %1625 = vperm.xlu2 %10496, %v10856_v3   ;;  %v1531_v53 = vpack.c.bf16 %v9750_v26, %v9750_v26  ;;  %v9753_v26 = vsel %vm1150_vm5, 1.0, %v15365_v51 }
 0x281   : > { %1703 = vperm.xlu0 %10543, %v10930_v22  }
 0x282   : > { %7373 = vmatmul.bf16.gmra.mxu0 %v5729_v1  ;;  %v5627_v1 = vunpack.c.l.b16 %v1531_v53  ;;  %v11695_v2 = vpop.permute.xlu0 %1613  ;;  %v11697_v35 = vpop.permute.xlu2 %998  ;;  %v9752_v53 = vsel %vm1149_vm4, 1.0, %v15365_v51 }
 0x283   : > { %15451 = vst [vmem:[#allocation131_spill] sm:$0xff] %v11697_v35 }
 0x284   : > { %v5730_v50 = vpack.c.b16 %v5628_v24, %v5627_v1  ;;  %v1533_v1 = vpack.c.bf16 %v9752_v53, %v9752_v53  ;;  %v1534_v24 = vpack.c.bf16 %v9753_v26, %v9753_v26 }
 0x286   : > { %v5630_v12 = vunpack.c.l.b16 %v1534_v24  ;;  %v9754_v24 = vsel %vm1151_vm7, 1.0, %v15365_v51  ;;  %vm1161_vm7 = vcmp.eq.s32.totalorder %v11466_v45, %v11093_v8 }
 0x287   : > { %1619 = vperm.xlu1 %10495, %v10858_v4   ;;  %v11691_v6 = vpop.f32.mrf.mxu0  ;;  %v11703_v4 = vpop.permute.xlu1 %926 }
 0x288   : > { %15450 = vst [vmem:[#allocation130_spill] sm:$0xff] %v11691_v6  ;;  %1637 = vperm.xlu2 %10496, %v10860_v5   ;;  %v15464_v6 = vld [vmem:[#allocation48_spill] sm:$0xff] }
 0x289   : > { %1763 = vperm.xlu0 %10543, %v10981_v33  }
 0x28a   : > { %v11715_v25 = vpop.permute.xlu0 %1673 }
 0x28f   : > { %1631 = vperm.xlu1 %10495, %v10856_v3   ;;  %v11700_v56 = vpop.f32.mrf.mxu0  ;;  %v11720_v19 = vpop.permute.xlu1 %946 }
 0x290   : > { %15452 = vst [vmem:[#allocation132_spill] sm:$0xff] %v11700_v56  ;;  %10498 = vset.pattern.permute.xlu2 %v11663_v42 }
 0x291   : > { %15455 = vst [vmem:[#allocation135_spill] sm:$0xff] %v11720_v19  ;;  %1823 = vperm.xlu0 %10543, %v11021_v43  }
 0x292   : > { %7378 = vmatmul.bf16.gmra.mxu0 %v5730_v50  ;;  %v11717_v5 = vpop.permute.xlu2 %1017  ;;  %v5629_v50 = vunpack.c.l.b16 %v1533_v1  ;;  %v9755_v1 = vsel %vm1152_vm6, 1.0, %v15365_v51 }
 0x293   : > { %15454 = vst [vmem:[#allocation134_spill] sm:$0xff] %v11717_v5 }
 0x294   : > { %v5731_v56 = vpack.c.b16 %v5630_v12, %v5629_v50  ;;  %v1536_v12 = vpack.c.bf16 %v9755_v1, %v9755_v1 }
 0x297   : > { %10497 = vset.pattern.permute.xlu1 %v11463_v32  ;;  %v11713_v57 = vpop.f32.mrf.mxu0  ;;  %v11736_v26 = vpop.permute.xlu1 %959 }
 0x298   : > { %15453 = vst [vmem:[#allocation133_spill] sm:$0xff] %v11713_v57  ;;  %1655 = vperm.xlu2 %10498, %v10885_v11   ;;  %v11727_v57 = vpop.permute.xlu0 %1733 }
 0x299   : > { %1883 = vperm.xlu0 %10543, %v11082_v61   ;;  %15458 = vst [vmem:[#allocation138_spill] sm:$0xff] %v11736_v26  ;;  %v15468_v26 = vld [vmem:[#allocation52_spill] sm:$0xff] }
 0x29a   : > { %v11734_v53 = vpop.permute.xlu2 %1030 }
 0x29b   : > { %15457 = vst [vmem:[#allocation137_spill] sm:$0xff] %v11734_v53 }
 0x29f   : > { %1649 = vperm.xlu1 %10497, %v10885_v11   ;;  %v11724_v3 = vpop.f32.mrf.mxu0  ;;  %v1535_v11 = vpack.c.bf16 %v9754_v24, %v9754_v24  ;;  %v11747_v62 = vpop.permute.xlu1 %978 }
 0x2a0   : > { %15456 = vst [vmem:[#allocation136_spill] sm:$0xff] %v11724_v3  ;;  %1667 = vperm.xlu2 %10498, %v10868_v7   ;;  %v5632_v3 = vunpack.c.l.b16 %v1536_v12 }
 0x2a1   : > { %1943 = vperm.xlu0 %10543, %v11129_v55   ;;  %15461 = vst [vmem:[#allocation141_spill] sm:$0xff] %v11747_v62  ;;  %v5631_v53 = vunpack.c.l.b16 %v1535_v11 }
 0x2a2   : > { %7383 = vmatmul.bf16.gmra.mxu0 %v5731_v56  ;;  %v11749_v56 = vpop.permute.xlu0 %1793 }
 0x2a3   : > { %v5732_v24 = vpack.c.b16 %v5632_v3, %v5631_v53  ;;  %v9756_v3 = vsel %vm1153_vm10, 1.0, %v15365_v51 }
 0x2a4   : > { %v1537_v62 = vpack.c.bf16 %v9756_v3, %v9756_v3  ;;  %v15471_v3 = vld [vmem:[#allocation30_spill] sm:$0xff] }
 0x2a5   : > { %vm1155_vm12 = vcmp.eq.s32.totalorder %v15471_v3, %v11093_v8 }
 0x2a6   : > { %v5633_v39 = vunpack.c.l.b16 %v1537_v62  ;;  %v9759_v62 = vsel %vm1156_vm13, 1.0, %v15365_v51 }
 0x2a7   : > { %1661 = vperm.xlu1 %10497, %v10868_v7   ;;  %v11741_v50 = vpop.f32.mrf.mxu0  ;;  %v9823_v7 = vsel %vm1220_vm8, 1.0, %v15365_v51  ;;  %v11767_v53 = vpop.permute.xlu1 %991  ;;  %vm2377_vm8 = vcmp.eq.s32.totalorder %v11695_v2, %v11093_v8 }
 0x2a8   : > { %15459 = vst [vmem:[#allocation139_spill] sm:$0xff] %v11741_v50  ;;  %10500 = vset.pattern.permute.xlu2 %v11463_v32  ;;  %v15463_v50 = vld [vmem:[#allocation14_spill] sm:$0xff]  ;;  %v1604_v11 = vpack.c.bf16 %v9823_v7, %v9823_v7 }
 0x2a9   : > { %2003 = vperm.xlu0 %10543, %v15464_v6  }
 0x2aa   : > { %v11745_v47 = vpop.permute.xlu2 %1050  ;;  %v11769_v5 = vpop.permute.xlu0 %1853 }
 0x2ab   : > { %15460 = vst [vmem:[#allocation140_spill] sm:$0xff] %v11745_v47  ;;  %v15465_v47 = vld [vmem:[#allocation66_spill] sm:$0xff] }
 0x2ac   : > { %vm1154_vm9 = vcmp.eq.s32.totalorder %v15465_v47, %v11093_v8  ;;  %15466 = vst [vmem:[#allocation66_spill] sm:$0xff] %v11767_v53  ;;  %v5700_v47 = vunpack.c.l.b16 %v1604_v11 }
 0x2af   : > { %10499 = vset.pattern.permute.xlu1 %v11663_v42  ;;  %v11755_v1 = vpop.f32.mrf.mxu0 }
 0x2b0   : > { %15462 = vst [vmem:[#allocation142_spill] sm:$0xff] %v11755_v1  ;;  %1685 = vperm.xlu2 %10500, %v15463_v50   ;;  %v9757_v1 = vsel %vm1154_vm9, 1.0, %v15365_v51 }
 0x2b1   : > { %2063 = vperm.xlu0 %10543, %v15468_v26   ;;  %v11776_v53 = vpop.permute.xlu1 %1011 }
 0x2b2   : > { %7388 = vmatmul.bf16.gmra.mxu0 %v5732_v24  ;;  %v1064_v27 = vpop.permute.xlu2 %1063  ;;  %v1538_v24 = vpack.c.bf16 %v9757_v1, %v9757_v1  ;;  %v15470_v1 = vld [vmem:[#allocation61_spill] sm:$0xff] }
 0x2b3   : > { %vm1219_vm11 = vcmp.eq.s32.totalorder %v1064_v27, %v11093_v8 }
 0x2b4   : > { %v9822_v12 = vsel %vm1219_vm11, 1.0, %v15365_v51  ;;  %v5634_v19 = vunpack.c.l.b16 %v1538_v24  ;;  %vm1163_vm11 = vcmp.eq.s32.totalorder %v11485_v30, %v11093_v8 }
 0x2b5   : > { %v1603_v35 = vpack.c.bf16 %v9822_v12, %v9822_v12  ;;  %v11781_v12 = vpop.permute.xlu0 %1913 }
 0x2b7   : > { %1679 = vperm.xlu1 %10499, %v10905_v16   ;;  %v11772_v40 = vpop.f32.mrf.mxu0  ;;  %v5699_v7 = vunpack.c.l.b16 %v1603_v35  ;;  %v5733_v16 = vpack.c.b16 %v5634_v19, %v5633_v39  ;;  %v10389_v35 = vld [vmem:[%s15143_s1 + $0x78] sm:$0xff]  ;;  %v10388_v39 = vld [vmem:[%s15143_s1 + $0x70] sm:$0xff]  ;;  %v9758_v19 = vsel %vm1155_vm12, 1.0, %v15365_v51 }
 0x2b8   : > { %15467 = vst [vmem:[#allocation143_spill] sm:$0xff] %v11772_v40  ;;  %1697 = vperm.xlu2 %10500, %v10930_v22   ;;  %7574 = vmatpush.bf16.msrb.mxu1 %v10389_v35  ;;  %v1539_v24 = vpack.c.bf16 %v9758_v19, %v9758_v19  ;;  %v10387_v35 = vld [vmem:[%s15143_s1 + $0x68] sm:$0xff] }
 0x2b9   : > { %v5766_v27 = vpack.c.b16 %v5700_v47, %v5699_v7  ;;  %2123 = vperm.xlu0 %10543, %v15470_v1   ;;  %v11797_v47 = vpop.permute.xlu1 %1024 }
 0x2ba   : > { %v5635_v3 = vunpack.c.l.b16 %v1539_v24  ;;  %v15478_v24 = vld [vmem:[#allocation90_spill] sm:$0xff] }
 0x2bb   : > { %7558 = vmatmul.bf16.vlgmr.msra.gmra.mxu1 %v5766_v27  ;;  %v1540_v27 = vpack.c.bf16 %v9759_v62, %v9759_v62  ;;  %vm1158_vm15 = vcmp.eq.s32.totalorder %v15478_v24, %v11093_v8 }
 0x2bc   : > { %7575 = vmatpush.bf16.msrb.mxu1 %v10388_v39 }
 0x2bd   : > { %v5636_v22 = vunpack.c.l.b16 %v1540_v27 }
 0x2bf   : > { %1691 = vperm.xlu1 %10499, %v15463_v50   ;;  %v11779_v11 = vpop.f32.mrf.mxu0  ;;  %v10386_v50 = vld [vmem:[%s15143_s1 + $0x60] sm:$0xff]  ;;  %v5734_v62 = vpack.c.b16 %v5636_v22, %v5635_v3  ;;  %v10384_v22 = vld [vmem:[%s15143_s1 + $0x50] sm:$0xff]  ;;  %v9761_v3 = vsel %vm1158_vm15, 1.0, %v15365_v51  ;;  %vm1166_vm15 = vcmp.eq.s32.totalorder %v11494_v49, %v11093_v8 }
 0x2c0   : > { %15469 = vst [vmem:[#allocation144_spill] sm:$0xff] %v11779_v11  ;;  %10502 = vset.pattern.permute.xlu2 %v11663_v42  ;;  %7576 = vmatpush.bf16.msrb.mxu1 %v10387_v35  ;;  %v10385_v35 = vld [vmem:[%s15143_s1 + $0x58] sm:$0xff]  ;;  %v1542_v24 = vpack.c.bf16 %v9761_v3, %v9761_v3 }
 0x2c1   : > { %2183 = vperm.xlu0 %10543, %v11375_v63  }
 0x2c2   : > { %7393 = vmatmul.bf16.gmra.mxu0 %v5733_v16  ;;  %v11803_v16 = vpop.permute.xlu0 %1973 }
 0x2c3   : > { %15474 = vst [vmem:[#allocation145_spill] sm:$0xff] %v11803_v16  ;;  %v15477_v16 = vld [vmem:[#allocation7_spill] sm:$0xff] }
 0x2c4   : > { %7577 = vmatpush.bf16.msrb.mxu1 %v10386_v50  ;;  %v9760_v50 = vsel %vm1157_vm14, 1.0, %v15365_v51 }
 0x2c5   : > { %v1541_v13 = vpack.c.bf16 %v9760_v50, %v9760_v50  ;;  %v10382_v50 = vld [vmem:[%s15143_s1 + $0x40] sm:$0xff] }
 0x2c7   : > { %10501 = vset.pattern.permute.xlu1 %v11463_v32  ;;  %v11800_v7 = vpop.f32.mrf.mxu0 }
 0x2c8   : > { %15472 = vst [vmem:[#allocation30_spill] sm:$0xff] %v11800_v7  ;;  %1715 = vperm.xlu2 %10502, %v15473_v14   ;;  %7578 = vmatpush.bf16.msrb.mxu1 %v10385_v35  ;;  %v10383_v35 = vld [vmem:[%s15143_s1 + $0x48] sm:$0xff] }
 0x2c9   : > { %v11812_v39 = vpop.permute.xlu1 %1043  ;;  %2243 = vperm.xlu0 %10543, %v11457_v54  }
 0x2ca   : > { %15475 = vst [vmem:[#allocation146_spill] sm:$0xff] %v11812_v39  ;;  %v11826_v27 = vpop.permute.xlu0 %2033 }
 0x2cb   : > { %15479 = vst [vmem:[#allocation90_spill] sm:$0xff] %v11826_v27  ;;  %v5637_v27 = vunpack.c.l.b16 %v1541_v13 }
 0x2cc   : > { %7579 = vmatpush.bf16.msrb.mxu1 %v10384_v22 }
 0x2cf   : > { %1709 = vperm.xlu1 %10501, %v15473_v14   ;;  %v11815_v19 = vpop.f32.mrf.mxu0  ;;  %v1083_v14 = vpop.permute.xlu2 %1082 }
 0x2d0   : > { %15476 = vst [vmem:[#allocation147_spill] sm:$0xff] %v11815_v19  ;;  %1727 = vperm.xlu2 %10502, %v15477_v16   ;;  %vm1222_vm0 = vcmp.eq.s32.totalorder %v1083_v14, %v11093_v8  ;;  %7580 = vmatpush.bf16.msrb.mxu1 %v10383_v35  ;;  %v15484_v14 = vld [vmem:[#allocation24_spill] sm:$0xff] }
 0x2d1   : > { %2303 = vperm.xlu0 %10543, %v11540_v23  }
 0x2d2   : > { %7398 = vmatmul.bf16.gmra.mxu0 %v5734_v62  ;;  %v11837_v62 = vpop.permute.xlu1 %1056  ;;  %v11845_v22 = vpop.permute.xlu0 %2093 }
 0x2d3   : > { %15481 = vst [vmem:[#allocation149_spill] sm:$0xff] %v11837_v62 }
 0x2d4   : > { %15482 = vst [vmem:[#allocation150_spill] sm:$0xff] %v11845_v22  ;;  %7581 = vmatpush.bf16.msrb.mxu1 %v10382_v50  ;;  %v9763_v50 = vsel %vm1160_vm2, 1.0, %v15365_v51 }
 0x2d7   : > { %1721 = vperm.xlu1 %10501, %v15477_v16   ;;  %v11834_v19 = vpop.f32.mrf.mxu0  ;;  %v5638_v16 = vunpack.c.l.b16 %v1542_v24  ;;  %v1096_v7 = vpop.permute.xlu2 %1095  ;;  %v15485_v24 = vld [vmem:[#allocation72_spill] sm:$0xff] }
 0x2d8   : > { %15480 = vst [vmem:[#allocation148_spill] sm:$0xff] %v11834_v19  ;;  %10504 = vset.pattern.permute.xlu2 %v11463_v32  ;;  %v9825_v19 = vsel %vm1222_vm0, 1.0, %v15365_v51  ;;  %vm1159_vm1 = vcmp.eq.s32.totalorder %v15485_v24, %v11093_v8  ;;  %vm1224_vm4 = vcmp.eq.s32.totalorder %v1096_v7, %v11093_v8 }
 0x2d9   : > { %v1606_v11 = vpack.c.bf16 %v9825_v19, %v9825_v19  ;;  %v5735_v40 = vpack.c.b16 %v5638_v16, %v5637_v27  ;;  %2363 = vperm.xlu0 %10543, %v11626_v46   ;;  %v9762_v27 = vsel %vm1159_vm1, 1.0, %v15365_v51  ;;  %v9827_v22 = vsel %vm1224_vm4, 1.0, %v15365_v51 }
 0x2da   : > { %v11868_v28 = vpop.permute.xlu0 %2153  ;;  %v1608_v7 = vpack.c.bf16 %v9827_v22, %v9827_v22 }
 0x2db   : > { %v5702_v16 = vunpack.c.l.b16 %v1606_v11  ;;  %15486 = vst [vmem:[#allocation72_spill] sm:$0xff] %v11868_v28 }
 0x2df   : > { %10503 = vset.pattern.permute.xlu1 %v11663_v42  ;;  %v11851_v3 = vpop.f32.mrf.mxu0 }
 0x2e0   : > { %15483 = vst [vmem:[#allocation151_spill] sm:$0xff] %v11851_v3  ;;  %1745 = vperm.xlu2 %10504, %v15484_v14  }
 0x2e1   : > { %v1077_v13 = vpop.permute.xlu1 %1076 }
 0x2e2   : > { %vm1221_vm3 = vcmp.eq.s32.totalorder %v1077_v13, %v11093_v8  ;;  %7403 = vmatmul.bf16.gmra.mxu0 %v5735_v40  ;;  %v1543_v40 = vpack.c.bf16 %v9762_v27, %v9762_v27  ;;  %v1544_v13 = vpack.c.bf16 %v9763_v50, %v9763_v50 }
 0x2e3   : > { %v9824_v35 = vsel %vm1221_vm3, 1.0, %v15365_v51  ;;  %vm1168_vm3 = vcmp.eq.s32.totalorder %v11512_v21, %v11093_v8 }
 0x2e4   : > { %v1605_v19 = vpack.c.bf16 %v9824_v35, %v9824_v35  ;;  %v5639_v62 = vunpack.c.l.b16 %v1543_v40 }
 0x2e6   : > { %v5701_v3 = vunpack.c.l.b16 %v1605_v19  ;;  %v5640_v19 = vunpack.c.l.b16 %v1544_v13  ;;  %v15489_v13 = vld [vmem:[#allocation26_spill] sm:$0xff] }
 0x2e7   : > { %1739 = vperm.xlu1 %10503, %v10960_v29   ;;  %v11866_v24 = vpop.f32.mrf.mxu0  ;;  %v5704_v29 = vunpack.c.l.b16 %v1608_v7 }
 0x2e8   : > { %v5767_v46 = vpack.c.b16 %v5702_v16, %v5701_v3  ;;  %1757 = vperm.xlu2 %10504, %v10981_v33   ;;  %v5736_v27 = vpack.c.b16 %v5640_v19, %v5639_v62  ;;  %v11877_v3 = vpop.permute.xlu0 %2213  ;;  %v15488_v16 = vld [vmem:[#allocation75_spill] sm:$0xff] }
 0x2e9   : > { %v1090_v11 = vpop.permute.xlu1 %1089  ;;  %15487 = vst [vmem:[#allocation152_spill] sm:$0xff] %v11877_v3  ;;  %vm1162_vm6 = vcmp.eq.s32.totalorder %v15488_v16, %v11093_v8  ;;  %v15491_v3 = vld [vmem:[#allocation8_spill] sm:$0xff] }
 0x2ea   : > { %vm1223_vm5 = vcmp.eq.s32.totalorder %v1090_v11, %v11093_v8  ;;  %7563 = vmatmul.bf16.gmra.mxu1 %v5767_v46  ;;  %v9765_v46 = vsel %vm1162_vm6, 1.0, %v15365_v51 }
 0x2eb   : > { %v9826_v35 = vsel %vm1223_vm5, 1.0, %v15365_v51  ;;  %v1546_v62 = vpack.c.bf16 %v9765_v46, %v9765_v46  ;;  %v1626_v46 = vpop.permute.xlu2 %1625 }
 0x2ec   : > { %v1607_v39 = vpack.c.bf16 %v9826_v35, %v9826_v35  ;;  %vm2379_vm12 = vcmp.eq.s32.totalorder %v1626_v46, %v11093_v8 }
 0x2ed   : > { %v5642_v11 = vunpack.c.l.b16 %v1546_v62 }
 0x2ee   : > { %v5703_v23 = vunpack.c.l.b16 %v1607_v39  ;;  %v9764_v39 = vsel %vm1161_vm7, 1.0, %v15365_v51  ;;  %vm1170_vm7 = vcmp.eq.s32.totalorder %v11604_v20, %v11093_v8 }
 0x2ef   : > { %1751 = vperm.xlu1 %10503, %v15484_v14   ;;  %v11874_v28 = vpop.f32.mrf.mxu0  ;;  %v1545_v50 = vpack.c.bf16 %v9764_v39, %v9764_v39 }
 0x2f0   : > { %v5768_v22 = vpack.c.b16 %v5704_v29, %v5703_v23  ;;  %10506 = vset.pattern.permute.xlu2 %v11663_v42  ;;  %v9828_v29 = vsel %vm2377_vm8, 1.0, %v15365_v51  ;;  %v11894_v7 = vpop.permute.xlu0 %2273 }
 0x2f1   : > { %v2761_v40 = vpack.c.bf16 %v9828_v29, %v9828_v29  ;;  %15490 = vst [vmem:[#allocation75_spill] sm:$0xff] %v11894_v7  ;;  %v5641_v35 = vunpack.c.l.b16 %v1545_v50  ;;  %v9766_v50 = vsel %vm1163_vm11, 1.0, %v15365_v51  ;;  %vm1171_vm11 = vcmp.eq.s32.totalorder %v11521_v17, %v11093_v8 }
 0x2f2   : > { %7408 = vmatmul.bf16.gmra.mxu0 %v5736_v27  ;;  %7568 = vmatmul.bf16.vlgmr.msra.gmra.mxu2 %v5768_v22 }
 0x2f3   : > { %v5961_v19 = vunpack.c.l.b16 %v2761_v40  ;;  %v5737_v39 = vpack.c.b16 %v5642_v11, %v5641_v35  ;;  %v9830_v40 = vsel %vm2379_vm12, 1.0, %v15365_v51  ;;  %vm2387_vm12 = vcmp.eq.s32.totalorder %v11715_v25, %v11093_v8 }
 0x2f7   : > { %10505 = vset.pattern.permute.xlu1 %v11463_v32  ;;  %v11889_v23 = vpop.f32.mrf.mxu0 }
 0x2f8   : > { %1775 = vperm.xlu2 %10506, %v15489_v13   ;;  %v11910_v11 = vpop.permute.xlu0 %2333 }
 0x2f9   : > { %v1620_v45 = vpop.permute.xlu1 %1619  ;;  %15493 = vst [vmem:[#allocation26_spill] sm:$0xff] %v11910_v11 }
 0x2fa   : > { %vm2378_vm9 = vcmp.eq.s32.totalorder %v1620_v45, %v11093_v8  ;;  %v15492_v45 = vld [vmem:[#allocation78_spill] sm:$0xff] }
 0x2fb   : > { %v9829_v2 = vsel %vm2378_vm9, 1.0, %v15365_v51  ;;  %vm1164_vm10 = vcmp.eq.s32.totalorder %v15492_v45, %v11093_v8 }
 0x2fc   : > { %v2762_v27 = vpack.c.bf16 %v9829_v2, %v9829_v2  ;;  %v9767_v62 = vsel %vm1164_vm10, 1.0, %v15365_v51 }
 0x2fd   : > { %v1548_v30 = vpack.c.bf16 %v9767_v62, %v9767_v62  ;;  %v15496_v62 = vld [vmem:[#allocation32_spill] sm:$0xff] }
 0x2fe   : > { %v5962_v22 = vunpack.c.l.b16 %v2762_v27  ;;  %v2763_v27 = vpack.c.bf16 %v9830_v40, %v9830_v40  ;;  %vm1165_vm14 = vcmp.eq.s32.totalorder %v15496_v62, %v11093_v8 }
 0x2ff   : > { %1769 = vperm.xlu1 %10505, %v15489_v13   ;;  %v11897_v16 = vpop.f32.mrf.mxu0  ;;  %v9768_v40 = vsel %vm1165_vm14, 1.0, %v15365_v51 }
 0x300   : > { %v6089_v29 = vpack.c.b16 %v5962_v22, %v5961_v19  ;;  %1787 = vperm.xlu2 %10506, %v15491_v3   ;;  %v1547_v19 = vpack.c.bf16 %v9766_v50, %v9766_v50  ;;  %v5644_v22 = vunpack.c.l.b16 %v1548_v30  ;;  %v1644_v7 = vpop.permute.xlu0 %1643  ;;  %v1638_v50 = vpop.permute.xlu2 %1637 }
 0x301   : > { %v1632_v33 = vpop.permute.xlu1 %1631  ;;  %vm2381_vm0 = vcmp.eq.s32.totalorder %v1638_v50, %v11093_v8  ;;  %vm2382_vm1 = vcmp.eq.s32.totalorder %v1644_v7, %v11093_v8 }
 0x302   : > { %vm2380_vm13 = vcmp.eq.s32.totalorder %v1632_v33, %v11093_v8  ;;  %7413 = vmatmul.bf16.gmra.mxu0 %v5737_v39  ;;  %7582 = vmatmul.bf16.vlgmr.msrb.gmra.mxu1 %v6089_v29  ;;  %v5643_v46 = vunpack.c.l.b16 %v1547_v19  ;;  %v5963_v39 = vunpack.c.l.b16 %v2763_v27  ;;  %v9832_v30 = vsel %vm2381_vm0, 1.0, %v15365_v51 }
 0x303   : > { %v9831_v2 = vsel %vm2380_vm13, 1.0, %v15365_v51  ;;  %v9833_v19 = vsel %vm2382_vm1, 1.0, %v15365_v51 }
 0x304   : > { %v2764_v33 = vpack.c.bf16 %v9831_v2, %v9831_v2  ;;  %v5738_v11 = vpack.c.b16 %v5644_v22, %v5643_v46  ;;  %v9769_v2 = vsel %vm1166_vm15, 1.0, %v15365_v51  ;;  %v2765_v22 = vpack.c.bf16 %v9832_v30, %v9832_v30 }
 0x305   : > { %v1550_v49 = vpack.c.bf16 %v9769_v2, %v9769_v2  ;;  %v2766_v46 = vpack.c.bf16 %v9833_v19, %v9833_v19  ;;  %v9771_v30 = vsel %vm1168_vm3, 1.0, %v15365_v51  ;;  %vm1176_vm3 = vcmp.eq.s32.totalorder %v11554_v18, %v11093_v8 }
 0x306   : > { %v5964_v29 = vunpack.c.l.b16 %v2764_v33  ;;  %v1549_v33 = vpack.c.bf16 %v9768_v40, %v9768_v40  ;;  %v15498_v40 = vld [vmem:[#allocation80_spill] sm:$0xff]  ;;  %v1552_v21 = vpack.c.bf16 %v9771_v30, %v9771_v30 }
 0x307   : > { %1781 = vperm.xlu1 %10505, %v15491_v3   ;;  %v11913_v35 = vpop.f32.mrf.mxu0  ;;  %v15495_v3 = vld [vmem:[#allocation28_spill] sm:$0xff]  ;;  %v5646_v7 = vunpack.c.l.b16 %v1550_v49  ;;  %vm1167_vm2 = vcmp.eq.s32.totalorder %v15498_v40, %v11093_v8 }
 0x308   : > { %10508 = vset.pattern.permute.xlu2 %v11463_v32  ;;  %v6090_v14 = vpack.c.b16 %v5964_v29, %v5963_v39  ;;  %v5966_v39 = vunpack.c.l.b16 %v2766_v46  ;;  %v1656_v29 = vpop.permute.xlu2 %1655  ;;  %v9770_v2 = vsel %vm1167_vm2, 1.0, %v15365_v51 }
 0x309   : > { %vm2384_vm4 = vcmp.eq.s32.totalorder %v1656_v29, %v11093_v8 }
 0x30a   : > { %v9835_v19 = vsel %vm2384_vm4, 1.0, %v15365_v51 }
 0x30b   : > { %v2768_v46 = vpack.c.bf16 %v9835_v19, %v9835_v19  ;;  %v9773_v19 = vsel %vm1170_vm7, 1.0, %v15365_v51  ;;  %vm1178_vm7 = vcmp.eq.s32.totalorder %v11572_v41, %v11093_v8 }
 0x30c   : > { %v1554_v20 = vpack.c.bf16 %v9773_v19, %v9773_v19 }
 0x30f   : > { %10507 = vset.pattern.permute.xlu1 %v11663_v42  ;;  %v11917_v45 = vpop.f32.mrf.mxu0 }
 0x310   : > { %15494 = vst [vmem:[#allocation78_spill] sm:$0xff] %v11917_v45  ;;  %1805 = vperm.xlu2 %10508, %v15495_v3   ;;  %v1668_v29 = vpop.permute.xlu2 %1667 }
 0x311   : > { %v1650_v62 = vpop.permute.xlu1 %1649  ;;  %vm2386_vm8 = vcmp.eq.s32.totalorder %v1668_v29, %v11093_v8 }
 0x312   : > { %7418 = vmatmul.bf16.gmra.mxu0 %v5738_v11  ;;  %7587 = vmatmul.bf16.gmra.mxu1 %v6090_v14  ;;  %v5645_v14 = vunpack.c.l.b16 %v1549_v33  ;;  %v5965_v11 = vunpack.c.l.b16 %v2765_v22  ;;  %vm2383_vm5 = vcmp.eq.s32.totalorder %v1650_v62, %v11093_v8  ;;  %v1551_v22 = vpack.c.bf16 %v9770_v2, %v9770_v2  ;;  %v15501_v2 = vld [vmem:[#allocation84_spill] sm:$0xff] }
 0x313   : > { %v9834_v33 = vsel %vm2383_vm5, 1.0, %v15365_v51  ;;  %vm1169_vm6 = vcmp.eq.s32.totalorder %v15501_v2, %v11093_v8 }
 0x314   : > { %v5739_v45 = vpack.c.b16 %v5646_v7, %v5645_v14  ;;  %v2767_v14 = vpack.c.bf16 %v9834_v33, %v9834_v33  ;;  %v15499_v7 = vld [vmem:[#allocation31_spill] sm:$0xff]  ;;  %v9772_v30 = vsel %vm1169_vm6, 1.0, %v15365_v51  ;;  %v9837_v33 = vsel %vm2386_vm8, 1.0, %v15365_v51 }
 0x317   : > { %1799 = vperm.xlu1 %10507, %v11002_v38   ;;  %v11931_v27 = vpop.f32.mrf.mxu0  ;;  %v6091_v38 = vpack.c.b16 %v5966_v39, %v5965_v11  ;;  %v5967_v11 = vunpack.c.l.b16 %v2767_v14  ;;  %v5968_v39 = vunpack.c.l.b16 %v2768_v46  ;;  %v1553_v46 = vpack.c.bf16 %v9772_v30, %v9772_v30  ;;  %v15503_v30 = vld [vmem:[#allocation89_spill] sm:$0xff] }
 0x318   : > { %1817 = vperm.xlu2 %10508, %v11021_v43   ;;  %v2770_v14 = vpack.c.bf16 %v9837_v33, %v9837_v33  ;;  %vm1172_vm10 = vcmp.eq.s32.totalorder %v15503_v30, %v11093_v8  ;;  %v9774_v33 = vsel %vm1171_vm11, 1.0, %v15365_v51  ;;  %vm1180_vm11 = vcmp.eq.s32.totalorder %v11619_v59, %v11093_v8 }
 0x319   : > { %v1662_v62 = vpop.permute.xlu1 %1661  ;;  %v9775_v19 = vsel %vm1172_vm10, 1.0, %v15365_v51 }
 0x31a   : > { %vm2385_vm9 = vcmp.eq.s32.totalorder %v1662_v62, %v11093_v8  ;;  %v1556_v17 = vpack.c.bf16 %v9775_v19, %v9775_v19  ;;  %v15504_v19 = vld [vmem:[#allocation93_spill] sm:$0xff] }
 0x31b   : > { %vm1174_vm14 = vcmp.eq.s32.totalorder %v15504_v19, %v11093_v8 }
 0x31f   : > { %1811 = vperm.xlu1 %10507, %v15495_v3   ;;  %v11935_v50 = vpop.f32.mrf.mxu0  ;;  %v6092_v3 = vpack.c.b16 %v5968_v39, %v5967_v11  ;;  %v5970_v11 = vunpack.c.l.b16 %v2770_v14  ;;  %v1555_v14 = vpack.c.bf16 %v9774_v33, %v9774_v33  ;;  %v15505_v33 = vld [vmem:[#allocation106_spill] sm:$0xff] }
 0x320   : > { %15497 = vst [vmem:[#allocation32_spill] sm:$0xff] %v11935_v50  ;;  %10510 = vset.pattern.permute.xlu2 %v11663_v42  ;;  %v15500_v50 = vld [vmem:[#allocation10_spill] sm:$0xff]  ;;  %vm1173_vm15 = vcmp.eq.s32.totalorder %v15505_v33, %v11093_v8  ;;  %v1704_v33 = vpop.permute.xlu0 %1703 }
 0x321   : > { %vm2392_vm5 = vcmp.eq.s32.totalorder %v1704_v33, %v11093_v8 }
 0x322   : > { %7423 = vmatmul.bf16.gmra.mxu0 %v5739_v45  ;;  %7592 = vmatmul.bf16.gmra.mxu1 %v6091_v38  ;;  %v5647_v45 = vunpack.c.l.b16 %v1551_v22  ;;  %v5648_v38 = vunpack.c.l.b16 %v1552_v21  ;;  %v9836_v22 = vsel %vm2385_vm9, 1.0, %v15365_v51 }
 0x324   : > { %v5740_v43 = vpack.c.b16 %v5648_v38, %v5647_v45  ;;  %v2769_v45 = vpack.c.bf16 %v9836_v22, %v9836_v22  ;;  %v9838_v22 = vsel %vm2387_vm12, 1.0, %v15365_v51 }
 0x326   : > { %v5969_v38 = vunpack.c.l.b16 %v2769_v45  ;;  %v2771_v45 = vpack.c.bf16 %v9838_v22, %v9838_v22  ;;  %v9777_v22 = vsel %vm1174_vm14, 1.0, %v15365_v51 }
 0x327   : > { %10509 = vset.pattern.permute.xlu1 %v11463_v32  ;;  %v11949_v49 = vpop.f32.mrf.mxu0 }
 0x328   : > { %1835 = vperm.xlu2 %10510, %v15499_v7   ;;  %v6093_v2 = vpack.c.b16 %v5970_v11, %v5969_v38  ;;  %v5971_v38 = vunpack.c.l.b16 %v2771_v45 }
 0x329   : > { %v1680_v39 = vpop.permute.xlu1 %1679 }
 0x32a   : > { %vm2388_vm13 = vcmp.eq.s32.totalorder %v1680_v39, %v11093_v8  ;;  %v1686_v39 = vpop.permute.xlu2 %1685 }
 0x32b   : > { %vm2389_vm0 = vcmp.eq.s32.totalorder %v1686_v39, %v11093_v8 }
 0x32f   : > { %1829 = vperm.xlu1 %10509, %v15499_v7   ;;  %v11953_v40 = vpop.f32.mrf.mxu0  ;;  %v15502_v7 = vld [vmem:[#allocation35_spill] sm:$0xff] }
 0x330   : > { %1847 = vperm.xlu2 %10510, %v15500_v50  }
 0x332   : > { %7428 = vmatmul.bf16.gmra.mxu0 %v5740_v43  ;;  %7597 = vmatmul.bf16.gmra.mxu1 %v6092_v3  ;;  %v5649_v43 = vunpack.c.l.b16 %v1553_v46  ;;  %v5650_v3 = vunpack.c.l.b16 %v1554_v20  ;;  %v9839_v46 = vsel %vm2388_vm13, 1.0, %v15365_v51 }
 0x333   : > { %v2772_v25 = vpack.c.bf16 %v9839_v46, %v9839_v46  ;;  %v9776_v46 = vsel %vm1173_vm15, 1.0, %v15365_v51  ;;  %vm1181_vm15 = vcmp.eq.s32.totalorder %v11586_v0, %v11093_v8 }
 0x334   : > { %v5741_v62 = vpack.c.b16 %v5650_v3, %v5649_v43  ;;  %v5652_v43 = vunpack.c.l.b16 %v1556_v17  ;;  %v5651_v3 = vunpack.c.l.b16 %v1555_v14  ;;  %v9840_v17 = vsel %vm2389_vm0, 1.0, %v15365_v51 }
 0x335   : > { %v5972_v11 = vunpack.c.l.b16 %v2772_v25  ;;  %v1558_v25 = vpack.c.bf16 %v9777_v22, %v9777_v22  ;;  %v15510_v22 = vld [vmem:[#allocation33_spill] sm:$0xff]  ;;  %vm2397_vm0 = vcmp.eq.s32.totalorder %v11727_v57, %v11093_v8 }
 0x336   : > { %v5742_v30 = vpack.c.b16 %v5652_v43, %v5651_v3  ;;  %v1557_v43 = vpack.c.bf16 %v9776_v46, %v9776_v46  ;;  %v2773_v3 = vpack.c.bf16 %v9840_v17, %v9840_v17  ;;  %vm1175_vm2 = vcmp.eq.s32.totalorder %v15510_v22, %v11093_v8  ;;  %v1698_v46 = vpop.permute.xlu2 %1697 }
 0x337   : > { %1841 = vperm.xlu1 %10509, %v15500_v50   ;;  %v11967_v21 = vpop.f32.mrf.mxu0  ;;  %vm2391_vm4 = vcmp.eq.s32.totalorder %v1698_v46, %v11093_v8 }
 0x338   : > { %10512 = vset.pattern.permute.xlu2 %v11463_v32  ;;  %v12007_v39 = vpop.f32.mrf.mxu1 }
 0x339   : > { %15508 = vst [vmem:[#allocation84_spill] sm:$0xff] %v12007_v39 }
 0x33e   : > { %v1716_v46 = vpop.permute.xlu2 %1715 }
 0x33f   : > { %10511 = vset.pattern.permute.xlu1 %v11663_v42  ;;  %v11971_v29 = vpop.f32.mrf.mxu0  ;;  %vm2394_vm8 = vcmp.eq.s32.totalorder %v1716_v46, %v11093_v8 }
 0x340   : > { %1865 = vperm.xlu2 %10512, %v15502_v7   ;;  %v12019_v17 = vpop.f32.mrf.mxu1 }
 0x341   : > { %15511 = vst [vmem:[#allocation89_spill] sm:$0xff] %v12019_v17 }
 0x342   : > { %7433 = vmatmul.bf16.gmra.mxu0 %v5741_v62  ;;  %7602 = vmatmul.bf16.gmra.mxu1 %v6093_v2  ;;  %v1692_v62 = vpop.permute.xlu1 %1691 }
 0x343   : > { %vm2390_vm1 = vcmp.eq.s32.totalorder %v1692_v62, %v11093_v8  ;;  %v5653_v62 = vunpack.c.l.b16 %v1557_v43  ;;  %v9842_v43 = vsel %vm2391_vm4, 1.0, %v15365_v51 }
 0x344   : > { %v9841_v14 = vsel %vm2390_vm1, 1.0, %v15365_v51 }
 0x347   : > { %1859 = vperm.xlu1 %10511, %v11051_v52   ;;  %v11986_v20 = vpop.f32.mrf.mxu0  ;;  %v6094_v52 = vpack.c.b16 %v5972_v11, %v5971_v38  ;;  %v2774_v38 = vpack.c.bf16 %v9841_v14, %v9841_v14  ;;  %v15507_v11 = vld [vmem:[#allocation40_spill] sm:$0xff]  ;;  %v9778_v14 = vsel %vm1175_vm2, 1.0, %v15365_v51 }
 0x348   : > { %1877 = vperm.xlu2 %10512, %v11082_v61   ;;  %v1559_v18 = vpack.c.bf16 %v9778_v14, %v9778_v14  ;;  %v15513_v14 = vld [vmem:[#allocation43_spill] sm:$0xff] }
 0x349   : > { %v5974_v19 = vunpack.c.l.b16 %v2774_v38 }
 0x34a   : > { %v1710_v17 = vpop.permute.xlu1 %1709 }
 0x34b   : > { %vm2393_vm9 = vcmp.eq.s32.totalorder %v1710_v17, %v11093_v8 }
 0x34f   : > { %1871 = vperm.xlu1 %10511, %v15502_v7   ;;  %v11990_v2 = vpop.f32.mrf.mxu0 }
 0x350   : > { %10514 = vset.pattern.permute.xlu2 %v11663_v42 }
 0x352   : > { %7438 = vmatmul.bf16.gmra.mxu0 %v5742_v30  ;;  %7607 = vmatmul.bf16.gmra.mxu1 %v6094_v52  ;;  %v5654_v52 = vunpack.c.l.b16 %v1558_v25  ;;  %v5973_v30 = vunpack.c.l.b16 %v2773_v3  ;;  %v9779_v25 = vsel %vm1176_vm3, 1.0, %v15365_v51  ;;  %v9843_v3 = vsel %vm2392_vm5, 1.0, %v15365_v51 }
 0x353   : > { %vm1183_vm3 = vcmp.eq.s32.totalorder %v11606_v15, %v11093_v8 }
 0x354   : > { %v5743_v7 = vpack.c.b16 %v5654_v52, %v5653_v62  ;;  %v6095_v50 = vpack.c.b16 %v5974_v19, %v5973_v30  ;;  %v1560_v52 = vpack.c.bf16 %v9779_v25, %v9779_v25  ;;  %v2775_v62 = vpack.c.bf16 %v9842_v43, %v9842_v43  ;;  %v15514_v25 = vld [vmem:[#allocation96_spill] sm:$0xff] }
 0x355   : > { %v2776_v30 = vpack.c.bf16 %v9843_v3, %v9843_v3  ;;  %vm1177_vm6 = vcmp.eq.s32.totalorder %v15514_v25, %v11093_v8  ;;  %v9781_v3 = vsel %vm1178_vm7, 1.0, %v15365_v51  ;;  %vm1186_vm7 = vcmp.eq.s32.totalorder %v11621_v10, %v11093_v8 }
 0x356   : > { %v5975_v19 = vunpack.c.l.b16 %v2775_v62  ;;  %v9780_v43 = vsel %vm1177_vm6, 1.0, %v15365_v51 }
 0x357   : > { %10513 = vset.pattern.permute.xlu1 %v11463_v32  ;;  %v12004_v45 = vpop.f32.mrf.mxu0  ;;  %v5976_v33 = vunpack.c.l.b16 %v2776_v30  ;;  %v1561_v41 = vpack.c.bf16 %v9780_v43, %v9780_v43 }
 0x358   : > { %15506 = vst [vmem:[#allocation80_spill] sm:$0xff] %v12004_v45  ;;  %1895 = vperm.xlu2 %10514, %v15507_v11   ;;  %v15509_v45 = vld [vmem:[#allocation11_spill] sm:$0xff] }
 0x35f   : > { %1889 = vperm.xlu1 %10513, %v15507_v11   ;;  %v12010_v61 = vpop.f32.mrf.mxu0  ;;  %v6096_v11 = vpack.c.b16 %v5976_v33, %v5975_v19  ;;  %v5657_v33 = vunpack.c.l.b16 %v1561_v41  ;;  %v15521_v41 = vld [vmem:[#allocation55_spill] sm:$0xff] }
 0x360   : > { %1907 = vperm.xlu2 %10514, %v15509_v45  }
 0x362   : > { %7443 = vmatmul.bf16.gmra.mxu0 %v5743_v7  ;;  %7612 = vmatmul.bf16.gmra.mxu1 %v6095_v50  ;;  %v5655_v50 = vunpack.c.l.b16 %v1559_v18  ;;  %v5656_v7 = vunpack.c.l.b16 %v1560_v52  ;;  %v9845_v18 = vsel %vm2394_vm8, 1.0, %v15365_v51  ;;  %v9844_v52 = vsel %vm2393_vm9, 1.0, %v15365_v51 }
 0x363   : > { %v2777_v17 = vpack.c.bf16 %v9844_v52, %v9844_v52 }
 0x365   : > { %v5977_v25 = vunpack.c.l.b16 %v2777_v17 }
 0x367   : > { %1901 = vperm.xlu1 %10513, %v15509_v45   ;;  %v12026_v38 = vpop.f32.mrf.mxu0  ;;  %v12029_v22 = vpop.f32.mrf.mxu1  ;;  %v5744_v45 = vpack.c.b16 %v5656_v7, %v5655_v50  ;;  %v1562_v50 = vpack.c.bf16 %v9781_v3, %v9781_v3  ;;  %v2778_v7 = vpack.c.bf16 %v9845_v18, %v9845_v18 }
 0x368   : > { %10516 = vset.pattern.permute.xlu2 %v11463_v32  ;;  %15512 = vst [vmem:[#allocation93_spill] sm:$0xff] %v12029_v22  ;;  %v1728_v22 = vpop.permute.xlu2 %1727 }
 0x369   : > { %v5658_v46 = vunpack.c.l.b16 %v1562_v50  ;;  %vm2396_vm12 = vcmp.eq.s32.totalorder %v1728_v22, %v11093_v8 }
 0x36a   : > { %v9847_v17 = vsel %vm2396_vm12, 1.0, %v15365_v51 }
 0x36b   : > { %v5745_v52 = vpack.c.b16 %v5658_v46, %v5657_v33  ;;  %v15524_v46 = vld [vmem:[#allocation45_spill] sm:$0xff] }
 0x36f   : > { %10515 = vset.pattern.permute.xlu1 %v11663_v42  ;;  %v12032_v39 = vpop.f32.mrf.mxu0  ;;  %v12045_v62 = vpop.f32.mrf.mxu1 }
 0x370   : > { %1925 = vperm.xlu2 %10516, %v15513_v14   ;;  %15515 = vst [vmem:[#allocation106_spill] sm:$0xff] %v12045_v62  ;;  %v5978_v62 = vunpack.c.l.b16 %v2778_v7 }
 0x372   : > { %7448 = vmatmul.bf16.gmra.mxu0 %v5744_v45  ;;  %7617 = vmatmul.bf16.gmra.mxu1 %v6096_v11  ;;  %v12054_v45 = vld [vmem:[%s15144_s2] ss:$0 sm:$0xff] }
 0x373   : > { %v15517_v11 = vld [vmem:[#allocation54_spill] sm:$0xff]  ;;  %v7257_v50 = vadd.f32 %v12054_v45, %v15521_v41 }
 0x374   : > { %v7255_v19 = vadd.f32 %v12054_v45, %v15517_v11 }
 0x377   : > { %1919 = vperm.xlu1 %10515, %v11104_v34   ;;  %v12048_v30 = vpop.f32.mrf.mxu0  ;;  %v1722_v34 = vpop.permute.xlu1 %1721 }
 0x378   : > { %15516 = vst [vmem:[#allocation33_spill] sm:$0xff] %v12048_v30  ;;  %1937 = vperm.xlu2 %10516, %v11129_v55   ;;  %v6097_v55 = vpack.c.b16 %v5978_v62, %v5977_v25  ;;  %v15520_v30 = vld [vmem:[#allocation98_spill] sm:$0xff]  ;;  %vm2395_vm13 = vcmp.eq.s32.totalorder %v1722_v34, %v11093_v8  ;;  %v9783_v62 = vsel %vm1180_vm11, 1.0, %v15365_v51  ;;  %vm1188_vm11 = vcmp.eq.s32.totalorder %v11637_v37, %v11093_v8 }
 0x379   : > { %vm1179_vm10 = vcmp.eq.s32.totalorder %v15520_v30, %v11093_v8  ;;  %v9846_v30 = vsel %vm2395_vm13, 1.0, %v15365_v51  ;;  %v1564_v34 = vpack.c.bf16 %v9783_v62, %v9783_v62 }
 0x37a   : > { %v9782_v7 = vsel %vm1179_vm10, 1.0, %v15365_v51 }
 0x37b   : > { %v1563_v11 = vpack.c.bf16 %v9782_v7, %v9782_v7 }
 0x37d   : > { %v5659_v25 = vunpack.c.l.b16 %v1563_v11  ;;  %v15528_v11 = vld [vmem:[#allocation101_spill] sm:$0xff] }
 0x37e   : > { %vm1182_vm14 = vcmp.eq.s32.totalorder %v15528_v11, %v11093_v8 }
 0x37f   : > { %1931 = vperm.xlu1 %10515, %v15513_v14   ;;  %v12059_v43 = vpop.f32.mrf.mxu0  ;;  %v7583_v3 = vpop.f32.mrf.mxu1  ;;  %v15525_v14 = vld [vmem:[#allocation57_spill] sm:$0xff] }
 0x380   : > { %15518 = vst [vmem:[#allocation96_spill] sm:$0xff] %v12059_v43  ;;  %v12061_v18 = vadd.f32 %v7583_v3, %v7255_v19  ;;  %10518 = vset.pattern.permute.xlu2 %v11663_v42  ;;  %v2780_v19 = vpack.c.bf16 %v9847_v17, %v9847_v17  ;;  %v5660_v3 = vunpack.c.l.b16 %v1564_v34  ;;  %v1740_v7 = vpop.permute.xlu1 %1739  ;;  %v15529_v34 = vld [vmem:[#allocation59_spill] sm:$0xff] }
 0x381   : > { %vm2398_vm1 = vcmp.eq.s32.totalorder %v1740_v7, %v11093_v8 }
 0x382   : > { %15519 = vst [vmem:[#allocation54_spill] sm:$0xff] %v12061_v18  ;;  %7453 = vmatmul.bf16.gmra.mxu0 %v5745_v52  ;;  %7622 = vmatmul.bf16.gmra.mxu1 %v6097_v55  ;;  %v2779_v55 = vpack.c.bf16 %v9846_v30, %v9846_v30  ;;  %v5980_v41 = vunpack.c.l.b16 %v2780_v19  ;;  %v7260_v18 = vadd.f32 %v12054_v45, %v15525_v14  ;;  %v15527_v30 = vld [vmem:[#allocation13_spill] sm:$0xff]  ;;  %v9785_v14 = vsel %vm1182_vm14, 1.0, %v15365_v51 }
 0x383   : > { %v5746_v17 = vpack.c.b16 %v5660_v3, %v5659_v25  ;;  %v7262_v19 = vadd.f32 %v12054_v45, %v15529_v34 }
 0x384   : > { %v5979_v52 = vunpack.c.l.b16 %v2779_v55  ;;  %v1566_v55 = vpack.c.bf16 %v9785_v14, %v9785_v14  ;;  %v1746_v14 = vpop.permute.xlu2 %1745 }
 0x385   : > { %vm2399_vm4 = vcmp.eq.s32.totalorder %v1746_v14, %v11093_v8 }
 0x386   : > { %v5662_v7 = vunpack.c.l.b16 %v1566_v55  ;;  %v15534_v55 = vld [vmem:[#allocation104_spill] sm:$0xff] }
 0x387   : > { %10517 = vset.pattern.permute.xlu1 %v11463_v32  ;;  %v12077_v59 = vpop.f32.mrf.mxu0  ;;  %v7585_v22 = vpop.f32.mrf.mxu1  ;;  %vm1184_vm2 = vcmp.eq.s32.totalorder %v15534_v55, %v11093_v8 }
 0x388   : > { %15522 = vst [vmem:[#allocation98_spill] sm:$0xff] %v12077_v59  ;;  %v12079_v33 = vadd.f32 %v7585_v22, %v7257_v50  ;;  %1955 = vperm.xlu2 %10518, %v15524_v46   ;;  %v6098_v50 = vpack.c.b16 %v5980_v41, %v5979_v52  ;;  %v9849_v22 = vsel %vm2398_vm1, 1.0, %v15365_v51 }
 0x389   : > { %v2782_v52 = vpack.c.bf16 %v9849_v22, %v9849_v22 }
 0x38a   : > { %15523 = vst [vmem:[#allocation55_spill] sm:$0xff] %v12079_v33 }
 0x38b   : > { %v5982_v11 = vunpack.c.l.b16 %v2782_v52 }
 0x38f   : > { %1949 = vperm.xlu1 %10517, %v15524_v46   ;;  %v12085_v43 = vpop.f32.mrf.mxu0  ;;  %v7588_v59 = vpop.f32.mrf.mxu1  ;;  %v15531_v46 = vld [vmem:[#allocation60_spill] sm:$0xff] }
 0x390   : > { %v12087_v62 = vadd.f32 %v7588_v59, %v7260_v18  ;;  %1967 = vperm.xlu2 %10518, %v15527_v30   ;;  %v9784_v18 = vsel %vm1181_vm15, 1.0, %v15365_v51  ;;  %v9848_v59 = vsel %vm2397_vm0, 1.0, %v15365_v51  ;;  %v7265_v34 = vadd.f32 %v12054_v45, %v15531_v46 }
 0x391   : > { %v1565_v25 = vpack.c.bf16 %v9784_v18, %v9784_v18  ;;  %v2781_v3 = vpack.c.bf16 %v9848_v59, %v9848_v59  ;;  %v9787_v46 = vsel %vm1184_vm2, 1.0, %v15365_v51  ;;  %vm1190_vm15 = vcmp.eq.s32.totalorder %v11635_v31, %v11093_v8 }
 0x392   : > { %15526 = vst [vmem:[#allocation57_spill] sm:$0xff] %v12087_v62  ;;  %7458 = vmatmul.bf16.gmra.mxu0 %v5746_v17  ;;  %7627 = vmatmul.bf16.gmra.mxu1 %v6098_v50  ;;  %v1752_v62 = vpop.permute.xlu1 %1751 }
 0x393   : > { %v5661_v17 = vunpack.c.l.b16 %v1565_v25  ;;  %v5981_v50 = vunpack.c.l.b16 %v2781_v3  ;;  %vm2400_vm5 = vcmp.eq.s32.totalorder %v1752_v62, %v11093_v8  ;;  %v15535_v3 = vld [vmem:[#allocation62_spill] sm:$0xff] }
 0x394   : > { %v9851_v25 = vsel %vm2400_vm5, 1.0, %v15365_v51  ;;  %v7267_v52 = vadd.f32 %v12054_v45, %v15535_v3 }
 0x395   : > { %v5747_v59 = vpack.c.b16 %v5662_v7, %v5661_v17  ;;  %v6099_v22 = vpack.c.b16 %v5982_v11, %v5981_v50  ;;  %v1568_v7 = vpack.c.bf16 %v9787_v46, %v9787_v46  ;;  %v2784_v62 = vpack.c.bf16 %v9851_v25, %v9851_v25  ;;  %v1764_v46 = vpop.permute.xlu0 %1763 }
 0x396   : > { %vm2402_vm9 = vcmp.eq.s32.totalorder %v1764_v46, %v11093_v8 }
 0x397   : > { %1961 = vperm.xlu1 %10517, %v15527_v30   ;;  %v12104_v0 = vpop.f32.mrf.mxu0  ;;  %v7590_v57 = vpop.f32.mrf.mxu1  ;;  %v5664_v14 = vunpack.c.l.b16 %v1568_v7  ;;  %v5984_v55 = vunpack.c.l.b16 %v2784_v62  ;;  %v15542_v62 = vld [vmem:[#allocation65_spill] sm:$0xff] }
 0x398   : > { %v12106_v41 = vadd.f32 %v7590_v57, %v7262_v19  ;;  %10520 = vset.pattern.permute.xlu2 %v11463_v32  ;;  %v15533_v19 = vld [vmem:[#allocation47_spill] sm:$0xff]  ;;  %v9850_v57 = vsel %vm2399_vm4, 1.0, %v15365_v51  ;;  %v1758_v7 = vpop.permute.xlu2 %1757  ;;  %vm2407_vm4 = vcmp.eq.s32.totalorder %v11749_v56, %v11093_v8 }
 0x399   : > { %v2783_v50 = vpack.c.bf16 %v9850_v57, %v9850_v57  ;;  %vm2401_vm8 = vcmp.eq.s32.totalorder %v1758_v7, %v11093_v8 }
 0x39a   : > { %15530 = vst [vmem:[#allocation101_spill] sm:$0xff] %v12106_v41  ;;  %v15562_v41 = vld [vmem:[#allocation77_spill] sm:$0xff] }
 0x39f   : > { %10519 = vset.pattern.permute.xlu1 %v11663_v42  ;;  %v7593_v30 = vpop.f32.mrf.mxu1  ;;  %v12112_v33 = vpop.f32.mrf.mxu0 }
 0x3a0   : > { %v12114_v18 = vadd.f32 %v7593_v30, %v7265_v34  ;;  %1985 = vperm.xlu2 %10520, %v15533_v19   ;;  %v9786_v30 = vsel %vm1183_vm3, 1.0, %v15365_v51  ;;  %vm1191_vm3 = vcmp.eq.s32.totalorder %v11657_v9, %v11093_v8 }
 0x3a1   : > { %v1567_v17 = vpack.c.bf16 %v9786_v30, %v9786_v30 }
 0x3a2   : > { %15532 = vst [vmem:[#allocation59_spill] sm:$0xff] %v12114_v18  ;;  %7463 = vmatmul.bf16.gmra.mxu0 %v5747_v59  ;;  %7632 = vmatmul.bf16.gmra.mxu1 %v6099_v22  ;;  %v5983_v22 = vunpack.c.l.b16 %v2783_v50  ;;  %v15538_v18 = vld [vmem:[#allocation64_spill] sm:$0xff]  ;;  %v9853_v50 = vsel %vm2402_vm9, 1.0, %v15365_v51 }
 0x3a3   : > { %v5663_v59 = vunpack.c.l.b16 %v1567_v17  ;;  %v7270_v3 = vadd.f32 %v12054_v45, %v15538_v18  ;;  %v9852_v17 = vsel %vm2401_vm8, 1.0, %v15365_v51 }
 0x3a4   : > { %v6100_v25 = vpack.c.b16 %v5984_v55, %v5983_v22  ;;  %v2785_v55 = vpack.c.bf16 %v9852_v17, %v9852_v17 }
 0x3a5   : > { %v5748_v57 = vpack.c.b16 %v5664_v14, %v5663_v59  ;;  %v7272_v14 = vadd.f32 %v12054_v45, %v15542_v62 }
 0x3a6   : > { %v5985_v7 = vunpack.c.l.b16 %v2785_v55  ;;  %v15550_v55 = vld [vmem:[#allocation70_spill] sm:$0xff] }
 0x3a7   : > { %1979 = vperm.xlu1 %10519, %v11151_v48   ;;  %v7595_v15 = vpop.f32.mrf.mxu1  ;;  %v12133_v34 = vpop.f32.mrf.mxu0 }
 0x3a8   : > { %v12130_v11 = vadd.f32 %v7595_v15, %v7267_v52  ;;  %1997 = vperm.xlu2 %10520, %v15464_v6   ;;  %15537 = vst [vmem:[#allocation104_spill] sm:$0xff] %v12133_v34  ;;  %v15540_v52 = vld [vmem:[#allocation36_spill] sm:$0xff]  ;;  %v9789_v15 = vsel %vm1186_vm7, 1.0, %v15365_v51  ;;  %vm1193_vm7 = vcmp.eq.s32.totalorder %v11671_v44, %v11093_v8 }
 0x3a9   : > { %vm1185_vm6 = vcmp.eq.s32.totalorder %v15540_v52, %v11093_v8  ;;  %v1570_v22 = vpack.c.bf16 %v9789_v15, %v9789_v15 }
 0x3aa   : > { %15536 = vst [vmem:[#allocation60_spill] sm:$0xff] %v12130_v11  ;;  %v1776_v11 = vpop.permute.xlu2 %1775 }
 0x3ab   : > { %v5666_v52 = vunpack.c.l.b16 %v1570_v22  ;;  %vm2404_vm12 = vcmp.eq.s32.totalorder %v1776_v11, %v11093_v8 }
 0x3af   : > { %1991 = vperm.xlu1 %10519, %v15533_v19   ;;  %v7598_v48 = vpop.f32.mrf.mxu1  ;;  %v12148_v18 = vpop.f32.mrf.mxu0  ;;  %v15545_v19 = vld [vmem:[#allocation68_spill] sm:$0xff] }
 0x3b0   : > { %v12138_v30 = vadd.f32 %v7598_v48, %v7270_v3  ;;  %10522 = vset.pattern.permute.xlu2 %v11663_v42  ;;  %v9788_v48 = vsel %vm1185_vm6, 1.0, %v15365_v51  ;;  %15541 = vst [vmem:[#allocation64_spill] sm:$0xff] %v12148_v18  ;;  %v2786_v3 = vpack.c.bf16 %v9853_v50, %v9853_v50  ;;  %v15670_v18 = vld [vmem:[#allocation142_spill] sm:$0xff] }
 0x3b1   : > { %v1569_v10 = vpack.c.bf16 %v9788_v48, %v9788_v48  ;;  %v1770_v48 = vpop.permute.xlu1 %1769 }
 0x3b2   : > { %15539 = vst [vmem:[#allocation62_spill] sm:$0xff] %v12138_v30  ;;  %7468 = vmatmul.bf16.gmra.mxu0 %v5748_v57  ;;  %7637 = vmatmul.bf16.gmra.mxu1 %v6100_v25  ;;  %v15544_v57 = vld [vmem:[#allocation49_spill] sm:$0xff]  ;;  %v5986_v6 = vunpack.c.l.b16 %v2786_v3  ;;  %v7275_v30 = vadd.f32 %v12054_v45, %v15545_v19  ;;  %vm2403_vm13 = vcmp.eq.s32.totalorder %v1770_v48, %v11093_v8 }
 0x3b3   : > { %v5665_v25 = vunpack.c.l.b16 %v1569_v10  ;;  %v15549_v10 = vld [vmem:[#allocation108_spill] sm:$0xff]  ;;  %v9854_v22 = vsel %vm2403_vm13, 1.0, %v15365_v51  ;;  %v7277_v3 = vadd.f32 %v12054_v45, %v15550_v55 }
 0x3b4   : > { %vm1187_vm10 = vcmp.eq.s32.totalorder %v15549_v10, %v11093_v8 }
 0x3b5   : > { %v5749_v50 = vpack.c.b16 %v5666_v52, %v5665_v25  ;;  %v9790_v19 = vsel %vm1187_vm10, 1.0, %v15365_v51 }
 0x3b6   : > { %v1571_v25 = vpack.c.bf16 %v9790_v19, %v9790_v19  ;;  %v1788_v19 = vpop.permute.xlu2 %1787 }
 0x3b7   : > { %10521 = vset.pattern.permute.xlu1 %v11463_v32  ;;  %v7600_v59 = vpop.f32.mrf.mxu1  ;;  %v12161_v62 = vpop.f32.mrf.mxu0  ;;  %vm2406_vm0 = vcmp.eq.s32.totalorder %v1788_v19, %v11093_v8 }
 0x3b8   : > { %v12156_v46 = vadd.f32 %v7600_v59, %v7272_v14  ;;  %2015 = vperm.xlu2 %10522, %v15544_v57   ;;  %15546 = vst [vmem:[#allocation65_spill] sm:$0xff] %v12161_v62  ;;  %v6101_v14 = vpack.c.b16 %v5986_v6, %v5985_v7  ;;  %v15548_v59 = vld [vmem:[#allocation15_spill] sm:$0xff]  ;;  %v9855_v6 = vsel %vm2404_vm12, 1.0, %v15365_v51  ;;  %v2787_v7 = vpack.c.bf16 %v9854_v22, %v9854_v22 }
 0x3b9   : > { %v2788_v52 = vpack.c.bf16 %v9855_v6, %v9855_v6 }
 0x3ba   : > { %15543 = vst [vmem:[#allocation36_spill] sm:$0xff] %v12156_v46  ;;  %v1782_v46 = vpop.permute.xlu1 %1781 }
 0x3bb   : > { %v5988_v10 = vunpack.c.l.b16 %v2788_v52  ;;  %vm2405_vm1 = vcmp.eq.s32.totalorder %v1782_v46, %v11093_v8 }
 0x3bc   : > { %v9856_v52 = vsel %vm2405_vm1, 1.0, %v15365_v51 }
 0x3bd   : > { %v2789_v19 = vpack.c.bf16 %v9856_v52, %v9856_v52 }
 0x3bf   : > { %2009 = vperm.xlu1 %10521, %v15544_v57   ;;  %v7603_v15 = vpop.f32.mrf.mxu1  ;;  %v12180_v48 = vpop.f32.mrf.mxu0  ;;  %v5987_v57 = vunpack.c.l.b16 %v2787_v7  ;;  %v15558_v7 = vld [vmem:[#allocation74_spill] sm:$0xff] }
 0x3c0   : > { %v12164_v17 = vadd.f32 %v7603_v15, %v7275_v30  ;;  %2027 = vperm.xlu2 %10522, %v15548_v59   ;;  %v9791_v30 = vsel %vm1188_vm11, 1.0, %v15365_v51  ;;  %15551 = vst [vmem:[#allocation108_spill] sm:$0xff] %v12180_v48  ;;  %vm1196_vm11 = vcmp.eq.s32.totalorder %v11688_v60, %v11093_v8 }
 0x3c1   : > { %v1572_v11 = vpack.c.bf16 %v9791_v30, %v9791_v30 }
 0x3c2   : > { %15547 = vst [vmem:[#allocation68_spill] sm:$0xff] %v12164_v17  ;;  %7473 = vmatmul.bf16.gmra.mxu0 %v5749_v50  ;;  %7642 = vmatmul.bf16.gmra.mxu1 %v6101_v14  ;;  %v5667_v50 = vunpack.c.l.b16 %v1571_v25  ;;  %v15553_v17 = vld [vmem:[#allocation71_spill] sm:$0xff] }
 0x3c3   : > { %v5668_v14 = vunpack.c.l.b16 %v1572_v11  ;;  %v7280_v55 = vadd.f32 %v12054_v45, %v15553_v17  ;;  %v9857_v11 = vsel %vm2406_vm0, 1.0, %v15365_v51 }
 0x3c5   : > { %v5750_v22 = vpack.c.b16 %v5668_v14, %v5667_v50  ;;  %v7282_v50 = vadd.f32 %v12054_v45, %v15558_v7  ;;  %v15559_v14 = vld [vmem:[#allocation50_spill] sm:$0xff]  ;;  %v7285_v7 = vadd.f32 %v12054_v45, %v15562_v41 }
 0x3c7   : > { %2021 = vperm.xlu1 %10521, %v15548_v59   ;;  %v7605_v37 = vpop.f32.mrf.mxu1  ;;  %v6102_v59 = vpack.c.b16 %v5988_v10, %v5987_v57  ;;  %v12197_v17 = vpop.f32.mrf.mxu0  ;;  %v9793_v57 = vsel %vm1190_vm15, 1.0, %v15365_v51  ;;  %vm1198_vm15 = vcmp.eq.s32.totalorder %v11703_v4, %v11093_v8 }
 0x3c8   : > { %v12182_v15 = vadd.f32 %v7605_v37, %v7277_v3  ;;  %10524 = vset.pattern.permute.xlu2 %v11463_v32  ;;  %v15555_v3 = vld [vmem:[#allocation51_spill] sm:$0xff]  ;;  %v1574_v46 = vpack.c.bf16 %v9793_v57, %v9793_v57 }
 0x3c9   : > { %v15556_v37 = vld [vmem:[#allocation111_spill] sm:$0xff] }
 0x3ca   : > { %15552 = vst [vmem:[#allocation70_spill] sm:$0xff] %v12182_v15  ;;  %vm1189_vm14 = vcmp.eq.s32.totalorder %v15556_v37, %v11093_v8 }
 0x3cb   : > { %15557 = vst [vmem:[#allocation111_spill] sm:$0xff] %v12197_v17  ;;  %v9792_v25 = vsel %vm1189_vm14, 1.0, %v15365_v51  ;;  %vm1197_vm14 = vcmp.eq.s32.totalorder %v11608_v36, %v11093_v8  ;;  %v15588_v36 = vld [vmem:[#allocation97_spill] sm:$0xff] }
 0x3cc   : > { %v1573_v31 = vpack.c.bf16 %v9792_v25, %v9792_v25  ;;  %v1800_v25 = vpop.permute.xlu1 %1799 }
 0x3cd   : > { %vm2408_vm5 = vcmp.eq.s32.totalorder %v1800_v25, %v11093_v8  ;;  %v15568_v25 = vld [vmem:[#allocation53_spill] sm:$0xff] }
 0x3cf   : > { %10523 = vset.pattern.permute.xlu1 %v11663_v42  ;;  %v7608_v30 = vpop.f32.mrf.mxu1  ;;  %v12209_v15 = vpop.f32.mrf.mxu0 }
 0x3d0   : > { %v12188_v6 = vadd.f32 %v7608_v30, %v7280_v55  ;;  %2045 = vperm.xlu2 %10524, %v15555_v3   ;;  %v2790_v55 = vpack.c.bf16 %v9857_v11, %v9857_v11  ;;  %15561 = vst [vmem:[#allocation153_spill] sm:$0xff] %v12209_v15 }
 0x3d2   : > { %15554 = vst [vmem:[#allocation71_spill] sm:$0xff] %v12188_v6  ;;  %7478 = vmatmul.bf16.gmra.mxu0 %v5750_v22  ;;  %7647 = vmatmul.bf16.gmra.mxu1 %v6102_v59  ;;  %v5669_v59 = vunpack.c.l.b16 %v1573_v31  ;;  %v5670_v22 = vunpack.c.l.b16 %v1574_v46  ;;  %v5990_v37 = vunpack.c.l.b16 %v2790_v55  ;;  %v5989_v6 = vunpack.c.l.b16 %v2789_v19  ;;  %v1806_v31 = vpop.permute.xlu2 %1805  ;;  %v15565_v46 = vld [vmem:[#allocation79_spill] sm:$0xff] }
 0x3d3   : > { %v7287_v55 = vadd.f32 %v12054_v45, %v15565_v46  ;;  %vm2409_vm8 = vcmp.eq.s32.totalorder %v1806_v31, %v11093_v8 }
 0x3d4   : > { %v5751_v11 = vpack.c.b16 %v5670_v22, %v5669_v59  ;;  %v6103_v52 = vpack.c.b16 %v5990_v37, %v5989_v6  ;;  %v9794_v6 = vsel %vm1191_vm3, 1.0, %v15365_v51 }
 0x3d5   : > { %v1575_v59 = vpack.c.bf16 %v9794_v6, %v9794_v6 }
 0x3d7   : > { %2039 = vperm.xlu1 %10523, %v15559_v14   ;;  %v7610_v10 = vpop.f32.mrf.mxu1  ;;  %v12230_v9 = vpop.f32.mrf.mxu0 }
 0x3d8   : > { %v12206_v30 = vadd.f32 %v7610_v10, %v7282_v50  ;;  %2057 = vperm.xlu2 %10524, %v15468_v26   ;;  %v15564_v50 = vld [vmem:[#allocation113_spill] sm:$0xff]  ;;  %v9859_v10 = vsel %vm2408_vm5, 1.0, %v15365_v51 }
 0x3d9   : > { %vm1192_vm2 = vcmp.eq.s32.totalorder %v15564_v50, %v11093_v8  ;;  %15566 = vst [vmem:[#allocation113_spill] sm:$0xff] %v12230_v9  ;;  %v2792_v37 = vpack.c.bf16 %v9859_v10, %v9859_v10 }
 0x3da   : > { %15560 = vst [vmem:[#allocation74_spill] sm:$0xff] %v12206_v30  ;;  %v9795_v41 = vsel %vm1192_vm2, 1.0, %v15365_v51  ;;  %v1812_v30 = vpop.permute.xlu1 %1811  ;;  %vm1199_vm2 = vcmp.eq.s32.totalorder %v11631_v58, %v11093_v8 }
 0x3db   : > { %v1576_v19 = vpack.c.bf16 %v9795_v41, %v9795_v41  ;;  %v5992_v26 = vunpack.c.l.b16 %v2792_v37  ;;  %vm2410_vm9 = vcmp.eq.s32.totalorder %v1812_v30, %v11093_v8 }
 0x3df   : > { %2051 = vperm.xlu1 %10523, %v15555_v3   ;;  %v7613_v14 = vpop.f32.mrf.mxu1  ;;  %v15569_v3 = vld [vmem:[#allocation82_spill] sm:$0xff]  ;;  %v12239_v9 = vpop.f32.mrf.mxu0 }
 0x3e0   : > { %v12214_v57 = vadd.f32 %v7613_v14, %v7285_v7  ;;  %10526 = vset.pattern.permute.xlu2 %v11663_v42  ;;  %v9858_v14 = vsel %vm2407_vm4, 1.0, %v15365_v51  ;;  %v7290_v46 = vadd.f32 %v12054_v45, %v15569_v3  ;;  %15570 = vst [vmem:[#allocation82_spill] sm:$0xff] %v12239_v9 }
 0x3e1   : > { %v2791_v22 = vpack.c.bf16 %v9858_v14, %v9858_v14 }
 0x3e2   : > { %15563 = vst [vmem:[#allocation77_spill] sm:$0xff] %v12214_v57  ;;  %7483 = vmatmul.bf16.gmra.mxu0 %v5751_v11  ;;  %7652 = vmatmul.bf16.gmra.mxu1 %v6103_v52  ;;  %v5672_v11 = vunpack.c.l.b16 %v1576_v19  ;;  %v5671_v52 = vunpack.c.l.b16 %v1575_v59  ;;  %v1818_v57 = vpop.permute.xlu2 %1817  ;;  %v15573_v19 = vld [vmem:[#allocation116_spill] sm:$0xff]  ;;  %v9861_v59 = vsel %vm2410_vm9, 1.0, %v15365_v51 }
 0x3e3   : > { %v5991_v50 = vunpack.c.l.b16 %v2791_v22  ;;  %vm1194_vm6 = vcmp.eq.s32.totalorder %v15573_v19, %v11093_v8  ;;  %v15574_v22 = vld [vmem:[#allocation85_spill] sm:$0xff]  ;;  %v2794_v30 = vpack.c.bf16 %v9861_v59, %v9861_v59  ;;  %vm2411_vm12 = vcmp.eq.s32.totalorder %v1818_v57, %v11093_v8 }
 0x3e4   : > { %v5752_v14 = vpack.c.b16 %v5672_v11, %v5671_v52  ;;  %v9797_v3 = vsel %vm1194_vm6, 1.0, %v15365_v51  ;;  %v7292_v37 = vadd.f32 %v12054_v45, %v15574_v22  ;;  %v1824_v22 = vpop.permute.xlu0 %1823 }
 0x3e5   : > { %v6104_v10 = vpack.c.b16 %v5992_v26, %v5991_v50  ;;  %v9860_v26 = vsel %vm2409_vm8, 1.0, %v15365_v51  ;;  %v1578_v11 = vpack.c.bf16 %v9797_v3, %v9797_v3  ;;  %vm2412_vm13 = vcmp.eq.s32.totalorder %v1824_v22, %v11093_v8 }
 0x3e6   : > { %v2793_v52 = vpack.c.bf16 %v9860_v26, %v9860_v26  ;;  %vm2417_vm8 = vcmp.eq.s32.totalorder %v11769_v5, %v11093_v8 }
 0x3e7   : > { %10525 = vset.pattern.permute.xlu1 %v11463_v32  ;;  %v7615_v56 = vpop.f32.mrf.mxu1 }
 0x3e8   : > { %v12233_v7 = vadd.f32 %v7615_v56, %v7287_v55  ;;  %2075 = vperm.xlu2 %10526, %v15568_v25   ;;  %v15572_v55 = vld [vmem:[#allocation16_spill] sm:$0xff]  ;;  %v9796_v56 = vsel %vm1193_vm7, 1.0, %v15365_v51  ;;  %v5993_v19 = vunpack.c.l.b16 %v2793_v52  ;;  %v9862_v52 = vsel %vm2411_vm12, 1.0, %v15365_v51 }
 0x3e9   : > { %v1577_v31 = vpack.c.bf16 %v9796_v56, %v9796_v56 }
 0x3ea   : > { %15567 = vst [vmem:[#allocation79_spill] sm:$0xff] %v12233_v7  ;;  %v1836_v50 = vpop.permute.xlu2 %1835  ;;  %v5994_v7 = vunpack.c.l.b16 %v2794_v30  ;;  %v15582_v30 = vld [vmem:[#allocation92_spill] sm:$0xff] }
 0x3eb   : > { %v7297_v60 = vadd.f32 %v12054_v45, %v15582_v30  ;;  %vm2414_vm0 = vcmp.eq.s32.totalorder %v1836_v50, %v11093_v8 }
 0x3ef   : > { %2069 = vperm.xlu1 %10525, %v15568_v25   ;;  %v7618_v41 = vpop.f32.mrf.mxu1  ;;  %v15577_v25 = vld [vmem:[#allocation87_spill] sm:$0xff] }
 0x3f0   : > { %v12241_v6 = vadd.f32 %v7618_v41, %v7290_v46  ;;  %2087 = vperm.xlu2 %10526, %v15572_v55   ;;  %v12260_v41 = vpop.f32.mrf.mxu0  ;;  %v7295_v3 = vadd.f32 %v12054_v45, %v15577_v25 }
 0x3f1   : > { %15576 = vst [vmem:[#allocation85_spill] sm:$0xff] %v12260_v41 }
 0x3f2   : > { %15571 = vst [vmem:[#allocation154_spill] sm:$0xff] %v12241_v6  ;;  %7488 = vmatmul.bf16.gmra.mxu0 %v5752_v14  ;;  %7657 = vmatmul.bf16.gmra.mxu1 %v6104_v10  ;;  %v5674_v14 = vunpack.c.l.b16 %v1578_v11  ;;  %v5673_v10 = vunpack.c.l.b16 %v1577_v31  ;;  %v12274_v25 = vpop.permute.xlu2 %1847 }
 0x3f3   : > { %vm2416_vm4 = vcmp.eq.s32.totalorder %v12274_v25, %v11093_v8 }
 0x3f4   : > { %v5753_v59 = vpack.c.b16 %v5674_v14, %v5673_v10  ;;  %v15583_v14 = vld [vmem:[#allocation56_spill] sm:$0xff] }
 0x3f7   : > { %2081 = vperm.xlu1 %10525, %v15572_v55   ;;  %v7620_v44 = vpop.f32.mrf.mxu1  ;;  %v15580_v55 = vld [vmem:[#allocation37_spill] sm:$0xff] }
 0x3f8   : > { %v12257_v46 = vadd.f32 %v7620_v44, %v7292_v37  ;;  %10528 = vset.pattern.permute.xlu2 %v11463_v32  ;;  %v6105_v37 = vpack.c.b16 %v5994_v7, %v5993_v19  ;;  %v15579_v44 = vld [vmem:[#allocation58_spill] sm:$0xff]  ;;  %vm1195_vm10 = vcmp.eq.s32.totalorder %v15580_v55, %v11093_v8  ;;  %v12277_v31 = vpop.f32.mrf.mxu0  ;;  %v9799_v7 = vsel %vm1196_vm11, 1.0, %v15365_v51 }
 0x3f9   : > { %v9798_v11 = vsel %vm1195_vm10, 1.0, %v15365_v51  ;;  %15581 = vst [vmem:[#allocation37_spill] sm:$0xff] %v12277_v31  ;;  %v9863_v55 = vsel %vm2412_vm13, 1.0, %v15365_v51  ;;  %v1580_v19 = vpack.c.bf16 %v9799_v7, %v9799_v7  ;;  %v15585_v31 = vld [vmem:[#allocation95_spill] sm:$0xff] }
 0x3fa   : > { %15575 = vst [vmem:[#allocation116_spill] sm:$0xff] %v12257_v46  ;;  %v1579_v57 = vpack.c.bf16 %v9798_v11, %v9798_v11  ;;  %v2796_v22 = vpack.c.bf16 %v9863_v55, %v9863_v55  ;;  %v7300_v30 = vadd.f32 %v12054_v45, %v15585_v31  ;;  %v9800_v31 = vsel %vm1197_vm14, 1.0, %v15365_v51 }
 0x3fb   : > { %v5676_v46 = vunpack.c.l.b16 %v1580_v19  ;;  %v1581_v4 = vpack.c.bf16 %v9800_v31, %v9800_v31 }
 0x3fc   : > { %v5996_v6 = vunpack.c.l.b16 %v2796_v22 }
 0x3ff   : > { %10527 = vset.pattern.permute.xlu1 %v11663_v42  ;;  %v7623_v56 = vpop.f32.mrf.mxu1 }
 0x400   : > { %v12265_v26 = vadd.f32 %v7623_v56, %v7295_v3  ;;  %2105 = vperm.xlu2 %10528, %v15579_v44   ;;  %v2795_v3 = vpack.c.bf16 %v9862_v52, %v9862_v52  ;;  %v12292_v11 = vpop.f32.mrf.mxu0 }
 0x401   : > { %15586 = vst [vmem:[#allocation95_spill] sm:$0xff] %v12292_v11 }
 0x402   : > { %15578 = vst [vmem:[#allocation87_spill] sm:$0xff] %v12265_v26  ;;  %7493 = vmatmul.bf16.gmra.mxu0 %v5753_v59  ;;  %7662 = vmatmul.bf16.gmra.mxu1 %v6105_v37  ;;  %v12288_v59 = vpop.permute.xlu2 %1865  ;;  %v5675_v37 = vunpack.c.l.b16 %v1579_v57  ;;  %v5995_v26 = vunpack.c.l.b16 %v2795_v3 }
 0x403   : > { %vm2419_vm12 = vcmp.eq.s32.totalorder %v12288_v59, %v11093_v8 }
 0x404   : > { %v5754_v55 = vpack.c.b16 %v5676_v46, %v5675_v37  ;;  %v9865_v46 = vsel %vm2414_vm0, 1.0, %v15365_v51 }
 0x405   : > { %v2798_v19 = vpack.c.bf16 %v9865_v46, %v9865_v46 }
 0x407   : > { %2099 = vperm.xlu1 %10527, %v15583_v14   ;;  %v7625_v10 = vpop.f32.mrf.mxu1  ;;  %v1830_v14 = vpop.permute.xlu1 %1829 }
 0x408   : > { %v12285_v56 = vadd.f32 %v7625_v10, %v7297_v60  ;;  %2117 = vperm.xlu2 %10528, %v15470_v1   ;;  %v6106_v60 = vpack.c.b16 %v5996_v6, %v5995_v26  ;;  %vm2413_vm1 = vcmp.eq.s32.totalorder %v1830_v14, %v11093_v8  ;;  %v9801_v6 = vsel %vm1198_vm15, 1.0, %v15365_v51  ;;  %v12313_v22 = vpop.f32.mrf.mxu0  ;;  %v15592_v1 = vld [vmem:[#allocation100_spill] sm:$0xff] }
 0x409   : > { %v9864_v26 = vsel %vm2413_vm1, 1.0, %v15365_v51  ;;  %v7302_v10 = vadd.f32 %v12054_v45, %v15588_v36  ;;  %v1582_v14 = vpack.c.bf16 %v9801_v6, %v9801_v6  ;;  %15589 = vst [vmem:[#allocation97_spill] sm:$0xff] %v12313_v22  ;;  %v7305_v36 = vadd.f32 %v12054_v45, %v15592_v1 }
 0x40a   : > { %15584 = vst [vmem:[#allocation92_spill] sm:$0xff] %v12285_v56  ;;  %v12305_v57 = vpop.permute.xlu2 %1877  ;;  %v2797_v3 = vpack.c.bf16 %v9864_v26, %v9864_v26 }
 0x40b   : > { %vm2421_vm0 = vcmp.eq.s32.totalorder %v12305_v57, %v11093_v8 }
 0x40c   : > { %v5997_v56 = vunpack.c.l.b16 %v2797_v3  ;;  %v15597_v3 = vld [vmem:[#allocation102_spill] sm:$0xff] }
 0x40f   : > { %2111 = vperm.xlu1 %10527, %v15579_v44   ;;  %v7628_v7 = vpop.f32.mrf.mxu1  ;;  %v1842_v44 = vpop.permute.xlu1 %1841 }
 0x410   : > { %v12295_v52 = vadd.f32 %v7628_v7, %v7300_v30  ;;  %10530 = vset.pattern.permute.xlu2 %v11663_v42  ;;  %v15591_v30 = vld [vmem:[#allocation63_spill] sm:$0xff]  ;;  %v5677_v7 = vunpack.c.l.b16 %v1581_v4  ;;  %v15595_v4 = vld [vmem:[#allocation124_spill] sm:$0xff]  ;;  %vm2415_vm5 = vcmp.eq.s32.totalorder %v1842_v44, %v11093_v8  ;;  %v12333_v1 = vpop.f32.mrf.mxu0 }
 0x411   : > { %vm1200_vm3 = vcmp.eq.s32.totalorder %v15595_v4, %v11093_v8  ;;  %15596 = vst [vmem:[#allocation124_spill] sm:$0xff] %v12333_v1  ;;  %v9866_v58 = vsel %vm2415_vm5, 1.0, %v15365_v51 }
 0x412   : > { %15587 = vst [vmem:[#allocation155_spill] sm:$0xff] %v12295_v52  ;;  %7498 = vmatmul.bf16.gmra.mxu0 %v5754_v55  ;;  %7667 = vmatmul.bf16.gmra.mxu1 %v6106_v60  ;;  %v5678_v55 = vunpack.c.l.b16 %v1582_v14  ;;  %v5998_v60 = vunpack.c.l.b16 %v2798_v19  ;;  %v12320_v31 = vpop.permute.xlu2 %1895  ;;  %v9802_v14 = vsel %vm1199_vm2, 1.0, %v15365_v51  ;;  %v9867_v19 = vsel %vm2416_vm4, 1.0, %v15365_v51 }
 0x413   : > { %vm2424_vm4 = vcmp.eq.s32.totalorder %v12320_v31, %v11093_v8  ;;  %v15633_v31 = vld [vmem:[#allocation81_spill] sm:$0xff] }
 0x414   : > { %v5755_v26 = vpack.c.b16 %v5678_v55, %v5677_v7  ;;  %v7307_v7 = vadd.f32 %v12054_v45, %v15597_v3  ;;  %v1583_v55 = vpack.c.bf16 %v9802_v14, %v9802_v14  ;;  %v15600_v14 = vld [vmem:[#allocation103_spill] sm:$0xff] }
 0x415   : > { %v7310_v3 = vadd.f32 %v12054_v45, %v15600_v14 }
 0x416   : > { %v5679_v4 = vunpack.c.l.b16 %v1583_v55  ;;  %v15603_v55 = vld [vmem:[#allocation123_spill] sm:$0xff] }
 0x417   : > { %10529 = vset.pattern.permute.xlu1 %v11463_v32  ;;  %v7630_v50 = vpop.f32.mrf.mxu1  ;;  %vm1202_vm6 = vcmp.eq.s32.totalorder %v15603_v55, %v11093_v8  ;;  %v15607_v55 = vld [vmem:[#allocation67_spill] sm:$0xff] }
 0x418   : > { %v12315_v37 = vadd.f32 %v7630_v50, %v7302_v10  ;;  %2135 = vperm.xlu2 %10530, %v15591_v30   ;;  %v6107_v10 = vpack.c.b16 %v5998_v60, %v5997_v56  ;;  %v15594_v50 = vld [vmem:[#allocation18_spill] sm:$0xff]  ;;  %v9803_v56 = vsel %vm1200_vm3, 1.0, %v15365_v51  ;;  %v1860_v60 = vpop.permute.xlu1 %1859  ;;  %v12347_v52 = vpop.f32.mrf.mxu0 }
 0x419   : > { %v1584_v25 = vpack.c.bf16 %v9803_v56, %v9803_v56  ;;  %15599 = vst [vmem:[#allocation157_spill] sm:$0xff] %v12347_v52  ;;  %vm2418_vm9 = vcmp.eq.s32.totalorder %v1860_v60, %v11093_v8 }
 0x41a   : > { %15590 = vst [vmem:[#allocation156_spill] sm:$0xff] %v12315_v37 }
 0x41b   : > { %v5680_v37 = vunpack.c.l.b16 %v1584_v25 }
 0x41f   : > { %2129 = vperm.xlu1 %10529, %v15591_v30   ;;  %v7633_v6 = vpop.f32.mrf.mxu1 }
 0x420   : > { %v12323_v46 = vadd.f32 %v7633_v6, %v7305_v36  ;;  %2147 = vperm.xlu2 %10530, %v15594_v50   ;;  %v2800_v36 = vpack.c.bf16 %v9867_v19, %v9867_v19  ;;  %v2799_v6 = vpack.c.bf16 %v9866_v58, %v9866_v58  ;;  %v1872_v25 = vpop.permute.xlu1 %1871 }
 0x421   : > { %vm2420_vm13 = vcmp.eq.s32.totalorder %v1872_v25, %v11093_v8 }
 0x422   : > { %15593 = vst [vmem:[#allocation100_spill] sm:$0xff] %v12323_v46  ;;  %7503 = vmatmul.bf16.gmra.mxu0 %v5755_v26  ;;  %7672 = vmatmul.bf16.gmra.mxu1 %v6107_v10  ;;  %v12342_v26 = vpop.permute.xlu2 %1907  ;;  %v6000_v30 = vunpack.c.l.b16 %v2800_v36  ;;  %v5999_v46 = vunpack.c.l.b16 %v2799_v6  ;;  %v15604_v36 = vld [vmem:[#allocation135_spill] sm:$0xff]  ;;  %v9805_v6 = vsel %vm1202_vm6, 1.0, %v15365_v51 }
 0x423   : > { %vm1201_vm7 = vcmp.eq.s32.totalorder %v15604_v36, %v11093_v8 }
 0x427   : > { %2141 = vperm.xlu1 %10529, %v15594_v50   ;;  %v7635_v44 = vpop.f32.mrf.mxu1  ;;  %v15602_v50 = vld [vmem:[#allocation69_spill] sm:$0xff] }
 0x428   : > { %v12344_v10 = vadd.f32 %v7635_v44, %v7307_v7  ;;  %10532 = vset.pattern.permute.xlu2 %v11463_v32  ;;  %v5756_v7 = vpack.c.b16 %v5680_v37, %v5679_v4  ;;  %v6108_v44 = vpack.c.b16 %v6000_v30, %v5999_v46  ;;  %v9804_v37 = vsel %vm1201_vm7, 1.0, %v15365_v51  ;;  %v15605_v4 = vld [vmem:[#allocation107_spill] sm:$0xff] }
 0x429   : > { %v9868_v30 = vsel %vm2417_vm8, 1.0, %v15365_v51  ;;  %v9869_v46 = vsel %vm2418_vm9, 1.0, %v15365_v51  ;;  %v7312_v14 = vadd.f32 %v12054_v45, %v15605_v4  ;;  %v1585_v60 = vpack.c.bf16 %v9804_v37, %v9804_v37 }
 0x42a   : > { %15598 = vst [vmem:[#allocation102_spill] sm:$0xff] %v12344_v10  ;;  %v12352_v19 = vpop.permute.xlu2 %1925  ;;  %v12376_v10 = vpop.permute.xlu1 %1889  ;;  %vm2426_vm8 = vcmp.eq.s32.totalorder %v12342_v26, %v11093_v8 }
 0x42b   : > { %v5681_v1 = vunpack.c.l.b16 %v1585_v60  ;;  %v9871_v60 = vsel %vm2420_vm13, 1.0, %v15365_v51  ;;  %vm2423_vm5 = vcmp.eq.s32.totalorder %v12376_v10, %v11093_v8 }
 0x42f   : > { %10531 = vset.pattern.permute.xlu1 %v11663_v42  ;;  %v7638_v56 = vpop.f32.mrf.mxu1 }
 0x430   : > { %v12354_v58 = vadd.f32 %v7638_v56, %v7310_v3  ;;  %2165 = vperm.xlu2 %10532, %v15602_v50   ;;  %v12370_v3 = vpop.f32.mrf.mxu0  ;;  %v1586_v56 = vpack.c.bf16 %v9805_v6, %v9805_v6 }
 0x431   : > { %15606 = vst [vmem:[#allocation123_spill] sm:$0xff] %v12370_v3  ;;  %v15609_v3 = vld [vmem:[#allocation110_spill] sm:$0xff] }
 0x432   : > { %15601 = vst [vmem:[#allocation103_spill] sm:$0xff] %v12354_v58  ;;  %7508 = vmatmul.bf16.gmra.mxu0 %v5756_v7  ;;  %7677 = vmatmul.bf16.gmra.mxu1 %v6108_v44  ;;  %v2801_v7 = vpack.c.bf16 %v9868_v30, %v9868_v30  ;;  %v2802_v44 = vpack.c.bf16 %v9869_v46, %v9869_v46  ;;  %v12378_v58 = vpop.permute.xlu2 %1937  ;;  %v5682_v52 = vunpack.c.l.b16 %v1586_v56  ;;  %v15613_v56 = vld [vmem:[#allocation138_spill] sm:$0xff] }
 0x433   : > { %v7315_v6 = vadd.f32 %v12054_v45, %v15609_v3  ;;  %vm1203_vm11 = vcmp.eq.s32.totalorder %v15613_v56, %v11093_v8  ;;  %v12395_v3 = vpop.permute.xlu1 %1901 }
 0x434   : > { %v6001_v4 = vunpack.c.l.b16 %v2801_v7  ;;  %v6002_v22 = vunpack.c.l.b16 %v2802_v44  ;;  %v15614_v7 = vld [vmem:[#allocation112_spill] sm:$0xff]  ;;  %vm2425_vm9 = vcmp.eq.s32.totalorder %v12395_v3, %v11093_v8 }
 0x435   : > { %v7317_v44 = vadd.f32 %v12054_v45, %v15614_v7  ;;  %v15618_v7 = vld [vmem:[#allocation115_spill] sm:$0xff] }
 0x437   : > { %2159 = vperm.xlu1 %10531, %v15607_v55   ;;  %v7640_v5 = vpop.f32.mrf.mxu1 }
 0x438   : > { %v12373_v36 = vadd.f32 %v7640_v5, %v7312_v14  ;;  %2177 = vperm.xlu2 %10532, %v11375_v63   ;;  %v12383_v30 = vpop.f32.mrf.mxu0  ;;  %v5757_v14 = vpack.c.b16 %v5682_v52, %v5681_v1  ;;  %v6109_v5 = vpack.c.b16 %v6002_v22, %v6001_v4  ;;  %v15612_v63 = vld [vmem:[#allocation127_spill] sm:$0xff]  ;;  %v9806_v1 = vsel %vm1203_vm11, 1.0, %v15365_v51 }
 0x439   : > { %15610 = vst [vmem:[#allocation107_spill] sm:$0xff] %v12383_v30  ;;  %vm1204_vm10 = vcmp.eq.s32.totalorder %v15612_v63, %v11093_v8  ;;  %v9870_v63 = vsel %vm2419_vm12, 1.0, %v15365_v51  ;;  %v1587_v4 = vpack.c.bf16 %v9806_v1, %v9806_v1  ;;  %v1884_v1 = vpop.permute.xlu0 %1883  ;;  %vm1211_vm11 = vcmp.eq.s32.totalorder %v11776_v53, %v11093_v8 }
 0x43a   : > { %15608 = vst [vmem:[#allocation135_spill] sm:$0xff] %v12373_v36  ;;  %v9807_v52 = vsel %vm1204_vm10, 1.0, %v15365_v51  ;;  %v12398_v22 = vpop.permute.xlu2 %1955  ;;  %vm2422_vm1 = vcmp.eq.s32.totalorder %v1884_v1, %v11093_v8  ;;  %vm2427_vm12 = vcmp.eq.s32.totalorder %v11781_v12, %v11093_v8 }
 0x43b   : > { %v1588_v59 = vpack.c.bf16 %v9807_v52, %v9807_v52  ;;  %v7320_v52 = vadd.f32 %v12054_v45, %v15618_v7  ;;  %v15624_v7 = vld [vmem:[#allocation117_spill] sm:$0xff] }
 0x43d   : > { %v5684_v36 = vunpack.c.l.b16 %v1588_v59  ;;  %v15621_v59 = vld [vmem:[#allocation38_spill] sm:$0xff] }
 0x43e   : > { %vm1205_vm14 = vcmp.eq.s32.totalorder %v15621_v59, %v11093_v8 }
 0x43f   : > { %2171 = vperm.xlu1 %10531, %v15602_v50   ;;  %v7643_v37 = vpop.f32.mrf.mxu1  ;;  %v5683_v50 = vunpack.c.l.b16 %v1587_v4  ;;  %v15622_v4 = vld [vmem:[#allocation141_spill] sm:$0xff] }
 0x440   : > { %v12385_v46 = vadd.f32 %v7643_v37, %v7315_v6  ;;  %10534 = vset.pattern.permute.xlu2 %v11663_v42  ;;  %v2803_v6 = vpack.c.bf16 %v9870_v63, %v9870_v63  ;;  %v2804_v37 = vpack.c.bf16 %v9871_v60, %v9871_v60  ;;  %v12409_v56 = vpop.f32.mrf.mxu0  ;;  %vm1206_vm15 = vcmp.eq.s32.totalorder %v15622_v4, %v11093_v8 }
 0x441   : > { %15617 = vst [vmem:[#allocation138_spill] sm:$0xff] %v12409_v56 }
 0x442   : > { %15611 = vst [vmem:[#allocation110_spill] sm:$0xff] %v12385_v46  ;;  %7513 = vmatmul.bf16.gmra.mxu0 %v5757_v14  ;;  %7682 = vmatmul.bf16.gmra.mxu1 %v6109_v5  ;;  %v15616_v5 = vld [vmem:[#allocation76_spill] sm:$0xff]  ;;  %v12411_v46 = vpop.permute.xlu1 %1919  ;;  %v6003_v55 = vunpack.c.l.b16 %v2803_v6  ;;  %v6004_v30 = vunpack.c.l.b16 %v2804_v37  ;;  %v12415_v11 = vpop.permute.xlu2 %1967  ;;  %v9808_v6 = vsel %vm1205_vm14, 1.0, %v15365_v51 }
 0x443   : > { %v1589_v1 = vpack.c.bf16 %v9808_v6, %v9808_v6  ;;  %vm2428_vm13 = vcmp.eq.s32.totalorder %v12411_v46, %v11093_v8 }
 0x447   : > { %10533 = vset.pattern.permute.xlu1 %v11463_v32  ;;  %v7645_v25 = vpop.f32.mrf.mxu1 }
 0x448   : > { %v12406_v14 = vadd.f32 %v7645_v25, %v7317_v44  ;;  %2195 = vperm.xlu2 %10534, %v15616_v5   ;;  %v5758_v44 = vpack.c.b16 %v5684_v36, %v5683_v50  ;;  %v6110_v25 = vpack.c.b16 %v6004_v30, %v6003_v55  ;;  %v12429_v37 = vpop.f32.mrf.mxu0  ;;  %v9809_v50 = vsel %vm1206_vm15, 1.0, %v15365_v51 }
 0x449   : > { %15623 = vst [vmem:[#allocation115_spill] sm:$0xff] %v12429_v37  ;;  %v9872_v55 = vsel %vm2421_vm0, 1.0, %v15365_v51  ;;  %v9873_v36 = vsel %vm2422_vm1, 1.0, %v15365_v51  ;;  %vm1213_vm15 = vcmp.eq.s32.totalorder %v11797_v47, %v11093_v8  ;;  %vm2429_vm0 = vcmp.eq.s32.totalorder %v12352_v19, %v11093_v8  ;;  %v15658_v19 = vld [vmem:[#allocation99_spill] sm:$0xff] }
 0x44a   : > { %15615 = vst [vmem:[#allocation127_spill] sm:$0xff] %v12406_v14  ;;  %v15620_v14 = vld [vmem:[#allocation20_spill] sm:$0xff]  ;;  %v12434_v30 = vpop.permute.xlu1 %1931  ;;  %v12438_v57 = vpop.permute.xlu2 %1985  ;;  %v2806_v59 = vpack.c.bf16 %v9873_v36, %v9873_v36 }
 0x44b   : > { %vm2430_vm1 = vcmp.eq.s32.totalorder %v12434_v30, %v11093_v8 }
 0x44c   : > { %v6006_v56 = vunpack.c.l.b16 %v2806_v59 }
 0x44f   : > { %2189 = vperm.xlu1 %10533, %v15616_v5   ;;  %v7648_v63 = vpop.f32.mrf.mxu1 }
 0x450   : > { %v12418_v60 = vadd.f32 %v7648_v63, %v7320_v52  ;;  %2207 = vperm.xlu2 %10534, %v15620_v14   ;;  %v7322_v52 = vadd.f32 %v12054_v45, %v15624_v7  ;;  %v15626_v7 = vld [vmem:[#allocation118_spill] sm:$0xff]  ;;  %v12448_v6 = vpop.f32.mrf.mxu0 }
 0x451   : > { %v7325_v9 = vadd.f32 %v12054_v45, %v15626_v7  ;;  %15627 = vst [vmem:[#allocation141_spill] sm:$0xff] %v12448_v6 }
 0x452   : > { %15619 = vst [vmem:[#allocation112_spill] sm:$0xff] %v12418_v60  ;;  %7518 = vmatmul.bf16.gmra.mxu0 %v5758_v44  ;;  %7687 = vmatmul.bf16.gmra.mxu1 %v6110_v25  ;;  %v1590_v44 = vpack.c.bf16 %v9809_v50, %v9809_v50  ;;  %v2805_v25 = vpack.c.bf16 %v9872_v55, %v9872_v55  ;;  %v5685_v60 = vunpack.c.l.b16 %v1589_v1  ;;  %v12444_v41 = vpop.permute.xlu1 %1949  ;;  %v12451_v55 = vpop.permute.xlu2 %1997  ;;  %v15629_v1 = vld [vmem:[#allocation83_spill] sm:$0xff] }
 0x454   : > { %v5686_v5 = vunpack.c.l.b16 %v1590_v44  ;;  %v6005_v37 = vunpack.c.l.b16 %v2805_v25  ;;  %v15630_v44 = vld [vmem:[#allocation129_spill] sm:$0xff]  ;;  %v15631_v25 = vld [vmem:[#allocation66_spill] sm:$0xff] }
 0x455   : > { %vm1207_vm2 = vcmp.eq.s32.totalorder %v15630_v44, %v11093_v8  ;;  %vm1208_vm3 = vcmp.eq.s32.totalorder %v15631_v25, %v11093_v8 }
 0x457   : > { %2201 = vperm.xlu1 %10533, %v15620_v14   ;;  %v7650_v63 = vpop.f32.mrf.mxu1 }
 0x458   : > { %v12441_v4 = vadd.f32 %v7650_v63, %v7322_v52  ;;  %10536 = vset.pattern.permute.xlu2 %v11463_v32  ;;  %v5759_v52 = vpack.c.b16 %v5686_v5, %v5685_v60  ;;  %v6111_v63 = vpack.c.b16 %v6006_v56, %v6005_v37  ;;  %v9811_v5 = vsel %vm1208_vm3, 1.0, %v15365_v51  ;;  %v15632_v37 = vld [vmem:[#allocation120_spill] sm:$0xff]  ;;  %v12473_v25 = vpop.f32.mrf.mxu0 }
 0x459   : > { %v9875_v56 = vsel %vm2424_vm4, 1.0, %v15365_v51  ;;  %v9874_v60 = vsel %vm2423_vm5, 1.0, %v15365_v51  ;;  %v7327_v59 = vadd.f32 %v12054_v45, %v15632_v37  ;;  %v1592_v10 = vpack.c.bf16 %v9811_v5, %v9811_v5  ;;  %15634 = vst [vmem:[#allocation118_spill] sm:$0xff] %v12473_v25  ;;  %v12483_v37 = vld [vmem:[%s15144_s2] ss:$0 sm:$0xff] }
 0x45a   : > { %15625 = vst [vmem:[#allocation38_spill] sm:$0xff] %v12441_v4  ;;  %v15636_v5 = vld [vmem:[#allocation122_spill] sm:$0xff]  ;;  %vm2431_vm4 = vcmp.eq.s32.totalorder %v12378_v58, %v11093_v8 }
 0x45b   : > { %v5688_v6 = vunpack.c.l.b16 %v1592_v10  ;;  %v15638_v10 = vld [vmem:[#allocation126_spill] sm:$0xff] }
 0x45c   : > { %vm1210_vm6 = vcmp.eq.s32.totalorder %v15638_v10, %v11093_v8 }
 0x45f   : > { %10535 = vset.pattern.permute.xlu1 %v11663_v42  ;;  %v7653_v50 = vpop.f32.mrf.mxu1 }
 0x460   : > { %v12453_v36 = vadd.f32 %v7653_v50, %v7325_v9  ;;  %2225 = vperm.xlu2 %10536, %v15629_v1   ;;  %v9810_v9 = vsel %vm1207_vm2, 1.0, %v15365_v51  ;;  %v12470_v50 = vpop.permute.xlu1 %1961 }
 0x461   : > { %v1591_v7 = vpack.c.bf16 %v9810_v9, %v9810_v9 }
 0x462   : > { %15628 = vst [vmem:[#allocation117_spill] sm:$0xff] %v12453_v36  ;;  %7523 = vmatmul.bf16.gmra.mxu0 %v5759_v52  ;;  %7692 = vmatmul.bf16.gmra.mxu1 %v6111_v63  ;;  %v2808_v52 = vpack.c.bf16 %v9875_v56, %v9875_v56  ;;  %v2807_v63 = vpack.c.bf16 %v9874_v60, %v9874_v60  ;;  %v12478_v36 = vpop.permute.xlu2 %2015 }
 0x463   : > { %v5687_v4 = vunpack.c.l.b16 %v1591_v7  ;;  %v7330_v56 = vadd.f32 %v12483_v37, %v15636_v5  ;;  %v9876_v5 = vsel %vm2425_vm9, 1.0, %v15365_v51  ;;  %vm2433_vm9 = vcmp.eq.s32.totalorder %v12444_v41, %v11093_v8 }
 0x464   : > { %v6008_v45 = vunpack.c.l.b16 %v2808_v52  ;;  %v6007_v9 = vunpack.c.l.b16 %v2807_v63  ;;  %v15639_v52 = vld [vmem:[#allocation131_spill] sm:$0xff]  ;;  %v12501_v63 = vpop.f32.mrf.mxu0 }
 0x465   : > { %vm1209_vm7 = vcmp.eq.s32.totalorder %v15639_v52, %v11093_v8  ;;  %15640 = vst [vmem:[#allocation120_spill] sm:$0xff] %v12501_v63 }
 0x466   : > { %v6112_v7 = vpack.c.b16 %v6008_v45, %v6007_v9  ;;  %v9812_v45 = vsel %vm1209_vm7, 1.0, %v15365_v51  ;;  %v9877_v9 = vsel %vm2426_vm8, 1.0, %v15365_v51  ;;  %vm2434_vm8 = vcmp.eq.s32.totalorder %v12398_v22, %v11093_v8 }
 0x467   : > { %2219 = vperm.xlu1 %10535, %v15633_v31   ;;  %v7655_v44 = vpop.f32.mrf.mxu1  ;;  %v1593_v10 = vpack.c.bf16 %v9812_v45, %v9812_v45 }
 0x468   : > { %v12475_v14 = vadd.f32 %v7655_v44, %v7327_v59  ;;  %2237 = vperm.xlu2 %10536, %v11457_v54   ;;  %v12487_v60 = vpop.permute.xlu1 %1979  ;;  %v5760_v54 = vpack.c.b16 %v5688_v6, %v5687_v4  ;;  %v9813_v4 = vsel %vm1210_vm6, 1.0, %v15365_v51 }
 0x469   : > { %v5689_v31 = vunpack.c.l.b16 %v1593_v10 }
 0x46a   : > { %15635 = vst [vmem:[#allocation129_spill] sm:$0xff] %v12475_v14  ;;  %v12504_v6 = vpop.permute.xlu2 %2027 }
 0x46c   : > { %v12517_v15 = vpop.f32.mrf.mxu0 }
 0x46d   : > { %15644 = vst [vmem:[#allocation126_spill] sm:$0xff] %v12517_v15 }
 0x46f   : > { %2231 = vperm.xlu1 %10535, %v15629_v1   ;;  %v7658_v59 = vpop.f32.mrf.mxu1 }
 0x470   : > { %v12490_v44 = vadd.f32 %v7658_v59, %v7330_v56  ;;  %10538 = vset.pattern.permute.xlu2 %v11663_v42  ;;  %v15641_v56 = vld [vmem:[#allocation125_spill] sm:$0xff]  ;;  %v1594_v59 = vpack.c.bf16 %v9813_v4, %v9813_v4  ;;  %v12515_v1 = vpop.permute.xlu1 %1991  ;;  %v15645_v4 = vld [vmem:[#allocation128_spill] sm:$0xff] }
 0x471   : > { %v7332_v26 = vadd.f32 %v12483_v37, %v15641_v56  ;;  %v7335_v17 = vadd.f32 %v12483_v37, %v15645_v4 }
 0x472   : > { %15637 = vst [vmem:[#allocation66_spill] sm:$0xff] %v12490_v44  ;;  %7528 = vmatmul.bf16.gmra.mxu0 %v5760_v54  ;;  %7697 = vmatmul.bf16.gmra.mxu1 %v6112_v7  ;;  %v2810_v54 = vpack.c.bf16 %v9877_v9, %v9877_v9  ;;  %v2809_v7 = vpack.c.bf16 %v9876_v5, %v9876_v5  ;;  %v15643_v44 = vld [vmem:[#allocation94_spill] sm:$0xff]  ;;  %v5690_v14 = vunpack.c.l.b16 %v1594_v59  ;;  %v12519_v56 = vpop.permute.xlu2 %2045 }
 0x473   : > { %v15648_v59 = vld [vmem:[#allocation134_spill] sm:$0xff] }
 0x474   : > { %v6010_v63 = vunpack.c.l.b16 %v2810_v54  ;;  %v6009_v25 = vunpack.c.l.b16 %v2809_v7  ;;  %v5761_v5 = vpack.c.b16 %v5690_v14, %v5689_v31  ;;  %vm1212_vm10 = vcmp.eq.s32.totalorder %v15648_v59, %v11093_v8  ;;  %v12543_v53 = vpop.f32.mrf.mxu0 }
 0x475   : > { %v9814_v14 = vsel %vm1211_vm11, 1.0, %v15365_v51  ;;  %v9878_v31 = vsel %vm2427_vm12, 1.0, %v15365_v51  ;;  %15650 = vst [vmem:[#allocation125_spill] sm:$0xff] %v12543_v53  ;;  %v15652_v53 = vld [vmem:[#allocation132_spill] sm:$0xff]  ;;  %vm2435_vm11 = vcmp.eq.s32.totalorder %v12470_v50, %v11093_v8 }
 0x476   : > { %v1595_v4 = vpack.c.bf16 %v9814_v14, %v9814_v14  ;;  %v7340_v15 = vadd.f32 %v12483_v37, %v15652_v53  ;;  %v9881_v53 = vsel %vm2430_vm1, 1.0, %v15365_v51 }
 0x477   : > { %10537 = vset.pattern.permute.xlu1 %v11463_v32  ;;  %v7660_v3 = vpop.f32.mrf.mxu1 }
 0x478   : > { %v12512_v52 = vadd.f32 %v7660_v3, %v7332_v26  ;;  %2255 = vperm.xlu2 %10538, %v15643_v44   ;;  %v6113_v26 = vpack.c.b16 %v6010_v63, %v6009_v25  ;;  %v15647_v3 = vld [vmem:[#allocation21_spill] sm:$0xff]  ;;  %v12529_v10 = vpop.permute.xlu1 %2009  ;;  %v9879_v25 = vsel %vm2428_vm13, 1.0, %v15365_v51  ;;  %v15649_v63 = vld [vmem:[#allocation130_spill] sm:$0xff]  ;;  %vm2438_vm13 = vcmp.eq.s32.totalorder %v12487_v60, %v11093_v8 }
 0x479   : > { %v7337_v54 = vadd.f32 %v12483_v37, %v15649_v63 }
 0x47a   : > { %15642 = vst [vmem:[#allocation122_spill] sm:$0xff] %v12512_v52  ;;  %v12545_v7 = vpop.permute.xlu2 %2057  ;;  %v5691_v52 = vunpack.c.l.b16 %v1595_v4  ;;  %v15657_v4 = vld [vmem:[#allocation133_spill] sm:$0xff] }
 0x47b   : > { %v7342_v47 = vadd.f32 %v12483_v37, %v15657_v4 }
 0x47f   : > { %2249 = vperm.xlu1 %10537, %v15643_v44   ;;  %v7663_v45 = vpop.f32.mrf.mxu1 }
 0x480   : > { %v12524_v9 = vadd.f32 %v7663_v45, %v7335_v17  ;;  %2267 = vperm.xlu2 %10538, %v15647_v3   ;;  %v9815_v17 = vsel %vm1212_vm10, 1.0, %v15365_v51  ;;  %v2811_v45 = vpack.c.bf16 %v9878_v31, %v9878_v31  ;;  %v12551_v59 = vpop.permute.xlu1 %2021  ;;  %vm2436_vm10 = vcmp.eq.s32.totalorder %v12415_v11, %v11093_v8 }
 0x481   : > { %v1596_v12 = vpack.c.bf16 %v9815_v17, %v9815_v17 }
 0x482   : > { %15646 = vst [vmem:[#allocation131_spill] sm:$0xff] %v12524_v9  ;;  %7533 = vmatmul.bf16.gmra.mxu0 %v5761_v5  ;;  %7702 = vmatmul.bf16.gmra.mxu1 %v6113_v26  ;;  %v2812_v5 = vpack.c.bf16 %v9879_v25, %v9879_v25  ;;  %v6011_v63 = vunpack.c.l.b16 %v2811_v45  ;;  %v12558_v14 = vpop.permute.xlu2 %2075 }
 0x483   : > { %v5692_v44 = vunpack.c.l.b16 %v1596_v12  ;;  %v15656_v12 = vld [vmem:[#allocation137_spill] sm:$0xff] }
 0x484   : > { %v6012_v9 = vunpack.c.l.b16 %v2812_v5  ;;  %vm1214_vm14 = vcmp.eq.s32.totalorder %v15656_v12, %v11093_v8 }
 0x485   : > { %v5762_v25 = vpack.c.b16 %v5692_v44, %v5691_v52  ;;  %v9817_v44 = vsel %vm1214_vm14, 1.0, %v15365_v51  ;;  %v9816_v52 = vsel %vm1213_vm15, 1.0, %v15365_v51  ;;  %vm2439_vm14 = vcmp.eq.s32.totalorder %v12438_v57, %v11093_v8 }
 0x486   : > { %v1598_v45 = vpack.c.bf16 %v9817_v44, %v9817_v44  ;;  %v1597_v30 = vpack.c.bf16 %v9816_v52, %v9816_v52  ;;  %v15662_v44 = vld [vmem:[#allocation136_spill] sm:$0xff]  ;;  %v1944_v52 = vpop.permute.xlu0 %1943  ;;  %vm2440_vm15 = vcmp.eq.s32.totalorder %v12515_v1, %v11093_v8 }
 0x487   : > { %2261 = vperm.xlu1 %10537, %v15647_v3   ;;  %v7665_v46 = vpop.f32.mrf.mxu1  ;;  %v12556_v3 = vpop.f32.mrf.mxu0  ;;  %vm2432_vm5 = vcmp.eq.s32.totalorder %v1944_v52, %v11093_v8 }
 0x488   : > { %v12548_v26 = vadd.f32 %v7665_v46, %v7337_v54  ;;  %10540 = vset.pattern.permute.xlu2 %v11463_v32  ;;  %15653 = vst [vmem:[#allocation134_spill] sm:$0xff] %v12556_v3  ;;  %v6114_v54 = vpack.c.b16 %v6012_v9, %v6011_v63  ;;  %v15655_v46 = vld [vmem:[#allocation86_spill] sm:$0xff]  ;;  %v9880_v9 = vsel %vm2429_vm0, 1.0, %v15365_v51  ;;  %v5693_v3 = vunpack.c.l.b16 %v1597_v30 }
 0x489   : > { %v2813_v63 = vpack.c.bf16 %v9880_v9, %v9880_v9  ;;  %v15665_v30 = vld [vmem:[#allocation146_spill] sm:$0xff]  ;;  %vm2441_vm0 = vcmp.eq.s32.totalorder %v12451_v55, %v11093_v8 }
 0x48a   : > { %15651 = vst [vmem:[#allocation128_spill] sm:$0xff] %v12548_v26  ;;  %v12585_v26 = vpop.permute.xlu2 %2087  ;;  %vm1216_vm3 = vcmp.eq.s32.totalorder %v15665_v30, %v11093_v8 }
 0x48b   : > { %v6013_v48 = vunpack.c.l.b16 %v2813_v63 }
 0x48f   : > { %10539 = vset.pattern.permute.xlu1 %v11663_v42  ;;  %v7668_v17 = vpop.f32.mrf.mxu1  ;;  %v12583_v12 = vpop.f32.mrf.mxu0 }
 0x490   : > { %v12560_v31 = vadd.f32 %v7668_v17, %v7340_v15  ;;  %2285 = vperm.xlu2 %10540, %v15655_v46   ;;  %v12571_v15 = vpop.permute.xlu1 %2039  ;;  %v2814_v17 = vpack.c.bf16 %v9881_v53, %v9881_v53  ;;  %15661 = vst [vmem:[#allocation137_spill] sm:$0xff] %v12583_v12 }
 0x492   : > { %15654 = vst [vmem:[#allocation130_spill] sm:$0xff] %v12560_v31  ;;  %7538 = vmatmul.bf16.gmra.mxu0 %v5762_v25  ;;  %7707 = vmatmul.bf16.gmra.mxu1 %v6114_v54  ;;  %v15660_v54 = vld [vmem:[#allocation105_spill] sm:$0xff]  ;;  %v5694_v31 = vunpack.c.l.b16 %v1598_v45  ;;  %v6014_v62 = vunpack.c.l.b16 %v2814_v17  ;;  %v12602_v63 = vpop.permute.xlu2 %2105 }
 0x493   : > { %v15664_v45 = vld [vmem:[#allocation41_spill] sm:$0xff] }
 0x494   : > { %vm1215_vm2 = vcmp.eq.s32.totalorder %v15664_v45, %v11093_v8 }
 0x497   : > { %2279 = vperm.xlu1 %10539, %v15658_v19   ;;  %v7670_v5 = vpop.f32.mrf.mxu1  ;;  %v7345_v19 = vadd.f32 %v12483_v37, %v15662_v44  ;;  %v15667_v44 = vld [vmem:[#allocation139_spill] sm:$0xff] }
 0x498   : > { %v12580_v25 = vadd.f32 %v7670_v5, %v7342_v47  ;;  %2297 = vperm.xlu2 %10540, %v15660_v54   ;;  %v12587_v4 = vpop.permute.xlu1 %2051  ;;  %v5763_v47 = vpack.c.b16 %v5694_v31, %v5693_v3  ;;  %v6115_v5 = vpack.c.b16 %v6014_v62, %v6013_v48  ;;  %v9818_v3 = vsel %vm1215_vm2, 1.0, %v15365_v51  ;;  %v12605_v62 = vpop.f32.mrf.mxu0  ;;  %v15669_v54 = vld [vmem:[#allocation109_spill] sm:$0xff] }
 0x499   : > { %15666 = vst [vmem:[#allocation136_spill] sm:$0xff] %v12605_v62  ;;  %v9819_v48 = vsel %vm1216_vm3, 1.0, %v15365_v51  ;;  %v9882_v31 = vsel %vm2431_vm4, 1.0, %v15365_v51  ;;  %v7347_v58 = vadd.f32 %v12483_v37, %v15667_v44  ;;  %v1599_v52 = vpack.c.bf16 %v9818_v3, %v9818_v3 }
 0x49a   : > { %15659 = vst [vmem:[#allocation132_spill] sm:$0xff] %v12580_v25  ;;  %v12618_v12 = vpop.permute.xlu2 %2117  ;;  %v7350_v44 = vadd.f32 %v12483_v37, %v15670_v18  ;;  %vm2444_vm2 = vcmp.eq.s32.totalorder %v12478_v36, %v11093_v8  ;;  %vm2443_vm3 = vcmp.eq.s32.totalorder %v12529_v10, %v11093_v8  ;;  %vm2446_vm4 = vcmp.eq.s32.totalorder %v12504_v6, %v11093_v8  ;;  %v15725_v6 = vld [vmem:[#allocation12_spill] sm:$0xff] }
 0x49f   : > { %2291 = vperm.xlu1 %10539, %v15655_v46   ;;  %v7673_v9 = vpop.f32.mrf.mxu1  ;;  %v5695_v46 = vunpack.c.l.b16 %v1599_v52  ;;  %v15673_v52 = vld [vmem:[#allocation23_spill] sm:$0xff] }
 0x4a0   : > { %v12592_v53 = vadd.f32 %v7673_v9, %v7345_v19  ;;  %10542 = vset.pattern.permute.xlu2 %v11663_v42  ;;  %v9883_v19 = vsel %vm2432_vm5, 1.0, %v15365_v51  ;;  %v12610_v17 = vpop.permute.xlu1 %2069  ;;  %v12622_v3 = vpop.f32.mrf.mxu0  ;;  %vm2445_vm5 = vcmp.eq.s32.totalorder %v12551_v59, %v11093_v8 }
 0x4a1   : > { %v2816_v45 = vpack.c.bf16 %v9883_v19, %v9883_v19  ;;  %15671 = vst [vmem:[#allocation146_spill] sm:$0xff] %v12622_v3  ;;  %v15680_v3 = vld [vmem:[#allocation144_spill] sm:$0xff] }
 0x4a2   : > { %15663 = vst [vmem:[#allocation133_spill] sm:$0xff] %v12592_v53  ;;  %7543 = vmatmul.bf16.gmra.mxu0 %v5763_v47  ;;  %7712 = vmatmul.bf16.gmra.mxu1 %v6115_v5  ;;  %v1600_v47 = vpack.c.bf16 %v9819_v48, %v9819_v48  ;;  %v2815_v5 = vpack.c.bf16 %v9882_v31, %v9882_v31 }
 0x4a3   : > { %v6016_v62 = vunpack.c.l.b16 %v2816_v45  ;;  %v12644_v45 = vpop.permute.xlu2 %2135 }
 0x4a4   : > { %v5696_v25 = vunpack.c.l.b16 %v1600_v47  ;;  %v6015_v53 = vunpack.c.l.b16 %v2815_v5  ;;  %v15675_v47 = vld [vmem:[#allocation149_spill] sm:$0xff]  ;;  %15677 = vst [vmem:[#allocation142_spill] sm:$0xff] %v12644_v45 }
 0x4a5   : > { %vm1218_vm7 = vcmp.eq.s32.totalorder %v15675_v47, %v11093_v8 }
 0x4a6   : > { %v5764_v19 = vpack.c.b16 %v5696_v25, %v5695_v46  ;;  %v9821_v46 = vsel %vm1218_vm7, 1.0, %v15365_v51  ;;  %v9885_v25 = vsel %vm2434_vm8, 1.0, %v15365_v51  ;;  %vm2448_vm7 = vcmp.eq.s32.totalorder %v12571_v15, %v11093_v8  ;;  %v10397_v15 = vld [vmem:[%s15143_s1 + $0xb8] sm:$0xff] }
 0x4a7   : > { %10541 = vset.pattern.permute.xlu1 %v11463_v32  ;;  %v7675_v9 = vpop.f32.mrf.mxu1  ;;  %7903 = vmatpush.bf16.msrb.mxu2 %v10397_v15  ;;  %v10395_v15 = vld [vmem:[%s15143_s1 + $0xa8] sm:$0xff]  ;;  %vm2449_vm8 = vcmp.eq.s32.totalorder %v12519_v56, %v11093_v8  ;;  %v7392_v56 = vadd.f32 %v12483_v37, %v11967_v21  ;;  %v10392_v21 = vld [vmem:[%s15143_s1 + $0x90] sm:$0xff] }
 0x4a8   : > { %v12615_v30 = vadd.f32 %v7675_v9, %v7347_v58  ;;  %2315 = vperm.xlu2 %10542, %v15669_v54   ;;  %v12624_v34 = vpop.permute.xlu1 %2081  ;;  %v6116_v58 = vpack.c.b16 %v6016_v62, %v6015_v53  ;;  %v15674_v9 = vld [vmem:[#allocation140_spill] sm:$0xff]  ;;  %v9884_v53 = vsel %vm2433_vm9, 1.0, %v15365_v51  ;;  %v15676_v62 = vld [vmem:[#allocation143_spill] sm:$0xff]  ;;  %vm2450_vm9 = vcmp.eq.s32.totalorder %v12587_v4, %v11093_v8 }
 0x4a9   : > { %vm1217_vm6 = vcmp.eq.s32.totalorder %v15674_v9, %v11093_v8  ;;  %v7352_v5 = vadd.f32 %v12483_v37, %v15676_v62  ;;  %v12649_v9 = vpop.f32.mrf.mxu0 }
 0x4aa   : > { %15668 = vst [vmem:[#allocation41_spill] sm:$0xff] %v12615_v30  ;;  %v9820_v18 = vsel %vm1217_vm6, 1.0, %v15365_v51 }
 0x4ab   : > { %15678 = vst [vmem:[#allocation140_spill] sm:$0xff] %v12649_v9  ;;  %v15691_v9 = vld [vmem:[#allocation3_spill] sm:$0xff] }
 0x4af   : > { %2309 = vperm.xlu1 %10541, %v15669_v54   ;;  %v7678_v48 = vpop.f32.mrf.mxu1 }
 0x4b0   : > { %v12627_v31 = vadd.f32 %v7678_v48, %v7350_v44  ;;  %2327 = vperm.xlu2 %10542, %v15673_v52   ;;  %v1601_v44 = vpack.c.bf16 %v9820_v18, %v9820_v18  ;;  %v12646_v22 = vpop.permute.xlu1 %2099  ;;  %v1602_v48 = vpack.c.bf16 %v9821_v46, %v9821_v46  ;;  %v7355_v18 = vadd.f32 %v12483_v37, %v15680_v3 }
 0x4b1   : > { %v12668_v3 = vpop.f32.mrf.mxu0 }
 0x4b2   : > { %15672 = vst [vmem:[#allocation139_spill] sm:$0xff] %v12627_v31  ;;  %7548 = vmatmul.bf16.gmra.mxu0 %v5764_v19  ;;  %7717 = vmatmul.bf16.gmra.mxu1 %v6116_v58  ;;  %v2818_v19 = vpack.c.bf16 %v9885_v25, %v9885_v25  ;;  %v2817_v58 = vpack.c.bf16 %v9884_v53, %v9884_v53  ;;  %v5697_v54 = vunpack.c.l.b16 %v1601_v44  ;;  %v5698_v30 = vunpack.c.l.b16 %v1602_v48  ;;  %v15682_v53 = vld [vmem:[#allocation88_spill] sm:$0xff]  ;;  %v15685_v44 = vld [vmem:[#allocation30_spill] sm:$0xff] }
 0x4b3   : > { %15683 = vst [vmem:[#allocation144_spill] sm:$0xff] %v12668_v3  ;;  %v7357_v48 = vadd.f32 %v12483_v37, %v15685_v44  ;;  %v15690_v3 = vld [vmem:[#allocation147_spill] sm:$0xff] }
 0x4b4   : > { %v6018_v62 = vunpack.c.l.b16 %v2818_v19  ;;  %v6017_v31 = vunpack.c.l.b16 %v2817_v58  ;;  %v5765_v46 = vpack.c.b16 %v5698_v30, %v5697_v54  ;;  %v9886_v54 = vsel %vm2435_vm11, 1.0, %v15365_v51  ;;  %v15684_v30 = vld [vmem:[#allocation2_spill] sm:$0xff] }
 0x4b5   : > { %v15686_v19 = vld [vmem:[#allocation114_spill] sm:$0xff]  ;;  %v2819_v58 = vpack.c.bf16 %v9886_v54, %v9886_v54  ;;  %v7360_v44 = vadd.f32 %v12483_v37, %v15690_v3 }
 0x4b6   : > { %v6117_v25 = vpack.c.b16 %v6018_v62, %v6017_v31  ;;  %v12673_v31 = vadd.s32 2, %v15684_v30 }
 0x4b7   : > { %2321 = vperm.xlu1 %10541, %v15673_v52   ;;  %v7680_v41 = vpop.f32.mrf.mxu1 }
 0x4b8   : > { %v12651_v47 = vadd.f32 %v7680_v41, %v7352_v5  ;;  %10545 = vset.pattern.permute.xlu2 %v11463_v32  ;;  %v12660_v5 = vpop.permute.xlu1 %2111  ;;  %v12662_v41 = vpop.permute.xlu2 %2147  ;;  %10550 = vset.pattern.permute.xlu0 %v12673_v31 }
 0x4ba   : > { %15679 = vst [vmem:[#allocation149_spill] sm:$0xff] %v12651_v47 }
 0x4bf   : > { %10544 = vset.pattern.permute.xlu1 %v11663_v42  ;;  %v7683_v52 = vpop.f32.mrf.mxu1 }
 0x4c0   : > { %v12657_v45 = vadd.f32 %v7683_v52, %v7355_v18  ;;  %2345 = vperm.xlu2 %10545, %v15682_v53   ;;  %v9887_v52 = vsel %vm2436_vm10, 1.0, %v15365_v51  ;;  %v15688_v18 = vld [vmem:[#allocation119_spill] sm:$0xff]  ;;  %2905 = vperm.xlu0 %10550, %v15691_v9   ;;  %vm2451_vm10 = vcmp.eq.s32.totalorder %v12545_v7, %v11093_v8 }
 0x4c1   : > { %v2820_v50 = vpack.c.bf16 %v9887_v52, %v9887_v52 }
 0x4c2   : > { %15681 = vst [vmem:[#allocation143_spill] sm:$0xff] %v12657_v45  ;;  %7553 = vmatmul.bf16.gmra.mxu0 %v5765_v46  ;;  %7722 = vmatmul.bf16.gmra.mxu1 %v6117_v25  ;;  %v12682_v46 = vpop.permute.xlu1 %2129  ;;  %v12684_v25 = vpop.permute.xlu2 %2165  ;;  %v6019_v45 = vunpack.c.l.b16 %v2819_v58  ;;  %v9889_v58 = vsel %vm2438_vm13, 1.0, %v15365_v51  ;;  %vm2453_vm13 = vcmp.eq.s32.totalorder %v12610_v17, %v11093_v8 }
 0x4c3   : > { %15689 = vst [vmem:[#allocation30_spill] sm:$0xff] %v12684_v25  ;;  %v6020_v47 = vunpack.c.l.b16 %v2820_v50  ;;  %v15700_v25 = vld [vmem:[#allocation9_spill] sm:$0xff] }
 0x4c5   : > { %v6118_v54 = vpack.c.b16 %v6020_v47, %v6019_v45  ;;  %v15695_v45 = vld [vmem:[#allocation148_spill] sm:$0xff] }
 0x4c7   : > { %2339 = vperm.xlu1 %10544, %v15686_v19   ;;  %v7685_v11 = vpop.f32.mrf.mxu1 }
 0x4c8   : > { %v12679_v62 = vadd.f32 %v7685_v11, %v7357_v48  ;;  %2357 = vperm.xlu2 %10545, %v15688_v18   ;;  %v15693_v48 = vld [vmem:[#allocation145_spill] sm:$0xff] }
 0x4c9   : > { %vm2437_vm12 = vcmp.eq.s32.totalorder %v15693_v48, %v11093_v8  ;;  %v15697_v48 = vld [vmem:[#allocation121_spill] sm:$0xff] }
 0x4ca   : > { %15687 = vst [vmem:[#allocation2_spill] sm:$0xff] %v12679_v62  ;;  %v12697_v11 = vpop.permute.xlu1 %2141  ;;  %v12699_v3 = vpop.permute.xlu2 %2177  ;;  %v9888_v50 = vsel %vm2437_vm12, 1.0, %v15365_v51  ;;  %vm2454_vm12 = vcmp.eq.s32.totalorder %v12558_v14, %v11093_v8 }
 0x4cb   : > { %15694 = vst [vmem:[#allocation3_spill] sm:$0xff] %v12699_v3  ;;  %v2821_v60 = vpack.c.bf16 %v9888_v50, %v9888_v50  ;;  %v15699_v3 = vld [vmem:[#allocation151_spill] sm:$0xff] }
 0x4cf   : > { %2351 = vperm.xlu1 %10544, %v15682_v53   ;;  %v7688_v19 = vpop.f32.mrf.mxu1  ;;  %v6021_v53 = vunpack.c.l.b16 %v2821_v60  ;;  %v7367_v60 = vadd.f32 %v12483_v37, %v11866_v24  ;;  %v7370_v24 = vadd.f32 %v12483_v37, %v11874_v28  ;;  %v9892_v28 = vsel %vm2441_vm0, 1.0, %v15365_v51 }
 0x4d0   : > { %v12690_v52 = vadd.f32 %v7688_v19, %v7360_v44  ;;  %10547 = vset.pattern.permute.xlu2 %v11663_v42  ;;  %v12704_v19 = vadd.s32 10, %v15684_v30  ;;  %v7362_v42 = vadd.f32 %v12483_v37, %v15695_v45  ;;  %v2822_v44 = vpack.c.bf16 %v9889_v58, %v9889_v58 }
 0x4d1   : > { %v7365_v45 = vadd.f32 %v12483_v37, %v15699_v3  ;;  %v9891_v3 = vsel %vm2440_vm15, 1.0, %v15365_v51  ;;  %vm2456_vm15 = vcmp.eq.s32.totalorder %v12585_v26, %v11093_v8  ;;  %vm2455_vm0 = vcmp.eq.s32.totalorder %v12624_v34, %v11093_v8 }
 0x4d2   : > { %15692 = vst [vmem:[#allocation147_spill] sm:$0xff] %v12690_v52  ;;  %7727 = vmatmul.bf16.gmra.mxu1 %v6118_v54  ;;  %10553 = vset.pattern.permute.xlu0 %v12704_v19  ;;  %v12713_v18 = vpop.permute.xlu1 %2159  ;;  %v6022_v62 = vunpack.c.l.b16 %v2822_v44  ;;  %v12715_v52 = vpop.permute.xlu2 %2195 }
 0x4d3   : > { %15698 = vst [vmem:[#allocation148_spill] sm:$0xff] %v12715_v52 }
 0x4d4   : > { %v6119_v58 = vpack.c.b16 %v6022_v62, %v6021_v53  ;;  %v15703_v62 = vld [vmem:[#allocation19_spill] sm:$0xff] }
 0x4d7   : > { %10546 = vset.pattern.permute.xlu1 %v11463_v32  ;;  %v7690_v47 = vpop.f32.mrf.mxu1 }
 0x4d8   : > { %v12710_v54 = vadd.f32 %v7690_v47, %v7362_v42  ;;  %2375 = vperm.xlu2 %10547, %v15697_v48   ;;  %v9890_v42 = vsel %vm2439_vm14, 1.0, %v15365_v51 }
 0x4d9   : > { %v2823_v57 = vpack.c.bf16 %v9890_v42, %v9890_v42 }
 0x4da   : > { %15696 = vst [vmem:[#allocation145_spill] sm:$0xff] %v12710_v54  ;;  %2935 = vperm.xlu0 %10553, %v15700_v25   ;;  %v12730_v47 = vpop.permute.xlu1 %2171  ;;  %v12734_v44 = vpop.permute.xlu2 %2207 }
 0x4db   : > { %15702 = vst [vmem:[#allocation9_spill] sm:$0xff] %v12734_v44 }
 0x4df   : > { %2369 = vperm.xlu1 %10546, %v15697_v48   ;;  %v7693_v32 = vpop.f32.mrf.mxu1 }
 0x4e0   : > { %v12721_v50 = vadd.f32 %v7693_v32, %v7365_v45  ;;  %10549 = vset.pattern.permute.xlu2 %v12704_v19  ;;  %v2824_v45 = vpack.c.bf16 %v9891_v3, %v9891_v3  ;;  %v15705_v32 = vld [vmem:[#allocation4_spill] sm:$0xff] }
 0x4e2   : > { %15701 = vst [vmem:[#allocation151_spill] sm:$0xff] %v12721_v50  ;;  %7732 = vmatmul.bf16.gmra.mxu1 %v6119_v58  ;;  %2995 = vperm.xlu0 %10553, %v15703_v62   ;;  %v6023_v58 = vunpack.c.l.b16 %v2823_v57  ;;  %v6024_v48 = vunpack.c.l.b16 %v2824_v45  ;;  %v12741_v54 = vpop.permute.xlu1 %2189  ;;  %v2004_v50 = vpop.permute.xlu0 %2003 }
 0x4e3   : > { %v12745_v44 = vpop.permute.xlu2 %2225  ;;  %vm2442_vm1 = vcmp.eq.s32.totalorder %v2004_v50, %v11093_v8  ;;  %v15709_v50 = vld [vmem:[#allocation5_spill] sm:$0xff] }
 0x4e4   : > { %15706 = vst [vmem:[#allocation4_spill] sm:$0xff] %v12745_v44  ;;  %v6120_v3 = vpack.c.b16 %v6024_v48, %v6023_v58  ;;  %v2825_v48 = vpack.c.bf16 %v9892_v28, %v9892_v28  ;;  %v15711_v44 = vld [vmem:[#allocation14_spill] sm:$0xff] }
 0x4e7   : > { %10548 = vset.pattern.permute.xlu1 %v12673_v31  ;;  %v7695_v53 = vpop.f32.mrf.mxu1 }
 0x4e8   : > { %v12738_v1 = vadd.f32 %v7695_v53, %v7367_v60  ;;  %2899 = vperm.xlu2 %10549, %v15705_v32   ;;  %v9893_v60 = vsel %vm2442_vm1, 1.0, %v15365_v51  ;;  %v7372_v53 = vadd.f32 %v12483_v37, %v11889_v23  ;;  %v7375_v23 = vadd.f32 %v12483_v37, %v11897_v16 }
 0x4e9   : > { %v2826_v45 = vpack.c.bf16 %v9893_v60, %v9893_v60 }
 0x4ea   : > { %15704 = vst [vmem:[#allocation19_spill] sm:$0xff] %v12738_v1  ;;  %3055 = vperm.xlu0 %10553, %v15489_v13   ;;  %v12759_v57 = vpop.permute.xlu1 %2201 }
 0x4eb   : > { %v12766_v58 = vpop.permute.xlu2 %2237 }
 0x4ec   : > { %15710 = vst [vmem:[#allocation5_spill] sm:$0xff] %v12766_v58  ;;  %v15719_v58 = vld [vmem:[#allocation27_spill] sm:$0xff] }
 0x4ef   : > { %2893 = vperm.xlu1 %10548, %v15705_v32   ;;  %v7698_v52 = vpop.f32.mrf.mxu1 }
 0x4f0   : > { %v12749_v42 = vadd.f32 %v7698_v52, %v7370_v24  ;;  %10552 = vset.pattern.permute.xlu2 %v12673_v31  ;;  %v6025_v24 = vunpack.c.l.b16 %v2825_v48 }
 0x4f2   : > { %15707 = vst [vmem:[#allocation158_spill] sm:$0xff] %v12749_v42  ;;  %7737 = vmatmul.bf16.gmra.mxu1 %v6120_v3  ;;  %10562 = vset.pattern.permute.xlu0 %v12673_v31  ;;  %v6026_v3 = vunpack.c.l.b16 %v2826_v45  ;;  %v12770_v1 = vpop.permute.xlu1 %2219  ;;  %v15714_v45 = vld [vmem:[#allocation24_spill] sm:$0xff] }
 0x4f3   : > { %v12781_v16 = vpop.permute.xlu2 %2255 }
 0x4f4   : > { %v6121_v60 = vpack.c.b16 %v6026_v3, %v6025_v24  ;;  %15713 = vst [vmem:[#allocation160_spill] sm:$0xff] %v12781_v16 }
 0x4f7   : > { %10551 = vset.pattern.permute.xlu1 %v12704_v19  ;;  %v7700_v52 = vpop.f32.mrf.mxu1 }
 0x4f8   : > { %v12763_v55 = vadd.f32 %v7700_v52, %v7372_v53  ;;  %2917 = vperm.xlu2 %10552, %v15709_v50   ;;  %v9895_v53 = vsel %vm2444_vm2, 1.0, %v15365_v51  ;;  %v9894_v52 = vsel %vm2443_vm3, 1.0, %v15365_v51 }
 0x4f9   : > { %v2828_v24 = vpack.c.bf16 %v9895_v53, %v9895_v53  ;;  %v2827_v36 = vpack.c.bf16 %v9894_v52, %v9894_v52 }
 0x4fa   : > { %15708 = vst [vmem:[#allocation159_spill] sm:$0xff] %v12763_v55  ;;  %2965 = vperm.xlu0 %10562, %v15711_v44   ;;  %v12792_v10 = vpop.permute.xlu1 %2231 }
 0x4fb   : > { %15716 = vst [vmem:[#allocation161_spill] sm:$0xff] %v12792_v10  ;;  %v12794_v55 = vpop.permute.xlu2 %2267 }
 0x4fc   : > { %15717 = vst [vmem:[#allocation162_spill] sm:$0xff] %v12794_v55  ;;  %v15726_v55 = vld [vmem:[#allocation32_spill] sm:$0xff] }
 0x4ff   : > { %2911 = vperm.xlu1 %10551, %v15691_v9   ;;  %v7703_v42 = vpop.f32.mrf.mxu1 }
 0x500   : > { %v12774_v28 = vadd.f32 %v7703_v42, %v7375_v23  ;;  %2929 = vperm.xlu2 %10552, %v15700_v25   ;;  %v7377_v42 = vadd.f32 %v12483_v37, %v11913_v35  ;;  %v6028_v23 = vunpack.c.l.b16 %v2828_v24  ;;  %v9896_v24 = vsel %vm2445_vm5, 1.0, %v15365_v51 }
 0x502   : > { %15712 = vst [vmem:[#allocation14_spill] sm:$0xff] %v12774_v28  ;;  %7742 = vmatmul.bf16.gmra.mxu1 %v6121_v60  ;;  %3025 = vperm.xlu0 %10562, %v15714_v45   ;;  %v6027_v60 = vunpack.c.l.b16 %v2827_v36  ;;  %v15718_v28 = vld [vmem:[#allocation78_spill] sm:$0xff] }
 0x503   : > { %v7380_v35 = vadd.f32 %v12483_v37, %v15718_v28  ;;  %v9897_v28 = vsel %vm2446_vm4, 1.0, %v15365_v51  ;;  %v12811_v36 = vpop.permute.xlu2 %2285  ;;  %vm2458_vm4 = vcmp.eq.s32.totalorder %v12646_v22, %v11093_v8 }
 0x504   : > { %v6122_v52 = vpack.c.b16 %v6028_v23, %v6027_v60  ;;  %v2830_v60 = vpack.c.bf16 %v9897_v28, %v9897_v28 }
 0x507   : > { %2923 = vperm.xlu1 %10551, %v15709_v50   ;;  %v7705_v48 = vpop.f32.mrf.mxu1 }
 0x508   : > { %v12789_v3 = vadd.f32 %v7705_v48, %v7377_v42  ;;  %10555 = vset.pattern.permute.xlu2 %v12704_v19  ;;  %v15721_v42 = vld [vmem:[#allocation6_spill] sm:$0xff]  ;;  %v12803_v48 = vpop.permute.xlu1 %2249 }
 0x509   : > { %15722 = vst [vmem:[#allocation27_spill] sm:$0xff] %v12803_v48  ;;  %v7385_v48 = vadd.f32 %v12483_v37, %v15726_v55 }
 0x50a   : > { %15715 = vst [vmem:[#allocation24_spill] sm:$0xff] %v12789_v3  ;;  %3073 = vperm.xlu0 %10562, %v15719_v58  }
 0x50b   : > { %15723 = vst [vmem:[#allocation6_spill] sm:$0xff] %v12811_v36  ;;  %v12823_v36 = vpop.permute.xlu2 %2297 }
 0x50f   : > { %10554 = vset.pattern.permute.xlu1 %v12673_v31  ;;  %v7708_v16 = vpop.f32.mrf.mxu1 }
 0x510   : > { %v12800_v53 = vadd.f32 %v7708_v16, %v7380_v35  ;;  %2947 = vperm.xlu2 %10555, %v15721_v42   ;;  %v7382_v16 = vadd.f32 %v12483_v37, %v11931_v27  ;;  %v2829_v35 = vpack.c.bf16 %v9896_v24, %v9896_v24  ;;  %v12819_v59 = vpop.permute.xlu1 %2261  ;;  %v15728_v24 = vld [vmem:[#allocation90_spill] sm:$0xff] }
 0x511   : > { %vm2447_vm6 = vcmp.eq.s32.totalorder %v15728_v24, %v11093_v8 }
 0x512   : > { %15720 = vst [vmem:[#allocation78_spill] sm:$0xff] %v12800_v53  ;;  %7747 = vmatmul.bf16.gmra.mxu1 %v6122_v52  ;;  %v6030_v52 = vunpack.c.l.b16 %v2830_v60  ;;  %v6029_v53 = vunpack.c.l.b16 %v2829_v35  ;;  %v9898_v55 = vsel %vm2447_vm6, 1.0, %v15365_v51 }
 0x513   : > { %v2831_v60 = vpack.c.bf16 %v9898_v55, %v9898_v55  ;;  %v7390_v55 = vadd.f32 %v12483_v37, %v11953_v40 }
 0x514   : > { %v6123_v28 = vpack.c.b16 %v6030_v52, %v6029_v53 }
 0x515   : > { %v6031_v24 = vunpack.c.l.b16 %v2831_v60  ;;  %v9900_v60 = vsel %vm2449_vm8, 1.0, %v15365_v51  ;;  %vm2459_vm8 = vcmp.eq.s32.totalorder %v12602_v63, %v11093_v8 }
 0x517   : > { %2941 = vperm.xlu1 %10554, %v15721_v42   ;;  %v7710_v23 = vpop.f32.mrf.mxu1 }
 0x518   : > { %v12816_v3 = vadd.f32 %v7710_v23, %v7382_v16  ;;  %2959 = vperm.xlu2 %10555, %v15725_v6   ;;  %v12833_v16 = vpop.permute.xlu1 %2279  ;;  %v9899_v23 = vsel %vm2448_vm7, 1.0, %v15365_v51 }
 0x519   : > { %v2832_v35 = vpack.c.bf16 %v9899_v23, %v9899_v23 }
 0x51a   : > { %15724 = vst [vmem:[#allocation163_spill] sm:$0xff] %v12816_v3 }
 0x51b   : > { %v6032_v3 = vunpack.c.l.b16 %v2832_v35 }
 0x51f   : > { %2953 = vperm.xlu1 %10554, %v15725_v6   ;;  %v7713_v27 = vpop.f32.mrf.mxu1 }
 0x520   : > { %v12826_v10 = vadd.f32 %v7713_v27, %v7385_v48  ;;  %10557 = vset.pattern.permute.xlu2 %v12673_v31  ;;  %v7387_v48 = vadd.f32 %v12483_v37, %v11949_v49  ;;  %v15730_v27 = vld [vmem:[#allocation17_spill] sm:$0xff]  ;;  %v10396_v49 = vld [vmem:[%s15143_s1 + $0xb0] sm:$0xff] }
 0x521   : > { %7904 = vmatpush.bf16.msrb.mxu2 %v10396_v49  ;;  %v10394_v49 = vld [vmem:[%s15143_s1 + $0xa0] sm:$0xff] }
 0x522   : > { %15727 = vst [vmem:[#allocation12_spill] sm:$0xff] %v12826_v10  ;;  %7752 = vmatmul.bf16.gmra.mxu1 %v6123_v28  ;;  %v12846_v28 = vpop.permute.xlu2 %2315  ;;  %v12851_v10 = vpop.permute.xlu1 %2291 }
 0x523   : > { %15731 = vst [vmem:[#allocation90_spill] sm:$0xff] %v12846_v28 }
 0x525   : > { %7905 = vmatpush.bf16.msrb.mxu2 %v10395_v15  ;;  %v10393_v15 = vld [vmem:[%s15143_s1 + $0x98] sm:$0xff] }
 0x527   : > { %10556 = vset.pattern.permute.xlu1 %v12704_v19  ;;  %v7715_v53 = vpop.f32.mrf.mxu1 }
 0x528   : > { %v12840_v52 = vadd.f32 %v7715_v53, %v7387_v48  ;;  %2977 = vperm.xlu2 %10557, %v15730_v27   ;;  %v6124_v53 = vpack.c.b16 %v6032_v3, %v6031_v24  ;;  %v9901_v3 = vsel %vm2450_vm9, 1.0, %v15365_v51  ;;  %v2064_v24 = vpop.permute.xlu0 %2063  ;;  %vm2460_vm9 = vcmp.eq.s32.totalorder %v12660_v5, %v11093_v8 }
 0x529   : > { %7906 = vmatpush.bf16.msrb.mxu2 %v10394_v49  ;;  %vm2452_vm11 = vcmp.eq.s32.totalorder %v2064_v24, %v11093_v8 }
 0x52a   : > { %15729 = vst [vmem:[#allocation32_spill] sm:$0xff] %v12840_v52  ;;  %v12866_v40 = vpop.permute.xlu2 %2327  ;;  %v12870_v35 = vpop.permute.xlu1 %2309 }
 0x52b   : > { %15733 = vst [vmem:[#allocation164_spill] sm:$0xff] %v12866_v40 }
 0x52c   : > { %15734 = vst [vmem:[#allocation165_spill] sm:$0xff] %v12870_v35 }
 0x52d   : > { %7907 = vmatpush.bf16.msrb.mxu2 %v10393_v15 }
 0x52f   : > { %2971 = vperm.xlu1 %10556, %v15711_v44   ;;  %v7718_v23 = vpop.f32.mrf.mxu1 }
 0x530   : > { %v12856_v48 = vadd.f32 %v7718_v23, %v7390_v55  ;;  %2989 = vperm.xlu2 %10557, %v15703_v62   ;;  %v2833_v55 = vpack.c.bf16 %v9900_v60, %v9900_v60  ;;  %v2834_v23 = vpack.c.bf16 %v9901_v3, %v9901_v3  ;;  %v7395_v60 = vadd.f32 %v12483_v37, %v11971_v29  ;;  %v12891_v3 = vpop.permute.xlu0 %2123 }
 0x531   : > { %7908 = vmatpush.bf16.msrb.mxu2 %v10392_v21  ;;  %v9902_v29 = vsel %vm2451_vm10, 1.0, %v15365_v51 }
 0x532   : > { %15732 = vst [vmem:[#allocation17_spill] sm:$0xff] %v12856_v48  ;;  %7757 = vmatmul.bf16.gmra.mxu1 %v6124_v53  ;;  %v12884_v48 = vpop.permute.xlu2 %2345  ;;  %v6033_v52 = vunpack.c.l.b16 %v2833_v55  ;;  %v6034_v40 = vunpack.c.l.b16 %v2834_v23  ;;  %v12893_v49 = vpop.permute.xlu1 %2321  ;;  %v10391_v55 = vld [vmem:[%s15143_s1 + $0x88] sm:$0xff]  ;;  %v9903_v23 = vsel %vm2452_vm11, 1.0, %v15365_v51 }
 0x533   : > { %15736 = vst [vmem:[#allocation167_spill] sm:$0xff] %v12884_v48 }
 0x534   : > { %15737 = vst [vmem:[#allocation168_spill] sm:$0xff] %v12893_v49  ;;  %v6125_v15 = vpack.c.b16 %v6034_v40, %v6033_v52  ;;  %v10390_v52 = vld [vmem:[%s15143_s1 + $0x80] sm:$0xff]  ;;  %v7397_v40 = vadd.f32 %v12483_v37, %v11986_v20  ;;  %v7400_v49 = vadd.f32 %v12483_v37, %v11990_v2  ;;  %v9905_v2 = vsel %vm2454_vm12, 1.0, %v15365_v51 }
 0x535   : > { %7909 = vmatpush.bf16.msrb.mxu2 %v10391_v55  ;;  %vm2461_vm12 = vcmp.eq.s32.totalorder %v12618_v12, %v11093_v8 }
 0x537   : > { %2983 = vperm.xlu1 %10556, %v15730_v27   ;;  %v7720_v4 = vpop.f32.mrf.mxu1 }
 0x538   : > { %v12878_v53 = vadd.f32 %v7720_v4, %v7392_v56  ;;  %10559 = vset.pattern.permute.xlu2 %v12704_v19 }
 0x539   : > { %7910 = vmatpush.bf16.msrb.mxu2 %v10390_v52  ;;  %v9904_v52 = vsel %vm2453_vm13, 1.0, %v15365_v51  ;;  %vm2462_vm13 = vcmp.eq.s32.totalorder %v12891_v3, %v11093_v8 }
 0x53a   : > { %15735 = vst [vmem:[#allocation166_spill] sm:$0xff] %v12878_v53  ;;  %v15739_v53 = vld [vmem:[#allocation7_spill] sm:$0xff]  ;;  %v12907_v21 = vpop.permute.xlu2 %2357  ;;  %v12916_v7 = vpop.permute.xlu1 %2339 }
 0x53b   : > { %15740 = vst [vmem:[#allocation7_spill] sm:$0xff] %v12907_v21 }
 0x53c   : > { %15741 = vst [vmem:[#allocation170_spill] sm:$0xff] %v12916_v7 }
 0x53f   : > { %10558 = vset.pattern.permute.xlu1 %v12673_v31  ;;  %v7723_v56 = vpop.f32.mrf.mxu1 }
 0x540   : > { %v12896_v4 = vadd.f32 %v7723_v56, %v7395_v60  ;;  %3007 = vperm.xlu2 %10559, %v15739_v53   ;;  %v12914_v60 = vpop.permute.xlu0 %2183  ;;  %v2835_v56 = vpack.c.bf16 %v9902_v29, %v9902_v29 }
 0x542   : > { %15738 = vst [vmem:[#allocation169_spill] sm:$0xff] %v12896_v4  ;;  %7762 = vmatmul.bf16.gmra.mxu1 %v6125_v15  ;;  %v2836_v15 = vpack.c.bf16 %v9903_v23, %v9903_v23  ;;  %v15743_v4 = vld [vmem:[#allocation22_spill] sm:$0xff]  ;;  %v6035_v21 = vunpack.c.l.b16 %v2835_v56  ;;  %v12927_v35 = vpop.permute.xlu2 %2375  ;;  %v12932_v23 = vpop.permute.xlu1 %2351  ;;  %v2837_v56 = vpack.c.bf16 %v9904_v52, %v9904_v52 }
 0x543   : > { %15744 = vst [vmem:[#allocation22_spill] sm:$0xff] %v12927_v35 }
 0x544   : > { %v6036_v48 = vunpack.c.l.b16 %v2836_v15  ;;  %v15748_v15 = vld [vmem:[#allocation25_spill] sm:$0xff] }
 0x546   : > { %v6126_v29 = vpack.c.b16 %v6036_v48, %v6035_v21 }
 0x547   : > { %3001 = vperm.xlu1 %10558, %v15739_v53   ;;  %v7725_v24 = vpop.f32.mrf.mxu1 }
 0x548   : > { %v12919_v55 = vadd.f32 %v7725_v24, %v7397_v40  ;;  %3019 = vperm.xlu2 %10559, %v15743_v4   ;;  %v12924_v20 = vpop.permute.xlu0 %2243  ;;  %v15746_v40 = vld [vmem:[#allocation80_spill] sm:$0xff]  ;;  %v2838_v24 = vpack.c.bf16 %v9905_v2, %v9905_v2 }
 0x54a   : > { %15742 = vst [vmem:[#allocation171_spill] sm:$0xff] %v12919_v55  ;;  %v2900_v21 = vpop.permute.xlu2 %2899  ;;  %v7405_v55 = vadd.f32 %v12483_v37, %v12010_v61 }
 0x54b   : > { %vm3658_vm14 = vcmp.eq.s32.totalorder %v2900_v21, %v11093_v8 }
 0x54f   : > { %3013 = vperm.xlu1 %10558, %v15743_v4   ;;  %v7728_v7 = vpop.f32.mrf.mxu1 }
 0x550   : > { %v12929_v28 = vadd.f32 %v7728_v7, %v7400_v49  ;;  %10561 = vset.pattern.permute.xlu2 %v12673_v31  ;;  %v7402_v49 = vadd.f32 %v12483_v37, %v15746_v40  ;;  %v12942_v7 = vpop.permute.xlu0 %2303  ;;  %v9957_v40 = vsel %vm3658_vm14, 1.0, %v15365_v51 }
 0x551   : > { %v12948_v17 = vpop.permute.xlu1 %2369 }
 0x552   : > { %15745 = vst [vmem:[#allocation172_spill] sm:$0xff] %v12929_v28  ;;  %7767 = vmatmul.bf16.gmra.mxu1 %v6126_v29  ;;  %v6038_v29 = vunpack.c.l.b16 %v2838_v24  ;;  %v6037_v28 = vunpack.c.l.b16 %v2837_v56  ;;  %v7407_v56 = vadd.f32 %v12483_v37, %v12026_v38  ;;  %v7410_v38 = vadd.f32 %v12483_v37, %v12032_v39 }
 0x557   : > { %10560 = vset.pattern.permute.xlu1 %v12704_v19  ;;  %v7730_v48 = vpop.f32.mrf.mxu1 }
 0x558   : > { %v12945_v14 = vadd.f32 %v7730_v48, %v7402_v49  ;;  %3037 = vperm.xlu2 %10561, %v15748_v15   ;;  %v12954_v35 = vpop.permute.xlu0 %2363  ;;  %v4042_v49 = vpack.c.bf16 %v9957_v40, %v9957_v40  ;;  %v6127_v48 = vpack.c.b16 %v6038_v29, %v6037_v28  ;;  %v9906_v28 = vsel %vm2455_vm0, 1.0, %v15365_v51 }
 0x55a   : > { %15747 = vst [vmem:[#allocation80_spill] sm:$0xff] %v12945_v14  ;;  %v6346_v21 = vunpack.c.l.b16 %v4042_v49 }
 0x55f   : > { %3031 = vperm.xlu1 %10560, %v15714_v45   ;;  %v7733_v2 = vpop.f32.mrf.mxu1 }
 0x560   : > { %v12957_v52 = vadd.f32 %v7733_v2, %v7405_v55  ;;  %3049 = vperm.xlu2 %10561, %v15489_v13   ;;  %v9907_v55 = vsel %vm2456_vm15, 1.0, %v15365_v51  ;;  %v2906_v40 = vpop.permute.xlu0 %2905  ;;  %v2839_v2 = vpack.c.bf16 %v9906_v28, %v9906_v28 }
 0x561   : > { %v2894_v14 = vpop.permute.xlu1 %2893  ;;  %v2840_v34 = vpack.c.bf16 %v9907_v55, %v9907_v55  ;;  %vm3659_vm2 = vcmp.eq.s32.totalorder %v2906_v40, %v11093_v8 }
 0x562   : > { %15749 = vst [vmem:[#allocation25_spill] sm:$0xff] %v12957_v52  ;;  %vm3657_vm1 = vcmp.eq.s32.totalorder %v2894_v14, %v11093_v8  ;;  %7772 = vmatmul.bf16.gmra.mxu1 %v6127_v48  ;;  %v9958_v52 = vsel %vm3659_vm2, 1.0, %v15365_v51 }
 0x563   : > { %v9956_v61 = vsel %vm3657_vm1, 1.0, %v15365_v51  ;;  %v6040_v49 = vunpack.c.l.b16 %v2840_v34  ;;  %v4043_v28 = vpack.c.bf16 %v9958_v52, %v9958_v52  ;;  %vm2463_vm1 = vcmp.eq.s32.totalorder %v12682_v46, %v11093_v8 }
 0x564   : > { %v4041_v24 = vpack.c.bf16 %v9956_v61, %v9956_v61  ;;  %v6039_v61 = vunpack.c.l.b16 %v2839_v2  ;;  %v12989_v2 = vadd.s32 11, %v15684_v30 }
 0x565   : > { %v6347_v34 = vunpack.c.l.b16 %v4043_v28 }
 0x566   : > { %v6345_v29 = vunpack.c.l.b16 %v4041_v24  ;;  %10569 = vset.pattern.permute.xlu0 %v12989_v2 }
 0x567   : > { %3043 = vperm.xlu1 %10560, %v15748_v15   ;;  %v7735_v26 = vpop.f32.mrf.mxu1 }
 0x568   : > { %v12971_v14 = vadd.f32 %v7735_v26, %v7407_v56  ;;  %v6473_v48 = vpack.c.b16 %v6346_v21, %v6345_v29  ;;  %10564 = vset.pattern.permute.xlu2 %v12704_v19  ;;  %v6128_v56 = vpack.c.b16 %v6040_v49, %v6039_v61  ;;  %v15752_v21 = vld [vmem:[#allocation8_spill] sm:$0xff]  ;;  %v15753_v26 = vld [vmem:[#allocation150_spill] sm:$0xff]  ;;  %v15754_v49 = vld [vmem:[#allocation33_spill] sm:$0xff] }
 0x569   : > { %vm2457_vm3 = vcmp.eq.s32.totalorder %v15753_v26, %v11093_v8  ;;  %v7412_v61 = vadd.f32 %v12483_v37, %v15754_v49  ;;  %v13003_v37 = vadd.s32 3, %v15684_v30 }
 0x56a   : > { %15750 = vst [vmem:[#allocation173_spill] sm:$0xff] %v12971_v14  ;;  %7911 = vmatmul.bf16.vlgmr.msrb.gmra.mxu2 %v6473_v48  ;;  %v9908_v52 = vsel %vm2457_vm3, 1.0, %v15365_v51  ;;  %v9909_v48 = vsel %vm2458_vm4, 1.0, %v15365_v51  ;;  %vm2466_vm4 = vcmp.eq.s32.totalorder %v12662_v41, %v11093_v8 }
 0x56e   : > { %4227 = vperm.xlu0 %10569, %v15721_v42  }
 0x56f   : > { %10563 = vset.pattern.permute.xlu1 %v12673_v31  ;;  %v7738_v24 = vpop.f32.mrf.mxu1 }
 0x570   : > { %v12979_v55 = vadd.f32 %v7738_v24, %v7410_v38  ;;  %3067 = vperm.xlu2 %10564, %v15752_v21   ;;  %v2918_v24 = vpop.permute.xlu2 %2917 }
 0x571   : > { %v2912_v29 = vpop.permute.xlu1 %2911  ;;  %vm3661_vm6 = vcmp.eq.s32.totalorder %v2918_v24, %v11093_v8 }
 0x572   : > { %15751 = vst [vmem:[#allocation174_spill] sm:$0xff] %v12979_v55  ;;  %vm3660_vm5 = vcmp.eq.s32.totalorder %v2912_v29, %v11093_v8  ;;  %7777 = vmatmul.bf16.gmra.mxu1 %v6128_v56  ;;  %v2841_v56 = vpack.c.bf16 %v9908_v52, %v9908_v52  ;;  %v2842_v29 = vpack.c.bf16 %v9909_v48, %v9909_v48  ;;  %v9960_v55 = vsel %vm3661_vm6, 1.0, %v15365_v51  ;;  %v15756_v48 = vld [vmem:[#allocation96_spill] sm:$0xff] }
 0x573   : > { %v9959_v39 = vsel %vm3660_vm5, 1.0, %v15365_v51  ;;  %vm2465_vm5 = vcmp.eq.s32.totalorder %v12697_v11, %v11093_v8 }
 0x574   : > { %v4044_v40 = vpack.c.bf16 %v9959_v39, %v9959_v39  ;;  %v6042_v49 = vunpack.c.l.b16 %v2842_v29 }
 0x576   : > { %v6348_v38 = vunpack.c.l.b16 %v4044_v40  ;;  %v6041_v40 = vunpack.c.l.b16 %v2841_v56  ;;  %4251 = vperm.xlu0 %10569, %v15711_v44  }
 0x577   : > { %3061 = vperm.xlu1 %10563, %v15752_v21   ;;  %v7740_v22 = vpop.f32.mrf.mxu1 }
 0x578   : > { %v12997_v28 = vadd.f32 %v7740_v22, %v7412_v61  ;;  %v6474_v26 = vpack.c.b16 %v6348_v38, %v6347_v34  ;;  %10566 = vset.pattern.permute.xlu2 %v12989_v2  ;;  %v13010_v34 = vld [vmem:[%s15144_s2] ss:$0 sm:$0xff]  ;;  %v4045_v38 = vpack.c.bf16 %v9960_v55, %v9960_v55  ;;  %v6129_v56 = vpack.c.b16 %v6042_v49, %v6041_v40 }
 0x579   : > { %v2924_v39 = vpop.permute.xlu1 %2923  ;;  %v7415_v61 = vadd.f32 %v13010_v34, %v15756_v48  ;;  %v9911_v48 = vsel %vm2460_vm9, 1.0, %v15365_v51  ;;  %v15758_v55 = vld [vmem:[#allocation98_spill] sm:$0xff]  ;;  %vm2468_vm9 = vcmp.eq.s32.totalorder %v12713_v18, %v11093_v8 }
 0x57a   : > { %15755 = vst [vmem:[#allocation8_spill] sm:$0xff] %v12997_v28  ;;  %vm3662_vm7 = vcmp.eq.s32.totalorder %v2924_v39, %v11093_v8  ;;  %7916 = vmatmul.bf16.gmra.mxu2 %v6474_v26  ;;  %v6349_v29 = vunpack.c.l.b16 %v4045_v38  ;;  %v9910_v39 = vsel %vm2459_vm8, 1.0, %v15365_v51  ;;  %v2844_v63 = vpack.c.bf16 %v9911_v48, %v9911_v48  ;;  %v2936_v38 = vpop.permute.xlu0 %2935 }
 0x57b   : > { %v9961_v52 = vsel %vm3662_vm7, 1.0, %v15365_v51  ;;  %v2843_v49 = vpack.c.bf16 %v9910_v39, %v9910_v39  ;;  %vm3664_vm11 = vcmp.eq.s32.totalorder %v2936_v38, %v11093_v8  ;;  %v7420_v39 = vadd.f32 %v13010_v34, %v12085_v43 }
 0x57c   : > { %v4046_v22 = vpack.c.bf16 %v9961_v52, %v9961_v52  ;;  %v7417_v52 = vadd.f32 %v13010_v34, %v15758_v55 }
 0x57e   : > { %v6350_v26 = vunpack.c.l.b16 %v4046_v22  ;;  %v6043_v22 = vunpack.c.l.b16 %v2843_v49  ;;  %4263 = vperm.xlu0 %10569, %v15730_v27  }
 0x57f   : > { %10565 = vset.pattern.permute.xlu1 %v13003_v37  ;;  %v7743_v30 = vpop.f32.mrf.mxu1 }
 0x580   : > { %v13016_v24 = vadd.f32 %v7743_v30, %v7415_v61  ;;  %4179 = vperm.xlu2 %10566, %v15705_v32   ;;  %v6475_v5 = vpack.c.b16 %v6350_v26, %v6349_v29  ;;  %v2930_v30 = vpop.permute.xlu2 %2929 }
 0x581   : > { %vm3663_vm10 = vcmp.eq.s32.totalorder %v2930_v30, %v11093_v8 }
 0x582   : > { %15757 = vst [vmem:[#allocation150_spill] sm:$0xff] %v13016_v24  ;;  %7782 = vmatmul.bf16.gmra.mxu1 %v6129_v56  ;;  %v6044_v56 = vunpack.c.l.b16 %v2844_v63  ;;  %v9962_v55 = vsel %vm3663_vm10, 1.0, %v15365_v51  ;;  %v9912_v63 = vsel %vm2461_vm12, 1.0, %v15365_v51 }
 0x583   : > { %v4047_v26 = vpack.c.bf16 %v9962_v55, %v9962_v55 }
 0x585   : > { %v6351_v43 = vunpack.c.l.b16 %v4047_v26 }
 0x586   : > { %4299 = vperm.xlu0 %10569, %v15743_v4  }
 0x587   : > { %4173 = vperm.xlu1 %10565, %v15705_v32   ;;  %v7745_v40 = vpop.f32.mrf.mxu1  ;;  %v9963_v32 = vsel %vm3664_vm11, 1.0, %v15365_v51 }
 0x588   : > { %v13029_v61 = vadd.f32 %v7745_v40, %v7417_v52  ;;  %4191 = vperm.xlu2 %10566, %v15691_v9   ;;  %v4048_v48 = vpack.c.bf16 %v9963_v32, %v9963_v32  ;;  %v6130_v40 = vpack.c.b16 %v6044_v56, %v6043_v22  ;;  %v2948_v30 = vpop.permute.xlu2 %2947  ;;  %v2845_v22 = vpack.c.bf16 %v9912_v63, %v9912_v63  ;;  %v15763_v63 = vld [vmem:[#allocation142_spill] sm:$0xff] }
 0x589   : > { %v2942_v38 = vpop.permute.xlu1 %2941  ;;  %vm3666_vm14 = vcmp.eq.s32.totalorder %v2948_v30, %v11093_v8  ;;  %vm2464_vm0 = vcmp.eq.s32.totalorder %v15763_v63, %v11093_v8  ;;  %v15766_v63 = vld [vmem:[#allocation64_spill] sm:$0xff] }
 0x58a   : > { %15759 = vst [vmem:[#allocation33_spill] sm:$0xff] %v13029_v61  ;;  %7921 = vmatmul.bf16.gmra.mxu2 %v6475_v5  ;;  %v6352_v49 = vunpack.c.l.b16 %v4048_v48  ;;  %v7422_v5 = vadd.f32 %v13010_v34, %v12104_v0  ;;  %vm3665_vm15 = vcmp.eq.s32.totalorder %v2942_v38, %v11093_v8  ;;  %v6045_v0 = vunpack.c.l.b16 %v2845_v22 }
 0x58b   : > { %v9915_v30 = vsel %vm2464_vm0, 1.0, %v15365_v51  ;;  %v9914_v38 = vsel %vm2463_vm1, 1.0, %v15365_v51  ;;  %vm2472_vm1 = vcmp.eq.s32.totalorder %v12914_v60, %v11093_v8 }
 0x58c   : > { %v6476_v55 = vpack.c.b16 %v6352_v49, %v6351_v43  ;;  %v2848_v46 = vpack.c.bf16 %v9915_v30, %v9915_v30 }
 0x58e   : > { %4323 = vperm.xlu0 %10569, %v15748_v15  }
 0x58f   : > { %4185 = vperm.xlu1 %10565, %v15691_v9   ;;  %v7748_v29 = vpop.f32.mrf.mxu1  ;;  %v9913_v9 = vsel %vm2462_vm13, 1.0, %v15365_v51  ;;  %vm2470_vm13 = vcmp.eq.s32.totalorder %v12730_v47, %v11093_v8 }
 0x590   : > { %v13040_v52 = vadd.f32 %v7748_v29, %v7420_v39  ;;  %4203 = vperm.xlu2 %10566, %v15709_v50   ;;  %v2846_v56 = vpack.c.bf16 %v9913_v9, %v9913_v9  ;;  %v9965_v39 = vsel %vm3666_vm14, 1.0, %v15365_v51  ;;  %v9964_v29 = vsel %vm3665_vm15, 1.0, %v15365_v51  ;;  %v13071_v9 = vpop.permute.xlu0 %2995 }
 0x591   : > { %v4050_v48 = vpack.c.bf16 %v9965_v39, %v9965_v39  ;;  %vm3674_vm14 = vcmp.eq.s32.totalorder %v13071_v9, %v11093_v8  ;;  %v15784_v9 = vld [vmem:[#allocation82_spill] sm:$0xff] }
 0x592   : > { %15760 = vst [vmem:[#allocation96_spill] sm:$0xff] %v13040_v52  ;;  %7787 = vmatmul.bf16.gmra.mxu1 %v6130_v40  ;;  %v6046_v32 = vunpack.c.l.b16 %v2846_v56  ;;  %v4049_v40 = vpack.c.bf16 %v9964_v29, %v9964_v29  ;;  %v2954_v56 = vpop.permute.xlu1 %2953  ;;  %v6048_v29 = vunpack.c.l.b16 %v2848_v46  ;;  %v9916_v46 = vsel %vm2465_vm5, 1.0, %v15365_v51 }
 0x593   : > { %vm3667_vm3 = vcmp.eq.s32.totalorder %v2954_v56, %v11093_v8  ;;  %vm2473_vm5 = vcmp.eq.s32.totalorder %v12741_v54, %v11093_v8  ;;  %v15797_v54 = vld [vmem:[#allocation35_spill] sm:$0xff] }
 0x594   : > { %v6131_v49 = vpack.c.b16 %v6046_v32, %v6045_v0  ;;  %v2847_v0 = vpack.c.bf16 %v9914_v38, %v9914_v38 }
 0x596   : > { %4335 = vperm.xlu0 %10569, %v15489_v13  }
 0x597   : > { %4197 = vperm.xlu1 %10565, %v15709_v50   ;;  %v7750_v12 = vpop.f32.mrf.mxu1  ;;  %v7425_v50 = vadd.f32 %v13010_v34, %v12112_v33  ;;  %v2960_v33 = vpop.permute.xlu2 %2959 }
 0x598   : > { %v13053_v3 = vadd.f32 %v7750_v12, %v7422_v5  ;;  %4215 = vperm.xlu2 %10566, %v15700_v25   ;;  %v6353_v5 = vunpack.c.l.b16 %v4049_v40  ;;  %v15764_v12 = vld [vmem:[#allocation104_spill] sm:$0xff]  ;;  %vm3668_vm2 = vcmp.eq.s32.totalorder %v2960_v33, %v11093_v8 }
 0x599   : > { %v7427_v22 = vadd.f32 %v13010_v34, %v15764_v12  ;;  %v9967_v40 = vsel %vm3668_vm2, 1.0, %v15365_v51 }
 0x59a   : > { %15761 = vst [vmem:[#allocation98_spill] sm:$0xff] %v13053_v3  ;;  %7926 = vmatmul.bf16.gmra.mxu2 %v6476_v55 }
 0x59e   : > { %10584 = vset.pattern.permute.xlu0 %v12704_v19 }
 0x59f   : > { %4209 = vperm.xlu1 %10565, %v15700_v25   ;;  %v7753_v26 = vpop.f32.mrf.mxu1  ;;  %v6354_v25 = vunpack.c.l.b16 %v4050_v48  ;;  %v13086_v48 = vpop.permute.xlu2 %2977 }
 0x5a0   : > { %v13064_v43 = vadd.f32 %v7753_v26, %v7425_v50  ;;  %10568 = vset.pattern.permute.xlu2 %v13003_v37  ;;  %v6047_v50 = vunpack.c.l.b16 %v2847_v0  ;;  %v13084_v26 = vpop.permute.xlu0 %3055  ;;  %v15769_v0 = vld [vmem:[#allocation65_spill] sm:$0xff]  ;;  %vm3671_vm10 = vcmp.eq.s32.totalorder %v13086_v48, %v11093_v8 }
 0x5a1   : > { %v6477_v39 = vpack.c.b16 %v6354_v25, %v6353_v5  ;;  %v7430_v5 = vadd.f32 %v13010_v34, %v15766_v63  ;;  %v4052_v25 = vpack.c.bf16 %v9967_v40, %v9967_v40 }
 0x5a2   : > { %15762 = vst [vmem:[#allocation175_spill] sm:$0xff] %v13064_v43  ;;  %7792 = vmatmul.bf16.gmra.mxu1 %v6131_v49  ;;  %v9966_v49 = vsel %vm3667_vm3, 1.0, %v15365_v51  ;;  %v6132_v12 = vpack.c.b16 %v6048_v29, %v6047_v50  ;;  %v2972_v50 = vpop.permute.xlu1 %2971 }
 0x5a3   : > { %v4051_v30 = vpack.c.bf16 %v9966_v49, %v9966_v49  ;;  %v6356_v56 = vunpack.c.l.b16 %v4052_v25  ;;  %v2849_v49 = vpack.c.bf16 %v9916_v46, %v9916_v46  ;;  %vm3670_vm6 = vcmp.eq.s32.totalorder %v2972_v50, %v11093_v8  ;;  %v15772_v46 = vld [vmem:[#allocation29_spill] sm:$0xff] }
 0x5a5   : > { %v6049_v25 = vunpack.c.l.b16 %v2849_v49  ;;  %v15774_v49 = vld [vmem:[#allocation72_spill] sm:$0xff] }
 0x5a6   : > { %3079 = vperm.xlu0 %10584, %v15719_v58   ;;  %vm2467_vm8 = vcmp.eq.s32.totalorder %v15774_v49, %v11093_v8 }
 0x5a7   : > { %10567 = vset.pattern.permute.xlu1 %v12673_v31  ;;  %v7755_v55 = vpop.f32.mrf.mxu1  ;;  %v13105_v29 = vpop.permute.xlu2 %2989 }
 0x5a8   : > { %v13079_v32 = vadd.f32 %v7755_v55, %v7427_v22  ;;  %4221 = vperm.xlu2 %10568, %v15721_v42   ;;  %v15767_v42 = vld [vmem:[#allocation28_spill] sm:$0xff]  ;;  %v6355_v22 = vunpack.c.l.b16 %v4051_v30  ;;  %v9917_v55 = vsel %vm2466_vm4, 1.0, %v15365_v51  ;;  %v2966_v40 = vpop.permute.xlu0 %2965  ;;  %v9969_v30 = vsel %vm3670_vm6, 1.0, %v15365_v51 }
 0x5a9   : > { %v2850_v11 = vpack.c.bf16 %v9917_v55, %v9917_v55  ;;  %vm3669_vm7 = vcmp.eq.s32.totalorder %v2966_v40, %v11093_v8  ;;  %vm3673_vm15 = vcmp.eq.s32.totalorder %v13105_v29, %v11093_v8  ;;  %v15785_v29 = vld [vmem:[#allocation31_spill] sm:$0xff] }
 0x5aa   : > { %15765 = vst [vmem:[#allocation142_spill] sm:$0xff] %v13079_v32  ;;  %7931 = vmatmul.bf16.gmra.mxu2 %v6477_v39  ;;  %v7432_v39 = vadd.f32 %v13010_v34, %v15769_v0  ;;  %v15771_v0 = vld [vmem:[#allocation108_spill] sm:$0xff] }
 0x5ab   : > { %v7435_v55 = vadd.f32 %v13010_v34, %v15771_v0  ;;  %v15775_v0 = vld [vmem:[#allocation111_spill] sm:$0xff] }
 0x5ae   : > { %3103 = vperm.xlu0 %10584, %v15772_v46  }
 0x5af   : > { %3085 = vperm.xlu1 %10567, %v15767_v42   ;;  %v7758_v33 = vpop.f32.mrf.mxu1 }
 0x5b0   : > { %v13094_v38 = vadd.f32 %v7758_v33, %v7430_v5  ;;  %10571 = vset.pattern.permute.xlu2 %v12989_v2  ;;  %v6478_v5 = vpack.c.b16 %v6356_v56, %v6355_v22  ;;  %v6050_v33 = vunpack.c.l.b16 %v2850_v11  ;;  %v4054_v56 = vpack.c.bf16 %v9969_v30, %v9969_v30  ;;  %v10405_v11 = vld [vmem:[%s15143_s1 + $0xf8] sm:$0xff] }
 0x5b1   : > { %8232 = vmatpush.bf16.msra.mxu3 %v10405_v11  ;;  %v9919_v30 = vsel %vm2468_vm9, 1.0, %v15365_v51 }
 0x5b2   : > { %15768 = vst [vmem:[#allocation104_spill] sm:$0xff] %v13094_v38  ;;  %7797 = vmatmul.bf16.gmra.mxu1 %v6132_v12  ;;  %v9968_v12 = vsel %vm3669_vm7, 1.0, %v15365_v51  ;;  %v6133_v40 = vpack.c.b16 %v6050_v33, %v6049_v25  ;;  %v6358_v33 = vunpack.c.l.b16 %v4054_v56  ;;  %v9918_v25 = vsel %vm2467_vm8, 1.0, %v15365_v51  ;;  %v10403_v56 = vld [vmem:[%s15143_s1 + $0xe8] sm:$0xff]  ;;  %v13266_v38 = vpop.permute.xlu0 %3025 }
 0x5b3   : > { %v2852_v11 = vpack.c.bf16 %v9919_v30, %v9919_v30  ;;  %v9970_v30 = vsel %vm3671_vm10, 1.0, %v15365_v51 }
 0x5b7   : > { %10570 = vset.pattern.permute.xlu1 %v13003_v37  ;;  %v7760_v41 = vpop.f32.mrf.mxu1 }
 0x5b8   : > { %v13109_v63 = vadd.f32 %v7760_v41, %v7432_v39  ;;  %4239 = vperm.xlu2 %10571, %v15725_v6   ;;  %v4053_v39 = vpack.c.bf16 %v9968_v12, %v9968_v12  ;;  %v13123_v41 = vpop.permute.xlu2 %3007  ;;  %v2984_v12 = vpop.permute.xlu1 %2983 }
 0x5b9   : > { %vm3672_vm11 = vcmp.eq.s32.totalorder %v2984_v12, %v11093_v8  ;;  %vm3676_vm2 = vcmp.eq.s32.totalorder %v13123_v41, %v11093_v8 }
 0x5ba   : > { %15770 = vst [vmem:[#allocation64_spill] sm:$0xff] %v13109_v63  ;;  %7936 = vmatmul.bf16.gmra.mxu2 %v6478_v5  ;;  %v6357_v5 = vunpack.c.l.b16 %v4053_v39 }
 0x5bc   : > { %v6479_v39 = vpack.c.b16 %v6358_v33, %v6357_v5  ;;  %v9971_v5 = vsel %vm3672_vm11, 1.0, %v15365_v51  ;;  %v10402_v33 = vld [vmem:[%s15143_s1 + $0xe0] sm:$0xff]  ;;  %vm2475_vm11 = vcmp.eq.s32.totalorder %v12759_v57, %v11093_v8 }
 0x5bf   : > { %4233 = vperm.xlu1 %10570, %v15725_v6   ;;  %v7763_v22 = vpop.f32.mrf.mxu1  ;;  %v10404_v6 = vld [vmem:[%s15143_s1 + $0xf0] sm:$0xff] }
 0x5c0   : > { %v13120_v50 = vadd.f32 %v7763_v22, %v7435_v55  ;;  %10573 = vset.pattern.permute.xlu2 %v13003_v37  ;;  %v7437_v55 = vadd.f32 %v13010_v34, %v15775_v0  ;;  %v15776_v22 = vld [vmem:[#allocation10_spill] sm:$0xff]  ;;  %8233 = vmatpush.bf16.msra.mxu3 %v10404_v6  ;;  %v13150_v0 = vpop.permute.xlu2 %3019 }
 0x5c1   : > { %3127 = vperm.xlu0 %10584, %v15776_v22   ;;  %vm3678_vm7 = vcmp.eq.s32.totalorder %v13150_v0, %v11093_v8 }
 0x5c2   : > { %15773 = vst [vmem:[#allocation28_spill] sm:$0xff] %v13120_v50  ;;  %7802 = vmatmul.bf16.gmra.mxu1 %v6133_v40  ;;  %v2851_v40 = vpack.c.bf16 %v9918_v25, %v9918_v25  ;;  %v6052_v25 = vunpack.c.l.b16 %v2852_v11 }
 0x5c4   : > { %8234 = vmatpush.bf16.msra.mxu3 %v10403_v56  ;;  %v6051_v6 = vunpack.c.l.b16 %v2851_v40  ;;  %v4056_v40 = vpack.c.bf16 %v9971_v5, %v9971_v5  ;;  %v10401_v56 = vld [vmem:[%s15143_s1 + $0xd8] sm:$0xff] }
 0x5c6   : > { %v6360_v5 = vunpack.c.l.b16 %v4056_v40 }
 0x5c7   : > { %10572 = vset.pattern.permute.xlu1 %v12704_v19  ;;  %v7765_v18 = vpop.f32.mrf.mxu1 }
 0x5c8   : > { %v13141_v49 = vadd.f32 %v7765_v18, %v7437_v55  ;;  %4245 = vperm.xlu2 %10573, %v15711_v44   ;;  %v13154_v44 = vpop.permute.xlu1 %3001  ;;  %v15778_v55 = vld [vmem:[#allocation153_spill] sm:$0xff]  ;;  %8235 = vmatpush.bf16.msra.mxu3 %v10402_v33  ;;  %v4055_v18 = vpack.c.bf16 %v9970_v30, %v9970_v30 }
 0x5c9   : > { %v7440_v48 = vadd.f32 %v13010_v34, %v15778_v55  ;;  %10589 = vset.pattern.permute.xlu0 %v12989_v2  ;;  %v13173_v55 = vpop.permute.xlu2 %3037  ;;  %v15781_v33 = vld [vmem:[#allocation113_spill] sm:$0xff]  ;;  %vm3675_vm3 = vcmp.eq.s32.totalorder %v13154_v44, %v11093_v8 }
 0x5ca   : > { %15777 = vst [vmem:[#allocation65_spill] sm:$0xff] %v13141_v49  ;;  %7941 = vmatmul.bf16.gmra.mxu2 %v6479_v39  ;;  %v6134_v39 = vpack.c.b16 %v6052_v25, %v6051_v6  ;;  %v15780_v49 = vld [vmem:[#allocation30_spill] sm:$0xff]  ;;  %v6359_v30 = vunpack.c.l.b16 %v4055_v18  ;;  %v10400_v25 = vld [vmem:[%s15143_s1 + $0xd0] sm:$0xff] }
 0x5cb   : > { %vm2469_vm12 = vcmp.eq.s32.totalorder %v15780_v49, %v11093_v8  ;;  %v7442_v49 = vadd.f32 %v13010_v34, %v15781_v33  ;;  %v13196_v33 = vpop.f32.mrf.mxu2 }
 0x5cc   : > { %8236 = vmatpush.bf16.msra.mxu3 %v10401_v56  ;;  %v9920_v6 = vsel %vm2469_vm12, 1.0, %v15365_v51  ;;  %v10399_v56 = vld [vmem:[%s15143_s1 + $0xc8] sm:$0xff]  ;;  %15783 = vst [vmem:[#allocation72_spill] sm:$0xff] %v13196_v33 }
 0x5cf   : > { %3091 = vperm.xlu1 %10572, %v15767_v42   ;;  %v7768_v12 = vpop.f32.mrf.mxu1 }
 0x5d0   : > { %v13163_v11 = vadd.f32 %v7768_v12, %v7440_v48  ;;  %4257 = vperm.xlu2 %10573, %v15730_v27   ;;  %v9921_v27 = vsel %vm2470_vm13, 1.0, %v15365_v51  ;;  %v13183_v47 = vpop.permute.xlu1 %3013  ;;  %8237 = vmatpush.bf16.msra.mxu3 %v10400_v25  ;;  %v2853_v12 = vpack.c.bf16 %v9920_v6, %v9920_v6 }
 0x5d1   : > { %4371 = vperm.xlu0 %10589, %v15767_v42   ;;  %v2854_v18 = vpack.c.bf16 %v9921_v27, %v9921_v27  ;;  %v13200_v25 = vpop.permute.xlu2 %3049  ;;  %vm3677_vm8 = vcmp.eq.s32.totalorder %v13183_v47, %v11093_v8 }
 0x5d2   : > { %15779 = vst [vmem:[#allocation108_spill] sm:$0xff] %v13163_v11  ;;  %7807 = vmatmul.bf16.gmra.mxu1 %v6134_v39  ;;  %v6480_v39 = vpack.c.b16 %v6360_v5, %v6359_v30  ;;  %v6053_v6 = vunpack.c.l.b16 %v2853_v12  ;;  %v9973_v30 = vsel %vm3674_vm14, 1.0, %v15365_v51  ;;  %v9972_v5 = vsel %vm3673_vm15, 1.0, %v15365_v51  ;;  %v15787_v11 = vld [vmem:[#allocation3_spill] sm:$0xff] }
 0x5d3   : > { %v6054_v27 = vunpack.c.l.b16 %v2854_v18  ;;  %v4058_v18 = vpack.c.bf16 %v9973_v30, %v9973_v30  ;;  %vm2471_vm0 = vcmp.eq.s32.totalorder %v15787_v11, %v11093_v8  ;;  %v13218_v50 = vpop.f32.mrf.mxu2  ;;  %v9923_v30 = vsel %vm2472_vm1, 1.0, %v15365_v51 }
 0x5d4   : > { %8238 = vmatpush.bf16.msra.mxu3 %v10399_v56  ;;  %v4057_v56 = vpack.c.bf16 %v9972_v5, %v9972_v5  ;;  %15788 = vst [vmem:[#allocation10_spill] sm:$0xff] %v13218_v50  ;;  %v15789_v5 = vld [vmem:[#allocation85_spill] sm:$0xff]  ;;  %v9975_v50 = vsel %vm3676_vm2, 1.0, %v15365_v51  ;;  %vm3679_vm15 = vcmp.eq.s32.totalorder %v13266_v38, %v11093_v8  ;;  %vm2478_vm1 = vcmp.eq.s32.totalorder %v12770_v1, %v11093_v8  ;;  %v15811_v1 = vld [vmem:[#allocation123_spill] sm:$0xff] }
 0x5d5   : > { %v6362_v63 = vunpack.c.l.b16 %v4058_v18 }
 0x5d7   : > { %10574 = vset.pattern.permute.xlu1 %v12673_v31  ;;  %v7770_v48 = vpop.f32.mrf.mxu1 }
 0x5d8   : > { %v13186_v40 = vadd.f32 %v7770_v48, %v7442_v49  ;;  %10576 = vset.pattern.permute.xlu2 %v12989_v2  ;;  %v10398_v49 = vld [vmem:[%s15143_s1 + $0xc0] sm:$0xff]  ;;  %v7445_v48 = vadd.f32 %v13010_v34, %v15784_v9  ;;  %v6361_v9 = vunpack.c.l.b16 %v4057_v56 }
 0x5d9   : > { %4395 = vperm.xlu0 %10589, %v15785_v29   ;;  %8239 = vmatpush.bf16.msra.mxu3 %v10398_v49  ;;  %v9922_v49 = vsel %vm2471_vm0, 1.0, %v15365_v51 }
 0x5da   : > { %15782 = vst [vmem:[#allocation29_spill] sm:$0xff] %v13186_v40  ;;  %7946 = vmatmul.bf16.gmra.mxu2 %v6480_v39  ;;  %v13208_v39 = vpop.permute.xlu1 %3031  ;;  %v6135_v40 = vpack.c.b16 %v6054_v27, %v6053_v6  ;;  %v7447_v6 = vadd.f32 %v13010_v34, %v15789_v5  ;;  %v13226_v27 = vpop.permute.xlu2 %3067  ;;  %v2855_v60 = vpack.c.bf16 %v9922_v49, %v9922_v49  ;;  %v9974_v49 = vsel %vm3675_vm3, 1.0, %v15365_v51 }
 0x5db   : > { %vm3680_vm14 = vcmp.eq.s32.totalorder %v13208_v39, %v11093_v8  ;;  %v15808_v39 = vld [vmem:[#allocation59_spill] sm:$0xff] }
 0x5dc   : > { %v6055_v56 = vunpack.c.l.b16 %v2855_v60  ;;  %v4059_v60 = vpack.c.bf16 %v9974_v49, %v9974_v49 }
 0x5de   : > { %v6363_v49 = vunpack.c.l.b16 %v4059_v60 }
 0x5df   : > { %3097 = vperm.xlu1 %10574, %v15772_v46   ;;  %v7773_v12 = vpop.f32.mrf.mxu1 }
 0x5e0   : > { %v13211_v33 = vadd.f32 %v7773_v12, %v7445_v48  ;;  %4275 = vperm.xlu2 %10576, %v15703_v62   ;;  %v6481_v12 = vpack.c.b16 %v6362_v63, %v6361_v9  ;;  %v15792_v9 = vld [vmem:[#allocation54_spill] sm:$0xff] }
 0x5e1   : > { %4407 = vperm.xlu0 %10589, %v15776_v22  }
 0x5e2   : > { %15786 = vst [vmem:[#allocation111_spill] sm:$0xff] %v13211_v33  ;;  %7812 = vmatmul.bf16.gmra.mxu1 %v6135_v40  ;;  %v2856_v40 = vpack.c.bf16 %v9923_v30, %v9923_v30  ;;  %v13231_v18 = vpop.permute.xlu1 %3043  ;;  %v4180_v44 = vpop.permute.xlu2 %4179  ;;  %v15794_v33 = vld [vmem:[#allocation148_spill] sm:$0xff] }
 0x5e3   : > { %vm2474_vm4 = vcmp.eq.s32.totalorder %v15794_v33, %v11093_v8  ;;  %vm4938_vm6 = vcmp.eq.s32.totalorder %v4180_v44, %v11093_v8 }
 0x5e4   : > { %v6056_v5 = vunpack.c.l.b16 %v2856_v40 }
 0x5e7   : > { %10575 = vset.pattern.permute.xlu1 %v13003_v37  ;;  %v7775_v11 = vpop.f32.mrf.mxu1 }
 0x5e8   : > { %v13228_v48 = vadd.f32 %v7775_v11, %v7447_v6  ;;  %4287 = vperm.xlu2 %10576, %v15739_v53   ;;  %v15791_v6 = vld [vmem:[#allocation37_spill] sm:$0xff] }
 0x5e9   : > { %v7450_v63 = vadd.f32 %v13010_v34, %v15791_v6  ;;  %10597 = vset.pattern.permute.xlu0 %v12704_v19 }
 0x5ea   : > { %15790 = vst [vmem:[#allocation153_spill] sm:$0xff] %v13228_v48  ;;  %7951 = vmatmul.bf16.gmra.mxu2 %v6481_v12  ;;  %v4060_v12 = vpack.c.bf16 %v9975_v50, %v9975_v50  ;;  %v6136_v48 = vpack.c.b16 %v6056_v5, %v6055_v56  ;;  %v9924_v50 = vsel %vm2473_vm5, 1.0, %v15365_v51  ;;  %v10085_v5 = vsel %vm4938_vm6, 1.0, %v15365_v51 }
 0x5eb   : > { %vm3682_vm5 = vcmp.eq.s32.totalorder %v13231_v18, %v11093_v8 }
 0x5ec   : > { %v6364_v6 = vunpack.c.l.b16 %v4060_v12  ;;  %v5322_v12 = vpack.c.bf16 %v10085_v5, %v10085_v5  ;;  %v15799_v5 = vld [vmem:[#allocation97_spill] sm:$0xff] }
 0x5ed   : > { %v7912_v30 = vpop.f32.mrf.mxu2  ;;  %v7455_v0 = vadd.f32 %v13010_v34, %v15799_v5 }
 0x5ee   : > { %v13242_v11 = vadd.f32 %v7912_v30, %v15792_v9  ;;  %v13253_v30 = vpop.permute.xlu1 %3061  ;;  %v15796_v9 = vld [vmem:[#allocation55_spill] sm:$0xff]  ;;  %v6482_v32 = vpack.c.b16 %v6364_v6, %v6363_v49  ;;  %v9977_v49 = vsel %vm3678_vm7, 1.0, %v15365_v51 }
 0x5ef   : > { %4269 = vperm.xlu1 %10575, %v15703_v62   ;;  %v7778_v41 = vpop.f32.mrf.mxu1  ;;  %v9925_v62 = vsel %vm2474_vm4, 1.0, %v15365_v51  ;;  %vm3681_vm4 = vcmp.eq.s32.totalorder %v13173_v55, %v11093_v8 }
 0x5f0   : > { %v13246_v40 = vadd.f32 %v7778_v41, %v7450_v63  ;;  %10578 = vset.pattern.permute.xlu2 %v13003_v37  ;;  %v15795_v63 = vld [vmem:[#allocation95_spill] sm:$0xff] }
 0x5f1   : > { %v7452_v33 = vadd.f32 %v13010_v34, %v15795_v63  ;;  %3151 = vperm.xlu0 %10597, %v15797_v54   ;;  %v6730_v63 = vunpack.c.l.b16 %v5322_v12 }
 0x5f2   : > { %15793 = vst [vmem:[#allocation30_spill] sm:$0xff] %v13246_v40  ;;  %7817 = vmatmul.bf16.gmra.mxu1 %v6136_v48  ;;  %v2858_v48 = vpack.c.bf16 %v9925_v62, %v9925_v62  ;;  %v2857_v40 = vpack.c.bf16 %v9924_v50, %v9924_v50 }
 0x5f4   : > { %v6057_v62 = vunpack.c.l.b16 %v2857_v40 }
 0x5f5   : > { %v7914_v56 = vpop.f32.mrf.mxu2 }
 0x5f6   : > { %v13262_v41 = vadd.f32 %v7914_v56, %v15796_v9 }
 0x5f7   : > { %4281 = vperm.xlu1 %10575, %v15739_v53   ;;  %v7780_v44 = vpop.f32.mrf.mxu1  ;;  %v6058_v53 = vunpack.c.l.b16 %v2858_v48  ;;  %v4062_v48 = vpack.c.bf16 %v9977_v49, %v9977_v49 }
 0x5f8   : > { %v13268_v60 = vadd.f32 %v7780_v44, %v7452_v33  ;;  %4293 = vperm.xlu2 %10578, %v15743_v4   ;;  %v9976_v4 = vsel %vm3677_vm8, 1.0, %v15365_v51  ;;  %v15800_v33 = vld [vmem:[#allocation57_spill] sm:$0xff] }
 0x5f9   : > { %v4174_v43 = vpop.permute.xlu1 %4173  ;;  %10600 = vset.pattern.permute.xlu0 %v13003_v37  ;;  %v6137_v40 = vpack.c.b16 %v6058_v53, %v6057_v62  ;;  %v4061_v44 = vpack.c.bf16 %v9976_v4, %v9976_v4  ;;  %v9926_v62 = vsel %vm2475_vm11, 1.0, %v15365_v51  ;;  %v6366_v49 = vunpack.c.l.b16 %v4062_v48 }
 0x5fa   : > { %15798 = vst [vmem:[#allocation113_spill] sm:$0xff] %v13268_v60  ;;  %vm4937_vm9 = vcmp.eq.s32.totalorder %v4174_v43, %v11093_v8  ;;  %7956 = vmatmul.bf16.gmra.mxu2 %v6482_v32  ;;  %v4192_v32 = vpop.permute.xlu2 %4191  ;;  %v13288_v60 = vpop.permute.xlu0 %3073  ;;  %vm3683_vm11 = vcmp.eq.s32.totalorder %v13200_v25, %v11093_v8 }
 0x5fb   : > { %v10084_v50 = vsel %vm4937_vm9, 1.0, %v15365_v51  ;;  %vm4940_vm12 = vcmp.eq.s32.totalorder %v4192_v32, %v11093_v8  ;;  %v15805_v32 = vld [vmem:[#allocation39_spill] sm:$0xff] }
 0x5fc   : > { %v5321_v56 = vpack.c.bf16 %v10084_v50, %v10084_v50  ;;  %v10087_v4 = vsel %vm4940_vm12, 1.0, %v15365_v51 }
 0x5fd   : > { %v7917_v6 = vpop.f32.mrf.mxu2 }
 0x5fe   : > { %v13282_v9 = vadd.f32 %v7917_v6, %v15800_v33  ;;  %v6729_v47 = vunpack.c.l.b16 %v5321_v56  ;;  %v15802_v6 = vld [vmem:[#allocation9_spill] sm:$0xff]  ;;  %v15803_v33 = vld [vmem:[#allocation124_spill] sm:$0xff] }
 0x5ff   : > { %10577 = vset.pattern.permute.xlu1 %v12673_v31  ;;  %v7783_v43 = vpop.f32.mrf.mxu1  ;;  %vm2476_vm10 = vcmp.eq.s32.totalorder %v15802_v6, %v11093_v8  ;;  %v7457_v57 = vadd.f32 %v13010_v34, %v15803_v33 }
 0x600   : > { %v13286_v12 = vadd.f32 %v7783_v43, %v7455_v0  ;;  %v6857_v50 = vpack.c.b16 %v6730_v63, %v6729_v47  ;;  %10580 = vset.pattern.permute.xlu2 %v12989_v2  ;;  %v9927_v53 = vsel %vm2476_vm10, 1.0, %v15365_v51  ;;  %v6365_v63 = vunpack.c.l.b16 %v4061_v44  ;;  %v15804_v47 = vld [vmem:[#allocation101_spill] sm:$0xff] }
 0x601   : > { %v4186_v56 = vpop.permute.xlu1 %4185  ;;  %4437 = vperm.xlu0 %10600, %v15805_v32   ;;  %v5324_v44 = vpack.c.bf16 %v10087_v4, %v10087_v4  ;;  %v9979_v4 = vsel %vm3680_vm14, 1.0, %v15365_v51  ;;  %vm3684_vm10 = vcmp.eq.s32.totalorder %v13084_v26, %v11093_v8 }
 0x602   : > { %15801 = vst [vmem:[#allocation82_spill] sm:$0xff] %v13286_v12  ;;  %vm4939_vm13 = vcmp.eq.s32.totalorder %v4186_v56, %v11093_v8  ;;  %7822 = vmatmul.bf16.gmra.mxu1 %v6137_v40  ;;  %8240 = vmatmul.bf16.vlgmr.msra.gmra.mxu3 %v6857_v50  ;;  %v2860_v40 = vpack.c.bf16 %v9927_v53, %v9927_v53 }
 0x603   : > { %v10086_v5 = vsel %vm4939_vm13, 1.0, %v15365_v51  ;;  %v2859_v50 = vpack.c.bf16 %v9926_v62, %v9926_v62  ;;  %v6483_v12 = vpack.c.b16 %v6366_v49, %v6365_v63  ;;  %v15807_v49 = vld [vmem:[#allocation157_spill] sm:$0xff] }
 0x604   : > { %v5323_v48 = vpack.c.bf16 %v10086_v5, %v10086_v5  ;;  %v6060_v53 = vunpack.c.l.b16 %v2860_v40  ;;  %v9978_v5 = vsel %vm3679_vm15, 1.0, %v15365_v51  ;;  %vm2482_vm15 = vcmp.eq.s32.totalorder %v12924_v20, %v11093_v8 }
 0x605   : > { %v7919_v0 = vpop.f32.mrf.mxu2  ;;  %v6059_v62 = vunpack.c.l.b16 %v2859_v50  ;;  %v4064_v50 = vpack.c.bf16 %v9979_v4, %v9979_v4 }
 0x606   : > { %v13304_v43 = vadd.f32 %v7919_v0, %v15804_v47  ;;  %v13315_v0 = vpop.permute.xlu0 %4227  ;;  %v6731_v33 = vunpack.c.l.b16 %v5323_v48  ;;  %v6732_v47 = vunpack.c.l.b16 %v5324_v44  ;;  %v4063_v44 = vpack.c.bf16 %v9978_v5, %v9978_v5 }
 0x607   : > { %3109 = vperm.xlu1 %10577, %v15785_v29   ;;  %v7785_v6 = vpop.f32.mrf.mxu1  ;;  %v6138_v40 = vpack.c.b16 %v6060_v53, %v6059_v62  ;;  %v9929_v62 = vsel %vm2478_vm1, 1.0, %v15365_v51  ;;  %v6368_v4 = vunpack.c.l.b16 %v4064_v50  ;;  %vm4946_vm12 = vcmp.eq.s32.totalorder %v13315_v0, %v11093_v8 }
 0x608   : > { %v13308_v56 = vadd.f32 %v7785_v6, %v7457_v57  ;;  %4311 = vperm.xlu2 %10580, %v15714_v45   ;;  %v7460_v57 = vadd.f32 %v13010_v34, %v15807_v49  ;;  %v4204_v6 = vpop.permute.xlu2 %4203  ;;  %v6858_v3 = vpack.c.b16 %v6732_v47, %v6731_v33  ;;  %v15810_v49 = vld [vmem:[#allocation152_spill] sm:$0xff]  ;;  %v6367_v33 = vunpack.c.l.b16 %v4063_v44 }
 0x609   : > { %10605 = vset.pattern.permute.xlu0 %v12989_v2  ;;  %v4198_v38 = vpop.permute.xlu1 %4197  ;;  %vm2477_vm0 = vcmp.eq.s32.totalorder %v15810_v49, %v11093_v8  ;;  %vm4942_vm2 = vcmp.eq.s32.totalorder %v4204_v6, %v11093_v8  ;;  %v7462_v6 = vadd.f32 %v13010_v34, %v15811_v1  ;;  %vm3685_vm1 = vcmp.eq.s32.totalorder %v13253_v30, %v11093_v8 }
 0x60a   : > { %15806 = vst [vmem:[#allocation31_spill] sm:$0xff] %v13308_v56  ;;  %7961 = vmatmul.bf16.gmra.mxu2 %v6483_v12  ;;  %vm4941_vm3 = vcmp.eq.s32.totalorder %v4198_v38, %v11093_v8  ;;  %v9928_v53 = vsel %vm2477_vm0, 1.0, %v15365_v51  ;;  %v10089_v5 = vsel %vm4942_vm2, 1.0, %v15365_v51  ;;  %v6484_v52 = vpack.c.b16 %v6368_v4, %v6367_v33  ;;  %v15816_v33 = vld [vmem:[#allocation62_spill] sm:$0xff] }
 0x60b   : > { %v5326_v44 = vpack.c.bf16 %v10089_v5, %v10089_v5  ;;  %v9981_v5 = vsel %vm3682_vm5, 1.0, %v15365_v51  ;;  %vm3686_vm0 = vcmp.eq.s32.totalorder %v13226_v27, %v11093_v8  ;;  %v15832_v27 = vld [vmem:[#allocation118_spill] sm:$0xff] }
 0x60d   : > { %v7922_v63 = vpop.f32.mrf.mxu2  ;;  %v6734_v1 = vunpack.c.l.b16 %v5326_v44 }
 0x60e   : > { %v13322_v56 = vadd.f32 %v7922_v63, %v15808_v39  ;;  %v13337_v47 = vpop.permute.xlu0 %4251  ;;  %v10088_v63 = vsel %vm4941_vm3, 1.0, %v15365_v51  ;;  %v15812_v39 = vld [vmem:[#allocation60_spill] sm:$0xff] }
 0x60f   : > { %10579 = vset.pattern.permute.xlu1 %v13003_v37  ;;  %v7788_v12 = vpop.f32.mrf.mxu1  ;;  %v5325_v49 = vpack.c.bf16 %v10088_v63, %v10088_v63 }
 0x610   : > { %v13326_v48 = vadd.f32 %v7788_v12, %v7460_v57  ;;  %10582 = vset.pattern.permute.xlu2 %v13003_v37  ;;  %v2861_v12 = vpack.c.bf16 %v9928_v53, %v9928_v53 }
 0x612   : > { %15809 = vst [vmem:[#allocation3_spill] sm:$0xff] %v13326_v48  ;;  %7827 = vmatmul.bf16.gmra.mxu1 %v6138_v40  ;;  %8245 = vmatmul.bf16.gmra.mxu3 %v6858_v3  ;;  %v15813_v3 = vld [vmem:[#allocation40_spill] sm:$0xff]  ;;  %v2862_v40 = vpack.c.bf16 %v9929_v62, %v9929_v62  ;;  %v6733_v62 = vunpack.c.l.b16 %v5325_v49 }
 0x613   : > { %4455 = vperm.xlu0 %10605, %v15813_v3  }
 0x614   : > { %v6062_v53 = vunpack.c.l.b16 %v2862_v40  ;;  %v6859_v49 = vpack.c.b16 %v6734_v1, %v6733_v62 }
 0x615   : > { %v7924_v57 = vpop.f32.mrf.mxu2 }
 0x616   : > { %v13344_v38 = vadd.f32 %v7924_v57, %v15812_v39  ;;  %v6061_v57 = vunpack.c.l.b16 %v2861_v12  ;;  %v13362_v55 = vpop.permute.xlu0 %4263 }
 0x617   : > { %4305 = vperm.xlu1 %10579, %v15714_v45   ;;  %v7790_v50 = vpop.f32.mrf.mxu1  ;;  %v9980_v45 = vsel %vm3681_vm4, 1.0, %v15365_v51 }
 0x618   : > { %v13348_v48 = vadd.f32 %v7790_v50, %v7462_v6  ;;  %4317 = vperm.xlu2 %10582, %v15748_v15   ;;  %v15815_v6 = vld [vmem:[#allocation107_spill] sm:$0xff]  ;;  %v4216_v15 = vpop.permute.xlu2 %4215  ;;  %v6139_v12 = vpack.c.b16 %v6062_v53, %v6061_v57  ;;  %v4065_v40 = vpack.c.bf16 %v9980_v45, %v9980_v45  ;;  %v4066_v50 = vpack.c.bf16 %v9981_v5, %v9981_v5 }
 0x619   : > { %v7465_v4 = vadd.f32 %v13010_v34, %v15815_v6  ;;  %v15818_v6 = vld [vmem:[#allocation4_spill] sm:$0xff]  ;;  %vm4944_vm8 = vcmp.eq.s32.totalorder %v4216_v15, %v11093_v8 }
 0x61a   : > { %15814 = vst [vmem:[#allocation85_spill] sm:$0xff] %v13348_v48  ;;  %7966 = vmatmul.bf16.gmra.mxu2 %v6484_v52  ;;  %v4210_v52 = vpop.permute.xlu1 %4209  ;;  %vm2479_vm6 = vcmp.eq.s32.totalorder %v15818_v6, %v11093_v8  ;;  %v6369_v45 = vunpack.c.l.b16 %v4065_v40  ;;  %v6370_v62 = vunpack.c.l.b16 %v4066_v50 }
 0x61b   : > { %10610 = vset.pattern.permute.xlu0 %v12673_v31  ;;  %vm4943_vm9 = vcmp.eq.s32.totalorder %v4210_v52, %v11093_v8  ;;  %v9930_v57 = vsel %vm2479_vm6, 1.0, %v15365_v51  ;;  %v15822_v52 = vld [vmem:[#allocation42_spill] sm:$0xff]  ;;  %vm3687_vm6 = vcmp.eq.s32.totalorder %v13288_v60, %v11093_v8 }
 0x61c   : > { %v10090_v1 = vsel %vm4943_vm9, 1.0, %v15365_v51 }
 0x61d   : > { %v7927_v63 = vpop.f32.mrf.mxu2  ;;  %v5327_v50 = vpack.c.bf16 %v10090_v1, %v10090_v1 }
 0x61e   : > { %v13360_v39 = vadd.f32 %v7927_v63, %v15816_v33  ;;  %v15819_v63 = vld [vmem:[#allocation161_spill] sm:$0xff] }
 0x61f   : > { %10581 = vset.pattern.permute.xlu1 %v12704_v19  ;;  %v7793_v18 = vpop.f32.mrf.mxu1  ;;  %vm2480_vm7 = vcmp.eq.s32.totalorder %v15819_v63, %v11093_v8  ;;  %v6735_v1 = vunpack.c.l.b16 %v5327_v50 }
 0x620   : > { %v13366_v44 = vadd.f32 %v7793_v18, %v7465_v4  ;;  %4329 = vperm.xlu2 %10582, %v15489_v13   ;;  %v9931_v53 = vsel %vm2480_vm7, 1.0, %v15365_v51  ;;  %v10091_v13 = vsel %vm4944_vm8, 1.0, %v15365_v51  ;;  %v15820_v4 = vld [vmem:[#allocation138_spill] sm:$0xff]  ;;  %v15821_v18 = vld [vmem:[#allocation36_spill] sm:$0xff]  ;;  %vm4950_vm8 = vcmp.eq.s32.totalorder %v13337_v47, %v11093_v8 }
 0x621   : > { %v7467_v33 = vadd.f32 %v13010_v34, %v15820_v4  ;;  %v5328_v40 = vpack.c.bf16 %v10091_v13, %v10091_v13  ;;  %v9983_v4 = vsel %vm3684_vm10, 1.0, %v15365_v51  ;;  %v9982_v13 = vsel %vm3683_vm11, 1.0, %v15365_v51 }
 0x622   : > { %15817 = vst [vmem:[#allocation37_spill] sm:$0xff] %v13366_v44  ;;  %7832 = vmatmul.bf16.gmra.mxu1 %v6139_v12  ;;  %8250 = vmatmul.bf16.gmra.mxu3 %v6859_v49  ;;  %v2863_v12 = vpack.c.bf16 %v9930_v57, %v9930_v57  ;;  %v2864_v49 = vpack.c.bf16 %v9931_v53, %v9931_v53 }
 0x623   : > { %3193 = vperm.xlu0 %10610, %v15822_v52   ;;  %v6485_v44 = vpack.c.b16 %v6370_v62, %v6369_v45  ;;  %v15824_v62 = vld [vmem:[#allocation115_spill] sm:$0xff]  ;;  %v4068_v25 = vpack.c.bf16 %v9983_v4, %v9983_v4  ;;  %vm2485_vm11 = vcmp.eq.s32.totalorder %v12819_v59, %v11093_v8 }
 0x624   : > { %v6063_v57 = vunpack.c.l.b16 %v2863_v12  ;;  %v6064_v53 = vunpack.c.l.b16 %v2864_v49 }
 0x625   : > { %v7929_v5 = vpop.f32.mrf.mxu2  ;;  %v6372_v4 = vunpack.c.l.b16 %v4068_v25 }
 0x626   : > { %v13382_v15 = vadd.f32 %v7929_v5, %v15821_v18  ;;  %v13393_v5 = vpop.permute.xlu0 %4299  ;;  %v7470_v18 = vadd.f32 %v13010_v34, %v15824_v62  ;;  %v6140_v49 = vpack.c.b16 %v6064_v53, %v6063_v57  ;;  %v10093_v57 = vsel %vm4946_vm12, 1.0, %v15365_v51 }
 0x627   : > { %3115 = vperm.xlu1 %10581, %v15785_v29   ;;  %v7795_v6 = vpop.f32.mrf.mxu1 }
 0x628   : > { %v13386_v63 = vadd.f32 %v7795_v6, %v7467_v33  ;;  %10586 = vset.pattern.permute.xlu2 %v12989_v2  ;;  %v6736_v33 = vunpack.c.l.b16 %v5328_v40  ;;  %v15825_v6 = vld [vmem:[#allocation68_spill] sm:$0xff] }
 0x62a   : > { %15823 = vst [vmem:[#allocation54_spill] sm:$0xff] %v13386_v63  ;;  %7971 = vmatmul.bf16.gmra.mxu2 %v6485_v44  ;;  %v4067_v63 = vpack.c.bf16 %v9982_v13, %v9982_v13  ;;  %v4222_v44 = vpop.permute.xlu2 %4221  ;;  %v6860_v50 = vpack.c.b16 %v6736_v33, %v6735_v1  ;;  %v9933_v33 = vsel %vm2482_vm15, 1.0, %v15365_v51  ;;  %vm2488_vm15 = vcmp.eq.s32.totalorder %v12833_v16, %v11093_v8 }
 0x62b   : > { %10615 = vset.pattern.permute.xlu0 %v12704_v19  ;;  %vm4945_vm13 = vcmp.eq.s32.totalorder %v4222_v44, %v11093_v8  ;;  %v5330_v44 = vpack.c.bf16 %v10093_v57, %v10093_v57 }
 0x62c   : > { %v10092_v53 = vsel %vm4945_vm13, 1.0, %v15365_v51  ;;  %v6371_v13 = vunpack.c.l.b16 %v4067_v63 }
 0x62d   : > { %v7932_v45 = vpop.f32.mrf.mxu2  ;;  %v5329_v20 = vpack.c.bf16 %v10092_v53, %v10092_v53 }
 0x62e   : > { %v13400_v26 = vadd.f32 %v7932_v45, %v15825_v6  ;;  %v15827_v45 = vld [vmem:[#allocation5_spill] sm:$0xff]  ;;  %v13416_v0 = vpop.permute.xlu0 %4323  ;;  %v6486_v61 = vpack.c.b16 %v6372_v4, %v6371_v13  ;;  %v13443_v4 = vld [vmem:[%s15144_s2] ss:$0 sm:$0xff] }
 0x62f   : > { %10583 = vset.pattern.permute.xlu1 %v12673_v31  ;;  %v7798_v12 = vpop.f32.mrf.mxu1  ;;  %vm2481_vm14 = vcmp.eq.s32.totalorder %v15827_v45, %v11093_v8  ;;  %v13426_v45 = vpop.permute.xlu1 %3085  ;;  %v6737_v57 = vunpack.c.l.b16 %v5329_v20  ;;  %v7475_v30 = vadd.f32 %v13443_v4, %v15832_v27  ;;  %v15835_v27 = vld [vmem:[#allocation160_spill] sm:$0xff] }
 0x630   : > { %v13407_v40 = vadd.f32 %v7798_v12, %v7470_v18  ;;  %4347 = vperm.xlu2 %10586, %v15752_v21   ;;  %v9932_v1 = vsel %vm2481_vm14, 1.0, %v15365_v51  ;;  %v15828_v18 = vld [vmem:[#allocation141_spill] sm:$0xff]  ;;  %v15829_v12 = vld [vmem:[#allocation70_spill] sm:$0xff]  ;;  %vm2484_vm2 = vcmp.eq.s32.totalorder %v15835_v27, %v11093_v8  ;;  %vm3689_vm13 = vcmp.eq.s32.totalorder %v13426_v45, %v11093_v8 }
 0x631   : > { %v7472_v6 = vadd.f32 %v13010_v34, %v15828_v18  ;;  %v2865_v25 = vpack.c.bf16 %v9932_v1, %v9932_v1  ;;  %v6738_v34 = vunpack.c.l.b16 %v5330_v44  ;;  %v9985_v18 = vsel %vm3686_vm0, 1.0, %v15365_v51  ;;  %v15838_v27 = vld [vmem:[#allocation74_spill] sm:$0xff] }
 0x632   : > { %15826 = vst [vmem:[#allocation148_spill] sm:$0xff] %v13407_v40  ;;  %7837 = vmatmul.bf16.gmra.mxu1 %v6140_v49  ;;  %8255 = vmatmul.bf16.gmra.mxu3 %v6860_v50  ;;  %v15830_v50 = vld [vmem:[#allocation43_spill] sm:$0xff]  ;;  %v2866_v40 = vpack.c.bf16 %v9933_v33, %v9933_v33  ;;  %v9984_v1 = vsel %vm3685_vm1, 1.0, %v15365_v51  ;;  %v4240_v13 = vpop.permute.xlu2 %4239  ;;  %v4070_v20 = vpack.c.bf16 %v9985_v18, %v9985_v18  ;;  %v9935_v18 = vsel %vm2484_vm2, 1.0, %v15365_v51 }
 0x633   : > { %3211 = vperm.xlu0 %10615, %v15830_v50   ;;  %v6065_v53 = vunpack.c.l.b16 %v2865_v25  ;;  %vm4948_vm4 = vcmp.eq.s32.totalorder %v4240_v13, %v11093_v8  ;;  %vm4952_vm0 = vcmp.eq.s32.totalorder %v13362_v55, %v11093_v8 }
 0x635   : > { %v7934_v62 = vpop.f32.mrf.mxu2 }
 0x636   : > { %v13423_v49 = vadd.f32 %v7934_v62, %v15829_v12  ;;  %v6066_v62 = vunpack.c.l.b16 %v2866_v40  ;;  %v6861_v40 = vpack.c.b16 %v6738_v34, %v6737_v57  ;;  %v4069_v12 = vpack.c.bf16 %v9984_v1, %v9984_v1 }
 0x637   : > { %3121 = vperm.xlu1 %10583, %v15776_v22   ;;  %v7800_v63 = vpop.f32.mrf.mxu1  ;;  %v6374_v34 = vunpack.c.l.b16 %v4070_v20 }
 0x638   : > { %v13429_v48 = vadd.f32 %v7800_v63, %v7472_v6  ;;  %4359 = vperm.xlu2 %10586, %v15719_v58   ;;  %v13438_v6 = vpop.permute.xlu0 %4335  ;;  %v4234_v63 = vpop.permute.xlu1 %4233  ;;  %v6141_v24 = vpack.c.b16 %v6066_v62, %v6065_v53  ;;  %v6373_v57 = vunpack.c.l.b16 %v4069_v12  ;;  %v10095_v62 = vsel %vm4948_vm4, 1.0, %v15365_v51 }
 0x639   : > { %vm4947_vm5 = vcmp.eq.s32.totalorder %v4234_v63, %v11093_v8  ;;  %v15839_v63 = vld [vmem:[#allocation44_spill] sm:$0xff] }
 0x63a   : > { %15831 = vst [vmem:[#allocation95_spill] sm:$0xff] %v13429_v48  ;;  %7976 = vmatmul.bf16.gmra.mxu2 %v6486_v61  ;;  %v15833_v61 = vld [vmem:[#allocation71_spill] sm:$0xff]  ;;  %v10094_v1 = vsel %vm4947_vm5, 1.0, %v15365_v51  ;;  %vm2490_vm5 = vcmp.eq.s32.totalorder %v12851_v10, %v11093_v8 }
 0x63b   : > { %10620 = vset.pattern.permute.xlu0 %v13003_v37  ;;  %v5331_v28 = vpack.c.bf16 %v10094_v1, %v10094_v1  ;;  %v15842_v1 = vld [vmem:[#allocation77_spill] sm:$0xff] }
 0x63d   : > { %v7937_v33 = vpop.f32.mrf.mxu2 }
 0x63e   : > { %v13448_v44 = vadd.f32 %v7937_v33, %v15833_v61  ;;  %v15836_v33 = vld [vmem:[#allocation27_spill] sm:$0xff]  ;;  %v15837_v61 = vld [vmem:[#allocation120_spill] sm:$0xff] }
 0x63f   : > { %10585 = vset.pattern.permute.xlu1 %v13003_v37  ;;  %v7803_v25 = vpop.f32.mrf.mxu1  ;;  %vm2483_vm3 = vcmp.eq.s32.totalorder %v15836_v33, %v11093_v8  ;;  %v6487_v33 = vpack.c.b16 %v6374_v34, %v6373_v57 }
 0x640   : > { %v13452_v48 = vadd.f32 %v7803_v25, %v7475_v30  ;;  %10588 = vset.pattern.permute.xlu2 %v13003_v37  ;;  %v9934_v53 = vsel %vm2483_vm3, 1.0, %v15365_v51  ;;  %v7477_v25 = vadd.f32 %v13443_v4, %v15837_v61  ;;  %v3080_v12 = vpop.permute.xlu0 %3079  ;;  %v6739_v61 = vunpack.c.l.b16 %v5331_v28 }
 0x641   : > { %vm3688_vm7 = vcmp.eq.s32.totalorder %v3080_v12, %v11093_v8  ;;  %v10097_v12 = vsel %vm4950_vm8, 1.0, %v15365_v51  ;;  %vm2491_vm8 = vcmp.eq.s32.totalorder %v12823_v36, %v11093_v8 }
 0x642   : > { %15834 = vst [vmem:[#allocation55_spill] sm:$0xff] %v13452_v48  ;;  %7842 = vmatmul.bf16.gmra.mxu1 %v6141_v24  ;;  %8260 = vmatmul.bf16.gmra.mxu3 %v6861_v40  ;;  %v2868_v24 = vpack.c.bf16 %v9935_v18, %v9935_v18  ;;  %v2867_v40 = vpack.c.bf16 %v9934_v53, %v9934_v53  ;;  %v9986_v53 = vsel %vm3687_vm6, 1.0, %v15365_v51  ;;  %v9987_v60 = vsel %vm3688_vm7, 1.0, %v15365_v51 }
 0x643   : > { %4497 = vperm.xlu0 %10620, %v15839_v63   ;;  %v5332_v48 = vpack.c.bf16 %v10095_v62, %v10095_v62  ;;  %v15841_v63 = vld [vmem:[#allocation126_spill] sm:$0xff]  ;;  %v4071_v57 = vpack.c.bf16 %v9986_v53, %v9986_v53  ;;  %v4072_v62 = vpack.c.bf16 %v9987_v60, %v9987_v60  ;;  %v15845_v53 = vld [vmem:[#allocation125_spill] sm:$0xff] }
 0x644   : > { %v6067_v18 = vunpack.c.l.b16 %v2867_v40  ;;  %v7480_v34 = vadd.f32 %v13443_v4, %v15841_v63  ;;  %v15844_v63 = vld [vmem:[#allocation162_spill] sm:$0xff]  ;;  %v7482_v60 = vadd.f32 %v13443_v4, %v15845_v53 }
 0x645   : > { %v7939_v30 = vpop.f32.mrf.mxu2  ;;  %vm2486_vm10 = vcmp.eq.s32.totalorder %v15844_v63, %v11093_v8 }
 0x646   : > { %v13468_v13 = vadd.f32 %v7939_v30, %v15838_v27  ;;  %v6068_v30 = vunpack.c.l.b16 %v2868_v24  ;;  %v4246_v24 = vpop.permute.xlu2 %4245 }
 0x647   : > { %4341 = vperm.xlu1 %10585, %v15752_v21   ;;  %v7805_v20 = vpop.f32.mrf.mxu1  ;;  %v6740_v21 = vunpack.c.l.b16 %v5332_v48  ;;  %vm4949_vm9 = vcmp.eq.s32.totalorder %v4246_v24, %v11093_v8 }
 0x648   : > { %v13474_v14 = vadd.f32 %v7805_v20, %v7477_v25  ;;  %4365 = vperm.xlu2 %10588, %v15767_v42   ;;  %v6142_v40 = vpack.c.b16 %v6068_v30, %v6067_v18  ;;  %v6376_v20 = vunpack.c.l.b16 %v4072_v62  ;;  %v10096_v47 = vsel %vm4949_vm9, 1.0, %v15365_v51  ;;  %v3104_v55 = vpop.permute.xlu0 %3103 }
 0x649   : > { %v6862_v48 = vpack.c.b16 %v6740_v21, %v6739_v61  ;;  %v9936_v30 = vsel %vm2485_vm11, 1.0, %v15365_v51  ;;  %v5334_v61 = vpack.c.bf16 %v10097_v12, %v10097_v12  ;;  %v5333_v21 = vpack.c.bf16 %v10096_v47, %v10096_v47  ;;  %v15848_v12 = vld [vmem:[#allocation134_spill] sm:$0xff] }
 0x64a   : > { %15840 = vst [vmem:[#allocation35_spill] sm:$0xff] %v13474_v14  ;;  %7981 = vmatmul.bf16.gmra.mxu2 %v6487_v33  ;;  %v9937_v33 = vsel %vm2486_vm10, 1.0, %v15365_v51  ;;  %v7485_v47 = vadd.f32 %v13443_v4, %v15848_v12  ;;  %v15853_v12 = vld [vmem:[#allocation137_spill] sm:$0xff]  ;;  %vm3692_vm3 = vcmp.eq.s32.totalorder %v3104_v55, %v11093_v8  ;;  %vm2492_vm9 = vcmp.eq.s32.totalorder %v12942_v7, %v11093_v8 }
 0x64b   : > { %10625 = vset.pattern.permute.xlu0 %v12989_v2  ;;  %v2870_v62 = vpack.c.bf16 %v9937_v33, %v9937_v33  ;;  %v6742_v24 = vunpack.c.l.b16 %v5334_v61  ;;  %v15849_v33 = vld [vmem:[#allocation154_spill] sm:$0xff] }
 0x64c   : > { %v15850_v61 = vld [vmem:[#allocation34_spill] sm:$0xff] }
 0x64d   : > { %v7942_v27 = vpop.f32.mrf.mxu2 }
 0x64e   : > { %v13483_v25 = vadd.f32 %v7942_v27, %v15842_v1  ;;  %v15846_v27 = vld [vmem:[#allocation45_spill] sm:$0xff]  ;;  %v2869_v1 = vpack.c.bf16 %v9936_v30, %v9936_v30 }
 0x64f   : > { %4353 = vperm.xlu1 %10585, %v15719_v58   ;;  %v7808_v42 = vpop.f32.mrf.mxu1  ;;  %v6375_v58 = vunpack.c.l.b16 %v4071_v57 }
 0x650   : > { %v13489_v28 = vadd.f32 %v7808_v42, %v7480_v34  ;;  %10591 = vset.pattern.permute.xlu2 %v12989_v2  ;;  %v3092_v34 = vpop.permute.xlu1 %3091  ;;  %v6069_v63 = vunpack.c.l.b16 %v2869_v1  ;;  %v13529_v1 = vpop.f32.mrf.mxu0 }
 0x651   : > { %v6488_v59 = vpack.c.b16 %v6376_v20, %v6375_v58  ;;  %vm3690_vm12 = vcmp.eq.s32.totalorder %v3092_v34, %v11093_v8 }
 0x652   : > { %15843 = vst [vmem:[#allocation97_spill] sm:$0xff] %v13489_v28  ;;  %7847 = vmatmul.bf16.gmra.mxu1 %v6142_v40  ;;  %8265 = vmatmul.bf16.gmra.mxu3 %v6862_v48  ;;  %v6741_v40 = vunpack.c.l.b16 %v5333_v21  ;;  %v6070_v48 = vunpack.c.l.b16 %v2870_v62  ;;  %v9989_v58 = vsel %vm3690_vm12, 1.0, %v15365_v51  ;;  %v4258_v62 = vpop.permute.xlu2 %4257 }
 0x653   : > { %4515 = vperm.xlu0 %10625, %v15846_v27   ;;  %vm4951_vm1 = vcmp.eq.s32.totalorder %v4258_v62, %v11093_v8 }
 0x654   : > { %v6863_v53 = vpack.c.b16 %v6742_v24, %v6741_v40  ;;  %v6143_v45 = vpack.c.b16 %v6070_v48, %v6069_v63  ;;  %v9939_v48 = vsel %vm2488_vm15, 1.0, %v15365_v51  ;;  %v10098_v16 = vsel %vm4951_vm1, 1.0, %v15365_v51 }
 0x655   : > { %v13501_v18 = vpop.f32.mrf.mxu2  ;;  %v5335_v62 = vpack.c.bf16 %v10098_v16, %v10098_v16 }
 0x657   : > { %10587 = vset.pattern.permute.xlu1 %v12673_v31  ;;  %v7810_v57 = vpop.f32.mrf.mxu1  ;;  %v6743_v28 = vunpack.c.l.b16 %v5335_v62 }
 0x658   : > { %v13507_v42 = vadd.f32 %v7810_v57, %v7482_v60  ;;  %4383 = vperm.xlu2 %10591, %v15772_v46   ;;  %v9988_v60 = vsel %vm3689_vm13, 1.0, %v15365_v51  ;;  %v15852_v57 = vld [vmem:[#allocation75_spill] sm:$0xff] }
 0x659   : > { %vm2487_vm14 = vcmp.eq.s32.totalorder %v15852_v57, %v11093_v8  ;;  %v4073_v24 = vpack.c.bf16 %v9988_v60, %v9988_v60  ;;  %v15854_v60 = vld [vmem:[#allocation46_spill] sm:$0xff] }
 0x65a   : > { %15847 = vst [vmem:[#allocation57_spill] sm:$0xff] %v13507_v42  ;;  %7986 = vmatmul.bf16.gmra.mxu2 %v6488_v59  ;;  %v4074_v59 = vpack.c.bf16 %v9989_v58, %v9989_v58  ;;  %v9938_v40 = vsel %vm2487_vm14, 1.0, %v15365_v51  ;;  %v10099_v58 = vsel %vm4952_vm0, 1.0, %v15365_v51  ;;  %vm4958_vm14 = vcmp.eq.s32.totalorder %v13393_v5, %v11093_v8 }
 0x65b   : > { %10630 = vset.pattern.permute.xlu0 %v12673_v31 }
 0x65c   : > { %v6378_v63 = vunpack.c.l.b16 %v4074_v59  ;;  %v5336_v59 = vpack.c.bf16 %v10099_v58, %v10099_v58  ;;  %v9991_v58 = vsel %vm3692_vm3, 1.0, %v15365_v51 }
 0x65d   : > { %v7947_v20 = vpop.f32.mrf.mxu2 }
 0x65e   : > { %v13517_v30 = vadd.f32 %v7947_v20, %v15849_v33  ;;  %v6377_v33 = vunpack.c.l.b16 %v4073_v24 }
 0x65f   : > { %3133 = vperm.xlu1 %10587, %v15850_v61   ;;  %v7813_v21 = vpop.f32.mrf.mxu1 }
 0x660   : > { %v13522_v34 = vadd.f32 %v7813_v21, %v7485_v47  ;;  %10593 = vset.pattern.permute.xlu2 %v13003_v37  ;;  %v7487_v47 = vadd.f32 %v13443_v4, %v15853_v12  ;;  %v2871_v21 = vpack.c.bf16 %v9938_v40, %v9938_v40  ;;  %v6489_v42 = vpack.c.b16 %v6378_v63, %v6377_v33  ;;  %v13549_v40 = vpop.f32.mrf.mxu0  ;;  %v15858_v33 = vld [vmem:[#allocation87_spill] sm:$0xff] }
 0x661   : > { %15856 = vst [vmem:[#allocation101_spill] sm:$0xff] %v13549_v40 }
 0x662   : > { %15851 = vst [vmem:[#allocation9_spill] sm:$0xff] %v13522_v34  ;;  %7852 = vmatmul.bf16.gmra.mxu1 %v6143_v45  ;;  %8270 = vmatmul.bf16.gmra.mxu3 %v6863_v53  ;;  %v2872_v53 = vpack.c.bf16 %v9939_v48, %v9939_v48  ;;  %v3098_v45 = vpop.permute.xlu1 %3097  ;;  %v6071_v24 = vunpack.c.l.b16 %v2871_v21  ;;  %v6744_v48 = vunpack.c.l.b16 %v5336_v59 }
 0x663   : > { %3253 = vperm.xlu0 %10630, %v15854_v60   ;;  %vm3691_vm2 = vcmp.eq.s32.totalorder %v3098_v45, %v11093_v8 }
 0x664   : > { %v6072_v12 = vunpack.c.l.b16 %v2872_v53  ;;  %v9990_v14 = vsel %vm3691_vm2, 1.0, %v15365_v51  ;;  %v6864_v62 = vpack.c.b16 %v6744_v48, %v6743_v28 }
 0x665   : > { %v13538_v20 = vpop.f32.mrf.mxu2  ;;  %v4075_v53 = vpack.c.bf16 %v9990_v14, %v9990_v14 }
 0x666   : > { %v6144_v21 = vpack.c.b16 %v6072_v12, %v6071_v24 }
 0x667   : > { %10590 = vset.pattern.permute.xlu1 %v13003_v37  ;;  %v7815_v57 = vpop.f32.mrf.mxu1  ;;  %v6379_v24 = vunpack.c.l.b16 %v4075_v53 }
 0x668   : > { %v13544_v34 = vadd.f32 %v7815_v57, %v7487_v47  ;;  %4389 = vperm.xlu2 %10593, %v15785_v29   ;;  %v15857_v47 = vld [vmem:[#allocation136_spill] sm:$0xff]  ;;  %v4276_v29 = vpop.permute.xlu2 %4275  ;;  %v4076_v57 = vpack.c.bf16 %v9991_v58, %v9991_v58  ;;  %v15861_v58 = vld [vmem:[#allocation146_spill] sm:$0xff] }
 0x669   : > { %v7490_v63 = vadd.f32 %v13443_v4, %v15857_v47  ;;  %v15860_v47 = vld [vmem:[#allocation6_spill] sm:$0xff]  ;;  %vm4954_vm6 = vcmp.eq.s32.totalorder %v4276_v29, %v11093_v8  ;;  %v7492_v10 = vadd.f32 %v13443_v4, %v15861_v58 }
 0x66a   : > { %15855 = vst [vmem:[#allocation124_spill] sm:$0xff] %v13544_v34  ;;  %7991 = vmatmul.bf16.gmra.mxu2 %v6489_v42  ;;  %v4270_v42 = vpop.permute.xlu1 %4269  ;;  %vm2489_vm4 = vcmp.eq.s32.totalorder %v15860_v47, %v11093_v8  ;;  %v6380_v28 = vunpack.c.l.b16 %v4076_v57  ;;  %v15864_v34 = vld [vmem:[#allocation140_spill] sm:$0xff] }
 0x66b   : > { %10635 = vset.pattern.permute.xlu0 %v12704_v19  ;;  %vm4953_vm7 = vcmp.eq.s32.totalorder %v4270_v42, %v11093_v8  ;;  %v9940_v14 = vsel %vm2489_vm4, 1.0, %v15365_v51 }
 0x66c   : > { %v10100_v12 = vsel %vm4953_vm7, 1.0, %v15365_v51  ;;  %v2873_v29 = vpack.c.bf16 %v9940_v14, %v9940_v14  ;;  %v6490_v57 = vpack.c.b16 %v6380_v28, %v6379_v24  ;;  %v7495_v14 = vadd.f32 %v13443_v4, %v15864_v34 }
 0x66d   : > { %v7952_v16 = vpop.f32.mrf.mxu2  ;;  %v9942_v34 = vsel %vm2491_vm8, 1.0, %v15365_v51 }
 0x66e   : > { %v13556_v45 = vadd.f32 %v7952_v16, %v15858_v33  ;;  %v13577_v16 = vpop.f32.mrf.mxu0 }
 0x66f   : > { %4377 = vperm.xlu1 %10590, %v15772_v46   ;;  %v7818_v55 = vpop.f32.mrf.mxu1  ;;  %v9941_v46 = vsel %vm2490_vm5, 1.0, %v15365_v51 }
 0x670   : > { %v13560_v59 = vadd.f32 %v7818_v55, %v7490_v63  ;;  %4401 = vperm.xlu2 %10593, %v15776_v22   ;;  %v10101_v22 = vsel %vm4954_vm6, 1.0, %v15365_v51  ;;  %v15862_v63 = vld [vmem:[#allocation47_spill] sm:$0xff]  ;;  %v2874_v33 = vpack.c.bf16 %v9941_v46, %v9941_v46  ;;  %v4288_v46 = vpop.permute.xlu2 %4287 }
 0x671   : > { %v5338_v55 = vpack.c.bf16 %v10101_v22, %v10101_v22  ;;  %vm4956_vm10 = vcmp.eq.s32.totalorder %v4288_v46, %v11093_v8 }
 0x672   : > { %15859 = vst [vmem:[#allocation39_spill] sm:$0xff] %v13560_v59  ;;  %7857 = vmatmul.bf16.gmra.mxu1 %v6144_v21  ;;  %8275 = vmatmul.bf16.gmra.mxu3 %v6864_v62  ;;  %v5337_v21 = vpack.c.bf16 %v10100_v12, %v10100_v12  ;;  %v6073_v62 = vunpack.c.l.b16 %v2873_v29  ;;  %v6074_v47 = vunpack.c.l.b16 %v2874_v33  ;;  %v4282_v22 = vpop.permute.xlu1 %4281 }
 0x673   : > { %3271 = vperm.xlu0 %10635, %v15862_v63   ;;  %v6746_v40 = vunpack.c.l.b16 %v5338_v55  ;;  %v15865_v63 = vld [vmem:[#allocation155_spill] sm:$0xff]  ;;  %vm4955_vm11 = vcmp.eq.s32.totalorder %v4282_v22, %v11093_v8 }
 0x674   : > { %v6745_v58 = vunpack.c.l.b16 %v5337_v21  ;;  %v15869_v21 = vld [vmem:[#allocation48_spill] sm:$0xff] }
 0x675   : > { %v13573_v48 = vpop.f32.mrf.mxu2 }
 0x676   : > { %v13591_v28 = vpop.f32.mrf.mxu0  ;;  %v6865_v29 = vpack.c.b16 %v6746_v40, %v6745_v58  ;;  %v10103_v40 = vsel %vm4956_vm10, 1.0, %v15365_v51  ;;  %vm4962_vm10 = vcmp.eq.s32.totalorder %v13416_v0, %v11093_v8 }
 0x677   : > { %10592 = vset.pattern.permute.xlu1 %v12704_v19  ;;  %v7820_v42 = vpop.f32.mrf.mxu1  ;;  %15866 = vst [vmem:[#allocation59_spill] sm:$0xff] %v13591_v28  ;;  %v5340_v58 = vpack.c.bf16 %v10103_v40, %v10103_v40 }
 0x678   : > { %v13581_v53 = vadd.f32 %v7820_v42, %v7492_v10  ;;  %10596 = vset.pattern.permute.xlu2 %v12989_v2  ;;  %v6145_v10 = vpack.c.b16 %v6074_v47, %v6073_v62  ;;  %v15868_v42 = vld [vmem:[#allocation144_spill] sm:$0xff] }
 0x679   : > { %v7497_v7 = vadd.f32 %v13443_v4, %v15868_v42 }
 0x67a   : > { %15863 = vst [vmem:[#allocation157_spill] sm:$0xff] %v13581_v53  ;;  %7996 = vmatmul.bf16.gmra.mxu2 %v6490_v57  ;;  %v2875_v57 = vpack.c.bf16 %v9942_v34, %v9942_v34  ;;  %v3110_v22 = vpop.permute.xlu1 %3109  ;;  %v7500_v34 = vadd.f32 %v13443_v4, %v13529_v1 }
 0x67b   : > { %10640 = vset.pattern.permute.xlu0 %v13003_v37  ;;  %vm3693_vm15 = vcmp.eq.s32.totalorder %v3110_v22, %v11093_v8 }
 0x67d   : > { %v7957_v59 = vpop.f32.mrf.mxu2 }
 0x67e   : > { %v13587_v60 = vadd.f32 %v7957_v59, %v15865_v63  ;;  %v9943_v59 = vsel %vm2492_vm9, 1.0, %v15365_v51  ;;  %v10102_v63 = vsel %vm4955_vm11, 1.0, %v15365_v51  ;;  %vm9479_vm11 = vcmask 1041409  }
 0x67f   : > { %3139 = vperm.xlu1 %10592, %v15850_v61   ;;  %v7823_v24 = vpop.f32.mrf.mxu1  ;;  %v2876_v47 = vpack.c.bf16 %v9943_v59, %v9943_v59  ;;  %v15871_v59 = vld [vmem:[#allocation100_spill] sm:$0xff] }
 0x680   : > { %v13593_v12 = vadd.f32 %v7823_v24, %v7495_v14  ;;  %4419 = vperm.xlu2 %10596, %v15850_v61   ;;  %v5339_v14 = vpack.c.bf16 %v10102_v63, %v10102_v63  ;;  %v13616_v24 = vpop.f32.mrf.mxu0 }
 0x682   : > { %15867 = vst [vmem:[#allocation152_spill] sm:$0xff] %v13593_v12  ;;  %7862 = vmatmul.bf16.gmra.mxu1 %v6145_v10  ;;  %8280 = vmatmul.bf16.gmra.mxu3 %v6865_v29  ;;  %v6075_v10 = vunpack.c.l.b16 %v2875_v57  ;;  %v6076_v29 = vunpack.c.l.b16 %v2876_v47  ;;  %v6747_v42 = vunpack.c.l.b16 %v5339_v14  ;;  %v13633_v57 = vld [vmem:[%s15145_s3 + $0x8] sm:$0xff]  ;;  %v15875_v14 = vld [vmem:[#allocation165_spill] sm:$0xff] }
 0x683   : > { %4557 = vperm.xlu0 %10640, %v15869_v21   ;;  %vm2493_vm13 = vcmp.eq.s32.totalorder %v15875_v14, %v11093_v8  ;;  %v7505_v21 = vadd.f32 %v13443_v4, %v13577_v16 }
 0x684   : > { %v6146_v47 = vpack.c.b16 %v6076_v29, %v6075_v10 }
 0x685   : > { %v13606_v33 = vpop.f32.mrf.mxu2  ;;  %v8241_v36 = vpop.f32.mrf.mxu3 }
 0x686   : > { %v8242_v55 = vadd.f32 %v8241_v36, %v13242_v11  ;;  %v6748_v11 = vunpack.c.l.b16 %v5340_v58 }
 0x687   : > { %10594 = vset.pattern.permute.xlu1 %v12673_v31  ;;  %v7825_v62 = vpop.f32.mrf.mxu1 }
 0x688   : > { %v13613_v46 = vadd.f32 %v7825_v62, %v7497_v7  ;;  %4431 = vperm.xlu2 %10596, %v15797_v54   ;;  %v8561_v12 = vmax.f32 %v8242_v55, 0.0  ;;  %v13628_v7 = vld [vmem:[%s15145_s3] sm:$0xff]  ;;  %v13651_v10 = vpop.f32.mrf.mxu0 }
 0x689   : > { %v13641_v58 = vpop.permute.xlu1 %4305  ;;  %15876 = vst [vmem:[#allocation107_spill] sm:$0xff] %v13651_v10 }
 0x68a   : > { %15870 = vst [vmem:[#allocation123_spill] sm:$0xff] %v13613_v46  ;;  %vm4959_vm6 = vcmp.eq.s32.totalorder %v13641_v58, %v11093_v8  ;;  %v15884_v58 = vld [vmem:[#allocation50_spill] sm:$0xff] }
 0x68b   : > { %10645 = vset.pattern.permute.xlu0 %v12989_v2 }
 0x68d   : > { %v7962_v36 = vpop.f32.mrf.mxu2  ;;  %v8243_v28 = vpop.f32.mrf.mxu3 }
 0x68e   : > { %v13621_v40 = vadd.f32 %v7962_v36, %v15871_v59  ;;  %v8244_v63 = vadd.f32 %v8243_v28, %v13262_v41  ;;  %v6866_v41 = vpack.c.b16 %v6748_v11, %v6747_v42  ;;  %v15874_v28 = vld [vmem:[#allocation90_spill] sm:$0xff]  ;;  %v4294_v36 = vpop.permute.xlu2 %4293  ;;  %v8691_v59 = vmul.f32 %v13628_v7, %v8561_v12 }
 0x68f   : > { %3145 = vperm.xlu1 %10594, %v15797_v54   ;;  %v7828_v1 = vpop.f32.mrf.mxu1  ;;  %vm2494_vm12 = vcmp.eq.s32.totalorder %v15874_v28, %v11093_v8  ;;  %vm4957_vm0 = vcmp.eq.s32.totalorder %v4294_v36, %v11093_v8  ;;  %v9944_v11 = vsel %vm2493_vm13, 1.0, %v15365_v51 }
 0x690   : > { %15872 = vst [vmem:[#allocation60_spill] sm:$0xff] %v13621_v40  ;;  %v8562_v55 = vmax.f32 %v8244_v63, 0.0  ;;  %v13636_v62 = vadd.f32 %v7828_v1, %v7500_v34  ;;  %10599 = vset.pattern.permute.xlu2 %v12704_v19  ;;  %v9945_v42 = vsel %vm2494_vm12, 1.0, %v15365_v51  ;;  %v10105_v63 = vsel %vm4958_vm14, 1.0, %v15365_v51  ;;  %v15880_v40 = vld [vmem:[#allocation103_spill] sm:$0xff] }
 0x691   : > { %v9992_v1 = vsel %vm3693_vm15, 1.0, %v15365_v51  ;;  %v10104_v5 = vsel %vm4957_vm0, 1.0, %v15365_v51  ;;  %v2877_v28 = vpack.c.bf16 %v9944_v11, %v9944_v11  ;;  %v5342_v14 = vpack.c.bf16 %v10105_v63, %v10105_v63  ;;  %v13670_v63 = vpop.f32.mrf.mxu0 }
 0x692   : > { %15873 = vst [vmem:[#allocation40_spill] sm:$0xff] %v13636_v62  ;;  %v8692_v46 = vmul.f32 %v13633_v57, %v8562_v55  ;;  %7867 = vmatmul.bf16.gmra.mxu1 %v6146_v47  ;;  %8285 = vmatmul.bf16.gmra.mxu3 %v6866_v41  ;;  %v15878_v55 = vld [vmem:[#allocation49_spill] sm:$0xff]  ;;  %v2878_v41 = vpack.c.bf16 %v9945_v42, %v9945_v42 }
 0x693   : > { %4575 = vperm.xlu0 %10645, %v15878_v55   ;;  %v4077_v36 = vpack.c.bf16 %v9992_v1, %v9992_v1  ;;  %v6077_v53 = vunpack.c.l.b16 %v2877_v28  ;;  %vm2500_vm14 = vcmp.eq.s32.totalorder %v12932_v23, %v11093_v8  ;;  %vm4964_vm15 = vcmp.eq.s32.totalorder %v13438_v6, %v11093_v8 }
 0x694   : > { %v8819_v29 = vmax.f32 %v8691_v59, %v8692_v46  ;;  %v5341_v59 = vpack.c.bf16 %v10104_v5, %v10104_v5 }
 0x695   : > { %v13655_v34 = vpop.f32.mrf.mxu2  ;;  %v8246_v12 = vpop.f32.mrf.mxu3  ;;  %v6381_v42 = vunpack.c.l.b16 %v4077_v36 }
 0x696   : > { %15877 = vst [vmem:[#allocation62_spill] sm:$0xff] %v13655_v34  ;;  %v8247_v22 = vadd.f32 %v8246_v12, %v13282_v9  ;;  %v8820_v47 = vrot.slane %v8819_v29, 4  ;;  %v6078_v12 = vunpack.c.l.b16 %v2878_v41  ;;  %v6749_v27 = vunpack.c.l.b16 %v5341_v59  ;;  %v3128_v41 = vpop.permute.xlu0 %3127  ;;  %v4312_v28 = vpop.permute.xlu2 %4311 }
 0x697   : > { %10595 = vset.pattern.permute.xlu1 %v13003_v37  ;;  %v13663_v46 = vpop.f32.mrf.mxu1  ;;  %vm3696_vm4 = vcmp.eq.s32.totalorder %v3128_v41, %v11093_v8  ;;  %vm4960_vm5 = vcmp.eq.s32.totalorder %v4312_v28, %v11093_v8 }
 0x698   : > { %15879 = vst [vmem:[#allocation4_spill] sm:$0xff] %v13663_v46  ;;  %3163 = vperm.xlu2 %10599, %v15805_v32   ;;  %v8821_v62 = vmax.f32 %v8819_v29, %v8820_v47  ;;  %v6750_v46 = vunpack.c.l.b16 %v5342_v14  ;;  %v8563_v1 = vmax.f32 %v8247_v22, 0.0  ;;  %v6147_v59 = vpack.c.b16 %v6078_v12, %v6077_v53 }
 0x699   : > { %v3116_v10 = vpop.permute.xlu1 %3115  ;;  %v13703_v28 = vpop.f32.mrf.mxu0 }
 0x69a   : > { %vm3694_vm1 = vcmp.eq.s32.totalorder %v3116_v10, %v11093_v8  ;;  %v8822_v47 = vrot.slane %v8821_v62, 2  ;;  %v8693_v22 = vmul.f32 %v13628_v7, %v8563_v1  ;;  %v10106_v1 = vsel %vm4959_vm6, 1.0, %v15365_v51  ;;  %15886 = vst [vmem:[#allocation36_spill] sm:$0xff] %v13703_v28 }
 0x69b   : > { %v9993_v9 = vsel %vm3694_vm1, 1.0, %v15365_v51  ;;  %10650 = vset.pattern.permute.xlu0 %v12673_v31  ;;  %vm9481_vm1 = vcmask 1042434   ;;  %vm9483_vm6 = vcmask 1043459  }
 0x69c   : > { %v4078_v55 = vpack.c.bf16 %v9993_v9, %v9993_v9  ;;  %v8823_v53 = vmax.f32 %v8821_v62, %v8822_v47 }
 0x69d   : > { %v7967_v11 = vpop.f32.mrf.mxu2  ;;  %v8248_v34 = vpop.f32.mrf.mxu3 }
 0x69e   : > { %v6382_v5 = vunpack.c.l.b16 %v4078_v55  ;;  %v13673_v10 = vadd.f32 %v7967_v11, %v15880_v40  ;;  %v8249_v29 = vadd.f32 %v8248_v34, %v13304_v43  ;;  %v15882_v40 = vld [vmem:[#allocation164_spill] sm:$0xff]  ;;  %v6867_v34 = vpack.c.b16 %v6750_v46, %v6749_v27 }
 0x69f   : > { %4413 = vperm.xlu1 %10595, %v15850_v61   ;;  %v7833_v16 = vpop.f32.mrf.mxu1  ;;  %vm2496_vm2 = vcmp.eq.s32.totalorder %v15882_v40, %v11093_v8  ;;  %v15883_v43 = vld [vmem:[#allocation168_spill] sm:$0xff]  ;;  %v10107_v11 = vsel %vm4960_vm5, 1.0, %v15365_v51  ;;  %v5343_v40 = vpack.c.bf16 %v10106_v1, %v10106_v1 }
 0x6a0   : > { %v8564_v14 = vmax.f32 %v8249_v29, 0.0  ;;  %v13678_v36 = vadd.f32 %v7833_v16, %v7505_v21  ;;  %v6491_v9 = vpack.c.b16 %v6382_v5, %v6381_v42  ;;  %10602 = vset.pattern.permute.xlu2 %v12673_v31  ;;  %vm2495_vm3 = vcmp.eq.s32.totalorder %v15883_v43, %v11093_v8 }
 0x6a1   : > { %v9947_v21 = vsel %vm2496_vm2, 1.0, %v15365_v51  ;;  %v9946_v55 = vsel %vm2495_vm3, 1.0, %v15365_v51  ;;  %v9995_v42 = vsel %vm3696_vm4, 1.0, %v15365_v51  ;;  %v8824_v16 = vrot.slane %v8823_v53, 1 }
 0x6a2   : > { %15881 = vst [vmem:[#allocation161_spill] sm:$0xff] %v13678_v36  ;;  %v8694_v61 = vmul.f32 %v13633_v57, %v8564_v14  ;;  %7872 = vmatmul.bf16.gmra.mxu1 %v6147_v59  ;;  %8001 = vmatmul.bf16.gmra.mxu2 %v6491_v9  ;;  %v2880_v62 = vpack.c.bf16 %v9947_v21, %v9947_v21 }
 0x6a3   : > { %8290 = vmatmul.bf16.gmra.mxu3 %v6867_v34  ;;  %3313 = vperm.xlu0 %10650, %v15884_v58   ;;  %v2879_v47 = vpack.c.bf16 %v9946_v55, %v9946_v55  ;;  %v4080_v59 = vpack.c.bf16 %v9995_v42, %v9995_v42  ;;  %v5344_v9 = vpack.c.bf16 %v10107_v11, %v10107_v11  ;;  %v6751_v11 = vunpack.c.l.b16 %v5343_v40  ;;  %v13724_v40 = vpop.f32.mrf.mxu0 }
 0x6a4   : > { %v8826_v27 = vmax.f32 %v8693_v22, %v8694_v61  ;;  %v8825_v61 = vmax.f32 %v8823_v53, %v8824_v16  ;;  %vm2502_vm3 = vcmp.eq.s32.totalorder %v12954_v35, %v11093_v8 }
 0x6a5   : > { %v13693_v46 = vpop.f32.mrf.mxu2  ;;  %v8251_v12 = vpop.f32.mrf.mxu3  ;;  %v6079_v22 = vunpack.c.l.b16 %v2879_v47  ;;  %v6752_v1 = vunpack.c.l.b16 %v5344_v9  ;;  %v15888_v9 = vld [vmem:[#allocation26_spill] sm:$0xff]  ;;  %v9953_v35 = vsel %vm2502_vm3, 1.0, %v15365_v51 }
 0x6a6   : > { %v8827_v5 = vrot.slane %v8826_v27, 4  ;;  %v8252_v29 = vadd.f32 %v8251_v12, %v13322_v56  ;;  %v6080_v56 = vunpack.c.l.b16 %v2880_v62  ;;  %v6384_v12 = vunpack.c.l.b16 %v4080_v59 }
 0x6a7   : > { %4425 = vperm.xlu1 %10595, %v15797_v54   ;;  %v13701_v41 = vpop.f32.mrf.mxu1  ;;  %v9267_v53 = vpack.c.bf16 %v8825_v61, %v8825_v61  ;;  %vm2497_vm8 = vcmp.eq.s32.totalorder %v15888_v9, %v11093_v8 }
 0x6a8   : > { %15885 = vst [vmem:[#allocation138_spill] sm:$0xff] %v13701_v41  ;;  %v8828_v14 = vmax.f32 %v8826_v27, %v8827_v5  ;;  %3169 = vperm.xlu2 %10602, %v15813_v3   ;;  %v7510_v27 = vadd.f32 %v13443_v4, %v13616_v24  ;;  %v8565_v41 = vmax.f32 %v8252_v29, 0.0  ;;  %v6148_v16 = vpack.c.b16 %v6080_v56, %v6079_v22  ;;  %v15889_v29 = vld [vmem:[#allocation170_spill] sm:$0xff] }
 0x6a9   : > { %v3122_v43 = vpop.permute.xlu1 %3121  ;;  %vm2498_vm9 = vcmp.eq.s32.totalorder %v15889_v29, %v11093_v8  ;;  %v9415_v22 = vunpack.c.l.b16 %v9267_v53  ;;  %v15890_v53 = vld [vmem:[#allocation51_spill] sm:$0xff] }
 0x6aa   : > { %v8829_v34 = vrot.slane %v8828_v14, 2  ;;  %vm3695_vm7 = vcmp.eq.s32.totalorder %v3122_v43, %v11093_v8  ;;  %v8695_v56 = vmul.f32 %v13628_v7, %v8565_v41  ;;  %v9949_v41 = vsel %vm2498_vm9, 1.0, %v15365_v51 }
 0x6ab   : > { %v9994_v21 = vsel %vm3695_vm7, 1.0, %v15365_v51  ;;  %10655 = vset.pattern.permute.xlu0 %v12704_v19 }
 0x6ac   : > { %v8830_v54 = vmax.f32 %v8828_v14, %v8829_v34  ;;  %v4079_v55 = vpack.c.bf16 %v9994_v21, %v9994_v21 }
 0x6ad   : > { %v13710_v42 = vpop.f32.mrf.mxu2  ;;  %v8253_v5 = vpop.f32.mrf.mxu3 }
 0x6ae   : > { %v8831_v28 = vrot.slane %v8830_v54, 1  ;;  %v6383_v36 = vunpack.c.l.b16 %v4079_v55  ;;  %v8254_v62 = vadd.f32 %v8253_v5, %v13344_v38  ;;  %v6868_v38 = vpack.c.b16 %v6752_v1, %v6751_v11 }
 0x6af   : > { %10598 = vset.pattern.permute.xlu1 %v12673_v31  ;;  %v7838_v47 = vpop.f32.mrf.mxu1  ;;  %v10109_v55 = vsel %vm4962_vm10, 1.0, %v15365_v51 }
 0x6b0   : > { %v8832_v14 = vmax.f32 %v8830_v54, %v8831_v28  ;;  %v8566_v59 = vmax.f32 %v8254_v62, 0.0  ;;  %v13715_v24 = vadd.f32 %v7838_v47, %v7510_v27  ;;  %v6492_v43 = vpack.c.b16 %v6384_v12, %v6383_v36  ;;  %10604 = vset.pattern.permute.xlu2 %v13003_v37  ;;  %v4318_v28 = vpop.permute.xlu2 %4317 }
 0x6b1   : > { %vm4961_vm12 = vcmp.eq.s32.totalorder %v4318_v28, %v11093_v8  ;;  %v9948_v54 = vsel %vm2497_vm8, 1.0, %v15365_v51  ;;  %vm2503_vm8 = vcmp.eq.s32.totalorder %v12948_v17, %v11093_v8 }
 0x6b2   : > { %15887 = vst [vmem:[#allocation42_spill] sm:$0xff] %v13715_v24  ;;  %v9268_v34 = vpack.c.bf16 %v8832_v14, %v8832_v14  ;;  %v8696_v36 = vmul.f32 %v13633_v57, %v8566_v59  ;;  %7877 = vmatmul.bf16.gmra.mxu1 %v6148_v16  ;;  %8006 = vmatmul.bf16.gmra.mxu2 %v6492_v43  ;;  %v10108_v11 = vsel %vm4961_vm12, 1.0, %v15365_v51  ;;  %vm9485_vm12 = vcmask 1044484  }
 0x6b3   : > { %8295 = vmatmul.bf16.gmra.mxu3 %v6868_v38  ;;  %3331 = vperm.xlu0 %10655, %v15890_v53   ;;  %v2881_v16 = vpack.c.bf16 %v9948_v54, %v9948_v54  ;;  %v2882_v14 = vpack.c.bf16 %v9949_v41, %v9949_v41  ;;  %v5346_v59 = vpack.c.bf16 %v10109_v55, %v10109_v55  ;;  %v13751_v38 = vpop.f32.mrf.mxu0 }
 0x6b4   : > { %v9416_v61 = vunpack.c.l.b16 %v9268_v34  ;;  %v8833_v21 = vmax.f32 %v8695_v56, %v8696_v36  ;;  %v5345_v43 = vpack.c.bf16 %v10108_v11, %v10108_v11 }
 0x6b5   : > { %v13741_v12 = vpop.f32.mrf.mxu2  ;;  %v8256_v27 = vpop.f32.mrf.mxu3  ;;  %v6081_v29 = vunpack.c.l.b16 %v2881_v16  ;;  %v6082_v34 = vunpack.c.l.b16 %v2882_v14 }
 0x6b6   : > { %v9480_v5 = vsel %vm9479_vm11, %v9416_v61, %v9415_v22  ;;  %v8834_v1 = vrot.slane %v8833_v21, 4  ;;  %v8257_v62 = vadd.f32 %v8256_v27, %v13360_v39  ;;  %v6754_v39 = vunpack.c.l.b16 %v5346_v59 }
 0x6b7   : > { %3157 = vperm.xlu1 %10598, %v15805_v32   ;;  %v13748_v47 = vpop.f32.mrf.mxu1  ;;  %v6753_v56 = vunpack.c.l.b16 %v5345_v43  ;;  %v7515_v61 = vadd.f32 %v13443_v4, %v13670_v63  ;;  %v6149_v14 = vpack.c.b16 %v6082_v34, %v6081_v29  ;;  %v9951_v34 = vsel %vm2500_vm14, 1.0, %v15365_v51 }
 0x6b8   : > { %15891 = vst [vmem:[#allocation115_spill] sm:$0xff] %v13748_v47  ;;  %v8835_v0 = vmax.f32 %v8833_v21, %v8834_v1  ;;  %4449 = vperm.xlu2 %10604, %v15813_v3   ;;  %v8567_v21 = vmax.f32 %v8257_v62, 0.0  ;;  %v4330_v27 = vpop.permute.xlu2 %4329  ;;  %v15905_v47 = vld [vmem:[#allocation79_spill] sm:$0xff] }
 0x6b9   : > { %v6869_v63 = vpack.c.b16 %v6754_v39, %v6753_v56  ;;  %vm4963_vm0 = vcmp.eq.s32.totalorder %v4330_v27, %v11093_v8  ;;  %v10111_v56 = vsel %vm4964_vm15, 1.0, %v15365_v51  ;;  %v2884_v27 = vpack.c.bf16 %v9951_v34, %v9951_v34  ;;  %v4342_v34 = vpop.permute.xlu1 %4341 }
 0x6ba   : > { %v8836_v9 = vrot.slane %v8835_v0, 2  ;;  %v8697_v62 = vmul.f32 %v13628_v7, %v8567_v21  ;;  %vm4965_vm5 = vcmp.eq.s32.totalorder %v4342_v34, %v11093_v8  ;;  %v15899_v34 = vld [vmem:[#allocation53_spill] sm:$0xff] }
 0x6bb   : > { %10660 = vset.pattern.permute.xlu0 %v13003_v37  ;;  %v13776_v39 = vpop.f32.mrf.mxu0 }
 0x6bc   : > { %v8837_v28 = vmax.f32 %v8835_v0, %v8836_v9  ;;  %v15893_v0 = vld [vmem:[#allocation167_spill] sm:$0xff] }
 0x6bd   : > { %v13753_v36 = vpop.f32.mrf.mxu2  ;;  %v8258_v22 = vpop.f32.mrf.mxu3  ;;  %vm2499_vm13 = vcmp.eq.s32.totalorder %v15893_v0, %v11093_v8 }
 0x6be   : > { %v8838_v54 = vrot.slane %v8837_v28, 1  ;;  %v8259_v41 = vadd.f32 %v8258_v22, %v13382_v15  ;;  %v9950_v29 = vsel %vm2499_vm13, 1.0, %v15365_v51  ;;  %v10110_v22 = vsel %vm4963_vm0, 1.0, %v15365_v51 }
 0x6bf   : > { %10601 = vset.pattern.permute.xlu1 %v12989_v2  ;;  %v7843_v55 = vpop.f32.mrf.mxu1  ;;  %v5347_v0 = vpack.c.bf16 %v10110_v22, %v10110_v22 }
 0x6c0   : > { %v8839_v11 = vmax.f32 %v8837_v28, %v8838_v54  ;;  %v8568_v1 = vmax.f32 %v8259_v41, 0.0  ;;  %v13760_v16 = vadd.f32 %v7843_v55, %v7515_v61  ;;  %10607 = vset.pattern.permute.xlu2 %v12704_v19  ;;  %v15894_v54 = vld [vmem:[#allocation52_spill] sm:$0xff]  ;;  %v2883_v55 = vpack.c.bf16 %v9950_v29, %v9950_v29 }
 0x6c2   : > { %15892 = vst [vmem:[#allocation68_spill] sm:$0xff] %v13760_v16  ;;  %v9269_v15 = vpack.c.bf16 %v8839_v11, %v8839_v11  ;;  %v8698_v59 = vmul.f32 %v13633_v57, %v8568_v1  ;;  %7882 = vmatmul.bf16.gmra.mxu1 %v6149_v14  ;;  %v15896_v1 = vld [vmem:[#allocation11_spill] sm:$0xff]  ;;  %v5348_v14 = vpack.c.bf16 %v10111_v56, %v10111_v56 }
 0x6c3   : > { %8300 = vmatmul.bf16.gmra.mxu3 %v6869_v63  ;;  %4617 = vperm.xlu0 %10660, %v15894_v54   ;;  %v13794_v22 = vpop.f32.mrf.mxu0 }
 0x6c4   : > { %v9417_v43 = vunpack.c.l.b16 %v9269_v15  ;;  %v8840_v9 = vmax.f32 %v8697_v62, %v8698_v59  ;;  %v6083_v15 = vunpack.c.l.b16 %v2883_v55  ;;  %v6084_v62 = vunpack.c.l.b16 %v2884_v27 }
 0x6c5   : > { %v13774_v23 = vpop.f32.mrf.mxu2  ;;  %v8261_v28 = vpop.f32.mrf.mxu3  ;;  %v6756_v59 = vunpack.c.l.b16 %v5348_v14 }
 0x6c6   : > { %v9482_v6 = vsel %vm9481_vm1, %v9417_v43, %v9480_v5  ;;  %v8841_v61 = vrot.slane %v8840_v9, 4  ;;  %v8262_v21 = vadd.f32 %v8261_v28, %v13400_v26  ;;  %v6755_v43 = vunpack.c.l.b16 %v5347_v0 }
 0x6c7   : > { %4443 = vperm.xlu1 %10601, %v15805_v32   ;;  %v13784_v41 = vpop.f32.mrf.mxu1  ;;  %v7520_v32 = vadd.f32 %v13443_v4, %v13724_v40  ;;  %v6150_v14 = vpack.c.b16 %v6084_v62, %v6083_v15  ;;  %v15898_v40 = vld [vmem:[#allocation7_spill] sm:$0xff] }
 0x6c8   : > { %15895 = vst [vmem:[#allocation5_spill] sm:$0xff] %v13784_v41  ;;  %v8842_v11 = vmax.f32 %v8840_v9, %v8841_v61  ;;  %3187 = vperm.xlu2 %10607, %v15896_v1   ;;  %v8569_v29 = vmax.f32 %v8262_v21, 0.0  ;;  %v4348_v61 = vpop.permute.xlu2 %4347  ;;  %vm2501_vm2 = vcmp.eq.s32.totalorder %v15898_v40, %v11093_v8 }
 0x6c9   : > { %vm4966_vm4 = vcmp.eq.s32.totalorder %v4348_v61, %v11093_v8  ;;  %v2886_v61 = vpack.c.bf16 %v9953_v35, %v9953_v35 }
 0x6ca   : > { %v8843_v63 = vrot.slane %v8842_v11, 2  ;;  %v8699_v0 = vmul.f32 %v13628_v7, %v8569_v29 }
 0x6cb   : > { %10665 = vset.pattern.permute.xlu0 %v12989_v2 }
 0x6cc   : > { %v8844_v5 = vmax.f32 %v8842_v11, %v8843_v63 }
 0x6cd   : > { %v13787_v16 = vpop.f32.mrf.mxu2  ;;  %v8263_v26 = vpop.f32.mrf.mxu3 }
 0x6ce   : > { %v8845_v28 = vrot.slane %v8844_v5, 1  ;;  %v8264_v9 = vadd.f32 %v8263_v26, %v13423_v49  ;;  %v6870_v49 = vpack.c.b16 %v6756_v59, %v6755_v43  ;;  %v9952_v59 = vsel %vm2501_vm2, 1.0, %v15365_v51 }
 0x6cf   : > { %10603 = vset.pattern.permute.xlu1 %v12704_v19  ;;  %v7848_v56 = vpop.f32.mrf.mxu1  ;;  %vm9487_vm2 = vcmask 1045509  }
 0x6d0   : > { %v8846_v55 = vmax.f32 %v8844_v5, %v8845_v28  ;;  %v8570_v27 = vmax.f32 %v8264_v9, 0.0  ;;  %v13796_v11 = vadd.f32 %v7848_v56, %v7520_v32  ;;  %10609 = vset.pattern.permute.xlu2 %v12989_v2  ;;  %v7522_v5 = vadd.f32 %v13443_v4, %v13751_v38 }
 0x6d1   : > { %v10113_v32 = vsel %vm4966_vm4, 1.0, %v15365_v51  ;;  %v10112_v28 = vsel %vm4965_vm5, 1.0, %v15365_v51  ;;  %v2885_v38 = vpack.c.bf16 %v9952_v59, %v9952_v59 }
 0x6d2   : > { %15897 = vst [vmem:[#allocation141_spill] sm:$0xff] %v13796_v11  ;;  %v9270_v21 = vpack.c.bf16 %v8846_v55, %v8846_v55  ;;  %v8700_v63 = vmul.f32 %v13633_v57, %v8570_v27  ;;  %7887 = vmatmul.bf16.gmra.mxu1 %v6150_v14  ;;  %v5350_v14 = vpack.c.bf16 %v10113_v32, %v10113_v32 }
 0x6d3   : > { %8305 = vmatmul.bf16.gmra.mxu3 %v6870_v49  ;;  %4635 = vperm.xlu0 %10665, %v15899_v34   ;;  %v5349_v40 = vpack.c.bf16 %v10112_v28, %v10112_v28  ;;  %v4354_v49 = vpop.permute.xlu1 %4353 }
 0x6d4   : > { %v9418_v15 = vunpack.c.l.b16 %v9270_v21  ;;  %v8847_v62 = vmax.f32 %v8699_v0, %v8700_v63  ;;  %v13822_v21 = vpop.f32.mrf.mxu0  ;;  %v13824_v0 = vpop.permute.xlu0 %4371  ;;  %v6085_v63 = vunpack.c.l.b16 %v2885_v38  ;;  %v6758_v11 = vunpack.c.l.b16 %v5350_v14 }
 0x6d5   : > { %v13811_v43 = vpop.f32.mrf.mxu2  ;;  %v8266_v26 = vpop.f32.mrf.mxu3  ;;  %vm4967_vm10 = vcmp.eq.s32.totalorder %v4354_v49, %v11093_v8  ;;  %vm4970_vm15 = vcmp.eq.s32.totalorder %v13824_v0, %v11093_v8 }
 0x6d6   : > { %v8848_v29 = vrot.slane %v8847_v62, 4  ;;  %v8267_v9 = vadd.f32 %v8266_v26, %v13448_v44  ;;  %v9484_v4 = vsel %vm9483_vm6, %v9418_v15, %v9482_v6  ;;  %v6757_v6 = vunpack.c.l.b16 %v5349_v40  ;;  %v15902_v40 = vld [vmem:[#allocation22_spill] sm:$0xff] }
 0x6d7   : > { %3175 = vperm.xlu1 %10603, %v15813_v3   ;;  %v7850_v56 = vpop.f32.mrf.mxu1  ;;  %v6086_v3 = vunpack.c.l.b16 %v2886_v61  ;;  %vm2504_vm7 = vcmp.eq.s32.totalorder %v15902_v40, %v11093_v8 }
 0x6d8   : > { %v8849_v55 = vmax.f32 %v8847_v62, %v8848_v29  ;;  %v13819_v27 = vadd.f32 %v7850_v56, %v7522_v5  ;;  %4467 = vperm.xlu2 %10609, %v15896_v1   ;;  %v13831_v5 = vld [vmem:[%s15144_s2] ss:$0 sm:$0xff]  ;;  %v8571_v32 = vmax.f32 %v8267_v9, 0.0  ;;  %v4360_v56 = vpop.permute.xlu2 %4359  ;;  %v6871_v9 = vpack.c.b16 %v6758_v11, %v6757_v6 }
 0x6d9   : > { %v7525_v59 = vadd.f32 %v13831_v5, %v13776_v39  ;;  %v6151_v14 = vpack.c.b16 %v6086_v3, %v6085_v63  ;;  %vm4968_vm9 = vcmp.eq.s32.totalorder %v4360_v56, %v11093_v8  ;;  %v7527_v17 = vadd.f32 %v13831_v5, %v13794_v22 }
 0x6da   : > { %15900 = vst [vmem:[#allocation70_spill] sm:$0xff] %v13819_v27  ;;  %v8850_v44 = vrot.slane %v8849_v55, 2  ;;  %v9955_v6 = vsel %vm2504_vm7, 1.0, %v15365_v51  ;;  %v10115_v49 = vsel %vm4968_vm9, 1.0, %v15365_v51 }
 0x6db   : > { %10670 = vset.pattern.permute.xlu0 %v12673_v31  ;;  %v3134_v39 = vpop.permute.xlu1 %3133 }
 0x6dc   : > { %v8851_v26 = vmax.f32 %v8849_v55, %v8850_v44  ;;  %v8701_v44 = vmul.f32 %v13628_v7, %v8571_v32  ;;  %v13851_v63 = vpop.f32.mrf.mxu0  ;;  %vm3697_vm13 = vcmp.eq.s32.totalorder %v3134_v39, %v11093_v8 }
 0x6dd   : > { %v13826_v15 = vpop.f32.mrf.mxu2  ;;  %v8268_v62 = vpop.f32.mrf.mxu3 }
 0x6de   : > { %v8852_v35 = vrot.slane %v8851_v26, 1  ;;  %v8269_v28 = vadd.f32 %v8268_v62, %v13468_v13 }
 0x6df   : > { %10606 = vset.pattern.permute.xlu1 %v12673_v31  ;;  %v7853_v29 = vpop.f32.mrf.mxu1 }
 0x6e0   : > { %v8853_v38 = vmax.f32 %v8851_v26, %v8852_v35  ;;  %v8572_v61 = vmax.f32 %v8269_v28, 0.0  ;;  %v13838_v55 = vadd.f32 %v7853_v29, %v7525_v59  ;;  %10612 = vset.pattern.permute.xlu2 %v13003_v37  ;;  %v13847_v26 = vpop.permute.xlu0 %4395  ;;  %v9954_v59 = vsel %vm2503_vm8, 1.0, %v15365_v51 }
 0x6e1   : > { %v10114_v28 = vsel %vm4967_vm10, 1.0, %v15365_v51  ;;  %v2887_v40 = vpack.c.bf16 %v9954_v59, %v9954_v59  ;;  %vm9489_vm8 = vcmask 1046534   ;;  %vm4974_vm9 = vcmp.eq.s32.totalorder %v13847_v26, %v11093_v8 }
 0x6e2   : > { %15901 = vst [vmem:[#allocation43_spill] sm:$0xff] %v13838_v55  ;;  %v9271_v13 = vpack.c.bf16 %v8853_v38, %v8853_v38  ;;  %v8702_v62 = vmul.f32 %v13633_v57, %v8572_v61  ;;  %7892 = vmatmul.bf16.gmra.mxu1 %v6151_v14  ;;  %v15903_v38 = vld [vmem:[#allocation56_spill] sm:$0xff]  ;;  %v2888_v14 = vpack.c.bf16 %v9955_v6, %v9955_v6 }
 0x6e3   : > { %8310 = vmatmul.bf16.gmra.mxu3 %v6871_v9  ;;  %3373 = vperm.xlu0 %10670, %v15903_v38   ;;  %v4366_v9 = vpop.permute.xlu2 %4365  ;;  %v5351_v55 = vpack.c.bf16 %v10114_v28, %v10114_v28  ;;  %v13873_v27 = vpop.permute.xlu1 %4377  ;;  %v6087_v41 = vunpack.c.l.b16 %v2887_v40 }
 0x6e4   : > { %v9419_v3 = vunpack.c.l.b16 %v9271_v13  ;;  %v8854_v11 = vmax.f32 %v8701_v44, %v8702_v62  ;;  %v5352_v62 = vpack.c.bf16 %v10115_v49, %v10115_v49  ;;  %v9996_v49 = vsel %vm3697_vm13, 1.0, %v15365_v51 }
 0x6e5   : > { %v13860_v35 = vpop.f32.mrf.mxu2  ;;  %v8271_v32 = vpop.f32.mrf.mxu3  ;;  %v6759_v59 = vunpack.c.l.b16 %v5351_v55  ;;  %vm4969_vm14 = vcmp.eq.s32.totalorder %v4366_v9, %v11093_v8  ;;  %vm4971_vm7 = vcmp.eq.s32.totalorder %v13873_v27, %v11093_v8  ;;  %vm9491_vm13 = vcmask 1047559  }
 0x6e6   : > { %v8855_v29 = vrot.slane %v8854_v11, 4  ;;  %v8272_v56 = vadd.f32 %v8271_v32, %v13483_v25  ;;  %v13868_v61 = vsel %vm9485_vm12, %v9419_v3, %v9484_v4  ;;  %v6088_v32 = vunpack.c.l.b16 %v2888_v14  ;;  %v15906_v14 = vld [vmem:[#allocation131_spill] sm:$0xff] }
 0x6e7   : > { %3181 = vperm.xlu1 %10606, %v15896_v1   ;;  %v7855_v22 = vpop.f32.mrf.mxu1  ;;  %v7945_v4 = vadd.f32 %v13501_v18, %v15905_v47  ;;  %v10118_v27 = vsel %vm4971_vm7, 1.0, %v15365_v51 }
 0x6e8   : > { %v8856_v13 = vmax.f32 %v8854_v11, %v8855_v29  ;;  %v13870_v44 = vadd.f32 %v7855_v22, %v7527_v17  ;;  %4473 = vperm.xlu2 %10612, %v15822_v52   ;;  %v13878_v6 = vpop.permute.xlu0 %4407  ;;  %v7530_v11 = vadd.f32 %v13831_v5, %v13822_v21  ;;  %v6760_v17 = vunpack.c.l.b16 %v5352_v62  ;;  %v7534_v22 = vpop.f32.mrf.mxu0 }
 0x6e9   : > { %v6152_v55 = vpack.c.b16 %v6088_v32, %v6087_v41  ;;  %v4081_v62 = vpack.c.bf16 %v9996_v49, %v9996_v49 }
 0x6ea   : > { %15904 = vst [vmem:[#allocation118_spill] sm:$0xff] %v13870_v44  ;;  %v8857_v25 = vrot.slane %v8856_v13, 2  ;;  %v8573_v44 = vmax.f32 %v8272_v56, 0.0 }
 0x6eb   : > { %10675 = vset.pattern.permute.xlu0 %v12704_v19 }
 0x6ec   : > { %v8858_v3 = vmax.f32 %v8856_v13, %v8857_v25  ;;  %v6872_v25 = vpack.c.b16 %v6760_v17, %v6759_v59  ;;  %v7532_v17 = vadd.f32 %v13831_v5, %v13851_v63  ;;  %v10116_v59 = vsel %vm4969_vm14, 1.0, %v15365_v51 }
 0x6ed   : > { %v7992_v28 = vpop.f32.mrf.mxu2  ;;  %v8273_v29 = vpop.f32.mrf.mxu3 }
 0x6ee   : > { %v8859_v39 = vrot.slane %v8858_v3, 1  ;;  %v13884_v40 = vadd.f32 %v7992_v28, %v15906_v14  ;;  %v8274_v24 = vadd.f32 %v8273_v29, %v7945_v4  ;;  %v13894_v28 = vpop.permute.xlu2 %4383  ;;  %v8703_v29 = vmul.f32 %v13628_v7, %v8573_v44 }
 0x6ef   : > { %10608 = vset.pattern.permute.xlu1 %v13003_v37  ;;  %v7858_v18 = vpop.f32.mrf.mxu1  ;;  %v10117_v44 = vsel %vm4970_vm15, 1.0, %v15365_v51  ;;  %v6385_v14 = vunpack.c.l.b16 %v4081_v62  ;;  %v5353_v62 = vpack.c.bf16 %v10116_v59, %v10116_v59  ;;  %vm4972_vm4 = vcmp.eq.s32.totalorder %v13894_v28, %v11093_v8 }
 0x6f0   : > { %v8860_v47 = vmax.f32 %v8858_v3, %v8859_v39  ;;  %v8574_v21 = vmax.f32 %v8274_v24, 0.0  ;;  %v13888_v13 = vadd.f32 %v7858_v18, %v7530_v11  ;;  %10614 = vset.pattern.permute.xlu2 %v12673_v31  ;;  %vm4976_vm15 = vcmp.eq.s32.totalorder %v13878_v6, %v11093_v8 }
 0x6f1   : > { %v3140_v56 = vpop.permute.xlu1 %3139 }
 0x6f2   : > { %15907 = vst [vmem:[#allocation71_spill] sm:$0xff] %v13888_v13  ;;  %v9272_v4 = vpack.c.bf16 %v8860_v47, %v8860_v47  ;;  %v8704_v24 = vmul.f32 %v13633_v57, %v8574_v21  ;;  %vm3698_vm0 = vcmp.eq.s32.totalorder %v3140_v56, %v11093_v8  ;;  %7897 = vmatmul.bf16.gmra.mxu1 %v6152_v55  ;;  %v3152_v55 = vpop.permute.xlu0 %3151  ;;  %v15908_v56 = vld [vmem:[#allocation58_spill] sm:$0xff] }
 0x6f3   : > { %v9997_v41 = vsel %vm3698_vm0, 1.0, %v15365_v51  ;;  %8315 = vmatmul.bf16.gmra.mxu3 %v6872_v25  ;;  %3391 = vperm.xlu0 %10675, %v15908_v56   ;;  %v7536_v25 = vpop.f32.mrf.mxu0  ;;  %vm3700_vm3 = vcmp.eq.s32.totalorder %v3152_v55, %v11093_v8 }
 0x6f4   : > { %v9420_v32 = vunpack.c.l.b16 %v9272_v4  ;;  %v8861_v3 = vmax.f32 %v8703_v29, %v8704_v24  ;;  %v4082_v11 = vpack.c.bf16 %v9997_v41, %v9997_v41  ;;  %v5354_v24 = vpack.c.bf16 %v10117_v44, %v10117_v44 }
 0x6f5   : > { %v13909_v49 = vpop.f32.mrf.mxu2  ;;  %v8276_v39 = vpop.f32.mrf.mxu3 }
 0x6f6   : > { %v8862_v18 = vrot.slane %v8861_v3, 4  ;;  %v6386_v47 = vunpack.c.l.b16 %v4082_v11  ;;  %v8277_v21 = vadd.f32 %v8276_v39, %v13517_v30  ;;  %v9488_v9 = vsel %vm9487_vm2, %v9420_v32, %v13868_v61  ;;  %v13920_v41 = vpop.permute.xlu2 %4389 }
 0x6f7   : > { %4461 = vperm.xlu1 %10608, %v15896_v1   ;;  %v7860_v63 = vpop.f32.mrf.mxu1  ;;  %v15910_v1 = vld [vmem:[#allocation116_spill] sm:$0xff]  ;;  %v9999_v61 = vsel %vm3700_vm3, 1.0, %v15365_v51  ;;  %v7535_v32 = vadd.f32 %v13831_v5, %v7534_v22  ;;  %vm4973_vm10 = vcmp.eq.s32.totalorder %v13920_v41, %v11093_v8  ;;  %v15917_v41 = vld [vmem:[#allocation63_spill] sm:$0xff] }
 0x6f8   : > { %v8863_v0 = vmax.f32 %v8861_v3, %v8862_v18  ;;  %v13916_v4 = vadd.f32 %v7860_v63, %v7532_v17  ;;  %v6493_v29 = vpack.c.b16 %v6386_v47, %v6385_v14  ;;  %3205 = vperm.xlu2 %10614, %v15830_v50   ;;  %v7950_v11 = vadd.f32 %v13538_v20, %v15910_v1  ;;  %v15911_v47 = vld [vmem:[#allocation130_spill] sm:$0xff] }
 0x6f9   : > { %v6761_v3 = vunpack.c.l.b16 %v5353_v62  ;;  %v6762_v17 = vunpack.c.l.b16 %v5354_v24  ;;  %v8575_v44 = vmax.f32 %v8277_v21, 0.0 }
 0x6fa   : > { %15909 = vst [vmem:[#allocation160_spill] sm:$0xff] %v13916_v4  ;;  %v8864_v30 = vrot.slane %v8863_v0, 2  ;;  %8011 = vmatmul.bf16.gmra.mxu2 %v6493_v29 }
 0x6fb   : > { %10680 = vset.pattern.permute.xlu0 %v13003_v37  ;;  %v6873_v21 = vpack.c.b16 %v6762_v17, %v6761_v3  ;;  %v7539_v62 = vpop.f32.mrf.mxu0  ;;  %v7537_v17 = vadd.f32 %v13831_v5, %v7536_v25 }
 0x6fc   : > { %v8865_v39 = vmax.f32 %v8863_v0, %v8864_v30  ;;  %v4084_v0 = vpack.c.bf16 %v9999_v61, %v9999_v61 }
 0x6fd   : > { %v7997_v14 = vpop.f32.mrf.mxu2  ;;  %v8278_v18 = vpop.f32.mrf.mxu3 }
 0x6fe   : > { %v8866_v59 = vrot.slane %v8865_v39, 1  ;;  %v13927_v55 = vadd.f32 %v7997_v14, %v15911_v47  ;;  %v8279_v63 = vadd.f32 %v8278_v18, %v7950_v11  ;;  %v8705_v11 = vmul.f32 %v13628_v7, %v8575_v44  ;;  %v13942_v18 = vpop.permute.xlu2 %4401 }
 0x6ff   : > { %10611 = vset.pattern.permute.xlu1 %v12704_v19  ;;  %v7863_v20 = vpop.f32.mrf.mxu1  ;;  %v6388_v61 = vunpack.c.l.b16 %v4084_v0  ;;  %v10119_v44 = vsel %vm4972_vm4, 1.0, %v15365_v51  ;;  %vm4975_vm0 = vcmp.eq.s32.totalorder %v13942_v18, %v11093_v8  ;;  %v15924_v18 = vld [vmem:[#allocation60_spill] sm:$0xff] }
 0x700   : > { %v8867_v29 = vmax.f32 %v8865_v39, %v8866_v59  ;;  %v8576_v30 = vmax.f32 %v8279_v63, 0.0  ;;  %v13931_v1 = vadd.f32 %v7863_v20, %v7535_v32  ;;  %10617 = vset.pattern.permute.xlu2 %v12989_v2  ;;  %v5356_v28 = vpack.c.bf16 %v10119_v44, %v10119_v44 }
 0x701   : > { %v3146_v22 = vpop.permute.xlu1 %3145 }
 0x702   : > { %15912 = vst [vmem:[#allocation27_spill] sm:$0xff] %v13931_v1  ;;  %v9273_v24 = vpack.c.bf16 %v8867_v29, %v8867_v29  ;;  %v8706_v14 = vmul.f32 %v13633_v57, %v8576_v30  ;;  %vm3699_vm5 = vcmp.eq.s32.totalorder %v3146_v22, %v11093_v8  ;;  %v15913_v29 = vld [vmem:[#allocation61_spill] sm:$0xff]  ;;  %v6764_v4 = vunpack.c.l.b16 %v5356_v28 }
 0x703   : > { %v9998_v39 = vsel %vm3699_vm5, 1.0, %v15365_v51  ;;  %8320 = vmatmul.bf16.gmra.mxu3 %v6873_v21  ;;  %4677 = vperm.xlu0 %10680, %v15913_v29  }
 0x704   : > { %v9421_v32 = vunpack.c.l.b16 %v9273_v24  ;;  %v8868_v59 = vmax.f32 %v8705_v11, %v8706_v14  ;;  %v4083_v3 = vpack.c.bf16 %v9998_v39, %v9998_v39  ;;  %v5355_v11 = vpack.c.bf16 %v10118_v27, %v10118_v27  ;;  %v7541_v39 = vpop.f32.mrf.mxu0 }
 0x705   : > { %v8281_v47 = vpop.f32.mrf.mxu3  ;;  %v7542_v28 = vadd.f32 %v13831_v5, %v7541_v39 }
 0x706   : > { %v8869_v63 = vrot.slane %v8868_v59, 4  ;;  %v6387_v20 = vunpack.c.l.b16 %v4083_v3  ;;  %v8282_v0 = vadd.f32 %v8281_v47, %v13556_v45  ;;  %v9490_v22 = vsel %vm9489_vm8, %v9421_v32, %v9488_v9  ;;  %v15915_v3 = vld [vmem:[#allocation92_spill] sm:$0xff]  ;;  %v13959_v1 = vpop.permute.xlu2 %4419 }
 0x707   : > { %3199 = vperm.xlu1 %10611, %v15822_v52   ;;  %v7865_v30 = vpop.f32.mrf.mxu1  ;;  %v7955_v45 = vadd.f32 %v13573_v48, %v15915_v3  ;;  %v6763_v13 = vunpack.c.l.b16 %v5355_v11  ;;  %v7540_v32 = vadd.f32 %v13831_v5, %v7539_v62  ;;  %vm4978_vm4 = vcmp.eq.s32.totalorder %v13959_v1, %v11093_v8 }
 0x708   : > { %v8870_v25 = vmax.f32 %v8868_v59, %v8869_v63  ;;  %v13954_v21 = vadd.f32 %v7865_v30, %v7537_v17  ;;  %v6494_v24 = vpack.c.b16 %v6388_v61, %v6387_v20  ;;  %4491 = vperm.xlu2 %10617, %v15830_v50   ;;  %v8577_v61 = vmax.f32 %v8282_v0, 0.0 }
 0x709   : > { %v6874_v48 = vpack.c.b16 %v6764_v4, %v6763_v13  ;;  %v10121_v13 = vsel %vm4974_vm9, 1.0, %v15365_v51 }
 0x70a   : > { %15914 = vst [vmem:[#allocation120_spill] sm:$0xff] %v13954_v21  ;;  %v8871_v14 = vrot.slane %v8870_v25, 2  ;;  %8016 = vmatmul.bf16.gmra.mxu2 %v6494_v24  ;;  %v15927_v21 = vld [vmem:[#allocation102_spill] sm:$0xff] }
 0x70b   : > { %10685 = vset.pattern.permute.xlu0 %v12989_v2 }
 0x70c   : > { %v8872_v47 = vmax.f32 %v8870_v25, %v8871_v14  ;;  %v8707_v25 = vmul.f32 %v13628_v7, %v8577_v61  ;;  %v7544_v14 = vpop.f32.mrf.mxu0  ;;  %v10120_v7 = vsel %vm4973_vm10, 1.0, %v15365_v51  ;;  %v15920_v61 = vld [vmem:[#allocation156_spill] sm:$0xff] }
 0x70d   : > { %v8283_v9 = vpop.f32.mrf.mxu3 }
 0x70e   : > { %v8873_v59 = vrot.slane %v8872_v47, 1  ;;  %v8284_v17 = vadd.f32 %v8283_v9, %v7955_v45  ;;  %v13976_v4 = vpop.permute.xlu2 %4431  ;;  %v15919_v9 = vld [vmem:[#allocation44_spill] sm:$0xff] }
 0x70f   : > { %10613 = vset.pattern.permute.xlu1 %v12989_v2  ;;  %v7868_v44 = vpop.f32.mrf.mxu1  ;;  %vm4980_vm10 = vcmp.eq.s32.totalorder %v13976_v4, %v11093_v8  ;;  %v15934_v4 = vld [vmem:[#allocation110_spill] sm:$0xff] }
 0x710   : > { %v8874_v27 = vmax.f32 %v8872_v47, %v8873_v59  ;;  %v8578_v63 = vmax.f32 %v8284_v17, 0.0  ;;  %v13964_v20 = vadd.f32 %v7868_v44, %v7540_v32  ;;  %10619 = vset.pattern.permute.xlu2 %v12704_v19  ;;  %v5358_v32 = vpack.c.bf16 %v10121_v13, %v10121_v13 }
 0x711   : > { %v13983_v3 = vpop.permute.xlu1 %4413  ;;  %v5357_v59 = vpack.c.bf16 %v10120_v7, %v10120_v7 }
 0x712   : > { %15916 = vst [vmem:[#allocation74_spill] sm:$0xff] %v13964_v20  ;;  %v9274_v30 = vpack.c.bf16 %v8874_v27, %v8874_v27  ;;  %v8708_v62 = vmul.f32 %v13633_v57, %v8578_v63  ;;  %v13991_v27 = vpop.f32.mrf.mxu2  ;;  %vm4977_vm5 = vcmp.eq.s32.totalorder %v13983_v3, %v11093_v8  ;;  %v15930_v3 = vld [vmem:[#allocation69_spill] sm:$0xff] }
 0x713   : > { %8325 = vmatmul.bf16.gmra.mxu3 %v6874_v48  ;;  %4695 = vperm.xlu0 %10685, %v15917_v41   ;;  %v6765_v44 = vunpack.c.l.b16 %v5357_v59  ;;  %v7545_v48 = vadd.f32 %v13831_v5, %v7544_v14  ;;  %v14004_v14 = vld [vmem:[%s15145_s3] sm:$0xff] }
 0x714   : > { %v8875_v0 = vmax.f32 %v8707_v25, %v8708_v62  ;;  %v9422_v24 = vunpack.c.l.b16 %v9274_v30 }
 0x715   : > { %v8286_v11 = vpop.f32.mrf.mxu3 }
 0x716   : > { %v8287_v57 = vadd.f32 %v8286_v11, %v13587_v60  ;;  %v13980_v26 = vsel %vm9491_vm13, %v9422_v24, %v9490_v22  ;;  %v8876_v45 = vrot.slane %v8875_v0, 4  ;;  %v7960_v60 = vadd.f32 %v13606_v33, %v15920_v61  ;;  %v3164_v62 = vpop.permute.xlu2 %3163  ;;  %v7546_v33 = vpop.f32.mrf.mxu0 }
 0x717   : > { %4479 = vperm.xlu1 %10613, %v15822_v52   ;;  %v7870_v39 = vpop.f32.mrf.mxu1  ;;  %v6766_v22 = vunpack.c.l.b16 %v5358_v32  ;;  %vm3702_vm14 = vcmp.eq.s32.totalorder %v3164_v62, %v11093_v8  ;;  %v7547_v59 = vadd.f32 %v13831_v5, %v7546_v33 }
 0x718   : > { %v13986_v47 = vadd.f32 %v7870_v39, %v7542_v28  ;;  %3223 = vperm.xlu2 %10619, %v15919_v9   ;;  %v8877_v17 = vmax.f32 %v8875_v0, %v8876_v45  ;;  %v8579_v52 = vmax.f32 %v8287_v57, 0.0  ;;  %v14010_v57 = vld [vmem:[%s15145_s3 + $0x8] sm:$0xff] }
 0x719   : > { %v13999_v0 = vpop.permute.xlu1 %4425  ;;  %v6875_v13 = vpack.c.b16 %v6766_v22, %v6765_v44  ;;  %v10123_v22 = vsel %vm4976_vm15, 1.0, %v15365_v51  ;;  %v10122_v44 = vsel %vm4975_vm0, 1.0, %v15365_v51 }
 0x71a   : > { %15918 = vst [vmem:[#allocation126_spill] sm:$0xff] %v13986_v47  ;;  %v8878_v24 = vrot.slane %v8877_v17, 2  ;;  %v8709_v7 = vmul.f32 %v14004_v14, %v8579_v52  ;;  %vm4979_vm7 = vcmp.eq.s32.totalorder %v13999_v0, %v11093_v8 }
 0x71b   : > { %10690 = vset.pattern.permute.xlu0 %v12673_v31 }
 0x71c   : > { %v8879_v45 = vmax.f32 %v8877_v17, %v8878_v24 }
 0x71d   : > { %v8288_v63 = vpop.f32.mrf.mxu3 }
 0x71e   : > { %v8289_v30 = vadd.f32 %v8288_v63, %v7960_v60  ;;  %v10001_v60 = vsel %vm3702_vm14, 1.0, %v15365_v51  ;;  %v8880_v62 = vrot.slane %v8879_v45, 1 }
 0x71f   : > { %10616 = vset.pattern.permute.xlu1 %v13003_v37  ;;  %v7873_v25 = vpop.f32.mrf.mxu1  ;;  %v4086_v33 = vpack.c.bf16 %v10001_v60, %v10001_v60 }
 0x720   : > { %v8580_v28 = vmax.f32 %v8289_v30, 0.0  ;;  %v13996_v11 = vadd.f32 %v7873_v25, %v7545_v48  ;;  %10622 = vset.pattern.permute.xlu2 %v12673_v31  ;;  %v15922_v48 = vld [vmem:[#allocation133_spill] sm:$0xff]  ;;  %v15923_v30 = vld [vmem:[#allocation67_spill] sm:$0xff] }
 0x722   : > { %15921 = vst [vmem:[#allocation77_spill] sm:$0xff] %v13996_v11  ;;  %v8710_v39 = vmul.f32 %v14010_v57, %v8580_v28 }
 0x723   : > { %8330 = vmatmul.bf16.gmra.mxu3 %v6875_v13  ;;  %3433 = vperm.xlu0 %10690, %v15923_v30   ;;  %v15926_v13 = vld [vmem:[#allocation45_spill] sm:$0xff] }
 0x724   : > { %v8882_v32 = vmax.f32 %v8709_v7, %v8710_v39  ;;  %v5360_v7 = vpack.c.bf16 %v10123_v22, %v10123_v22  ;;  %v5359_v39 = vpack.c.bf16 %v10122_v44, %v10122_v44 }
 0x725   : > { %v8002_v61 = vpop.f32.mrf.mxu2 }
 0x726   : > { %v8883_v63 = vrot.slane %v8882_v32, 4  ;;  %v14023_v52 = vadd.f32 %v8002_v61, %v15922_v48  ;;  %v8291_v6 = vpop.f32.mrf.mxu3  ;;  %v7549_v48 = vpop.f32.mrf.mxu0  ;;  %v6767_v60 = vunpack.c.l.b16 %v5359_v39 }
 0x727   : > { %v8292_v25 = vadd.f32 %v8291_v6, %v15924_v18  ;;  %4485 = vperm.xlu1 %10616, %v15830_v50   ;;  %v7875_v17 = vpop.f32.mrf.mxu1  ;;  %v8881_v6 = vmax.f32 %v8879_v45, %v8880_v62  ;;  %v6390_v50 = vunpack.c.l.b16 %v4086_v33  ;;  %v7550_v22 = vadd.f32 %v13831_v5, %v7549_v48 }
 0x728   : > { %v8884_v24 = vmax.f32 %v8882_v32, %v8883_v63  ;;  %v14028_v28 = vadd.f32 %v7875_v17, %v7547_v59  ;;  %3229 = vperm.xlu2 %10622, %v15926_v13   ;;  %v15928_v32 = vld [vmem:[#allocation62_spill] sm:$0xff]  ;;  %v6768_v63 = vunpack.c.l.b16 %v5360_v7  ;;  %v10124_v48 = vsel %vm4977_vm5, 1.0, %v15365_v51 }
 0x729   : > { %v3158_v11 = vpop.permute.xlu1 %3157  ;;  %v7965_v59 = vadd.f32 %v15928_v32, %v15927_v21 }
 0x72a   : > { %15925 = vst [vmem:[#allocation162_spill] sm:$0xff] %v14028_v28  ;;  %v8885_v61 = vrot.slane %v8884_v24, 2  ;;  %vm3701_vm3 = vcmp.eq.s32.totalorder %v3158_v11, %v11093_v8  ;;  %v8581_v11 = vmax.f32 %v8292_v25, 0.0  ;;  %v6876_v7 = vpack.c.b16 %v6768_v63, %v6767_v60 }
 0x72b   : > { %v10000_v47 = vsel %vm3701_vm3, 1.0, %v15365_v51  ;;  %10695 = vset.pattern.permute.xlu0 %v12704_v19  ;;  %v5361_v60 = vpack.c.bf16 %v10124_v48, %v10124_v48 }
 0x72c   : > { %v8886_v18 = vmax.f32 %v8884_v24, %v8885_v61  ;;  %v4085_v20 = vpack.c.bf16 %v10000_v47, %v10000_v47  ;;  %v9275_v47 = vpack.c.bf16 %v8881_v6, %v8881_v6 }
 0x72d   : > { %v14035_v17 = vpop.f32.mrf.mxu2 }
 0x72e   : > { %v8887_v44 = vrot.slane %v8886_v18, 1  ;;  %v6389_v28 = vunpack.c.l.b16 %v4085_v20  ;;  %v8293_v30 = vpop.f32.mrf.mxu3  ;;  %v8711_v20 = vmul.f32 %v14004_v14, %v8581_v11  ;;  %v9423_v25 = vunpack.c.l.b16 %v9275_v47  ;;  %v15931_v11 = vld [vmem:[#allocation135_spill] sm:$0xff] }
 0x72f   : > { %v8294_v41 = vadd.f32 %v8293_v30, %v7965_v59  ;;  %10618 = vset.pattern.permute.xlu1 %v12673_v31  ;;  %v7878_v45 = vpop.f32.mrf.mxu1 }
 0x730   : > { %v8888_v62 = vmax.f32 %v8886_v18, %v8887_v44  ;;  %v14040_v24 = vadd.f32 %v7878_v45, %v7550_v22  ;;  %v6495_v21 = vpack.c.b16 %v6390_v50, %v6389_v28  ;;  %10624 = vset.pattern.permute.xlu2 %v13003_v37  ;;  %v15929_v18 = vld [vmem:[#allocation139_spill] sm:$0xff]  ;;  %v7970_v45 = vadd.f32 %v13693_v46, %v15931_v11  ;;  %v15933_v11 = vld [vmem:[#allocation13_spill] sm:$0xff] }
 0x731   : > { %v8582_v33 = vmax.f32 %v8294_v41, 0.0  ;;  %v10125_v41 = vsel %vm4978_vm4, 1.0, %v15365_v51 }
 0x732   : > { %v9276_v5 = vpack.c.bf16 %v8888_v62, %v8888_v62  ;;  %8021 = vmatmul.bf16.gmra.mxu2 %v6495_v21  ;;  %v5362_v63 = vpack.c.bf16 %v10125_v41, %v10125_v41  ;;  %v6769_v62 = vunpack.c.l.b16 %v5361_v60 }
 0x733   : > { %v8712_v30 = vmul.f32 %v14010_v57, %v8582_v33  ;;  %8335 = vmatmul.bf16.gmra.mxu3 %v6876_v7  ;;  %3451 = vperm.xlu0 %10695, %v15930_v3  }
 0x734   : > { %v9424_v39 = vunpack.c.l.b16 %v9276_v5  ;;  %v6770_v47 = vunpack.c.l.b16 %v5362_v63 }
 0x735   : > { %v8889_v28 = vmax.f32 %v8711_v20, %v8712_v30  ;;  %v8007_v61 = vpop.f32.mrf.mxu2 }
 0x736   : > { %v9493_v6 = vsel %vm9479_vm11, %v9424_v39, %v9423_v25  ;;  %v14053_v1 = vadd.f32 %v8007_v61, %v15929_v18  ;;  %v8296_v50 = vpop.f32.mrf.mxu3 }
 0x737   : > { %v8890_v32 = vrot.slane %v8889_v28, 4  ;;  %v8297_v59 = vadd.f32 %v8296_v50, %v13673_v10  ;;  %3217 = vperm.xlu1 %10618, %v15919_v9   ;;  %v3170_v10 = vpop.permute.xlu2 %3169  ;;  %v10126_v50 = vsel %vm4979_vm7, 1.0, %v15365_v51 }
 0x738   : > { %4509 = vperm.xlu2 %10624, %v15926_v13   ;;  %vm3703_vm9 = vcmp.eq.s32.totalorder %v3170_v10, %v11093_v8 }
 0x739   : > { %v8891_v22 = vmax.f32 %v8889_v28, %v8890_v32  ;;  %v8583_v5 = vmax.f32 %v8297_v59, 0.0  ;;  %v14064_v25 = vpop.permute.xlu1 %4443  ;;  %v6877_v28 = vpack.c.b16 %v6770_v47, %v6769_v62  ;;  %v15932_v59 = vld [vmem:[#allocation73_spill] sm:$0xff]  ;;  %v10002_v63 = vsel %vm3703_vm9, 1.0, %v15365_v51 }
 0x73a   : > { %v5363_v47 = vpack.c.bf16 %v10126_v50, %v10126_v50  ;;  %vm4982_vm3 = vcmp.eq.s32.totalorder %v14064_v25, %v11093_v8 }
 0x73b   : > { %v8892_v44 = vrot.slane %v8891_v22, 2  ;;  %10700 = vset.pattern.permute.xlu0 %v13003_v37  ;;  %v8713_v61 = vmul.f32 %v14004_v14, %v8583_v5 }
 0x73d   : > { %v8893_v21 = vmax.f32 %v8891_v22, %v8892_v44  ;;  %v10127_v44 = vsel %vm4980_vm10, 1.0, %v15365_v51 }
 0x73e   : > { %v8298_v33 = vpop.f32.mrf.mxu3 }
 0x73f   : > { %v8894_v7 = vrot.slane %v8893_v21, 1  ;;  %v8299_v20 = vadd.f32 %v8298_v33, %v7970_v45  ;;  %10621 = vset.pattern.permute.xlu1 %v12989_v2  ;;  %v14078_v22 = vpop.permute.xlu2 %4449  ;;  %v7973_v45 = vadd.f32 %v13710_v42, %v15934_v4  ;;  %v4087_v33 = vpack.c.bf16 %v10002_v63, %v10002_v63 }
 0x740   : > { %10627 = vset.pattern.permute.xlu2 %v12704_v19  ;;  %vm4983_vm5 = vcmp.eq.s32.totalorder %v14078_v22, %v11093_v8 }
 0x741   : > { %v8895_v30 = vmax.f32 %v8893_v21, %v8894_v7  ;;  %v8584_v39 = vmax.f32 %v8299_v20, 0.0  ;;  %v15935_v20 = vld [vmem:[#allocation127_spill] sm:$0xff] }
 0x743   : > { %v9277_v46 = vpack.c.bf16 %v8895_v30, %v8895_v30  ;;  %v8714_v41 = vmul.f32 %v14010_v57, %v8584_v39  ;;  %8340 = vmatmul.bf16.gmra.mxu3 %v6877_v28  ;;  %4737 = vperm.xlu0 %10700, %v15932_v59   ;;  %v7975_v30 = vadd.f32 %v13741_v12, %v15935_v20  ;;  %v6771_v39 = vunpack.c.l.b16 %v5363_v47 }
 0x745   : > { %v9425_v48 = vunpack.c.l.b16 %v9277_v46  ;;  %v8896_v18 = vmax.f32 %v8713_v61, %v8714_v41  ;;  %v6391_v46 = vunpack.c.l.b16 %v4087_v33 }
 0x746   : > { %v8301_v32 = vpop.f32.mrf.mxu3 }
 0x747   : > { %v9494_v0 = vsel %vm9481_vm1, %v9425_v48, %v9493_v6  ;;  %v8897_v60 = vrot.slane %v8896_v18, 4  ;;  %4503 = vperm.xlu1 %10621, %v15919_v9   ;;  %v5364_v6 = vpack.c.bf16 %v10127_v44, %v10127_v44  ;;  %v8302_v5 = vadd.f32 %v8301_v32, %v7973_v45  ;;  %v4438_v48 = vpop.permute.xlu0 %4437  ;;  %v3188_v32 = vpop.permute.xlu2 %3187 }
 0x748   : > { %3247 = vperm.xlu2 %10627, %v15933_v11   ;;  %vm4981_vm15 = vcmp.eq.s32.totalorder %v4438_v48, %v11093_v8  ;;  %vm3706_vm0 = vcmp.eq.s32.totalorder %v3188_v32, %v11093_v8  ;;  %v10413_v48 = vld [vmem:[%s15146_s4 + $0x38] sm:$0xff]  ;;  %v15938_v32 = vld [vmem:[#allocation38_spill] sm:$0xff] }
 0x749   : > { %v8898_v62 = vmax.f32 %v8896_v18, %v8897_v60  ;;  %v3176_v21 = vpop.permute.xlu1 %3175  ;;  %v6772_v41 = vunpack.c.l.b16 %v5364_v6  ;;  %v8585_v50 = vmax.f32 %v8302_v5, 0.0  ;;  %v10005_v6 = vsel %vm3706_vm0, 1.0, %v15365_v51  ;;  %9598 = vmatpush.bf16.msrb.mxu0 %v10413_v48 }
 0x74a   : > { %vm3704_vm14 = vcmp.eq.s32.totalorder %v3176_v21, %v11093_v8  ;;  %v10128_v5 = vsel %vm4981_vm15, 1.0, %v15365_v51 }
 0x74b   : > { %v8899_v7 = vrot.slane %v8898_v62, 2  ;;  %v10003_v9 = vsel %vm3704_vm14, 1.0, %v15365_v51  ;;  %10705 = vset.pattern.permute.xlu0 %v12989_v2  ;;  %v6878_v4 = vpack.c.b16 %v6772_v41, %v6771_v39  ;;  %v8715_v47 = vmul.f32 %v14004_v14, %v8585_v50  ;;  %v15937_v39 = vld [vmem:[#allocation112_spill] sm:$0xff] }
 0x74c   : > { %v4088_v10 = vpack.c.bf16 %v10003_v9, %v10003_v9 }
 0x74d   : > { %v8900_v28 = vmax.f32 %v8898_v62, %v8899_v7  ;;  %v10129_v7 = vsel %vm4982_vm3, 1.0, %v15365_v51 }
 0x74e   : > { %v6392_v61 = vunpack.c.l.b16 %v4088_v10  ;;  %v8303_v42 = vpop.f32.mrf.mxu3  ;;  %v15936_v10 = vld [vmem:[#allocation76_spill] sm:$0xff] }
 0x74f   : > { %v8901_v18 = vrot.slane %v8900_v28, 1  ;;  %v8304_v63 = vadd.f32 %v8303_v42, %v7975_v30  ;;  %10623 = vset.pattern.permute.xlu1 %v12704_v19  ;;  %v4090_v30 = vpack.c.bf16 %v10005_v6, %v10005_v6 }
 0x750   : > { %v6496_v60 = vpack.c.b16 %v6392_v61, %v6391_v46  ;;  %10629 = vset.pattern.permute.xlu2 %v12989_v2  ;;  %v5366_v46 = vpack.c.bf16 %v10129_v7, %v10129_v7  ;;  %v5365_v61 = vpack.c.bf16 %v10128_v5, %v10128_v5 }
 0x751   : > { %v8902_v44 = vmax.f32 %v8900_v28, %v8901_v18  ;;  %v8586_v12 = vmax.f32 %v8304_v63, 0.0  ;;  %v7978_v28 = vadd.f32 %v13753_v36, %v15937_v39  ;;  %v6394_v50 = vunpack.c.l.b16 %v4090_v30 }
 0x752   : > { %8026 = vmatmul.bf16.gmra.mxu2 %v6496_v60  ;;  %v7980_v36 = vadd.f32 %v13774_v23, %v15938_v32  ;;  %v6774_v60 = vunpack.c.l.b16 %v5366_v46 }
 0x753   : > { %v9278_v45 = vpack.c.bf16 %v8902_v44, %v8902_v44  ;;  %v8716_v62 = vmul.f32 %v14010_v57, %v8586_v12  ;;  %8345 = vmatmul.bf16.gmra.mxu3 %v6878_v4  ;;  %4755 = vperm.xlu0 %10705, %v15936_v10   ;;  %v6773_v44 = vunpack.c.l.b16 %v5365_v61  ;;  %v10412_v4 = vld [vmem:[%s15146_s4 + $0x30] sm:$0xff] }
 0x754   : > { %9599 = vmatpush.bf16.msrb.mxu0 %v10412_v4 }
 0x755   : > { %v9426_v21 = vunpack.c.l.b16 %v9278_v45  ;;  %v8903_v33 = vmax.f32 %v8715_v47, %v8716_v62  ;;  %v4456_v62 = vpop.permute.xlu0 %4455 }
 0x756   : > { %v8306_v9 = vpop.f32.mrf.mxu3  ;;  %vm4984_vm7 = vcmp.eq.s32.totalorder %v4456_v62, %v11093_v8  ;;  %v15942_v62 = vld [vmem:[#allocation129_spill] sm:$0xff] }
 0x757   : > { %v8904_v20 = vrot.slane %v8903_v33, 4  ;;  %3235 = vperm.xlu1 %10623, %v15926_v13   ;;  %v9495_v25 = vsel %vm9483_vm6, %v9426_v21, %v9494_v0  ;;  %v8307_v13 = vadd.f32 %v8306_v9, %v7978_v28  ;;  %v6879_v9 = vpack.c.b16 %v6774_v60, %v6773_v44 }
 0x758   : > { %4527 = vperm.xlu2 %10629, %v15933_v11   ;;  %v10131_v22 = vsel %vm4984_vm7, 1.0, %v15365_v51 }
 0x759   : > { %v8905_v42 = vmax.f32 %v8903_v33, %v8904_v20  ;;  %v3182_v41 = vpop.permute.xlu1 %3181  ;;  %v8587_v33 = vmax.f32 %v8307_v13, 0.0  ;;  %v10411_v20 = vld [vmem:[%s15146_s4 + $0x28] sm:$0xff]  ;;  %v5368_v60 = vpack.c.bf16 %v10131_v22, %v10131_v22 }
 0x75a   : > { %vm3705_vm4 = vcmp.eq.s32.totalorder %v3182_v41, %v11093_v8  ;;  %9600 = vmatpush.bf16.msrb.mxu0 %v10411_v20  ;;  %v10130_v41 = vsel %vm4983_vm5, 1.0, %v15365_v51 }
 0x75b   : > { %v8906_v18 = vrot.slane %v8905_v42, 2  ;;  %v10004_v0 = vsel %vm3705_vm4, 1.0, %v15365_v51  ;;  %10710 = vset.pattern.permute.xlu0 %v12673_v31  ;;  %v8717_v39 = vmul.f32 %v14004_v14, %v8587_v33  ;;  %v6776_v33 = vunpack.c.l.b16 %v5368_v60 }
 0x75c   : > { %v4089_v63 = vpack.c.bf16 %v10004_v0, %v10004_v0 }
 0x75d   : > { %v8907_v12 = vmax.f32 %v8905_v42, %v8906_v18  ;;  %v10410_v42 = vld [vmem:[%s15146_s4 + $0x20] sm:$0xff]  ;;  %v15939_v18 = vld [vmem:[#allocation81_spill] sm:$0xff] }
 0x75e   : > { %v6393_v45 = vunpack.c.l.b16 %v4089_v63  ;;  %v8308_v47 = vpop.f32.mrf.mxu3  ;;  %9601 = vmatpush.bf16.msrb.mxu0 %v10410_v42  ;;  %v15941_v63 = vld [vmem:[#allocation117_spill] sm:$0xff] }
 0x75f   : > { %v8908_v21 = vrot.slane %v8907_v12, 1  ;;  %v8309_v6 = vadd.f32 %v8308_v47, %v7980_v36  ;;  %10626 = vset.pattern.permute.xlu1 %v12673_v31  ;;  %v7983_v32 = vadd.f32 %v13787_v16, %v15941_v63  ;;  %v5367_v36 = vpack.c.bf16 %v10130_v41, %v10130_v41  ;;  %v4468_v47 = vpop.permute.xlu2 %4467  ;;  %v10408_v16 = vld [vmem:[%s15146_s4 + $0x10] sm:$0xff] }
 0x760   : > { %v6497_v7 = vpack.c.b16 %v6394_v50, %v6393_v45  ;;  %10632 = vset.pattern.permute.xlu2 %v13003_v37  ;;  %v15940_v50 = vld [vmem:[#allocation46_spill] sm:$0xff]  ;;  %vm4986_vm9 = vcmp.eq.s32.totalorder %v4468_v47, %v11093_v8 }
 0x761   : > { %v8909_v23 = vmax.f32 %v8907_v12, %v8908_v21  ;;  %v8588_v5 = vmax.f32 %v8309_v6, 0.0  ;;  %v10409_v12 = vld [vmem:[%s15146_s4 + $0x18] sm:$0xff]  ;;  %v7985_v21 = vadd.f32 %v13811_v43, %v15942_v62  ;;  %v10133_v60 = vsel %vm4986_vm9, 1.0, %v15365_v51 }
 0x762   : > { %8031 = vmatmul.bf16.gmra.mxu2 %v6497_v7  ;;  %9602 = vmatpush.bf16.msrb.mxu0 %v10409_v12 }
 0x763   : > { %v9279_v30 = vpack.c.bf16 %v8909_v23, %v8909_v23  ;;  %v8718_v28 = vmul.f32 %v14010_v57, %v8588_v5  ;;  %8350 = vmatmul.bf16.gmra.mxu3 %v6879_v9  ;;  %3493 = vperm.xlu0 %10710, %v15939_v18  }
 0x765   : > { %v9427_v46 = vunpack.c.l.b16 %v9279_v30  ;;  %v8910_v61 = vmax.f32 %v8717_v39, %v8718_v28  ;;  %v3194_v30 = vpop.permute.xlu0 %3193 }
 0x766   : > { %v8311_v48 = vpop.f32.mrf.mxu3  ;;  %9603 = vmatpush.bf16.msrb.mxu0 %v10408_v16  ;;  %vm3707_vm14 = vcmp.eq.s32.totalorder %v3194_v30, %v11093_v8 }
 0x767   : > { %v8911_v13 = vrot.slane %v8910_v61, 4  ;;  %3241 = vperm.xlu1 %10626, %v15933_v11   ;;  %v9496_v0 = vsel %vm9485_vm12, %v9427_v46, %v9495_v25  ;;  %v8312_v45 = vadd.f32 %v8311_v48, %v7983_v32  ;;  %v6775_v25 = vunpack.c.l.b16 %v5367_v36  ;;  %v10407_v46 = vld [vmem:[%s15146_s4 + $0x8] sm:$0xff]  ;;  %v14157_v22 = vpop.permute.xlu2 %4473  ;;  %v14159_v48 = vpop.f32.mrf.mxu2  ;;  %v10406_v36 = vld [vmem:[%s15146_s4] sm:$0xff] }
 0x768   : > { %4533 = vperm.xlu2 %10632, %v15940_v50   ;;  %v10006_v32 = vsel %vm3707_vm14, 1.0, %v15365_v51  ;;  %vm4987_vm4 = vcmp.eq.s32.totalorder %v14157_v22, %v11093_v8 }
 0x769   : > { %v8912_v44 = vmax.f32 %v8910_v61, %v8911_v13  ;;  %v8589_v5 = vmax.f32 %v8312_v45, 0.0  ;;  %v4462_v9 = vpop.permute.xlu1 %4461  ;;  %v6880_v28 = vpack.c.b16 %v6776_v33, %v6775_v25  ;;  %v4091_v62 = vpack.c.bf16 %v10006_v32, %v10006_v32  ;;  %v15945_v25 = vld [vmem:[#allocation66_spill] sm:$0xff] }
 0x76a   : > { %vm4985_vm10 = vcmp.eq.s32.totalorder %v4462_v9, %v11093_v8  ;;  %9604 = vmatpush.bf16.msrb.mxu0 %v10407_v46  ;;  %v7988_v33 = vadd.f32 %v13826_v15, %v15945_v25 }
 0x76b   : > { %v8913_v4 = vrot.slane %v8912_v44, 2  ;;  %10715 = vset.pattern.permute.xlu0 %v12704_v19  ;;  %v8719_v42 = vmul.f32 %v14004_v14, %v8589_v5  ;;  %v6395_v30 = vunpack.c.l.b16 %v4091_v62 }
 0x76d   : > { %v8914_v6 = vmax.f32 %v8912_v44, %v8913_v4  ;;  %v10132_v44 = vsel %vm4985_vm10, 1.0, %v15365_v51  ;;  %v15943_v4 = vld [vmem:[#allocation83_spill] sm:$0xff] }
 0x76e   : > { %v8313_v7 = vpop.f32.mrf.mxu3  ;;  %9605 = vmatpush.bf16.msrb.mxu0 %v10406_v36  ;;  %v5369_v16 = vpack.c.bf16 %v10132_v44, %v10132_v44 }
 0x76f   : > { %v8915_v23 = vrot.slane %v8914_v6, 1  ;;  %v8314_v20 = vadd.f32 %v8313_v7, %v7985_v21  ;;  %10628 = vset.pattern.permute.xlu1 %v13003_v37  ;;  %v15944_v21 = vld [vmem:[#allocation47_spill] sm:$0xff] }
 0x770   : > { %10634 = vset.pattern.permute.xlu2 %v12673_v31  ;;  %v6777_v46 = vunpack.c.l.b16 %v5369_v16 }
 0x771   : > { %v8916_v43 = vmax.f32 %v8914_v6, %v8915_v23  ;;  %v8590_v39 = vmax.f32 %v8314_v20, 0.0  ;;  %v5370_v6 = vpack.c.bf16 %v10133_v60, %v10133_v60 }
 0x773   : > { %v9280_v61 = vpack.c.bf16 %v8916_v43, %v8916_v43  ;;  %v8720_v41 = vmul.f32 %v14010_v57, %v8590_v39  ;;  %8355 = vmatmul.bf16.gmra.mxu3 %v6880_v28  ;;  %3511 = vperm.xlu0 %10715, %v15943_v4   ;;  %v3206_v43 = vpop.permute.xlu2 %3205  ;;  %v6778_v28 = vunpack.c.l.b16 %v5370_v6 }
 0x774   : > { %vm3709_vm0 = vcmp.eq.s32.totalorder %v3206_v43, %v11093_v8  ;;  %v15948_v43 = vld [vmem:[#allocation91_spill] sm:$0xff] }
 0x775   : > { %v9428_v13 = vunpack.c.l.b16 %v9280_v61  ;;  %v8917_v63 = vmax.f32 %v8719_v42, %v8720_v41  ;;  %v3212_v42 = vpop.permute.xlu0 %3211  ;;  %v6881_v62 = vpack.c.b16 %v6778_v28, %v6777_v46  ;;  %v10008_v25 = vsel %vm3709_vm0, 1.0, %v15365_v51 }
 0x776   : > { %v8316_v12 = vpop.f32.mrf.mxu3  ;;  %vm3710_vm3 = vcmp.eq.s32.totalorder %v3212_v42, %v11093_v8 }
 0x777   : > { %v8918_v45 = vrot.slane %v8917_v63, 4  ;;  %4521 = vperm.xlu1 %10628, %v15933_v11   ;;  %v9497_v47 = vsel %vm9487_vm2, %v9428_v13, %v9496_v0  ;;  %v8317_v9 = vadd.f32 %v8316_v12, %v7988_v33  ;;  %v15946_v0 = vld [vmem:[#allocation122_spill] sm:$0xff]  ;;  %v15947_v13 = vld [vmem:[#allocation143_spill] sm:$0xff] }
 0x778   : > { %3265 = vperm.xlu2 %10634, %v15944_v21   ;;  %v7990_v39 = vadd.f32 %v13860_v35, %v15946_v0  ;;  %v10134_v0 = vsel %vm4987_vm4, 1.0, %v15365_v51 }
 0x779   : > { %v8919_v7 = vmax.f32 %v8917_v63, %v8918_v45  ;;  %v3200_v23 = vpop.permute.xlu1 %3199  ;;  %v8591_v60 = vmax.f32 %v8317_v9, 0.0 }
 0x77a   : > { %vm3708_vm15 = vcmp.eq.s32.totalorder %v3200_v23, %v11093_v8 }
 0x77b   : > { %v8920_v5 = vrot.slane %v8919_v7, 2  ;;  %v10007_v20 = vsel %vm3708_vm15, 1.0, %v15365_v51  ;;  %10720 = vset.pattern.permute.xlu0 %v13003_v37  ;;  %v8721_v6 = vmul.f32 %v14004_v14, %v8591_v60  ;;  %v15949_v60 = vld [vmem:[#allocation128_spill] sm:$0xff] }
 0x77c   : > { %v4092_v11 = vpack.c.bf16 %v10007_v20, %v10007_v20 }
 0x77d   : > { %v8921_v61 = vmax.f32 %v8919_v7, %v8920_v5  ;;  %v8012_v15 = vpop.f32.mrf.mxu2  ;;  %v10009_v7 = vsel %vm3710_vm3, 1.0, %v15365_v51 }
 0x77e   : > { %v6396_v41 = vunpack.c.l.b16 %v4092_v11  ;;  %v14178_v63 = vadd.f32 %v8012_v15, %v15947_v13  ;;  %v8318_v32 = vpop.f32.mrf.mxu3  ;;  %v4093_v11 = vpack.c.bf16 %v10008_v25, %v10008_v25  ;;  %v5371_v15 = vpack.c.bf16 %v10134_v0, %v10134_v0 }
 0x77f   : > { %v8922_v36 = vrot.slane %v8921_v61, 1  ;;  %v8319_v44 = vadd.f32 %v8318_v32, %v7990_v39  ;;  %10631 = vset.pattern.permute.xlu1 %v12704_v19 }
 0x780   : > { %v6498_v35 = vpack.c.b16 %v6396_v41, %v6395_v30  ;;  %10637 = vset.pattern.permute.xlu2 %v12989_v2  ;;  %v4094_v30 = vpack.c.bf16 %v10009_v7, %v10009_v7  ;;  %v6397_v42 = vunpack.c.l.b16 %v4093_v11 }
 0x781   : > { %v8923_v12 = vmax.f32 %v8921_v61, %v8922_v36  ;;  %v8592_v45 = vmax.f32 %v8319_v44, 0.0 }
 0x782   : > { %8036 = vmatmul.bf16.gmra.mxu2 %v6498_v35  ;;  %v6398_v41 = vunpack.c.l.b16 %v4094_v30 }
 0x783   : > { %v9281_v33 = vpack.c.bf16 %v8923_v12, %v8923_v12  ;;  %v8722_v16 = vmul.f32 %v14010_v57, %v8592_v45  ;;  %8360 = vmatmul.bf16.gmra.mxu3 %v6881_v62  ;;  %4797 = vperm.xlu0 %10720, %v15948_v43   ;;  %v6779_v12 = vunpack.c.l.b16 %v5371_v15  ;;  %v15950_v45 = vld [vmem:[#allocation147_spill] sm:$0xff]  ;;  %v15951_v15 = vld [vmem:[#allocation94_spill] sm:$0xff] }
 0x785   : > { %v9429_v23 = vunpack.c.l.b16 %v9281_v33  ;;  %v8924_v5 = vmax.f32 %v8721_v6, %v8722_v16  ;;  %v14191_v9 = vpop.f32.mrf.mxu2  ;;  %v6499_v33 = vpack.c.b16 %v6398_v41, %v6397_v42 }
 0x786   : > { %v8321_v20 = vpop.f32.mrf.mxu3 }
 0x787   : > { %v8925_v39 = vrot.slane %v8924_v5, 4  ;;  %v8322_v28 = vadd.f32 %v8321_v20, %v13884_v40  ;;  %3259 = vperm.xlu1 %10631, %v15940_v50   ;;  %v9498_v46 = vsel %vm9489_vm8, %v9429_v23, %v9497_v47  ;;  %v7995_v40 = vadd.f32 %v13909_v49, %v15949_v60  ;;  %v4492_v23 = vpop.permute.xlu2 %4491 }
 0x788   : > { %4551 = vperm.xlu2 %10637, %v15944_v21   ;;  %vm4990_vm7 = vcmp.eq.s32.totalorder %v4492_v23, %v11093_v8 }
 0x789   : > { %v8926_v22 = vmax.f32 %v8924_v5, %v8925_v39  ;;  %v4480_v61 = vpop.permute.xlu1 %4479  ;;  %v8593_v16 = vmax.f32 %v8322_v28, 0.0  ;;  %v10137_v28 = vsel %vm4990_vm7, 1.0, %v15365_v51 }
 0x78a   : > { %vm4988_vm5 = vcmp.eq.s32.totalorder %v4480_v61, %v11093_v8 }
 0x78b   : > { %v8927_v13 = vrot.slane %v8926_v22, 2  ;;  %v10135_v32 = vsel %vm4988_vm5, 1.0, %v15365_v51  ;;  %10725 = vset.pattern.permute.xlu0 %v12989_v2  ;;  %v8723_v30 = vmul.f32 %v14004_v14, %v8593_v16 }
 0x78c   : > { %v5372_v36 = vpack.c.bf16 %v10135_v32, %v10135_v32 }
 0x78d   : > { %v8928_v44 = vmax.f32 %v8926_v22, %v8927_v13  ;;  %v8017_v35 = vpop.f32.mrf.mxu2  ;;  %v5374_v13 = vpack.c.bf16 %v10137_v28, %v10137_v28 }
 0x78e   : > { %v6780_v47 = vunpack.c.l.b16 %v5372_v36  ;;  %v14204_v62 = vadd.f32 %v8017_v35, %v15950_v45  ;;  %v8323_v25 = vpop.f32.mrf.mxu3  ;;  %v15952_v36 = vld [vmem:[#allocation48_spill] sm:$0xff] }
 0x78f   : > { %v8929_v6 = vrot.slane %v8928_v44, 1  ;;  %v8324_v7 = vadd.f32 %v8323_v25, %v7995_v40  ;;  %10633 = vset.pattern.permute.xlu1 %v12989_v2  ;;  %v6782_v35 = vunpack.c.l.b16 %v5374_v13 }
 0x790   : > { %v6882_v5 = vpack.c.b16 %v6780_v47, %v6779_v12  ;;  %10639 = vset.pattern.permute.xlu2 %v12704_v19  ;;  %v15953_v47 = vld [vmem:[#allocation132_spill] sm:$0xff] }
 0x791   : > { %v8930_v49 = vmax.f32 %v8928_v44, %v8929_v6  ;;  %v8594_v20 = vmax.f32 %v8324_v7, 0.0 }
 0x792   : > { %8041 = vmatmul.bf16.gmra.mxu2 %v6499_v33  ;;  %v3224_v33 = vpop.permute.xlu2 %3223 }
 0x793   : > { %v9282_v11 = vpack.c.bf16 %v8930_v49, %v8930_v49  ;;  %v8724_v0 = vmul.f32 %v14010_v57, %v8594_v20  ;;  %8365 = vmatmul.bf16.gmra.mxu3 %v6882_v5  ;;  %4815 = vperm.xlu0 %10725, %v15951_v15   ;;  %vm3712_vm10 = vcmp.eq.s32.totalorder %v3224_v33, %v11093_v8 }
 0x794   : > { %v10011_v20 = vsel %vm3712_vm10, 1.0, %v15365_v51 }
 0x795   : > { %v8931_v39 = vmax.f32 %v8723_v30, %v8724_v0  ;;  %v9430_v22 = vunpack.c.l.b16 %v9282_v11  ;;  %v15954_v30 = vld [vmem:[#allocation99_spill] sm:$0xff]  ;;  %v4096_v28 = vpack.c.bf16 %v10011_v20, %v10011_v20 }
 0x796   : > { %v8326_v61 = vpop.f32.mrf.mxu3 }
 0x797   : > { %v8327_v42 = vadd.f32 %v8326_v61, %v13927_v55  ;;  %4539 = vperm.xlu1 %10633, %v15940_v50   ;;  %v9499_v41 = vsel %vm9491_vm13, %v9430_v22, %v9498_v46  ;;  %v8932_v60 = vrot.slane %v8931_v39, 4  ;;  %v8000_v55 = vadd.f32 %v13991_v27, %v15953_v47  ;;  %v15955_v22 = vld [vmem:[#allocation49_spill] sm:$0xff] }
 0x798   : > { %v9542_v32 = vpack.c.b16 %v9499_v41, %v13980_v26  ;;  %3283 = vperm.xlu2 %10639, %v15952_v36  }
 0x799   : > { %v4486_v40 = vpop.permute.xlu1 %4485  ;;  %v8933_v50 = vmax.f32 %v8931_v39, %v8932_v60  ;;  %v8595_v26 = vmax.f32 %v8327_v42, 0.0  ;;  %v6400_v60 = vunpack.c.l.b16 %v4096_v28 }
 0x79a   : > { %vm4989_vm9 = vcmp.eq.s32.totalorder %v4486_v40, %v11093_v8  ;;  %9606 = vmatmul.bf16.vlgmr.msrb.gmra.mxu0 %v9542_v32 }
 0x79b   : > { %v10136_v44 = vsel %vm4989_vm9, 1.0, %v15365_v51  ;;  %10730 = vset.pattern.permute.xlu0 %v12673_v31  ;;  %v8934_v16 = vrot.slane %v8933_v50, 2  ;;  %v8725_v23 = vmul.f32 %v14004_v14, %v8595_v26  ;;  %v4498_v26 = vpop.permute.xlu0 %4497 }
 0x79c   : > { %v5373_v12 = vpack.c.bf16 %v10136_v44, %v10136_v44  ;;  %v15956_v44 = vld [vmem:[#allocation41_spill] sm:$0xff]  ;;  %vm4991_vm15 = vcmp.eq.s32.totalorder %v4498_v26, %v11093_v8 }
 0x79d   : > { %v8935_v5 = vmax.f32 %v8933_v50, %v8934_v16 }
 0x79e   : > { %v6781_v45 = vunpack.c.l.b16 %v5373_v12  ;;  %v8328_v46 = vpop.f32.mrf.mxu3 }
 0x79f   : > { %v8329_v25 = vadd.f32 %v8328_v46, %v8000_v55  ;;  %10636 = vset.pattern.permute.xlu1 %v13003_v37  ;;  %v8936_v61 = vrot.slane %v8935_v5, 1 }
 0x7a0   : > { %v6883_v6 = vpack.c.b16 %v6782_v35, %v6781_v45  ;;  %10642 = vset.pattern.permute.xlu2 %v12673_v31  ;;  %v8005_v35 = vadd.f32 %v14035_v17, %v15956_v44 }
 0x7a1   : > { %v8596_v7 = vmax.f32 %v8329_v25, 0.0  ;;  %v8937_v12 = vmax.f32 %v8935_v5, %v8936_v61 }
 0x7a3   : > { %v8726_v27 = vmul.f32 %v14010_v57, %v8596_v7  ;;  %8370 = vmatmul.bf16.gmra.mxu3 %v6883_v6  ;;  %3553 = vperm.xlu0 %10730, %v15954_v30   ;;  %v9283_v33 = vpack.c.bf16 %v8937_v12, %v8937_v12 }
 0x7a5   : > { %v8938_v49 = vmax.f32 %v8725_v23, %v8726_v27  ;;  %v3230_v27 = vpop.permute.xlu2 %3229  ;;  %v9431_v5 = vunpack.c.l.b16 %v9283_v33 }
 0x7a6   : > { %v8331_v11 = vpop.f32.mrf.mxu3  ;;  %vm3713_vm5 = vcmp.eq.s32.totalorder %v3230_v27, %v11093_v8 }
 0x7a7   : > { %v8939_v0 = vrot.slane %v8938_v49, 4  ;;  %v8332_v39 = vadd.f32 %v8331_v11, %v14023_v52  ;;  %4545 = vperm.xlu1 %10636, %v15944_v21   ;;  %v14238_v52 = vpop.f32.mrf.mxu2 }
 0x7a8   : > { %3289 = vperm.xlu2 %10642, %v15955_v22  }
 0x7a9   : > { %v8940_v42 = vmax.f32 %v8938_v49, %v8939_v0  ;;  %v3218_v41 = vpop.permute.xlu1 %3217  ;;  %v8597_v45 = vmax.f32 %v8332_v39, 0.0  ;;  %v10138_v0 = vsel %vm4991_vm15, 1.0, %v15365_v51  ;;  %v15957_v39 = vld [vmem:[#allocation151_spill] sm:$0xff] }
 0x7aa   : > { %vm3711_vm14 = vcmp.eq.s32.totalorder %v3218_v41, %v11093_v8 }
 0x7ab   : > { %v8941_v13 = vrot.slane %v8940_v42, 2  ;;  %v10010_v32 = vsel %vm3711_vm14, 1.0, %v15365_v51  ;;  %10735 = vset.pattern.permute.xlu0 %v12704_v19  ;;  %v8727_v7 = vmul.f32 %v14004_v14, %v8597_v45 }
 0x7ac   : > { %v4095_v40 = vpack.c.bf16 %v10010_v32, %v10010_v32 }
 0x7ad   : > { %v8942_v21 = vmax.f32 %v8940_v42, %v8941_v13  ;;  %v15958_v42 = vld [vmem:[#allocation86_spill] sm:$0xff] }
 0x7ae   : > { %v6399_v47 = vunpack.c.l.b16 %v4095_v40  ;;  %v8333_v55 = vpop.f32.mrf.mxu3 }
 0x7af   : > { %v8943_v50 = vrot.slane %v8942_v21, 1  ;;  %v8334_v46 = vadd.f32 %v8333_v55, %v8005_v35  ;;  %10638 = vset.pattern.permute.xlu1 %v12673_v31  ;;  %v4510_v55 = vpop.permute.xlu2 %4509 }
 0x7b0   : > { %v6500_v25 = vpack.c.b16 %v6400_v60, %v6399_v47  ;;  %10644 = vset.pattern.permute.xlu2 %v13003_v37  ;;  %v5375_v60 = vpack.c.bf16 %v10138_v0, %v10138_v0  ;;  %vm4993_vm3 = vcmp.eq.s32.totalorder %v4510_v55, %v11093_v8 }
 0x7b1   : > { %v8944_v6 = vmax.f32 %v8942_v21, %v8943_v50  ;;  %v8598_v17 = vmax.f32 %v8334_v46, 0.0  ;;  %v15959_v50 = vld [vmem:[#allocation149_spill] sm:$0xff] }
 0x7b2   : > { %8046 = vmatmul.bf16.gmra.mxu2 %v6500_v25  ;;  %v6783_v47 = vunpack.c.l.b16 %v5375_v60  ;;  %v8010_v45 = vadd.f32 %v14159_v48, %v15959_v50  ;;  %v15960_v60 = vld [vmem:[#allocation105_spill] sm:$0xff] }
 0x7b3   : > { %v9284_v16 = vpack.c.bf16 %v8944_v6, %v8944_v6  ;;  %v8728_v23 = vmul.f32 %v14010_v57, %v8598_v17  ;;  %3571 = vperm.xlu0 %10735, %v15958_v42  }
 0x7b5   : > { %v9432_v49 = vunpack.c.l.b16 %v9284_v16  ;;  %v8945_v20 = vmax.f32 %v8727_v7, %v8728_v23  ;;  %v8022_v11 = vpop.f32.mrf.mxu2  ;;  %v10140_v23 = vsel %vm4993_vm3, 1.0, %v15365_v51 }
 0x7b6   : > { %v14248_v28 = vadd.f32 %v8022_v11, %v15957_v39  ;;  %v8336_v61 = vpop.f32.mrf.mxu3 }
 0x7b7   : > { %v9500_v41 = vsel %vm9479_vm11, %v9432_v49, %v9431_v5  ;;  %v8946_v13 = vrot.slane %v8945_v20, 4  ;;  %v8337_v32 = vadd.f32 %v8336_v61, %v14053_v1  ;;  %3277 = vperm.xlu1 %10638, %v15952_v36   ;;  %v4516_v1 = vpop.permute.xlu0 %4515 }
 0x7b8   : > { %4569 = vperm.xlu2 %10644, %v15955_v22   ;;  %vm4994_vm4 = vcmp.eq.s32.totalorder %v4516_v1, %v11093_v8  ;;  %v15962_v1 = vld [vmem:[#allocation2_spill] sm:$0xff] }
 0x7b9   : > { %v8947_v40 = vmax.f32 %v8945_v20, %v8946_v13  ;;  %v4504_v44 = vpop.permute.xlu1 %4503  ;;  %v8599_v6 = vmax.f32 %v8337_v32, 0.0  ;;  %v10141_v11 = vsel %vm4994_vm4, 1.0, %v15365_v51  ;;  %v5377_v13 = vpack.c.bf16 %v10140_v23, %v10140_v23 }
 0x7ba   : > { %vm4992_vm0 = vcmp.eq.s32.totalorder %v4504_v44, %v11093_v8  ;;  %v5378_v32 = vpack.c.bf16 %v10141_v11, %v10141_v11 }
 0x7bb   : > { %v8948_v35 = vrot.slane %v8947_v40, 2  ;;  %v10139_v12 = vsel %vm4992_vm0, 1.0, %v15365_v51  ;;  %10740 = vset.pattern.permute.xlu0 %v13003_v37  ;;  %v8729_v49 = vmul.f32 %v14004_v14, %v8599_v6 }
 0x7bc   : > { %v5376_v21 = vpack.c.bf16 %v10139_v12, %v10139_v12  ;;  %v6786_v55 = vunpack.c.l.b16 %v5378_v32 }
 0x7bd   : > { %v8949_v46 = vmax.f32 %v8947_v40, %v8948_v35  ;;  %v10012_v40 = vsel %vm3713_vm5, 1.0, %v15365_v51 }
 0x7be   : > { %v6784_v26 = vunpack.c.l.b16 %v5376_v21  ;;  %v8338_v25 = vpop.f32.mrf.mxu3  ;;  %v4097_v21 = vpack.c.bf16 %v10012_v40, %v10012_v40 }
 0x7bf   : > { %v8950_v33 = vrot.slane %v8949_v46, 1  ;;  %v8339_v17 = vadd.f32 %v8338_v25, %v8010_v45  ;;  %10641 = vset.pattern.permute.xlu1 %v12989_v2 }
 0x7c0   : > { %v6884_v16 = vpack.c.b16 %v6784_v26, %v6783_v47  ;;  %10647 = vset.pattern.permute.xlu2 %v12704_v19  ;;  %v6785_v47 = vunpack.c.l.b16 %v5377_v13  ;;  %v14279_v26 = vpop.f32.mrf.mxu2 }
 0x7c1   : > { %v8951_v7 = vmax.f32 %v8949_v46, %v8950_v33  ;;  %v8600_v48 = vmax.f32 %v8339_v17, 0.0 }
 0x7c2   : > { %8375 = vmatmul.bf16.gmra.mxu3 %v6884_v16  ;;  %v6885_v6 = vpack.c.b16 %v6786_v55, %v6785_v47 }
 0x7c3   : > { %v9285_v5 = vpack.c.bf16 %v8951_v7, %v8951_v7  ;;  %v8730_v20 = vmul.f32 %v14010_v57, %v8600_v48  ;;  %4857 = vperm.xlu0 %10740, %v15960_v60   ;;  %v15961_v57 = vld [vmem:[#allocation15_spill] sm:$0xff]  ;;  %v3248_v48 = vpop.permute.xlu2 %3247 }
 0x7c4   : > { %vm3716_vm9 = vcmp.eq.s32.totalorder %v3248_v48, %v11093_v8 }
 0x7c5   : > { %v9433_v0 = vunpack.c.l.b16 %v9285_v5  ;;  %v8952_v39 = vmax.f32 %v8729_v49, %v8730_v20  ;;  %v14288_v20 = vld [vmem:[%s15145_s3] sm:$0xff]  ;;  %v10015_v40 = vsel %vm3716_vm9, 1.0, %v15365_v51 }
 0x7c6   : > { %v8341_v61 = vpop.f32.mrf.mxu3 }
 0x7c7   : > { %v8953_v44 = vrot.slane %v8952_v39, 4  ;;  %v8342_v35 = vadd.f32 %v8341_v61, %v14178_v63  ;;  %4563 = vperm.xlu1 %10641, %v15952_v36   ;;  %v9501_v14 = vsel %vm9481_vm1, %v9433_v0, %v9500_v41  ;;  %v8015_v63 = vadd.f32 %v14191_v9, %v15962_v1  ;;  %v14294_v0 = vld [vmem:[%s15145_s3 + $0x8] sm:$0xff] }
 0x7c8   : > { %3307 = vperm.xlu2 %10647, %v15961_v57   ;;  %v6401_v41 = vunpack.c.l.b16 %v4097_v21 }
 0x7c9   : > { %v8954_v12 = vmax.f32 %v8952_v39, %v8953_v44  ;;  %v3236_v27 = vpop.permute.xlu1 %3235  ;;  %v8601_v16 = vmax.f32 %v8342_v35, 0.0  ;;  %v15963_v44 = vld [vmem:[#allocation158_spill] sm:$0xff] }
 0x7ca   : > { %vm3714_vm7 = vcmp.eq.s32.totalorder %v3236_v27, %v11093_v8  ;;  %v15964_v27 = vld [vmem:[#allocation109_spill] sm:$0xff] }
 0x7cb   : > { %v8955_v50 = vrot.slane %v8954_v12, 2  ;;  %v10013_v45 = vsel %vm3714_vm7, 1.0, %v15365_v51  ;;  %10745 = vset.pattern.permute.xlu0 %v12989_v2  ;;  %v8731_v11 = vmul.f32 %v14288_v20, %v8601_v16  ;;  %v4528_v48 = vpop.permute.xlu2 %4527 }
 0x7cc   : > { %v4098_v46 = vpack.c.bf16 %v10013_v45, %v10013_v45  ;;  %vm4996_vm14 = vcmp.eq.s32.totalorder %v4528_v48, %v11093_v8  ;;  %v3254_v48 = vpop.permute.xlu0 %3253 }
 0x7cd   : > { %v8956_v36 = vmax.f32 %v8954_v12, %v8955_v50  ;;  %v4100_v50 = vpack.c.bf16 %v10015_v40, %v10015_v40  ;;  %v15966_v40 = vld [vmem:[#allocation14_spill] sm:$0xff]  ;;  %vm3717_vm0 = vcmp.eq.s32.totalorder %v3254_v48, %v11093_v8 }
 0x7ce   : > { %v6402_v25 = vunpack.c.l.b16 %v4098_v46  ;;  %v8343_v33 = vpop.f32.mrf.mxu3 }
 0x7cf   : > { %v8957_v17 = vrot.slane %v8956_v36, 1  ;;  %v8344_v7 = vadd.f32 %v8343_v33, %v8015_v63  ;;  %10643 = vset.pattern.permute.xlu1 %v12704_v19 }
 0x7d0   : > { %v6501_v23 = vpack.c.b16 %v6402_v25, %v6401_v41  ;;  %10649 = vset.pattern.permute.xlu2 %v12989_v2  ;;  %v15965_v25 = vld [vmem:[#allocation145_spill] sm:$0xff] }
 0x7d1   : > { %v8958_v5 = vmax.f32 %v8956_v36, %v8957_v17  ;;  %v8602_v9 = vmax.f32 %v8344_v7, 0.0  ;;  %v6404_v36 = vunpack.c.l.b16 %v4100_v50  ;;  %v8020_v33 = vadd.f32 %v14238_v52, %v15965_v25 }
 0x7d2   : > { %8051 = vmatmul.bf16.gmra.mxu2 %v6501_v23  ;;  %8380 = vmatmul.bf16.gmra.mxu3 %v6885_v6 }
 0x7d3   : > { %v9286_v49 = vpack.c.bf16 %v8958_v5, %v8958_v5  ;;  %v8732_v39 = vmul.f32 %v14294_v0, %v8602_v9  ;;  %4875 = vperm.xlu0 %10745, %v15964_v27  }
 0x7d5   : > { %v9434_v61 = vunpack.c.l.b16 %v9286_v49  ;;  %v8959_v13 = vmax.f32 %v8731_v11, %v8732_v39  ;;  %v8027_v32 = vpop.f32.mrf.mxu2 }
 0x7d6   : > { %v14299_v35 = vadd.f32 %v8027_v32, %v15963_v44  ;;  %v8346_v12 = vpop.f32.mrf.mxu3  ;;  %v10143_v32 = vsel %vm4996_vm14, 1.0, %v15365_v51 }
 0x7d7   : > { %v8960_v21 = vrot.slane %v8959_v13, 4  ;;  %v8347_v47 = vadd.f32 %v8346_v12, %v14204_v62  ;;  %3295 = vperm.xlu1 %10643, %v15955_v22   ;;  %v9502_v55 = vsel %vm9483_vm6, %v9434_v61, %v9501_v14 }
 0x7d8   : > { %4587 = vperm.xlu2 %10649, %v15961_v57  }
 0x7d9   : > { %v8961_v45 = vmax.f32 %v8959_v13, %v8960_v21  ;;  %v3242_v46 = vpop.permute.xlu1 %3241  ;;  %v8603_v16 = vmax.f32 %v8347_v47, 0.0  ;;  %v15967_v21 = vld [vmem:[#allocation114_spill] sm:$0xff] }
 0x7da   : > { %vm3715_vm10 = vcmp.eq.s32.totalorder %v3242_v46, %v11093_v8  ;;  %v5380_v46 = vpack.c.bf16 %v10143_v32, %v10143_v32 }
 0x7db   : > { %v8962_v1 = vrot.slane %v8961_v45, 2  ;;  %v10014_v63 = vsel %vm3715_vm10, 1.0, %v15365_v51  ;;  %10750 = vset.pattern.permute.xlu0 %v12673_v31  ;;  %v8733_v49 = vmul.f32 %v14288_v20, %v8603_v16 }
 0x7dc   : > { %v4099_v41 = vpack.c.bf16 %v10014_v63, %v10014_v63  ;;  %v6788_v25 = vunpack.c.l.b16 %v5380_v46 }
 0x7dd   : > { %v8963_v62 = vmax.f32 %v8961_v45, %v8962_v1  ;;  %v14310_v6 = vpop.f32.mrf.mxu2 }
 0x7de   : > { %v6403_v22 = vunpack.c.l.b16 %v4099_v41  ;;  %v8348_v14 = vpop.f32.mrf.mxu3 }
 0x7df   : > { %v8964_v17 = vrot.slane %v8963_v62, 1  ;;  %v8349_v7 = vadd.f32 %v8348_v14, %v8020_v33  ;;  %10646 = vset.pattern.permute.xlu1 %v12673_v31 }
 0x7e0   : > { %v6502_v23 = vpack.c.b16 %v6404_v36, %v6403_v22  ;;  %10652 = vset.pattern.permute.xlu2 %v13003_v37 }
 0x7e1   : > { %v8965_v5 = vmax.f32 %v8963_v62, %v8964_v17  ;;  %v8604_v9 = vmax.f32 %v8349_v7, 0.0  ;;  %v15968_v62 = vld [vmem:[#allocation19_spill] sm:$0xff] }
 0x7e2   : > { %8056 = vmatmul.bf16.gmra.mxu2 %v6502_v23  ;;  %v8025_v22 = vadd.f32 %v14279_v26, %v15968_v62 }
 0x7e3   : > { %v9287_v52 = vpack.c.bf16 %v8965_v5, %v8965_v5  ;;  %v8734_v11 = vmul.f32 %v14294_v0, %v8604_v9  ;;  %3613 = vperm.xlu0 %10750, %v15967_v21  }
 0x7e5   : > { %v9435_v39 = vunpack.c.l.b16 %v9287_v52  ;;  %v8966_v61 = vmax.f32 %v8733_v49, %v8734_v11  ;;  %v8032_v13 = vpop.f32.mrf.mxu2  ;;  %v4534_v11 = vpop.permute.xlu2 %4533 }
 0x7e6   : > { %v14320_v44 = vadd.f32 %v8032_v13, %v15966_v40  ;;  %v8351_v12 = vpop.f32.mrf.mxu3  ;;  %v10016_v13 = vsel %vm3717_vm0, 1.0, %v15365_v51  ;;  %v15969_v40 = vld [vmem:[#allocation88_spill] sm:$0xff]  ;;  %vm4997_vm7 = vcmp.eq.s32.totalorder %v4534_v11, %v11093_v8 }
 0x7e7   : > { %v8967_v47 = vrot.slane %v8966_v61, 4  ;;  %v8352_v50 = vadd.f32 %v8351_v12, %v14248_v28  ;;  %3301 = vperm.xlu1 %10646, %v15961_v57   ;;  %v9503_v45 = vsel %vm9485_vm12, %v9435_v39, %v9502_v55  ;;  %v4101_v46 = vpack.c.bf16 %v10016_v13, %v10016_v13 }
 0x7e8   : > { %4593 = vperm.xlu2 %10652, %v15884_v58  }
 0x7e9   : > { %v8968_v1 = vmax.f32 %v8966_v61, %v8967_v47  ;;  %v4522_v63 = vpop.permute.xlu1 %4521  ;;  %v8605_v16 = vmax.f32 %v8352_v50, 0.0  ;;  %v6405_v62 = vunpack.c.l.b16 %v4101_v46 }
 0x7ea   : > { %vm4995_vm15 = vcmp.eq.s32.totalorder %v4522_v63, %v11093_v8 }
 0x7eb   : > { %v8969_v36 = vrot.slane %v8968_v1, 2  ;;  %v10142_v41 = vsel %vm4995_vm15, 1.0, %v15365_v51  ;;  %10755 = vset.pattern.permute.xlu0 %v12704_v19  ;;  %v8735_v52 = vmul.f32 %v14288_v20, %v8605_v16 }
 0x7ec   : > { %v5379_v33 = vpack.c.bf16 %v10142_v41, %v10142_v41 }
 0x7ed   : > { %v8970_v28 = vmax.f32 %v8968_v1, %v8969_v36  ;;  %v14344_v36 = vpop.f32.mrf.mxu0 }
 0x7ee   : > { %v6787_v14 = vunpack.c.l.b16 %v5379_v33  ;;  %v8353_v17 = vpop.f32.mrf.mxu3 }
 0x7ef   : > { %v8971_v55 = vrot.slane %v8970_v28, 1  ;;  %v8354_v7 = vadd.f32 %v8353_v17, %v8025_v22  ;;  %10648 = vset.pattern.permute.xlu1 %v13003_v37  ;;  %v3266_v22 = vpop.permute.xlu2 %3265 }
 0x7f0   : > { %v6886_v23 = vpack.c.b16 %v6788_v25, %v6787_v14  ;;  %10654 = vset.pattern.permute.xlu2 %v12673_v31  ;;  %v3272_v14 = vpop.permute.xlu0 %3271  ;;  %vm3719_vm4 = vcmp.eq.s32.totalorder %v3266_v22, %v11093_v8 }
 0x7f1   : > { %v8972_v5 = vmax.f32 %v8970_v28, %v8971_v55  ;;  %v8606_v9 = vmax.f32 %v8354_v7, 0.0  ;;  %v8034_v28 = vpop.f32.mrf.mxu2  ;;  %vm3720_vm5 = vcmp.eq.s32.totalorder %v3272_v14, %v11093_v8 }
 0x7f2   : > { %8385 = vmatmul.bf16.gmra.mxu3 %v6886_v23 }
 0x7f3   : > { %v9288_v26 = vpack.c.bf16 %v8972_v5, %v8972_v5  ;;  %v8736_v49 = vmul.f32 %v14294_v0, %v8606_v9  ;;  %3631 = vperm.xlu0 %10755, %v15969_v40   ;;  %v10018_v9 = vsel %vm3719_vm4, 1.0, %v15365_v51 }
 0x7f5   : > { %v9436_v39 = vunpack.c.l.b16 %v9288_v26  ;;  %v8973_v61 = vmax.f32 %v8735_v52, %v8736_v49  ;;  %v10019_v49 = vsel %vm3720_vm5, 1.0, %v15365_v51 }
 0x7f6   : > { %v8356_v32 = vpop.f32.mrf.mxu3 }
 0x7f7   : > { %v8974_v12 = vrot.slane %v8973_v61, 4  ;;  %v8357_v47 = vadd.f32 %v8356_v32, %v14299_v35  ;;  %4581 = vperm.xlu1 %10648, %v15961_v57   ;;  %v9504_v50 = vsel %vm9487_vm2, %v9436_v39, %v9503_v45  ;;  %v15970_v35 = vld [vmem:[#allocation159_spill] sm:$0xff] }
 0x7f8   : > { %3325 = vperm.xlu2 %10654, %v15890_v53   ;;  %v8030_v57 = vadd.f32 %v14310_v6, %v15970_v35 }
 0x7f9   : > { %v8975_v1 = vmax.f32 %v8973_v61, %v8974_v12  ;;  %v3260_v63 = vpop.permute.xlu1 %3259  ;;  %v8607_v7 = vmax.f32 %v8357_v47, 0.0  ;;  %v14359_v61 = vpop.f32.mrf.mxu0  ;;  %v15971_v47 = vld [vmem:[#allocation78_spill] sm:$0xff] }
 0x7fa   : > { %vm3718_vm3 = vcmp.eq.s32.totalorder %v3260_v63, %v11093_v8  ;;  %v4103_v63 = vpack.c.bf16 %v10018_v9, %v10018_v9 }
 0x7fb   : > { %v8976_v41 = vrot.slane %v8975_v1, 2  ;;  %v10017_v25 = vsel %vm3718_vm3, 1.0, %v15365_v51  ;;  %10760 = vset.pattern.permute.xlu0 %v13003_v37  ;;  %v8737_v26 = vmul.f32 %v14288_v20, %v8607_v7 }
 0x7fc   : > { %v4102_v33 = vpack.c.bf16 %v10017_v25, %v10017_v25  ;;  %v15972_v25 = vld [vmem:[#allocation119_spill] sm:$0xff]  ;;  %v6407_v14 = vunpack.c.l.b16 %v4103_v63 }
 0x7fd   : > { %v8977_v45 = vmax.f32 %v8975_v1, %v8976_v41  ;;  %v4104_v41 = vpack.c.bf16 %v10019_v49, %v10019_v49 }
 0x7fe   : > { %v6406_v17 = vunpack.c.l.b16 %v4102_v33  ;;  %v8358_v55 = vpop.f32.mrf.mxu3  ;;  %v10144_v33 = vsel %vm4997_vm7, 1.0, %v15365_v51 }
 0x7ff   : > { %v8978_v16 = vrot.slane %v8977_v45, 1  ;;  %v8359_v48 = vadd.f32 %v8358_v55, %v8030_v57  ;;  %10651 = vset.pattern.permute.xlu1 %v12704_v19 }
 0x800   : > { %v6503_v23 = vpack.c.b16 %v6406_v17, %v6405_v62  ;;  %10657 = vset.pattern.permute.xlu2 %v12989_v2  ;;  %v6408_v17 = vunpack.c.l.b16 %v4104_v41 }
 0x801   : > { %v8979_v6 = vmax.f32 %v8977_v45, %v8978_v16  ;;  %v8608_v5 = vmax.f32 %v8359_v48, 0.0  ;;  %v5381_v45 = vpack.c.bf16 %v10144_v33, %v10144_v33  ;;  %v15973_v48 = vld [vmem:[#allocation24_spill] sm:$0xff]  ;;  %v10767_v33 = vld [vmem:[%s15147_s5] ss:$0 sm:$0xff] }
 0x802   : > { %8061 = vmatmul.bf16.gmra.mxu2 %v6503_v23  ;;  %v8035_v23 = vadd.f32 %v8034_v28, %v15973_v48 }
 0x803   : > { %v8738_v52 = vmul.f32 %v14294_v0, %v8608_v5  ;;  %v9289_v39 = vpack.c.bf16 %v8979_v6, %v8979_v6  ;;  %4917 = vperm.xlu0 %10760, %v15972_v25   ;;  %v6789_v5 = vunpack.c.l.b16 %v5381_v45  ;;  %v15974_v45 = vld [vmem:[#allocation12_spill] sm:$0xff] }
 0x805   : > { %v8980_v13 = vmax.f32 %v8737_v26, %v8738_v52  ;;  %v8037_v32 = vpop.f32.mrf.mxu2  ;;  %v9437_v12 = vunpack.c.l.b16 %v9289_v39  ;;  %v6504_v26 = vpack.c.b16 %v6408_v17, %v6407_v14  ;;  %v14372_v52 = vpop.f32.mrf.mxu0 }
 0x806   : > { %v8038_v46 = vadd.f32 %v8037_v32, %v15971_v47  ;;  %v8361_v1 = vpop.f32.mrf.mxu3  ;;  %v4552_v32 = vpop.permute.xlu2 %4551 }
 0x807   : > { %v8981_v62 = vrot.slane %v8980_v13, 4  ;;  %v8362_v22 = vadd.f32 %v8361_v1, %v14320_v44  ;;  %3319 = vperm.xlu1 %10651, %v15884_v58   ;;  %v9505_v11 = vsel %vm9489_vm8, %v9437_v12, %v9504_v50  ;;  %vm5000_vm10 = vcmp.eq.s32.totalorder %v4552_v32, %v11093_v8 }
 0x808   : > { %4611 = vperm.xlu2 %10657, %v15890_v53  }
 0x809   : > { %v8982_v35 = vmax.f32 %v8980_v13, %v8981_v62  ;;  %v4540_v57 = vpop.permute.xlu1 %4539  ;;  %v8609_v39 = vmax.f32 %v8362_v22, 0.0 }
 0x80a   : > { %vm4998_vm9 = vcmp.eq.s32.totalorder %v4540_v57, %v11093_v8 }
 0x80b   : > { %v8983_v55 = vrot.slane %v8982_v35, 2  ;;  %v10145_v16 = vsel %vm4998_vm9, 1.0, %v15365_v51  ;;  %10765 = vset.pattern.permute.xlu0 %v12989_v2  ;;  %v8739_v1 = vmul.f32 %v14288_v20, %v8609_v39 }
 0x80c   : > { %v5382_v7 = vpack.c.bf16 %v10145_v16, %v10145_v16 }
 0x80d   : > { %v8984_v44 = vmax.f32 %v8982_v35, %v8983_v55  ;;  %v8039_v6 = vpop.f32.mrf.mxu2  ;;  %v10147_v35 = vsel %vm5000_vm10, 1.0, %v15365_v51  ;;  %v15975_v55 = vld [vmem:[#allocation121_spill] sm:$0xff] }
 0x80e   : > { %v6790_v9 = vunpack.c.l.b16 %v5382_v7  ;;  %v8363_v50 = vpop.f32.mrf.mxu3 }
 0x80f   : > { %v8985_v49 = vrot.slane %v8984_v44, 1  ;;  %v8364_v13 = vadd.f32 %v8363_v50, %v8035_v23  ;;  %10653 = vset.pattern.permute.xlu1 %v12989_v2 }
 0x810   : > { %v6887_v12 = vpack.c.b16 %v6790_v9, %v6789_v5  ;;  %10659 = vset.pattern.permute.xlu2 %v12704_v19 }
 0x811   : > { %v8610_v28 = vmax.f32 %v8364_v13, 0.0  ;;  %v8986_v47 = vmax.f32 %v8984_v44, %v8985_v49  ;;  %v5384_v44 = vpack.c.bf16 %v10147_v35, %v10147_v35  ;;  %v15976_v49 = vld [vmem:[#allocation163_spill] sm:$0xff] }
 0x812   : > { %8066 = vmatmul.bf16.gmra.mxu2 %v6504_v26  ;;  %8390 = vmatmul.bf16.gmra.mxu3 %v6887_v12  ;;  %v8040_v39 = vadd.f32 %v8039_v6, %v15976_v49 }
 0x813   : > { %v8740_v63 = vmul.f32 %v14294_v0, %v8610_v28  ;;  %v9290_v41 = vpack.c.bf16 %v8986_v47, %v8986_v47  ;;  %4935 = vperm.xlu0 %10765, %v15975_v55   ;;  %v6792_v50 = vunpack.c.l.b16 %v5384_v44  ;;  %v3284_v47 = vpop.permute.xlu2 %3283 }
 0x814   : > { %vm3722_vm15 = vcmp.eq.s32.totalorder %v3284_v47, %v11093_v8  ;;  %v4558_v47 = vpop.permute.xlu0 %4557 }
 0x815   : > { %v8987_v62 = vmax.f32 %v8739_v1, %v8740_v63  ;;  %v8042_v22 = vpop.f32.mrf.mxu2  ;;  %v9438_v57 = vunpack.c.l.b16 %v9290_v41  ;;  %vm5001_vm3 = vcmp.eq.s32.totalorder %v4558_v47, %v11093_v8 }
 0x816   : > { %v8043_v14 = vadd.f32 %v8042_v22, %v15974_v45  ;;  %v8366_v17 = vpop.f32.mrf.mxu3  ;;  %v10021_v45 = vsel %vm3722_vm15, 1.0, %v15365_v51 }
 0x817   : > { %v8367_v16 = vadd.f32 %v8366_v17, %v8038_v46  ;;  %v9607_v7 = vpop.f32.mrf.mxu0  ;;  %4599 = vperm.xlu1 %10653, %v15884_v58   ;;  %v14394_v48 = vsel %vm9491_vm13, %v9438_v57, %v9505_v11  ;;  %v8988_v5 = vrot.slane %v8987_v62, 4 }
 0x818   : > { %v9608_v23 = vadd.f32 %v10767_v33, %v9607_v7  ;;  %3343 = vperm.xlu2 %10659, %v15894_v54   ;;  %v4106_v7 = vpack.c.bf16 %v10021_v45, %v10021_v45 }
 0x819   : > { %v4546_v9 = vpop.permute.xlu1 %4545  ;;  %v8989_v58 = vmax.f32 %v8987_v62, %v8988_v5  ;;  %v8611_v32 = vmax.f32 %v8367_v16, 0.0 }
 0x81a   : > { %9627 = vst [vmem:[%s14390_s29] sm:$0xff] %v9608_v23  ;;  %vm4999_vm14 = vcmp.eq.s32.totalorder %v4546_v9, %v11093_v8 }
 0x81b   : > { %v10146_v46 = vsel %vm4999_vm14, 1.0, %v15365_v51  ;;  %v8990_v41 = vrot.slane %v8989_v58, 2  ;;  %v8741_v6 = vmul.f32 %v14288_v20, %v8611_v32 }
 0x81c   : > { %v5383_v26 = vpack.c.bf16 %v10146_v46, %v10146_v46 }
 0x81d   : > { %v8991_v35 = vmax.f32 %v8989_v58, %v8990_v41  ;;  %v8044_v9 = vpop.f32.mrf.mxu2  ;;  %v15977_v58 = vld [vmem:[#allocation32_spill] sm:$0xff] }
 0x81e   : > { %v6791_v13 = vunpack.c.l.b16 %v5383_v26  ;;  %v8368_v11 = vpop.f32.mrf.mxu3  ;;  %v6410_v26 = vunpack.c.l.b16 %v4106_v7  ;;  %v3290_v7 = vpop.permute.xlu2 %3289 }
 0x81f   : > { %v8369_v12 = vadd.f32 %v8368_v11, %v8040_v39  ;;  %v9609_v28 = vpop.f32.mrf.mxu0  ;;  %10656 = vset.pattern.permute.xlu1 %v13003_v37  ;;  %v8992_v23 = vrot.slane %v8991_v35, 1  ;;  %vm3723_vm9 = vcmp.eq.s32.totalorder %v3290_v7, %v11093_v8 }
 0x820   : > { %v9610_v1 = vadd.f32 %v10767_v33, %v9609_v28  ;;  %v6888_v63 = vpack.c.b16 %v6792_v50, %v6791_v13  ;;  %10662 = vset.pattern.permute.xlu2 %v12673_v31  ;;  %v8045_v13 = vadd.f32 %v8044_v9, %v15977_v58 }
 0x821   : > { %v8612_v22 = vmax.f32 %v8369_v12, 0.0  ;;  %v8993_v39 = vmax.f32 %v8991_v35, %v8992_v23  ;;  %v15978_v23 = vld [vmem:[#allocation17_spill] sm:$0xff] }
 0x822   : > { %9628 = vst [vmem:[%s14390_s29 + $0x8] sm:$0xff] %v9610_v1  ;;  %8395 = vmatmul.bf16.gmra.mxu3 %v6888_v63 }
 0x823   : > { %v8742_v62 = vmul.f32 %v14294_v0, %v8612_v22  ;;  %v9291_v63 = vpack.c.bf16 %v8993_v39, %v8993_v39 }
 0x825   : > { %v8994_v57 = vmax.f32 %v8741_v6, %v8742_v62 }
 0x826   : > { %v8371_v17 = vpop.f32.mrf.mxu3 }
 0x827   : > { %v8995_v16 = vrot.slane %v8994_v57, 4  ;;  %v8372_v33 = vadd.f32 %v8371_v17, %v8043_v14  ;;  %4605 = vperm.xlu1 %10656, %v15890_v53  }
 0x828   : > { %3349 = vperm.xlu2 %10662, %v15899_v34  }
 0x829   : > { %v8996_v44 = vmax.f32 %v8994_v57, %v8995_v16  ;;  %v3278_v5 = vpop.permute.xlu1 %3277  ;;  %v8613_v12 = vmax.f32 %v8372_v33, 0.0  ;;  %v9439_v57 = vunpack.c.l.b16 %v9291_v63  ;;  %v10148_v33 = vsel %vm5001_vm3, 1.0, %v15365_v51 }
 0x82a   : > { %vm3721_vm0 = vcmp.eq.s32.totalorder %v3278_v5, %v11093_v8 }
 0x82b   : > { %v8997_v46 = vrot.slane %v8996_v44, 2  ;;  %v10020_v50 = vsel %vm3721_vm0, 1.0, %v15365_v51  ;;  %v8743_v62 = vmul.f32 %v14288_v20, %v8613_v12 }
 0x82c   : > { %v4105_v49 = vpack.c.bf16 %v10020_v50, %v10020_v50 }
 0x82d   : > { %v8998_v14 = vmax.f32 %v8996_v44, %v8997_v46  ;;  %v5385_v46 = vpack.c.bf16 %v10148_v33, %v10148_v33 }
 0x82e   : > { %v6409_v11 = vunpack.c.l.b16 %v4105_v49  ;;  %v8373_v53 = vpop.f32.mrf.mxu3 }
 0x82f   : > { %v8999_v32 = vrot.slane %v8998_v14, 1  ;;  %v8374_v28 = vadd.f32 %v8373_v53, %v8045_v13  ;;  %10658 = vset.pattern.permute.xlu1 %v12673_v31  ;;  %v6793_v13 = vunpack.c.l.b16 %v5385_v46  ;;  %v4576_v53 = vpop.permute.xlu0 %4575 }
 0x830   : > { %v6505_v1 = vpack.c.b16 %v6410_v26, %v6409_v11  ;;  %10664 = vset.pattern.permute.xlu2 %v13003_v37  ;;  %v4570_v11 = vpop.permute.xlu2 %4569  ;;  %vm5004_vm7 = vcmp.eq.s32.totalorder %v4576_v53, %v11093_v8 }
 0x831   : > { %v9000_v41 = vmax.f32 %v8998_v14, %v8999_v32  ;;  %v8614_v22 = vmax.f32 %v8374_v28, 0.0  ;;  %vm5003_vm5 = vcmp.eq.s32.totalorder %v4570_v11, %v11093_v8 }
 0x832   : > { %8071 = vmatmul.bf16.gmra.mxu2 %v6505_v1  ;;  %v10150_v63 = vsel %vm5003_vm5, 1.0, %v15365_v51 }
 0x833   : > { %v9292_v6 = vpack.c.bf16 %v9000_v41, %v9000_v41  ;;  %v8744_v35 = vmul.f32 %v14294_v0, %v8614_v22  ;;  %v10151_v41 = vsel %vm5004_vm7, 1.0, %v15365_v51 }
 0x835   : > { %v9440_v45 = vunpack.c.l.b16 %v9292_v6  ;;  %v9001_v17 = vmax.f32 %v8743_v62, %v8744_v35  ;;  %v8047_v16 = vpop.f32.mrf.mxu2  ;;  %v10022_v62 = vsel %vm3723_vm9, 1.0, %v15365_v51 }
 0x836   : > { %v8048_v44 = vadd.f32 %v8047_v16, %v15978_v23  ;;  %v15979_v16 = vld [vmem:[#allocation16_spill] sm:$0xff]  ;;  %v4107_v33 = vpack.c.bf16 %v10022_v62, %v10022_v62  ;;  %v15981_v62 = vld [vmem:[#allocation169_spill] sm:$0xff] }
 0x837   : > { %v9507_v5 = vsel %vm9479_vm11, %v9440_v45, %v9439_v57  ;;  %v9002_v9 = vrot.slane %v9001_v17, 4  ;;  %3337 = vperm.xlu1 %10658, %v15894_v54   ;;  %v5387_v57 = vpack.c.bf16 %v10150_v63, %v10150_v63  ;;  %v5388_v45 = vpack.c.bf16 %v10151_v41, %v10151_v41 }
 0x838   : > { %4629 = vperm.xlu2 %10664, %v15899_v34   ;;  %v3308_v11 = vpop.permute.xlu2 %3307 }
 0x839   : > { %v9003_v50 = vmax.f32 %v9001_v17, %v9002_v9  ;;  %v4564_v26 = vpop.permute.xlu1 %4563  ;;  %v6795_v9 = vunpack.c.l.b16 %v5387_v57  ;;  %v6796_v46 = vunpack.c.l.b16 %v5388_v45  ;;  %vm3726_vm14 = vcmp.eq.s32.totalorder %v3308_v11, %v11093_v8 }
 0x83a   : > { %vm5002_vm4 = vcmp.eq.s32.totalorder %v4564_v26, %v11093_v8  ;;  %v15980_v26 = vld [vmem:[#allocation166_spill] sm:$0xff]  ;;  %v10025_v41 = vsel %vm3726_vm14, 1.0, %v15365_v51 }
 0x83b   : > { %v9004_v49 = vrot.slane %v9003_v50, 2  ;;  %v10149_v39 = vsel %vm5002_vm4, 1.0, %v15365_v51  ;;  %v4110_v57 = vpack.c.bf16 %v10025_v41, %v10025_v41 }
 0x83c   : > { %v5386_v58 = vpack.c.bf16 %v10149_v39, %v10149_v39  ;;  %v6411_v39 = vunpack.c.l.b16 %v4107_v33 }
 0x83d   : > { %v9005_v14 = vmax.f32 %v9003_v50, %v9004_v49  ;;  %v8049_v7 = vpop.f32.mrf.mxu2 }
 0x83e   : > { %v6794_v32 = vunpack.c.l.b16 %v5386_v58 }
 0x83f   : > { %v9006_v12 = vrot.slane %v9005_v14, 1  ;;  %10661 = vset.pattern.permute.xlu1 %v12989_v2 }
 0x840   : > { %v6889_v28 = vpack.c.b16 %v6794_v32, %v6793_v13  ;;  %10667 = vset.pattern.permute.xlu2 %v12704_v19 }
 0x841   : > { %v9007_v47 = vmax.f32 %v9005_v14, %v9006_v12  ;;  %v6890_v14 = vpack.c.b16 %v6796_v46, %v6795_v9  ;;  %v6414_v46 = vunpack.c.l.b16 %v4110_v57 }
 0x842   : > { %8400 = vmatmul.bf16.gmra.mxu3 %v6889_v28 }
 0x843   : > { %v9293_v1 = vpack.c.bf16 %v9007_v47, %v9007_v47 }
 0x845   : > { %v9441_v22 = vunpack.c.l.b16 %v9293_v1  ;;  %v8376_v6 = vpop.f32.mrf.mxu3 }
 0x846   : > { %v8377_v35 = vadd.f32 %v8376_v6, %v8048_v44  ;;  %v8050_v44 = vadd.f32 %v8049_v7, %v15980_v26 }
 0x847   : > { %4623 = vperm.xlu1 %10661, %v15894_v54   ;;  %v14435_v17 = vsel %vm9481_vm1, %v9441_v22, %v9507_v5 }
 0x848   : > { %3367 = vperm.xlu2 %10667, %v15979_v16   ;;  %v8615_v54 = vmax.f32 %v8377_v35, 0.0 }
 0x849   : > { %v3296_v23 = vpop.permute.xlu1 %3295 }
 0x84a   : > { %vm3724_vm10 = vcmp.eq.s32.totalorder %v3296_v23, %v11093_v8  ;;  %v8745_v12 = vmul.f32 %v14288_v20, %v8615_v54  ;;  %v4588_v54 = vpop.permute.xlu2 %4587 }
 0x84b   : > { %v10023_v50 = vsel %vm3724_vm10, 1.0, %v15365_v51  ;;  %vm5006_vm0 = vcmp.eq.s32.totalorder %v4588_v54, %v11093_v8 }
 0x84c   : > { %v4108_v49 = vpack.c.bf16 %v10023_v50, %v10023_v50 }
 0x84d   : > { %v8378_v58 = vpop.f32.mrf.mxu3 }
 0x84e   : > { %v6412_v13 = vunpack.c.l.b16 %v4108_v49  ;;  %v8379_v5 = vadd.f32 %v8378_v58, %v8050_v44 }
 0x84f   : > { %10663 = vset.pattern.permute.xlu1 %v12704_v19 }
 0x850   : > { %v8616_v53 = vmax.f32 %v8379_v5, 0.0  ;;  %v6506_v32 = vpack.c.b16 %v6412_v13, %v6411_v39  ;;  %10669 = vset.pattern.permute.xlu2 %v12989_v2 }
 0x852   : > { %v8746_v28 = vmul.f32 %v14294_v0, %v8616_v53  ;;  %8076 = vmatmul.bf16.gmra.mxu2 %v6506_v32  ;;  %8405 = vmatmul.bf16.gmra.mxu3 %v6890_v14 }
 0x854   : > { %v9008_v47 = vmax.f32 %v8745_v12, %v8746_v28 }
 0x855   : > { %v8052_v1 = vpop.f32.mrf.mxu2  ;;  %v8381_v63 = vpop.f32.mrf.mxu3 }
 0x856   : > { %v9009_v22 = vrot.slane %v9008_v47, 4  ;;  %v8053_v35 = vadd.f32 %v8052_v1, %v15981_v62  ;;  %v10153_v1 = vsel %vm5006_vm0, 1.0, %v15365_v51 }
 0x857   : > { %3355 = vperm.xlu1 %10663, %v15899_v34   ;;  %v15982_v34 = vld [vmem:[#allocation171_spill] sm:$0xff] }
 0x858   : > { %v9010_v6 = vmax.f32 %v9008_v47, %v9009_v22  ;;  %4647 = vperm.xlu2 %10669, %v15979_v16   ;;  %v8382_v9 = vadd.f32 %v8381_v63, %v8053_v35 }
 0x859   : > { %v3302_v45 = vpop.permute.xlu1 %3301 }
 0x85a   : > { %v9011_v33 = vrot.slane %v9010_v6, 2  ;;  %vm3725_vm15 = vcmp.eq.s32.totalorder %v3302_v45, %v11093_v8  ;;  %v8617_v5 = vmax.f32 %v8382_v9, 0.0 }
 0x85b   : > { %v10024_v7 = vsel %vm3725_vm15, 1.0, %v15365_v51 }
 0x85c   : > { %v9012_v23 = vmax.f32 %v9010_v6, %v9011_v33  ;;  %v4109_v50 = vpack.c.bf16 %v10024_v7, %v10024_v7  ;;  %v8747_v28 = vmul.f32 %v14288_v20, %v8617_v5  ;;  %v5390_v6 = vpack.c.bf16 %v10153_v1, %v10153_v1 }
 0x85d   : > { %v8054_v26 = vpop.f32.mrf.mxu2  ;;  %v8383_v58 = vpop.f32.mrf.mxu3 }
 0x85e   : > { %v9013_v44 = vrot.slane %v9012_v23, 1  ;;  %v6413_v49 = vunpack.c.l.b16 %v4109_v50  ;;  %v8055_v39 = vadd.f32 %v8054_v26, %v15982_v34  ;;  %v6798_v33 = vunpack.c.l.b16 %v5390_v6  ;;  %v4594_v34 = vpop.permute.xlu2 %4593 }
 0x85f   : > { %10666 = vset.pattern.permute.xlu1 %v12673_v31  ;;  %vm5007_vm10 = vcmp.eq.s32.totalorder %v4594_v34, %v11093_v8 }
 0x860   : > { %v9014_v13 = vmax.f32 %v9012_v23, %v9013_v44  ;;  %v8384_v14 = vadd.f32 %v8383_v58, %v8055_v39  ;;  %v6507_v11 = vpack.c.b16 %v6414_v46, %v6413_v49  ;;  %10672 = vset.pattern.permute.xlu2 %v13003_v37 }
 0x862   : > { %v9294_v53 = vpack.c.bf16 %v9014_v13, %v9014_v13  ;;  %v8618_v32 = vmax.f32 %v8384_v14, 0.0  ;;  %8081 = vmatmul.bf16.gmra.mxu2 %v6507_v11  ;;  %v15983_v13 = vld [vmem:[#allocation172_spill] sm:$0xff] }
 0x864   : > { %v9442_v12 = vunpack.c.l.b16 %v9294_v53  ;;  %v8748_v47 = vmul.f32 %v14294_v0, %v8618_v32 }
 0x865   : > { %v8057_v46 = vpop.f32.mrf.mxu2 }
 0x866   : > { %v9015_v63 = vmax.f32 %v8747_v28, %v8748_v47  ;;  %v9509_v41 = vsel %vm9483_vm6, %v9442_v12, %v14435_v17  ;;  %v3314_v17 = vpop.permute.xlu0 %3313  ;;  %v8058_v5 = vadd.f32 %v8057_v46, %v15983_v13  ;;  %v15984_v47 = vld [vmem:[#allocation80_spill] sm:$0xff] }
 0x867   : > { %3361 = vperm.xlu1 %10666, %v15979_v16   ;;  %vm3727_vm4 = vcmp.eq.s32.totalorder %v3314_v17, %v11093_v8 }
 0x868   : > { %v9016_v22 = vrot.slane %v9015_v63, 4  ;;  %4653 = vperm.xlu2 %10672, %v15903_v38   ;;  %v10026_v58 = vsel %vm3727_vm4, 1.0, %v15365_v51 }
 0x869   : > { %v4582_v62 = vpop.permute.xlu1 %4581  ;;  %v4111_v14 = vpack.c.bf16 %v10026_v58, %v10026_v58 }
 0x86a   : > { %v9017_v35 = vmax.f32 %v9015_v63, %v9016_v22  ;;  %vm5005_vm3 = vcmp.eq.s32.totalorder %v4582_v62, %v11093_v8 }
 0x86b   : > { %v10152_v57 = vsel %vm5005_vm3, 1.0, %v15365_v51  ;;  %v6415_v22 = vunpack.c.l.b16 %v4111_v14 }
 0x86c   : > { %v9018_v45 = vrot.slane %v9017_v35, 2  ;;  %v5389_v7 = vpack.c.bf16 %v10152_v57, %v10152_v57 }
 0x86d   : > { %v8059_v53 = vpop.f32.mrf.mxu2 }
 0x86e   : > { %v9019_v23 = vmax.f32 %v9017_v35, %v9018_v45  ;;  %v6797_v9 = vunpack.c.l.b16 %v5389_v7  ;;  %v8060_v1 = vadd.f32 %v8059_v53, %v15984_v47  ;;  %v3332_v62 = vpop.permute.xlu0 %3331 }
 0x86f   : > { %10668 = vset.pattern.permute.xlu1 %v13003_v37  ;;  %vm3730_vm9 = vcmp.eq.s32.totalorder %v3332_v62, %v11093_v8 }
 0x870   : > { %v9020_v50 = vrot.slane %v9019_v23, 1  ;;  %v6891_v26 = vpack.c.b16 %v6798_v33, %v6797_v9  ;;  %10674 = vset.pattern.permute.xlu2 %v12673_v31  ;;  %v10029_v46 = vsel %vm3730_vm9, 1.0, %v15365_v51 }
 0x872   : > { %v9021_v44 = vmax.f32 %v9019_v23, %v9020_v50  ;;  %8410 = vmatmul.bf16.gmra.mxu3 %v6891_v26  ;;  %v10154_v50 = vsel %vm5007_vm10, 1.0, %v15365_v51 }
 0x873   : > { %v5391_v58 = vpack.c.bf16 %v10154_v50, %v10154_v50 }
 0x874   : > { %v9295_v49 = vpack.c.bf16 %v9021_v44, %v9021_v44 }
 0x875   : > { %v8386_v39 = vpop.f32.mrf.mxu3 }
 0x876   : > { %v9443_v54 = vunpack.c.l.b16 %v9295_v49  ;;  %v8387_v12 = vadd.f32 %v8386_v39, %v8058_v5  ;;  %v4114_v49 = vpack.c.bf16 %v10029_v46, %v10029_v46 }
 0x877   : > { %4641 = vperm.xlu1 %10668, %v15979_v16   ;;  %v3326_v16 = vpop.permute.xlu2 %3325 }
 0x878   : > { %3385 = vperm.xlu2 %10674, %v15908_v56   ;;  %v14473_v11 = vsel %vm9485_vm12, %v9443_v54, %v9509_v41  ;;  %v8619_v35 = vmax.f32 %v8387_v12, 0.0  ;;  %vm3729_vm7 = vcmp.eq.s32.totalorder %v3326_v16, %v11093_v8  ;;  %v6418_v34 = vunpack.c.l.b16 %v4114_v49 }
 0x879   : > { %v3320_v32 = vpop.permute.xlu1 %3319  ;;  %v10028_v9 = vsel %vm3729_vm7, 1.0, %v15365_v51 }
 0x87a   : > { %vm3728_vm5 = vcmp.eq.s32.totalorder %v3320_v32, %v11093_v8  ;;  %v8749_v7 = vmul.f32 %v14288_v20, %v8619_v35  ;;  %v4113_v44 = vpack.c.bf16 %v10028_v9, %v10028_v9 }
 0x87b   : > { %v10027_v28 = vsel %vm3728_vm5, 1.0, %v15365_v51 }
 0x87c   : > { %v4112_v63 = vpack.c.bf16 %v10027_v28, %v10027_v28  ;;  %v6417_v5 = vunpack.c.l.b16 %v4113_v44  ;;  %v6799_v28 = vunpack.c.l.b16 %v5391_v58 }
 0x87d   : > { %v8388_v6 = vpop.f32.mrf.mxu3 }
 0x87e   : > { %v6416_v57 = vunpack.c.l.b16 %v4112_v63  ;;  %v8389_v45 = vadd.f32 %v8388_v6, %v8060_v1  ;;  %v6509_v63 = vpack.c.b16 %v6418_v34, %v6417_v5 }
 0x87f   : > { %10671 = vset.pattern.permute.xlu1 %v12704_v19 }
 0x880   : > { %v8620_v41 = vmax.f32 %v8389_v45, 0.0  ;;  %v6508_v33 = vpack.c.b16 %v6416_v57, %v6415_v22  ;;  %10677 = vset.pattern.permute.xlu2 %v12989_v2  ;;  %v4612_v22 = vpop.permute.xlu2 %4611 }
 0x881   : > { %vm5010_vm15 = vcmp.eq.s32.totalorder %v4612_v22, %v11093_v8 }
 0x882   : > { %v8750_v23 = vmul.f32 %v14294_v0, %v8620_v41  ;;  %8086 = vmatmul.bf16.gmra.mxu2 %v6508_v33  ;;  %v10157_v41 = vsel %vm5010_vm15, 1.0, %v15365_v51 }
 0x883   : > { %v5394_v9 = vpack.c.bf16 %v10157_v41, %v10157_v41  ;;  %v15989_v41 = vld [vmem:[#allocation8_spill] sm:$0xff] }
 0x884   : > { %v9022_v17 = vmax.f32 %v8749_v7, %v8750_v23  ;;  %v15985_v7 = vld [vmem:[#allocation25_spill] sm:$0xff] }
 0x885   : > { %v8062_v14 = vpop.f32.mrf.mxu2  ;;  %v6802_v49 = vunpack.c.l.b16 %v5394_v9 }
 0x886   : > { %v9023_v26 = vrot.slane %v9022_v17, 4  ;;  %v8063_v23 = vadd.f32 %v8062_v14, %v15985_v7 }
 0x887   : > { %3379 = vperm.xlu1 %10671, %v15903_v38  }
 0x888   : > { %v9024_v39 = vmax.f32 %v9022_v17, %v9023_v26  ;;  %4671 = vperm.xlu2 %10677, %v15908_v56   ;;  %v15986_v26 = vld [vmem:[#allocation173_spill] sm:$0xff]  ;;  %v3344_v5 = vpop.permute.xlu2 %3343 }
 0x889   : > { %v4600_v54 = vpop.permute.xlu1 %4599  ;;  %vm3732_vm3 = vcmp.eq.s32.totalorder %v3344_v5, %v11093_v8 }
 0x88a   : > { %v9025_v13 = vrot.slane %v9024_v39, 2  ;;  %vm5008_vm14 = vcmp.eq.s32.totalorder %v4600_v54, %v11093_v8 }
 0x88b   : > { %v10155_v53 = vsel %vm5008_vm14, 1.0, %v15365_v51 }
 0x88c   : > { %v9026_v32 = vmax.f32 %v9024_v39, %v9025_v13  ;;  %v5392_v12 = vpack.c.bf16 %v10155_v53, %v10155_v53 }
 0x88d   : > { %v8064_v57 = vpop.f32.mrf.mxu2 }
 0x88e   : > { %v9027_v47 = vrot.slane %v9026_v32, 1  ;;  %v6800_v1 = vunpack.c.l.b16 %v5392_v12  ;;  %v8065_v44 = vadd.f32 %v8064_v57, %v15986_v26 }
 0x88f   : > { %10673 = vset.pattern.permute.xlu1 %v12989_v2 }
 0x890   : > { %v9028_v16 = vmax.f32 %v9026_v32, %v9027_v47  ;;  %v6892_v6 = vpack.c.b16 %v6800_v1, %v6799_v28  ;;  %10679 = vset.pattern.permute.xlu2 %v12704_v19  ;;  %v10031_v47 = vsel %vm3732_vm3, 1.0, %v15365_v51 }
 0x892   : > { %v9296_v62 = vpack.c.bf16 %v9028_v16, %v9028_v16  ;;  %8091 = vmatmul.bf16.gmra.mxu2 %v6509_v63  ;;  %8415 = vmatmul.bf16.gmra.mxu3 %v6892_v6  ;;  %v15987_v63 = vld [vmem:[#allocation174_spill] sm:$0xff]  ;;  %v4116_v6 = vpack.c.bf16 %v10031_v47, %v10031_v47 }
 0x894   : > { %v9444_v35 = vunpack.c.l.b16 %v9296_v62  ;;  %v15988_v62 = vld [vmem:[#allocation63_spill] sm:$0xff]  ;;  %v6420_v9 = vunpack.c.l.b16 %v4116_v6 }
 0x895   : > { %v8391_v45 = vpop.f32.mrf.mxu3 }
 0x896   : > { %v14498_v33 = vsel %vm9487_vm2, %v9444_v35, %v14473_v11  ;;  %v8392_v17 = vadd.f32 %v8391_v45, %v8063_v23 }
 0x897   : > { %4659 = vperm.xlu1 %10673, %v15903_v38   ;;  %v8067_v38 = vpop.f32.mrf.mxu2 }
 0x898   : > { %3403 = vperm.xlu2 %10679, %v15913_v29   ;;  %v8621_v11 = vmax.f32 %v8392_v17, 0.0  ;;  %v8068_v22 = vadd.f32 %v8067_v38, %v15987_v63  ;;  %v14529_v38 = vld [vmem:[%s15145_s3 + $0x8] sm:$0xff] }
 0x899   : > { %v4606_v46 = vpop.permute.xlu1 %4605 }
 0x89a   : > { %vm5009_vm0 = vcmp.eq.s32.totalorder %v4606_v46, %v11093_v8  ;;  %v8751_v53 = vmul.f32 %v14288_v20, %v8621_v11 }
 0x89b   : > { %v10156_v50 = vsel %vm5009_vm0, 1.0, %v15365_v51 }
 0x89c   : > { %v5393_v39 = vpack.c.bf16 %v10156_v50, %v10156_v50 }
 0x89d   : > { %v8393_v58 = vpop.f32.mrf.mxu3 }
 0x89e   : > { %v6801_v54 = vunpack.c.l.b16 %v5393_v39  ;;  %v8394_v13 = vadd.f32 %v8393_v58, %v8065_v44 }
 0x89f   : > { %10676 = vset.pattern.permute.xlu1 %v13003_v37  ;;  %v8069_v35 = vpop.f32.mrf.mxu2 }
 0x8a0   : > { %v8622_v34 = vmax.f32 %v8394_v13, 0.0  ;;  %v6893_v14 = vpack.c.b16 %v6802_v49, %v6801_v54  ;;  %10682 = vset.pattern.permute.xlu2 %v12673_v31  ;;  %v8070_v7 = vadd.f32 %v8069_v35, %v15989_v41  ;;  %v4618_v49 = vpop.permute.xlu0 %4617  ;;  %v14523_v54 = vld [vmem:[%s15145_s3] sm:$0xff] }
 0x8a1   : > { %vm5011_vm5 = vcmp.eq.s32.totalorder %v4618_v49, %v11093_v8 }
 0x8a2   : > { %v8752_v32 = vmul.f32 %v14294_v0, %v8622_v34  ;;  %8420 = vmatmul.bf16.gmra.mxu3 %v6893_v14 }
 0x8a4   : > { %v9029_v12 = vmax.f32 %v8751_v53, %v8752_v32 }
 0x8a5   : > { %v8396_v28 = vpop.f32.mrf.mxu3 }
 0x8a6   : > { %v9030_v1 = vrot.slane %v9029_v12, 4  ;;  %v8397_v0 = vadd.f32 %v8396_v28, %v8068_v22  ;;  %v3350_v28 = vpop.permute.xlu2 %3349 }
 0x8a7   : > { %4665 = vperm.xlu1 %10676, %v15908_v56   ;;  %vm3733_vm14 = vcmp.eq.s32.totalorder %v3350_v28, %v11093_v8 }
 0x8a8   : > { %v9031_v16 = vmax.f32 %v9029_v12, %v9030_v1  ;;  %3409 = vperm.xlu2 %10682, %v15988_v62   ;;  %v8623_v50 = vmax.f32 %v8397_v0, 0.0  ;;  %v10158_v12 = vsel %vm5011_vm5, 1.0, %v15365_v51  ;;  %v15990_v1 = vld [vmem:[#allocation150_spill] sm:$0xff]  ;;  %v10032_v49 = vsel %vm3733_vm14, 1.0, %v15365_v51 }
 0x8a9   : > { %v3338_v20 = vpop.permute.xlu1 %3337  ;;  %v5395_v6 = vpack.c.bf16 %v10158_v12, %v10158_v12 }
 0x8aa   : > { %v9032_v57 = vrot.slane %v9031_v16, 2  ;;  %vm3731_vm4 = vcmp.eq.s32.totalorder %v3338_v20, %v11093_v8  ;;  %v8753_v13 = vmul.f32 %v14523_v54, %v8623_v50 }
 0x8ab   : > { %v10030_v45 = vsel %vm3731_vm4, 1.0, %v15365_v51  ;;  %v6803_v41 = vunpack.c.l.b16 %v5395_v6 }
 0x8ac   : > { %v9033_v23 = vmax.f32 %v9031_v16, %v9032_v57  ;;  %v4115_v46 = vpack.c.bf16 %v10030_v45, %v10030_v45 }
 0x8ad   : > { %v8398_v56 = vpop.f32.mrf.mxu3 }
 0x8ae   : > { %v9034_v17 = vrot.slane %v9033_v23, 1  ;;  %v6419_v26 = vunpack.c.l.b16 %v4115_v46  ;;  %v8399_v44 = vadd.f32 %v8398_v56, %v8070_v7  ;;  %v4630_v7 = vpop.permute.xlu2 %4629 }
 0x8af   : > { %10678 = vset.pattern.permute.xlu1 %v12673_v31  ;;  %vm5013_vm9 = vcmp.eq.s32.totalorder %v4630_v7, %v11093_v8 }
 0x8b0   : > { %v9035_v39 = vmax.f32 %v9033_v23, %v9034_v17  ;;  %v8624_v58 = vmax.f32 %v8399_v44, 0.0  ;;  %v6510_v11 = vpack.c.b16 %v6420_v9, %v6419_v26  ;;  %10684 = vset.pattern.permute.xlu2 %v13003_v37  ;;  %v4636_v23 = vpop.permute.xlu0 %4635  ;;  %v10160_v50 = vsel %vm5013_vm9, 1.0, %v15365_v51 }
 0x8b1   : > { %vm5014_vm10 = vcmp.eq.s32.totalorder %v4636_v23, %v11093_v8 }
 0x8b2   : > { %v8754_v5 = vmul.f32 %v14529_v38, %v8624_v58  ;;  %8096 = vmatmul.bf16.gmra.mxu2 %v6510_v11  ;;  %v9297_v34 = vpack.c.bf16 %v9035_v39, %v9035_v39  ;;  %v10161_v26 = vsel %vm5014_vm10, 1.0, %v15365_v51  ;;  %v5397_v11 = vpack.c.bf16 %v10160_v50, %v10160_v50 }
 0x8b4   : > { %v9036_v14 = vmax.f32 %v8753_v13, %v8754_v5  ;;  %v9445_v53 = vunpack.c.l.b16 %v9297_v34  ;;  %v5398_v5 = vpack.c.bf16 %v10161_v26, %v10161_v26  ;;  %v6805_v28 = vunpack.c.l.b16 %v5397_v11 }
 0x8b5   : > { %v8072_v32 = vpop.f32.mrf.mxu2 }
 0x8b6   : > { %v9037_v47 = vrot.slane %v9036_v14, 4  ;;  %v8073_v63 = vadd.f32 %v8072_v32, %v15990_v1  ;;  %v9512_v22 = vsel %vm9489_vm8, %v9445_v53, %v14498_v33  ;;  %v4117_v53 = vpack.c.bf16 %v10032_v49, %v10032_v49 }
 0x8b7   : > { %3397 = vperm.xlu1 %10678, %v15913_v29  }
 0x8b8   : > { %v9038_v16 = vmax.f32 %v9036_v14, %v9037_v47  ;;  %4689 = vperm.xlu2 %10684, %v15988_v62   ;;  %v15991_v14 = vld [vmem:[#allocation18_spill] sm:$0xff]  ;;  %v6806_v47 = vunpack.c.l.b16 %v5398_v5  ;;  %v6421_v6 = vunpack.c.l.b16 %v4117_v53 }
 0x8b9   : > { %v4624_v35 = vpop.permute.xlu1 %4623 }
 0x8ba   : > { %v9039_v20 = vrot.slane %v9038_v16, 2  ;;  %vm5012_vm7 = vcmp.eq.s32.totalorder %v4624_v35, %v11093_v8 }
 0x8bb   : > { %v10159_v57 = vsel %vm5012_vm7, 1.0, %v15365_v51 }
 0x8bc   : > { %v9040_v0 = vmax.f32 %v9038_v16, %v9039_v20  ;;  %v5396_v45 = vpack.c.bf16 %v10159_v57, %v10159_v57  ;;  %v6895_v57 = vpack.c.b16 %v6806_v47, %v6805_v28 }
 0x8bd   : > { %v8074_v32 = vpop.f32.mrf.mxu2 }
 0x8be   : > { %v9041_v9 = vrot.slane %v9040_v0, 1  ;;  %v6804_v46 = vunpack.c.l.b16 %v5396_v45 }
 0x8bf   : > { %10681 = vset.pattern.permute.xlu1 %v12989_v2 }
 0x8c0   : > { %v6894_v33 = vpack.c.b16 %v6804_v46, %v6803_v41  ;;  %v9042_v56 = vmax.f32 %v9040_v0, %v9041_v9  ;;  %10687 = vset.pattern.permute.xlu2 %v12704_v19  ;;  %v3368_v0 = vpop.permute.xlu2 %3367 }
 0x8c1   : > { %vm3736_vm0 = vcmp.eq.s32.totalorder %v3368_v0, %v11093_v8  ;;  %v15995_v0 = vld [vmem:[#allocation175_spill] sm:$0xff] }
 0x8c2   : > { %8425 = vmatmul.bf16.gmra.mxu3 %v6894_v33  ;;  %v9298_v17 = vpack.c.bf16 %v9042_v56, %v9042_v56  ;;  %v10035_v56 = vsel %vm3736_vm0, 1.0, %v15365_v51 }
 0x8c4   : > { %v9446_v44 = vunpack.c.l.b16 %v9298_v17  ;;  %v15993_v17 = vld [vmem:[#allocation96_spill] sm:$0xff] }
 0x8c5   : > { %v8401_v39 = vpop.f32.mrf.mxu3 }
 0x8c6   : > { %v8402_v58 = vadd.f32 %v8401_v39, %v8073_v63  ;;  %v9513_v13 = vsel %vm9491_vm13, %v9446_v44, %v9512_v22  ;;  %v15992_v63 = vld [vmem:[#allocation33_spill] sm:$0xff]  ;;  %v4120_v44 = vpack.c.bf16 %v10035_v56, %v10035_v56 }
 0x8c7   : > { %4683 = vperm.xlu1 %10681, %v15913_v29   ;;  %v9543_v34 = vpack.c.b16 %v9513_v13, %v14394_v48  ;;  %v8075_v16 = vadd.f32 %v8074_v32, %v15992_v63  ;;  %v15994_v32 = vld [vmem:[#allocation98_spill] sm:$0xff] }
 0x8c8   : > { %3427 = vperm.xlu2 %10687, %v15991_v14   ;;  %v8625_v29 = vmax.f32 %v8402_v58, 0.0  ;;  %v6424_v11 = vunpack.c.l.b16 %v4120_v44 }
 0x8c9   : > { %v3356_v12 = vpop.permute.xlu1 %3355  ;;  %9611 = vmatmul.bf16.gmra.mxu0 %v9543_v34 }
 0x8ca   : > { %vm3734_vm15 = vcmp.eq.s32.totalorder %v3356_v12, %v11093_v8  ;;  %v8755_v7 = vmul.f32 %v14523_v54, %v8625_v29 }
 0x8cb   : > { %v10033_v1 = vsel %vm3734_vm15, 1.0, %v15365_v51 }
 0x8cc   : > { %v4118_v22 = vpack.c.bf16 %v10033_v1, %v10033_v1 }
 0x8cd   : > { %v8403_v35 = vpop.f32.mrf.mxu3 }
 0x8ce   : > { %v6422_v20 = vunpack.c.l.b16 %v4118_v22  ;;  %v8404_v48 = vadd.f32 %v8403_v35, %v8075_v16 }
 0x8cf   : > { %10683 = vset.pattern.permute.xlu1 %v12704_v19 }
 0x8d0   : > { %v8626_v45 = vmax.f32 %v8404_v48, 0.0  ;;  %v6511_v41 = vpack.c.b16 %v6422_v20, %v6421_v6  ;;  %10689 = vset.pattern.permute.xlu2 %v12989_v2 }
 0x8d2   : > { %v8756_v23 = vmul.f32 %v14529_v38, %v8626_v45  ;;  %8101 = vmatmul.bf16.gmra.mxu2 %v6511_v41  ;;  %8430 = vmatmul.bf16.gmra.mxu3 %v6895_v57 }
 0x8d4   : > { %v9043_v9 = vmax.f32 %v8755_v7, %v8756_v23  ;;  %v15996_v23 = vld [vmem:[#allocation67_spill] sm:$0xff] }
 0x8d5   : > { %v8077_v46 = vpop.f32.mrf.mxu2  ;;  %v8406_v33 = vpop.f32.mrf.mxu3 }
 0x8d6   : > { %v8078_v50 = vadd.f32 %v8077_v46, %v15993_v17  ;;  %v9044_v39 = vrot.slane %v9043_v9, 4 }
 0x8d7   : > { %3415 = vperm.xlu1 %10683, %v15988_v62   ;;  %v4648_v62 = vpop.permute.xlu2 %4647 }
 0x8d8   : > { %v8407_v26 = vadd.f32 %v8406_v33, %v8078_v50  ;;  %4707 = vperm.xlu2 %10689, %v15991_v14   ;;  %v9045_v34 = vmax.f32 %v9043_v9, %v9044_v39  ;;  %vm5016_vm4 = vcmp.eq.s32.totalorder %v4648_v62, %v11093_v8 }
 0x8d9   : > { %v3362_v49 = vpop.permute.xlu1 %3361  ;;  %v10163_v20 = vsel %vm5016_vm4, 1.0, %v15365_v51 }
 0x8da   : > { %vm3735_vm3 = vcmp.eq.s32.totalorder %v3362_v49, %v11093_v8  ;;  %v8627_v47 = vmax.f32 %v8407_v26, 0.0  ;;  %v9046_v16 = vrot.slane %v9045_v34, 2  ;;  %v5400_v7 = vpack.c.bf16 %v10163_v20, %v10163_v20 }
 0x8db   : > { %v10034_v58 = vsel %vm3735_vm3, 1.0, %v15365_v51 }
 0x8dc   : > { %v4119_v13 = vpack.c.bf16 %v10034_v58, %v10034_v58  ;;  %v8757_v6 = vmul.f32 %v14523_v54, %v8627_v47  ;;  %v9047_v48 = vmax.f32 %v9045_v34, %v9046_v16  ;;  %v6808_v50 = vunpack.c.l.b16 %v5400_v7  ;;  %v3374_v58 = vpop.permute.xlu0 %3373 }
 0x8dd   : > { %v8079_v5 = vpop.f32.mrf.mxu2  ;;  %v8408_v28 = vpop.f32.mrf.mxu3  ;;  %vm3737_vm7 = vcmp.eq.s32.totalorder %v3374_v58, %v11093_v8 }
 0x8de   : > { %v6423_v53 = vunpack.c.l.b16 %v4119_v13  ;;  %v8080_v12 = vadd.f32 %v8079_v5, %v15994_v32  ;;  %v9048_v46 = vrot.slane %v9047_v48, 1 }
 0x8df   : > { %10686 = vset.pattern.permute.xlu1 %v12673_v31  ;;  %v4654_v32 = vpop.permute.xlu2 %4653 }
 0x8e0   : > { %v8409_v1 = vadd.f32 %v8408_v28, %v8080_v12  ;;  %v6512_v63 = vpack.c.b16 %v6424_v11, %v6423_v53  ;;  %10692 = vset.pattern.permute.xlu2 %v13003_v37  ;;  %v9049_v44 = vmax.f32 %v9047_v48, %v9048_v46  ;;  %v10036_v28 = vsel %vm3737_vm7, 1.0, %v15365_v51 }
 0x8e1   : > { %v4121_v16 = vpack.c.bf16 %v10036_v28, %v10036_v28  ;;  %vm5017_vm15 = vcmp.eq.s32.totalorder %v4654_v32, %v11093_v8 }
 0x8e2   : > { %v8628_v22 = vmax.f32 %v8409_v1, 0.0  ;;  %8106 = vmatmul.bf16.gmra.mxu2 %v6512_v63  ;;  %v9299_v5 = vpack.c.bf16 %v9049_v44, %v9049_v44 }
 0x8e4   : > { %v8758_v35 = vmul.f32 %v14529_v38, %v8628_v22  ;;  %v9447_v62 = vunpack.c.l.b16 %v9299_v5 }
 0x8e5   : > { %v8082_v29 = vpop.f32.mrf.mxu2 }
 0x8e6   : > { %v9050_v57 = vmax.f32 %v8757_v6, %v8758_v35  ;;  %v8083_v45 = vadd.f32 %v8082_v29, %v15995_v0  ;;  %v15997_v29 = vld [vmem:[#allocation142_spill] sm:$0xff] }
 0x8e7   : > { %3421 = vperm.xlu1 %10686, %v15991_v14   ;;  %v3386_v0 = vpop.permute.xlu2 %3385 }
 0x8e8   : > { %v9051_v41 = vrot.slane %v9050_v57, 4  ;;  %4713 = vperm.xlu2 %10692, %v15996_v23   ;;  %vm3739_vm10 = vcmp.eq.s32.totalorder %v3386_v0, %v11093_v8 }
 0x8e9   : > { %v4642_v9 = vpop.permute.xlu1 %4641 }
 0x8ea   : > { %v9052_v33 = vmax.f32 %v9050_v57, %v9051_v41  ;;  %vm5015_vm5 = vcmp.eq.s32.totalorder %v4642_v9, %v11093_v8  ;;  %v6425_v57 = vunpack.c.l.b16 %v4121_v16  ;;  %v3392_v41 = vpop.permute.xlu0 %3391 }
 0x8eb   : > { %v10162_v56 = vsel %vm5015_vm5, 1.0, %v15365_v51  ;;  %vm3740_vm14 = vcmp.eq.s32.totalorder %v3392_v41, %v11093_v8 }
 0x8ec   : > { %v9053_v17 = vrot.slane %v9052_v33, 2  ;;  %v5399_v26 = vpack.c.bf16 %v10162_v56, %v10162_v56 }
 0x8ed   : > { %v8084_v22 = vpop.f32.mrf.mxu2 }
 0x8ee   : > { %v9054_v49 = vmax.f32 %v9052_v33, %v9053_v17  ;;  %v6807_v39 = vunpack.c.l.b16 %v5399_v26  ;;  %v8085_v20 = vadd.f32 %v8084_v22, %v15997_v29  ;;  %v10039_v26 = vsel %vm3740_vm14, 1.0, %v15365_v51 }
 0x8ef   : > { %10688 = vset.pattern.permute.xlu1 %v13003_v37 }
 0x8f0   : > { %v9055_v11 = vrot.slane %v9054_v49, 1  ;;  %v6896_v13 = vpack.c.b16 %v6808_v50, %v6807_v39  ;;  %10694 = vset.pattern.permute.xlu2 %v12673_v31  ;;  %v10038_v50 = vsel %vm3739_vm10, 1.0, %v15365_v51 }
 0x8f1   : > { %v4123_v5 = vpack.c.bf16 %v10038_v50, %v10038_v50 }
 0x8f2   : > { %v9056_v34 = vmax.f32 %v9054_v49, %v9055_v11  ;;  %8435 = vmatmul.bf16.gmra.mxu3 %v6896_v13  ;;  %v10164_v49 = vsel %vm5017_vm15, 1.0, %v15365_v51  ;;  %v15998_v11 = vld [vmem:[#allocation104_spill] sm:$0xff] }
 0x8f3   : > { %v5401_v32 = vpack.c.bf16 %v10164_v49, %v10164_v49 }
 0x8f4   : > { %v9300_v53 = vpack.c.bf16 %v9056_v34, %v9056_v34  ;;  %v4124_v34 = vpack.c.bf16 %v10039_v26, %v10039_v26 }
 0x8f5   : > { %v8411_v12 = vpop.f32.mrf.mxu3 }
 0x8f6   : > { %v9448_v47 = vunpack.c.l.b16 %v9300_v53  ;;  %v8412_v1 = vadd.f32 %v8411_v12, %v8083_v45 }
 0x8f7   : > { %4701 = vperm.xlu1 %10688, %v15991_v14  }
 0x8f8   : > { %v14585_v63 = vsel %vm9479_vm11, %v9448_v47, %v9447_v62  ;;  %3445 = vperm.xlu2 %10694, %v15930_v3   ;;  %v8629_v14 = vmax.f32 %v8412_v1, 0.0  ;;  %v6427_v62 = vunpack.c.l.b16 %v4123_v5  ;;  %v6428_v47 = vunpack.c.l.b16 %v4124_v34 }
 0x8f9   : > { %v3380_v6 = vpop.permute.xlu1 %3379 }
 0x8fa   : > { %vm3738_vm9 = vcmp.eq.s32.totalorder %v3380_v6, %v11093_v8  ;;  %v8759_v56 = vmul.f32 %v14523_v54, %v8629_v14 }
 0x8fb   : > { %v10037_v35 = vsel %vm3738_vm9, 1.0, %v15365_v51 }
 0x8fc   : > { %v4122_v48 = vpack.c.bf16 %v10037_v35, %v10037_v35  ;;  %v6809_v35 = vunpack.c.l.b16 %v5401_v32 }
 0x8fd   : > { %v8413_v45 = vpop.f32.mrf.mxu3 }
 0x8fe   : > { %v6426_v7 = vunpack.c.l.b16 %v4122_v48  ;;  %v8414_v9 = vadd.f32 %v8413_v45, %v8085_v20  ;;  %v6514_v48 = vpack.c.b16 %v6428_v47, %v6427_v62 }
 0x8ff   : > { %10691 = vset.pattern.permute.xlu1 %v12704_v19 }
 0x900   : > { %v8630_v46 = vmax.f32 %v8414_v9, 0.0  ;;  %v6513_v33 = vpack.c.b16 %v6426_v7, %v6425_v57  ;;  %10697 = vset.pattern.permute.xlu2 %v12989_v2  ;;  %v4672_v57 = vpop.permute.xlu2 %4671 }
 0x901   : > { %vm5020_vm3 = vcmp.eq.s32.totalorder %v4672_v57, %v11093_v8 }
 0x902   : > { %v8760_v17 = vmul.f32 %v14529_v38, %v8630_v46  ;;  %8111 = vmatmul.bf16.gmra.mxu2 %v6513_v33  ;;  %v10167_v46 = vsel %vm5020_vm3, 1.0, %v15365_v51  ;;  %v15999_v33 = vld [vmem:[#allocation28_spill] sm:$0xff] }
 0x903   : > { %v5404_v26 = vpack.c.bf16 %v10167_v46, %v10167_v46 }
 0x904   : > { %v9057_v44 = vmax.f32 %v8759_v56, %v8760_v17 }
 0x905   : > { %v8087_v39 = vpop.f32.mrf.mxu2 }
 0x906   : > { %v9058_v58 = vrot.slane %v9057_v44, 4  ;;  %v8088_v13 = vadd.f32 %v8087_v39, %v15998_v11  ;;  %v16000_v39 = vld [vmem:[#allocation64_spill] sm:$0xff]  ;;  %v6812_v11 = vunpack.c.l.b16 %v5404_v26  ;;  %v4678_v26 = vpop.permute.xlu0 %4677 }
 0x907   : > { %3439 = vperm.xlu1 %10691, %v15996_v23   ;;  %vm5021_vm9 = vcmp.eq.s32.totalorder %v4678_v26, %v11093_v8 }
 0x908   : > { %v9059_v53 = vmax.f32 %v9057_v44, %v9058_v58  ;;  %4731 = vperm.xlu2 %10697, %v15930_v3  }
 0x909   : > { %v4660_v12 = vpop.permute.xlu1 %4659 }
 0x90a   : > { %v9060_v28 = vrot.slane %v9059_v53, 2  ;;  %vm5018_vm0 = vcmp.eq.s32.totalorder %v4660_v12, %v11093_v8 }
 0x90b   : > { %v10165_v1 = vsel %vm5018_vm0, 1.0, %v15365_v51 }
 0x90c   : > { %v9061_v16 = vmax.f32 %v9059_v53, %v9060_v28  ;;  %v5402_v22 = vpack.c.bf16 %v10165_v1, %v10165_v1 }
 0x90d   : > { %v8089_v6 = vpop.f32.mrf.mxu2 }
 0x90e   : > { %v9062_v29 = vrot.slane %v9061_v16, 1  ;;  %v6810_v20 = vunpack.c.l.b16 %v5402_v22  ;;  %v8090_v58 = vadd.f32 %v8089_v6, %v16000_v39 }
 0x90f   : > { %10693 = vset.pattern.permute.xlu1 %v12989_v2 }
 0x910   : > { %v9063_v0 = vmax.f32 %v9061_v16, %v9062_v29  ;;  %v6897_v45 = vpack.c.b16 %v6810_v20, %v6809_v35  ;;  %10699 = vset.pattern.permute.xlu2 %v12704_v19 }
 0x912   : > { %v9301_v41 = vpack.c.bf16 %v9063_v0, %v9063_v0  ;;  %8116 = vmatmul.bf16.gmra.mxu2 %v6514_v48  ;;  %8440 = vmatmul.bf16.gmra.mxu3 %v6897_v45  ;;  %v16001_v45 = vld [vmem:[#allocation65_spill] sm:$0xff] }
 0x914   : > { %v9449_v14 = vunpack.c.l.b16 %v9301_v41 }
 0x915   : > { %v8092_v7 = vpop.f32.mrf.mxu2  ;;  %v8416_v9 = vpop.f32.mrf.mxu3 }
 0x916   : > { %v8093_v56 = vadd.f32 %v8092_v7, %v15999_v33  ;;  %v8417_v17 = vadd.f32 %v8416_v9, %v8088_v13  ;;  %v14613_v50 = vsel %vm9481_vm1, %v9449_v14, %v14585_v63  ;;  %v3404_v63 = vpop.permute.xlu2 %3403 }
 0x917   : > { %4719 = vperm.xlu1 %10693, %v15996_v23   ;;  %vm3742_vm5 = vcmp.eq.s32.totalorder %v3404_v63, %v11093_v8 }
 0x918   : > { %3463 = vperm.xlu2 %10699, %v15932_v59   ;;  %v8631_v13 = vmax.f32 %v8417_v17, 0.0  ;;  %v10041_v16 = vsel %vm3742_vm5, 1.0, %v15365_v51 }
 0x919   : > { %v4666_v44 = vpop.permute.xlu1 %4665  ;;  %v4126_v29 = vpack.c.bf16 %v10041_v16, %v10041_v16 }
 0x91a   : > { %vm5019_vm4 = vcmp.eq.s32.totalorder %v4666_v44, %v11093_v8  ;;  %v8761_v28 = vmul.f32 %v14523_v54, %v8631_v13 }
 0x91b   : > { %v10166_v49 = vsel %vm5019_vm4, 1.0, %v15365_v51  ;;  %v6430_v7 = vunpack.c.l.b16 %v4126_v29 }
 0x91c   : > { %v5403_v5 = vpack.c.bf16 %v10166_v49, %v10166_v49 }
 0x91d   : > { %v8418_v34 = vpop.f32.mrf.mxu3  ;;  %v8094_v20 = vpop.f32.mrf.mxu2 }
 0x91e   : > { %v6811_v53 = vunpack.c.l.b16 %v5403_v5  ;;  %v8419_v32 = vadd.f32 %v8418_v34, %v8090_v58  ;;  %v8095_v41 = vadd.f32 %v8094_v20, %v16001_v45  ;;  %v3410_v63 = vpop.permute.xlu2 %3409 }
 0x91f   : > { %10696 = vset.pattern.permute.xlu1 %v13003_v37  ;;  %vm3743_vm0 = vcmp.eq.s32.totalorder %v3410_v63, %v11093_v8 }
 0x920   : > { %v8632_v23 = vmax.f32 %v8419_v32, 0.0  ;;  %v6898_v12 = vpack.c.b16 %v6812_v11, %v6811_v53  ;;  %10702 = vset.pattern.permute.xlu2 %v12673_v31  ;;  %v10168_v32 = vsel %vm5021_vm9, 1.0, %v15365_v51 }
 0x922   : > { %v8762_v62 = vmul.f32 %v14529_v38, %v8632_v23  ;;  %8445 = vmatmul.bf16.gmra.mxu3 %v6898_v12  ;;  %v16002_v12 = vld [vmem:[#allocation108_spill] sm:$0xff] }
 0x924   : > { %v9064_v47 = vmax.f32 %v8761_v28, %v8762_v62 }
 0x925   : > { %v8421_v1 = vpop.f32.mrf.mxu3 }
 0x926   : > { %v9065_v22 = vrot.slane %v9064_v47, 4  ;;  %v8422_v6 = vadd.f32 %v8421_v1, %v8093_v56  ;;  %v5405_v1 = vpack.c.bf16 %v10168_v32, %v10168_v32 }
 0x927   : > { %4725 = vperm.xlu1 %10696, %v15930_v3  }
 0x928   : > { %v9066_v35 = vmax.f32 %v9064_v47, %v9065_v22  ;;  %3469 = vperm.xlu2 %10702, %v15936_v10   ;;  %v8633_v56 = vmax.f32 %v8422_v6, 0.0  ;;  %v6813_v20 = vunpack.c.l.b16 %v5405_v1 }
 0x929   : > { %v3398_v48 = vpop.permute.xlu1 %3397 }
 0x92a   : > { %v9067_v57 = vrot.slane %v9066_v35, 2  ;;  %vm3741_vm7 = vcmp.eq.s32.totalorder %v3398_v48, %v11093_v8  ;;  %v8763_v11 = vmul.f32 %v14523_v54, %v8633_v56  ;;  %v4690_v48 = vpop.permute.xlu2 %4689 }
 0x92b   : > { %v10040_v0 = vsel %vm3741_vm7, 1.0, %v15365_v51  ;;  %vm5023_vm14 = vcmp.eq.s32.totalorder %v4690_v48, %v11093_v8 }
 0x92c   : > { %v9068_v14 = vmax.f32 %v9066_v35, %v9067_v57  ;;  %v4125_v9 = vpack.c.bf16 %v10040_v0, %v10040_v0  ;;  %v4696_v57 = vpop.permute.xlu0 %4695 }
 0x92d   : > { %v8423_v46 = vpop.f32.mrf.mxu3  ;;  %vm5024_vm15 = vcmp.eq.s32.totalorder %v4696_v57, %v11093_v8 }
 0x92e   : > { %v9069_v33 = vrot.slane %v9068_v14, 1  ;;  %v6429_v3 = vunpack.c.l.b16 %v4125_v9  ;;  %v8424_v17 = vadd.f32 %v8423_v46, %v8095_v41  ;;  %v10171_v9 = vsel %vm5024_vm15, 1.0, %v15365_v51 }
 0x92f   : > { %10698 = vset.pattern.permute.xlu1 %v12673_v31 }
 0x930   : > { %v9070_v44 = vmax.f32 %v9068_v14, %v9069_v33  ;;  %v8634_v49 = vmax.f32 %v8424_v17, 0.0  ;;  %v6515_v39 = vpack.c.b16 %v6430_v7, %v6429_v3  ;;  %10704 = vset.pattern.permute.xlu2 %v13003_v37  ;;  %v10170_v7 = vsel %vm5023_vm14, 1.0, %v15365_v51 }
 0x931   : > { %v10042_v33 = vsel %vm3743_vm0, 1.0, %v15365_v51  ;;  %v5407_v26 = vpack.c.bf16 %v10170_v7, %v10170_v7 }
 0x932   : > { %v9302_v58 = vpack.c.bf16 %v9070_v44, %v9070_v44  ;;  %v8764_v5 = vmul.f32 %v14529_v38, %v8634_v49  ;;  %8121 = vmatmul.bf16.gmra.mxu2 %v6515_v39  ;;  %v5408_v44 = vpack.c.bf16 %v10171_v9, %v10171_v9  ;;  %v10779_v39 = vld [vmem:[%s15147_s5] ss:$0 sm:$0xff]  ;;  %v16005_v9 = vld [vmem:[#allocation111_spill] sm:$0xff] }
 0x934   : > { %v9450_v34 = vunpack.c.l.b16 %v9302_v58  ;;  %v9071_v13 = vmax.f32 %v8763_v11, %v8764_v5  ;;  %v16003_v11 = vld [vmem:[#allocation20_spill] sm:$0xff]  ;;  %v4127_v5 = vpack.c.bf16 %v10042_v33, %v10042_v33  ;;  %v6816_v32 = vunpack.c.l.b16 %v5408_v44 }
 0x935   : > { %v8097_v53 = vpop.f32.mrf.mxu2 }
 0x936   : > { %v9072_v23 = vrot.slane %v9071_v13, 4  ;;  %v8098_v28 = vadd.f32 %v8097_v53, %v16002_v12  ;;  %v9516_v62 = vsel %vm9483_vm6, %v9450_v34, %v14613_v50  ;;  %v6815_v53 = vunpack.c.l.b16 %v5407_v26 }
 0x937   : > { %3457 = vperm.xlu1 %10698, %v15932_v59  }
 0x938   : > { %v9073_v47 = vmax.f32 %v9071_v13, %v9072_v23  ;;  %4749 = vperm.xlu2 %10704, %v15936_v10   ;;  %v16004_v23 = vld [vmem:[#allocation29_spill] sm:$0xff] }
 0x939   : > { %v4684_v16 = vpop.permute.xlu1 %4683 }
 0x93a   : > { %v9074_v22 = vrot.slane %v9073_v47, 2  ;;  %vm5022_vm10 = vcmp.eq.s32.totalorder %v4684_v16, %v11093_v8 }
 0x93b   : > { %v10169_v6 = vsel %vm5022_vm10, 1.0, %v15365_v51 }
 0x93c   : > { %v9075_v35 = vmax.f32 %v9073_v47, %v9074_v22  ;;  %v5406_v29 = vpack.c.bf16 %v10169_v6, %v10169_v6  ;;  %v6900_v6 = vpack.c.b16 %v6816_v32, %v6815_v53  ;;  %v16006_v32 = vld [vmem:[#allocation153_spill] sm:$0xff] }
 0x93d   : > { %v8099_v34 = vpop.f32.mrf.mxu2 }
 0x93e   : > { %v9076_v0 = vrot.slane %v9075_v35, 1  ;;  %v6814_v45 = vunpack.c.l.b16 %v5406_v29  ;;  %v8100_v12 = vadd.f32 %v8099_v34, %v16004_v23  ;;  %v3428_v29 = vpop.permute.xlu2 %3427 }
 0x93f   : > { %10701 = vset.pattern.permute.xlu1 %v12989_v2  ;;  %vm3746_vm4 = vcmp.eq.s32.totalorder %v3428_v29, %v11093_v8 }
 0x940   : > { %v9077_v50 = vmax.f32 %v9075_v35, %v9076_v0  ;;  %v6899_v41 = vpack.c.b16 %v6814_v45, %v6813_v20  ;;  %10707 = vset.pattern.permute.xlu2 %v12704_v19 }
 0x942   : > { %v9303_v14 = vpack.c.bf16 %v9077_v50, %v9077_v50  ;;  %8450 = vmatmul.bf16.gmra.mxu3 %v6899_v41 }
 0x944   : > { %v9451_v46 = vunpack.c.l.b16 %v9303_v14  ;;  %v10045_v14 = vsel %vm3746_vm4, 1.0, %v15365_v51 }
 0x945   : > { %v8426_v56 = vpop.f32.mrf.mxu3 }
 0x946   : > { %v8427_v3 = vadd.f32 %v8426_v56, %v8098_v28  ;;  %v9612_v17 = vpop.f32.mrf.mxu0  ;;  %v14653_v49 = vsel %vm9485_vm12, %v9451_v46, %v9516_v62  ;;  %v6431_v62 = vunpack.c.l.b16 %v4127_v5  ;;  %v4708_v23 = vpop.permute.xlu2 %4707 }
 0x947   : > { %v9613_v58 = vadd.f32 %v10779_v39, %v9612_v17  ;;  %4743 = vperm.xlu1 %10701, %v15932_v59   ;;  %vm5026_vm7 = vcmp.eq.s32.totalorder %v4708_v23, %v11093_v8 }
 0x948   : > { %3487 = vperm.xlu2 %10707, %v16003_v11   ;;  %v8635_v1 = vmax.f32 %v8427_v3, 0.0  ;;  %v4130_v3 = vpack.c.bf16 %v10045_v14, %v10045_v14  ;;  %v10173_v29 = vsel %vm5026_vm7, 1.0, %v15365_v51 }
 0x949   : > { %9629 = vst [vmem:[%s14390_s29 + $0x10] sm:$0xff] %v9613_v58  ;;  %v3416_v13 = vpop.permute.xlu1 %3415 }
 0x94a   : > { %vm3744_vm3 = vcmp.eq.s32.totalorder %v3416_v13, %v11093_v8  ;;  %v8765_v57 = vmul.f32 %v14523_v54, %v8635_v1  ;;  %v6434_v58 = vunpack.c.l.b16 %v4130_v3 }
 0x94b   : > { %v10043_v63 = vsel %vm3744_vm3, 1.0, %v15365_v51 }
 0x94c   : > { %v4128_v28 = vpack.c.bf16 %v10043_v63, %v10043_v63 }
 0x94d   : > { %v8428_v47 = vpop.f32.mrf.mxu3 }
 0x94e   : > { %v6432_v59 = vunpack.c.l.b16 %v4128_v28  ;;  %v8429_v16 = vadd.f32 %v8428_v47, %v8100_v12  ;;  %v9614_v22 = vpop.f32.mrf.mxu0 }
 0x94f   : > { %v9615_v35 = vadd.f32 %v10779_v39, %v9614_v22  ;;  %10703 = vset.pattern.permute.xlu1 %v12704_v19 }
 0x950   : > { %v8636_v20 = vmax.f32 %v8429_v16, 0.0  ;;  %v6516_v48 = vpack.c.b16 %v6432_v59, %v6431_v62  ;;  %10709 = vset.pattern.permute.xlu2 %v12989_v2 }
 0x951   : > { %9630 = vst [vmem:[%s14390_s29 + $0x18] sm:$0xff] %v9615_v35 }
 0x952   : > { %v8766_v0 = vmul.f32 %v14529_v38, %v8636_v20  ;;  %8126 = vmatmul.bf16.gmra.mxu2 %v6516_v48  ;;  %8455 = vmatmul.bf16.gmra.mxu3 %v6900_v6  ;;  %v16007_v48 = vld [vmem:[#allocation30_spill] sm:$0xff] }
 0x954   : > { %v9078_v45 = vmax.f32 %v8765_v57, %v8766_v0 }
 0x955   : > { %v8102_v50 = vpop.f32.mrf.mxu2  ;;  %v8431_v41 = vpop.f32.mrf.mxu3 }
 0x956   : > { %v9079_v7 = vrot.slane %v9078_v45, 4  ;;  %v8103_v46 = vadd.f32 %v8102_v50, %v16005_v9  ;;  %v5410_v50 = vpack.c.bf16 %v10173_v29, %v10173_v29 }
 0x957   : > { %3475 = vperm.xlu1 %10703, %v15936_v10  }
 0x958   : > { %v9080_v33 = vmax.f32 %v9078_v45, %v9079_v7  ;;  %v8432_v56 = vadd.f32 %v8431_v41, %v8103_v46  ;;  %4767 = vperm.xlu2 %10709, %v16003_v11   ;;  %v6818_v46 = vunpack.c.l.b16 %v5410_v50 }
 0x959   : > { %v3422_v17 = vpop.permute.xlu1 %3421 }
 0x95a   : > { %v9081_v26 = vrot.slane %v9080_v33, 2  ;;  %vm3745_vm5 = vcmp.eq.s32.totalorder %v3422_v17, %v11093_v8  ;;  %v8637_v28 = vmax.f32 %v8432_v56, 0.0 }
 0x95b   : > { %v10044_v44 = vsel %vm3745_vm5, 1.0, %v15365_v51 }
 0x95c   : > { %v9082_v39 = vmax.f32 %v9080_v33, %v9081_v26  ;;  %v4129_v5 = vpack.c.bf16 %v10044_v44, %v10044_v44  ;;  %v8767_v22 = vmul.f32 %v14523_v54, %v8637_v28  ;;  %v16008_v28 = vld [vmem:[#allocation113_spill] sm:$0xff] }
 0x95d   : > { %v8104_v34 = vpop.f32.mrf.mxu2  ;;  %v8433_v10 = vpop.f32.mrf.mxu3 }
 0x95e   : > { %v9083_v13 = vrot.slane %v9082_v39, 1  ;;  %v6433_v53 = vunpack.c.l.b16 %v4129_v5  ;;  %v8105_v63 = vadd.f32 %v8104_v34, %v16006_v32 }
 0x95f   : > { %10706 = vset.pattern.permute.xlu1 %v12673_v31 }
 0x960   : > { %v9084_v12 = vmax.f32 %v9082_v39, %v9083_v13  ;;  %v8434_v62 = vadd.f32 %v8433_v10, %v8105_v63  ;;  %v6517_v47 = vpack.c.b16 %v6434_v58, %v6433_v53  ;;  %10712 = vset.pattern.permute.xlu2 %v13003_v37  ;;  %v4714_v39 = vpop.permute.xlu2 %4713 }
 0x961   : > { %vm5027_vm3 = vcmp.eq.s32.totalorder %v4714_v39, %v11093_v8 }
 0x962   : > { %v9304_v1 = vpack.c.bf16 %v9084_v12, %v9084_v12  ;;  %v8638_v59 = vmax.f32 %v8434_v62, 0.0  ;;  %8131 = vmatmul.bf16.gmra.mxu2 %v6517_v47 }
 0x964   : > { %v9452_v16 = vunpack.c.l.b16 %v9304_v1  ;;  %v8768_v6 = vmul.f32 %v14529_v38, %v8638_v59 }
 0x965   : > { %v8107_v35 = vpop.f32.mrf.mxu2 }
 0x966   : > { %v9085_v20 = vmax.f32 %v8767_v22, %v8768_v6  ;;  %v8108_v57 = vadd.f32 %v8107_v35, %v16007_v48  ;;  %v9518_v0 = vsel %vm9487_vm2, %v9452_v16, %v14653_v49  ;;  %v3434_v49 = vpop.permute.xlu0 %3433 }
 0x967   : > { %3481 = vperm.xlu1 %10706, %v16003_v11   ;;  %vm3747_vm10 = vcmp.eq.s32.totalorder %v3434_v49, %v11093_v8 }
 0x968   : > { %v9086_v45 = vrot.slane %v9085_v20, 4  ;;  %4773 = vperm.xlu2 %10712, %v15939_v18   ;;  %v10046_v34 = vsel %vm3747_vm10, 1.0, %v15365_v51  ;;  %v3446_v59 = vpop.permute.xlu2 %3445 }
 0x969   : > { %v4702_v41 = vpop.permute.xlu1 %4701  ;;  %v4131_v32 = vpack.c.bf16 %v10046_v34, %v10046_v34  ;;  %vm3749_vm15 = vcmp.eq.s32.totalorder %v3446_v59, %v11093_v8 }
 0x96a   : > { %v9087_v14 = vmax.f32 %v9085_v20, %v9086_v45  ;;  %vm5025_vm9 = vcmp.eq.s32.totalorder %v4702_v41, %v11093_v8  ;;  %v10174_v41 = vsel %vm5027_vm3, 1.0, %v15365_v51 }
 0x96b   : > { %v10172_v7 = vsel %vm5025_vm9, 1.0, %v15365_v51  ;;  %v6435_v1 = vunpack.c.l.b16 %v4131_v32  ;;  %v5411_v49 = vpack.c.bf16 %v10174_v41, %v10174_v41 }
 0x96c   : > { %v9088_v9 = vrot.slane %v9087_v14, 2  ;;  %v5409_v33 = vpack.c.bf16 %v10172_v7, %v10172_v7 }
 0x96d   : > { %v8109_v10 = vpop.f32.mrf.mxu2 }
 0x96e   : > { %v9089_v56 = vmax.f32 %v9087_v14, %v9088_v9  ;;  %v6817_v3 = vunpack.c.l.b16 %v5409_v33  ;;  %v8110_v62 = vadd.f32 %v8109_v10, %v16008_v28  ;;  %v3452_v22 = vpop.permute.xlu0 %3451  ;;  %v16009_v9 = vld [vmem:[#allocation82_spill] sm:$0xff] }
 0x96f   : > { %10708 = vset.pattern.permute.xlu1 %v13003_v37  ;;  %vm3750_vm0 = vcmp.eq.s32.totalorder %v3452_v22, %v11093_v8 }
 0x970   : > { %v9090_v17 = vrot.slane %v9089_v56, 1  ;;  %v6901_v26 = vpack.c.b16 %v6818_v46, %v6817_v3  ;;  %10714 = vset.pattern.permute.xlu2 %v12673_v31  ;;  %v10049_v45 = vsel %vm3750_vm0, 1.0, %v15365_v51 }
 0x972   : > { %v9091_v44 = vmax.f32 %v9089_v56, %v9090_v17  ;;  %8460 = vmatmul.bf16.gmra.mxu3 %v6901_v26  ;;  %v4134_v56 = vpack.c.bf16 %v10049_v45, %v10049_v45 }
 0x974   : > { %v9305_v58 = vpack.c.bf16 %v9091_v44, %v9091_v44  ;;  %v6438_v39 = vunpack.c.l.b16 %v4134_v56 }
 0x975   : > { %v8436_v5 = vpop.f32.mrf.mxu3 }
 0x976   : > { %v8437_v13 = vadd.f32 %v8436_v5, %v8108_v57  ;;  %v9453_v53 = vunpack.c.l.b16 %v9305_v58 }
 0x977   : > { %4761 = vperm.xlu1 %10708, %v16003_v11  }
 0x978   : > { %3505 = vperm.xlu2 %10714, %v15943_v4   ;;  %v14697_v63 = vsel %vm9489_vm8, %v9453_v53, %v9518_v0  ;;  %v8639_v11 = vmax.f32 %v8437_v13, 0.0  ;;  %v10048_v0 = vsel %vm3749_vm15, 1.0, %v15365_v51  ;;  %v6819_v53 = vunpack.c.l.b16 %v5411_v49 }
 0x979   : > { %v3440_v23 = vpop.permute.xlu1 %3439  ;;  %v4133_v33 = vpack.c.bf16 %v10048_v0, %v10048_v0  ;;  %v16011_v0 = vld [vmem:[#allocation31_spill] sm:$0xff] }
 0x97a   : > { %vm3748_vm14 = vcmp.eq.s32.totalorder %v3440_v23, %v11093_v8  ;;  %v8769_v48 = vmul.f32 %v14523_v54, %v8639_v11  ;;  %v16010_v11 = vld [vmem:[#allocation3_spill] sm:$0xff] }
 0x97b   : > { %v10047_v12 = vsel %vm3748_vm14, 1.0, %v15365_v51  ;;  %v6437_v44 = vunpack.c.l.b16 %v4133_v33 }
 0x97c   : > { %v4132_v47 = vpack.c.bf16 %v10047_v12, %v10047_v12  ;;  %v4732_v12 = vpop.permute.xlu2 %4731 }
 0x97d   : > { %v8438_v16 = vpop.f32.mrf.mxu3  ;;  %v6519_v23 = vpack.c.b16 %v6438_v39, %v6437_v44  ;;  %vm5030_vm5 = vcmp.eq.s32.totalorder %v4732_v12, %v11093_v8 }
 0x97e   : > { %v6436_v6 = vunpack.c.l.b16 %v4132_v47  ;;  %v8439_v35 = vadd.f32 %v8438_v16, %v8110_v62  ;;  %v10177_v22 = vsel %vm5030_vm5, 1.0, %v15365_v51 }
 0x97f   : > { %10711 = vset.pattern.permute.xlu1 %v12704_v19 }
 0x980   : > { %v8640_v29 = vmax.f32 %v8439_v35, 0.0  ;;  %v6518_v20 = vpack.c.b16 %v6436_v6, %v6435_v1  ;;  %10717 = vset.pattern.permute.xlu2 %v12989_v2 }
 0x982   : > { %v8770_v57 = vmul.f32 %v14529_v38, %v8640_v29  ;;  %8136 = vmatmul.bf16.gmra.mxu2 %v6518_v20  ;;  %v5414_v20 = vpack.c.bf16 %v10177_v22, %v10177_v22 }
 0x984   : > { %v9092_v50 = vmax.f32 %v8769_v48, %v8770_v57 }
 0x985   : > { %v8112_v14 = vpop.f32.mrf.mxu2 }
 0x986   : > { %v9093_v7 = vrot.slane %v9092_v50, 4  ;;  %v8113_v46 = vadd.f32 %v8112_v14, %v16009_v9 }
 0x987   : > { %3499 = vperm.xlu1 %10711, %v15939_v18  }
 0x988   : > { %v9094_v3 = vmax.f32 %v9092_v50, %v9093_v7  ;;  %4791 = vperm.xlu2 %10717, %v15943_v4   ;;  %v6822_v50 = vunpack.c.l.b16 %v5414_v20 }
 0x989   : > { %v4720_v17 = vpop.permute.xlu1 %4719 }
 0x98a   : > { %v9095_v26 = vrot.slane %v9094_v3, 2  ;;  %vm5028_vm4 = vcmp.eq.s32.totalorder %v4720_v17, %v11093_v8 }
 0x98b   : > { %v10175_v58 = vsel %vm5028_vm4, 1.0, %v15365_v51 }
 0x98c   : > { %v9096_v5 = vmax.f32 %v9094_v3, %v9095_v26  ;;  %v5412_v34 = vpack.c.bf16 %v10175_v58, %v10175_v58 }
 0x98d   : > { %v8114_v13 = vpop.f32.mrf.mxu2 }
 0x98e   : > { %v9097_v32 = vrot.slane %v9096_v5, 1  ;;  %v6820_v10 = vunpack.c.l.b16 %v5412_v34  ;;  %v8115_v45 = vadd.f32 %v8114_v13, %v16011_v0 }
 0x98f   : > { %10713 = vset.pattern.permute.xlu1 %v12989_v2 }
 0x990   : > { %v6902_v28 = vpack.c.b16 %v6820_v10, %v6819_v53  ;;  %10719 = vset.pattern.permute.xlu2 %v12704_v19  ;;  %v9098_v62 = vmax.f32 %v9096_v5, %v9097_v32 }
 0x992   : > { %8141 = vmatmul.bf16.gmra.mxu2 %v6519_v23  ;;  %8465 = vmatmul.bf16.gmra.mxu3 %v6902_v28  ;;  %v9306_v47 = vpack.c.bf16 %v9098_v62, %v9098_v62 }
 0x994   : > { %v9454_v1 = vunpack.c.l.b16 %v9306_v47 }
 0x995   : > { %v8117_v59 = vpop.f32.mrf.mxu2  ;;  %v8441_v16 = vpop.f32.mrf.mxu3 }
 0x996   : > { %v8118_v6 = vadd.f32 %v8117_v59, %v16010_v11  ;;  %v8442_v35 = vadd.f32 %v8441_v16, %v8113_v46  ;;  %v14724_v29 = vsel %vm9491_vm13, %v9454_v1, %v14697_v63  ;;  %v3464_v63 = vpop.permute.xlu2 %3463  ;;  %v14747_v16 = vld [vmem:[%s15145_s3] sm:$0xff]  ;;  %v14753_v11 = vld [vmem:[%s15145_s3 + $0x8] sm:$0xff] }
 0x997   : > { %4779 = vperm.xlu1 %10713, %v15939_v18   ;;  %vm3752_vm9 = vcmp.eq.s32.totalorder %v3464_v63, %v11093_v8 }
 0x998   : > { %3523 = vperm.xlu2 %10719, %v15948_v43   ;;  %v8641_v7 = vmax.f32 %v8442_v35, 0.0  ;;  %v10051_v26 = vsel %vm3752_vm9, 1.0, %v15365_v51 }
 0x999   : > { %v4726_v48 = vpop.permute.xlu1 %4725  ;;  %v4136_v58 = vpack.c.bf16 %v10051_v26, %v10051_v26 }
 0x99a   : > { %vm5029_vm7 = vcmp.eq.s32.totalorder %v4726_v48, %v11093_v8  ;;  %v8771_v56 = vmul.f32 %v14523_v54, %v8641_v7 }
 0x99b   : > { %v10176_v57 = vsel %vm5029_vm7, 1.0, %v15365_v51  ;;  %v6440_v32 = vunpack.c.l.b16 %v4136_v58 }
 0x99c   : > { %v5413_v41 = vpack.c.bf16 %v10176_v57, %v10176_v57 }
 0x99d   : > { %v8443_v14 = vpop.f32.mrf.mxu3  ;;  %v8119_v5 = vpop.f32.mrf.mxu2 }
 0x99e   : > { %v6821_v9 = vunpack.c.l.b16 %v5413_v41  ;;  %v8444_v46 = vadd.f32 %v8443_v14, %v8115_v45  ;;  %v3470_v48 = vpop.permute.xlu2 %3469 }
 0x99f   : > { %10716 = vset.pattern.permute.xlu1 %v13003_v37  ;;  %vm3753_vm4 = vcmp.eq.s32.totalorder %v3470_v48, %v11093_v8  ;;  %v16015_v48 = vld [vmem:[#allocation54_spill] sm:$0xff] }
 0x9a0   : > { %v8642_v18 = vmax.f32 %v8444_v46, 0.0  ;;  %v6903_v33 = vpack.c.b16 %v6822_v50, %v6821_v9  ;;  %10722 = vset.pattern.permute.xlu2 %v12673_v31  ;;  %v16013_v50 = vld [vmem:[#allocation37_spill] sm:$0xff] }
 0x9a2   : > { %v8772_v3 = vmul.f32 %v14529_v38, %v8642_v18  ;;  %8470 = vmatmul.bf16.gmra.mxu3 %v6903_v33  ;;  %v16012_v38 = vld [vmem:[#allocation85_spill] sm:$0xff] }
 0x9a3   : > { %v8120_v13 = vadd.f32 %v8119_v5, %v16012_v38 }
 0x9a4   : > { %v9099_v49 = vmax.f32 %v8771_v56, %v8772_v3 }
 0x9a5   : > { %v8446_v17 = vpop.f32.mrf.mxu3 }
 0x9a6   : > { %v8447_v44 = vadd.f32 %v8446_v17, %v8118_v6  ;;  %v9100_v39 = vrot.slane %v9099_v49, 4  ;;  %v4750_v17 = vpop.permute.xlu2 %4749 }
 0x9a7   : > { %4785 = vperm.xlu1 %10716, %v15943_v4   ;;  %v4738_v4 = vpop.permute.xlu0 %4737  ;;  %vm5033_vm0 = vcmp.eq.s32.totalorder %v4750_v17, %v11093_v8 }
 0x9a8   : > { %3529 = vperm.xlu2 %10722, %v15951_v15   ;;  %v9101_v53 = vmax.f32 %v9099_v49, %v9100_v39  ;;  %v8643_v12 = vmax.f32 %v8447_v44, 0.0  ;;  %vm5031_vm14 = vcmp.eq.s32.totalorder %v4738_v4, %v11093_v8  ;;  %v10180_v38 = vsel %vm5033_vm0, 1.0, %v15365_v51 }
 0x9a9   : > { %v3458_v34 = vpop.permute.xlu1 %3457  ;;  %v10178_v0 = vsel %vm5031_vm14, 1.0, %v15365_v51 }
 0x9aa   : > { %vm3751_vm10 = vcmp.eq.s32.totalorder %v3458_v34, %v11093_v8  ;;  %v9102_v47 = vrot.slane %v9101_v53, 2  ;;  %v8773_v22 = vmul.f32 %v14747_v16, %v8643_v12  ;;  %v5415_v9 = vpack.c.bf16 %v10178_v0, %v10178_v0 }
 0x9ab   : > { %v10050_v54 = vsel %vm3751_vm10, 1.0, %v15365_v51 }
 0x9ac   : > { %v4135_v10 = vpack.c.bf16 %v10050_v54, %v10050_v54  ;;  %v9103_v35 = vmax.f32 %v9101_v53, %v9102_v47  ;;  %v6823_v49 = vunpack.c.l.b16 %v5415_v9  ;;  %v16014_v47 = vld [vmem:[#allocation21_spill] sm:$0xff] }
 0x9ad   : > { %v8448_v23 = vpop.f32.mrf.mxu3 }
 0x9ae   : > { %v6439_v28 = vunpack.c.l.b16 %v4135_v10  ;;  %v8449_v62 = vadd.f32 %v8448_v23, %v8120_v13  ;;  %v9104_v14 = vrot.slane %v9103_v35, 1  ;;  %v10052_v10 = vsel %vm3753_vm4, 1.0, %v15365_v51  ;;  %v3488_v9 = vpop.permute.xlu2 %3487 }
 0x9af   : > { %10718 = vset.pattern.permute.xlu1 %v12673_v31  ;;  %v4756_v26 = vpop.permute.xlu0 %4755  ;;  %vm3756_vm7 = vcmp.eq.s32.totalorder %v3488_v9, %v11093_v8 }
 0x9b0   : > { %v8644_v1 = vmax.f32 %v8449_v62, 0.0  ;;  %v6520_v59 = vpack.c.b16 %v6440_v32, %v6439_v28  ;;  %10724 = vset.pattern.permute.xlu2 %v13003_v37  ;;  %v9105_v33 = vmax.f32 %v9103_v35, %v9104_v14  ;;  %vm5034_vm3 = vcmp.eq.s32.totalorder %v4756_v26, %v11093_v8 }
 0x9b1   : > { %v10181_v13 = vsel %vm5034_vm3, 1.0, %v15365_v51  ;;  %v5417_v62 = vpack.c.bf16 %v10180_v38, %v10180_v38  ;;  %v10055_v17 = vsel %vm3756_vm7, 1.0, %v15365_v51 }
 0x9b2   : > { %v8774_v6 = vmul.f32 %v14753_v11, %v8644_v1  ;;  %8146 = vmatmul.bf16.gmra.mxu2 %v6520_v59  ;;  %v9307_v58 = vpack.c.bf16 %v9105_v33, %v9105_v33  ;;  %v5418_v4 = vpack.c.bf16 %v10181_v13, %v10181_v13  ;;  %v4137_v1 = vpack.c.bf16 %v10052_v10, %v10052_v10 }
 0x9b4   : > { %v9106_v20 = vmax.f32 %v8773_v22, %v8774_v6  ;;  %v9455_v53 = vunpack.c.l.b16 %v9307_v58  ;;  %v6825_v6 = vunpack.c.l.b16 %v5417_v62  ;;  %v6826_v35 = vunpack.c.l.b16 %v5418_v4  ;;  %v16017_v4 = vld [vmem:[#allocation95_spill] sm:$0xff] }
 0x9b5   : > { %v8122_v57 = vpop.f32.mrf.mxu2 }
 0x9b6   : > { %v9107_v45 = vrot.slane %v9106_v20, 4  ;;  %v8123_v41 = vadd.f32 %v8122_v57, %v16013_v50 }
 0x9b7   : > { %3517 = vperm.xlu1 %10718, %v15948_v43  }
 0x9b8   : > { %v9108_v7 = vmax.f32 %v9106_v20, %v9107_v45  ;;  %4809 = vperm.xlu2 %10724, %v15951_v15   ;;  %v6441_v45 = vunpack.c.l.b16 %v4137_v1 }
 0x9b9   : > { %v4744_v46 = vpop.permute.xlu1 %4743 }
 0x9ba   : > { %v9109_v63 = vrot.slane %v9108_v7, 2  ;;  %vm5032_vm15 = vcmp.eq.s32.totalorder %v4744_v46, %v11093_v8 }
 0x9bb   : > { %v10179_v18 = vsel %vm5032_vm15, 1.0, %v15365_v51 }
 0x9bc   : > { %v9110_v56 = vmax.f32 %v9108_v7, %v9109_v63  ;;  %v5416_v3 = vpack.c.bf16 %v10179_v18, %v10179_v18 }
 0x9bd   : > { %v8124_v59 = vpop.f32.mrf.mxu2 }
 0x9be   : > { %v9111_v44 = vrot.slane %v9110_v56, 1  ;;  %v6824_v39 = vunpack.c.l.b16 %v5416_v3  ;;  %v8125_v57 = vadd.f32 %v8124_v59, %v16015_v48  ;;  %v4768_v59 = vpop.permute.xlu2 %4767 }
 0x9bf   : > { %10721 = vset.pattern.permute.xlu1 %v12989_v2  ;;  %vm5036_vm10 = vcmp.eq.s32.totalorder %v4768_v59, %v11093_v8 }
 0x9c0   : > { %v9112_v5 = vmax.f32 %v9110_v56, %v9111_v44  ;;  %v6904_v34 = vpack.c.b16 %v6824_v39, %v6823_v49  ;;  %10727 = vset.pattern.permute.xlu2 %v12704_v19  ;;  %v16016_v44 = vld [vmem:[#allocation148_spill] sm:$0xff] }
 0x9c2   : > { %v9308_v54 = vpack.c.bf16 %v9112_v5, %v9112_v5  ;;  %8475 = vmatmul.bf16.gmra.mxu3 %v6904_v34  ;;  %v4140_v34 = vpack.c.bf16 %v10055_v17, %v10055_v17 }
 0x9c4   : > { %v9456_v32 = vunpack.c.l.b16 %v9308_v54 }
 0x9c5   : > { %v8451_v23 = vpop.f32.mrf.mxu3 }
 0x9c6   : > { %v14772_v12 = vsel %vm9479_vm11, %v9456_v32, %v9455_v53  ;;  %v8452_v28 = vadd.f32 %v8451_v23, %v8123_v41  ;;  %v6444_v32 = vunpack.c.l.b16 %v4140_v34  ;;  %v4774_v34 = vpop.permute.xlu2 %4773 }
 0x9c7   : > { %4803 = vperm.xlu1 %10721, %v15948_v43   ;;  %v6905_v43 = vpack.c.b16 %v6826_v35, %v6825_v6 }
 0x9c8   : > { %3547 = vperm.xlu2 %10727, %v16014_v47   ;;  %v8645_v41 = vmax.f32 %v8452_v28, 0.0 }
 0x9c9   : > { %v3476_v22 = vpop.permute.xlu1 %3475 }
 0x9ca   : > { %vm3754_vm5 = vcmp.eq.s32.totalorder %v3476_v22, %v11093_v8  ;;  %v8775_v18 = vmul.f32 %v14747_v16, %v8645_v41  ;;  %v10183_v41 = vsel %vm5036_vm10, 1.0, %v15365_v51 }
 0x9cb   : > { %v10053_v20 = vsel %vm3754_vm5, 1.0, %v15365_v51  ;;  %v5420_v9 = vpack.c.bf16 %v10183_v41, %v10183_v41  ;;  %vm5037_vm5 = vcmp.eq.s32.totalorder %v4774_v34, %v11093_v8 }
 0x9cc   : > { %v4138_v0 = vpack.c.bf16 %v10053_v20, %v10053_v20 }
 0x9cd   : > { %v8453_v50 = vpop.f32.mrf.mxu3 }
 0x9ce   : > { %v6442_v14 = vunpack.c.l.b16 %v4138_v0  ;;  %v8454_v7 = vadd.f32 %v8453_v50, %v8125_v57 }
 0x9cf   : > { %10723 = vset.pattern.permute.xlu1 %v12704_v19 }
 0x9d0   : > { %v8646_v46 = vmax.f32 %v8454_v7, 0.0  ;;  %v6521_v63 = vpack.c.b16 %v6442_v14, %v6441_v45  ;;  %10729 = vset.pattern.permute.xlu2 %v12989_v2 }
 0x9d2   : > { %v8776_v33 = vmul.f32 %v14753_v11, %v8646_v46  ;;  %8151 = vmatmul.bf16.gmra.mxu2 %v6521_v63  ;;  %8480 = vmatmul.bf16.gmra.mxu3 %v6905_v43 }
 0x9d4   : > { %v9113_v56 = vmax.f32 %v8775_v18, %v8776_v33 }
 0x9d5   : > { %v8127_v3 = vpop.f32.mrf.mxu2  ;;  %v8456_v49 = vpop.f32.mrf.mxu3 }
 0x9d6   : > { %v9114_v26 = vrot.slane %v9113_v56, 4  ;;  %v8128_v39 = vadd.f32 %v8127_v3, %v16016_v44 }
 0x9d7   : > { %3535 = vperm.xlu1 %10723, %v15951_v15  }
 0x9d8   : > { %v9115_v58 = vmax.f32 %v9113_v56, %v9114_v26  ;;  %v8457_v5 = vadd.f32 %v8456_v49, %v8128_v39  ;;  %4827 = vperm.xlu2 %10729, %v16014_v47   ;;  %v6828_v56 = vunpack.c.l.b16 %v5420_v9 }
 0x9d9   : > { %v3482_v54 = vpop.permute.xlu1 %3481 }
 0x9da   : > { %v9116_v38 = vrot.slane %v9115_v58, 2  ;;  %vm3755_vm9 = vcmp.eq.s32.totalorder %v3482_v54, %v11093_v8  ;;  %v8647_v6 = vmax.f32 %v8457_v5, 0.0 }
 0x9db   : > { %v10054_v13 = vsel %vm3755_vm9, 1.0, %v15365_v51 }
 0x9dc   : > { %v9117_v53 = vmax.f32 %v9115_v58, %v9116_v38  ;;  %v4139_v10 = vpack.c.bf16 %v10054_v13, %v10054_v13  ;;  %v8777_v45 = vmul.f32 %v14747_v16, %v8647_v6 }
 0x9dd   : > { %v8129_v23 = vpop.f32.mrf.mxu2  ;;  %v8458_v15 = vpop.f32.mrf.mxu3 }
 0x9de   : > { %v9118_v28 = vrot.slane %v9117_v53, 1  ;;  %v6443_v62 = vunpack.c.l.b16 %v4139_v10  ;;  %v8130_v1 = vadd.f32 %v8129_v23, %v16017_v4 }
 0x9df   : > { %10726 = vset.pattern.permute.xlu1 %v12673_v31 }
 0x9e0   : > { %v9119_v22 = vmax.f32 %v9117_v53, %v9118_v28  ;;  %v8459_v35 = vadd.f32 %v8458_v15, %v8130_v1  ;;  %v6522_v20 = vpack.c.b16 %v6444_v32, %v6443_v62  ;;  %10732 = vset.pattern.permute.xlu2 %v13003_v37  ;;  %v16018_v53 = vld [vmem:[#allocation55_spill] sm:$0xff] }
 0x9e1   : > { %v16019_v15 = vld [vmem:[#allocation35_spill] sm:$0xff] }
 0x9e2   : > { %v9309_v48 = vpack.c.bf16 %v9119_v22, %v9119_v22  ;;  %v8648_v57 = vmax.f32 %v8459_v35, 0.0  ;;  %8156 = vmatmul.bf16.gmra.mxu2 %v6522_v20 }
 0x9e4   : > { %v9457_v0 = vunpack.c.l.b16 %v9309_v48  ;;  %v8778_v50 = vmul.f32 %v14753_v11, %v8648_v57 }
 0x9e5   : > { %v8132_v26 = vpop.f32.mrf.mxu2 }
 0x9e6   : > { %v9120_v14 = vmax.f32 %v8777_v45, %v8778_v50  ;;  %v9522_v7 = vsel %vm9481_vm1, %v9457_v0, %v14772_v12  ;;  %v3494_v12 = vpop.permute.xlu0 %3493  ;;  %v8133_v32 = vadd.f32 %v8132_v26, %v16018_v53 }
 0x9e7   : > { %3541 = vperm.xlu1 %10726, %v16014_v47   ;;  %vm3757_vm15 = vcmp.eq.s32.totalorder %v3494_v12, %v11093_v8 }
 0x9e8   : > { %v9121_v43 = vrot.slane %v9120_v14, 4  ;;  %4833 = vperm.xlu2 %10732, %v15954_v30   ;;  %v10056_v38 = vsel %vm3757_vm15, 1.0, %v15365_v51 }
 0x9e9   : > { %v4762_v46 = vpop.permute.xlu1 %4761  ;;  %v4141_v10 = vpack.c.bf16 %v10056_v38, %v10056_v38 }
 0x9ea   : > { %v9122_v63 = vmax.f32 %v9120_v14, %v9121_v43  ;;  %vm5035_vm14 = vcmp.eq.s32.totalorder %v4762_v46, %v11093_v8  ;;  %v10184_v46 = vsel %vm5037_vm5, 1.0, %v15365_v51 }
 0x9eb   : > { %v10182_v18 = vsel %vm5035_vm14, 1.0, %v15365_v51  ;;  %v6445_v6 = vunpack.c.l.b16 %v4141_v10 }
 0x9ec   : > { %v9123_v33 = vrot.slane %v9122_v63, 2  ;;  %v5419_v3 = vpack.c.bf16 %v10182_v18, %v10182_v18 }
 0x9ed   : > { %v8134_v28 = vpop.f32.mrf.mxu2 }
 0x9ee   : > { %v9124_v49 = vmax.f32 %v9122_v63, %v9123_v33  ;;  %v6827_v17 = vunpack.c.l.b16 %v5419_v3  ;;  %v8135_v59 = vadd.f32 %v8134_v28, %v16019_v15  ;;  %v3512_v20 = vpop.permute.xlu0 %3511  ;;  %v5421_v3 = vpack.c.bf16 %v10184_v46, %v10184_v46 }
 0x9ef   : > { %10728 = vset.pattern.permute.xlu1 %v13003_v37  ;;  %vm3760_vm4 = vcmp.eq.s32.totalorder %v3512_v20, %v11093_v8 }
 0x9f0   : > { %v9125_v44 = vrot.slane %v9124_v49, 1  ;;  %v6906_v39 = vpack.c.b16 %v6828_v56, %v6827_v17  ;;  %10734 = vset.pattern.permute.xlu2 %v12673_v31  ;;  %v10059_v43 = vsel %vm3760_vm4, 1.0, %v15365_v51  ;;  %v6829_v34 = vunpack.c.l.b16 %v5421_v3 }
 0x9f1   : > { %v4144_v33 = vpack.c.bf16 %v10059_v43, %v10059_v43 }
 0x9f2   : > { %v9126_v58 = vmax.f32 %v9124_v49, %v9125_v44  ;;  %8485 = vmatmul.bf16.gmra.mxu3 %v6906_v39 }
 0x9f3   : > { %v6448_v12 = vunpack.c.l.b16 %v4144_v33 }
 0x9f4   : > { %v9310_v5 = vpack.c.bf16 %v9126_v58, %v9126_v58 }
 0x9f5   : > { %v8461_v54 = vpop.f32.mrf.mxu3 }
 0x9f6   : > { %v9458_v13 = vunpack.c.l.b16 %v9310_v5  ;;  %v8462_v4 = vadd.f32 %v8461_v54, %v8133_v32 }
 0x9f7   : > { %4821 = vperm.xlu1 %10728, %v16014_v47   ;;  %v3506_v47 = vpop.permute.xlu2 %3505 }
 0x9f8   : > { %3565 = vperm.xlu2 %10734, %v15958_v42   ;;  %v14811_v23 = vsel %vm9483_vm6, %v9458_v13, %v9522_v7  ;;  %v8649_v48 = vmax.f32 %v8462_v4, 0.0  ;;  %vm3759_vm3 = vcmp.eq.s32.totalorder %v3506_v47, %v11093_v8 }
 0x9f9   : > { %v3500_v62 = vpop.permute.xlu1 %3499  ;;  %v10058_v7 = vsel %vm3759_vm3, 1.0, %v15365_v51 }
 0x9fa   : > { %vm3758_vm0 = vcmp.eq.s32.totalorder %v3500_v62, %v11093_v8  ;;  %v8779_v41 = vmul.f32 %v14747_v16, %v8649_v48  ;;  %v4143_v18 = vpack.c.bf16 %v10058_v7, %v10058_v7 }
 0x9fb   : > { %v10057_v1 = vsel %vm3758_vm0, 1.0, %v15365_v51 }
 0x9fc   : > { %v4142_v22 = vpack.c.bf16 %v10057_v1, %v10057_v1  ;;  %v6447_v26 = vunpack.c.l.b16 %v4143_v18 }
 0x9fd   : > { %v8463_v35 = vpop.f32.mrf.mxu3 }
 0x9fe   : > { %v6446_v57 = vunpack.c.l.b16 %v4142_v22  ;;  %v8464_v0 = vadd.f32 %v8463_v35, %v8135_v59  ;;  %v6524_v13 = vpack.c.b16 %v6448_v12, %v6447_v26  ;;  %v16020_v22 = vld [vmem:[#allocation97_spill] sm:$0xff] }
 0x9ff   : > { %10731 = vset.pattern.permute.xlu1 %v12704_v19  ;;  %v4792_v53 = vpop.permute.xlu2 %4791 }
 0xa00   : > { %v8650_v45 = vmax.f32 %v8464_v0, 0.0  ;;  %v6523_v50 = vpack.c.b16 %v6446_v57, %v6445_v6  ;;  %10737 = vset.pattern.permute.xlu2 %v12989_v2  ;;  %vm5040_vm9 = vcmp.eq.s32.totalorder %v4792_v53, %v11093_v8  ;;  %v16021_v57 = vld [vmem:[#allocation57_spill] sm:$0xff] }
 0xa01   : > { %v10187_v15 = vsel %vm5040_vm9, 1.0, %v15365_v51 }
 0xa02   : > { %v8780_v14 = vmul.f32 %v14753_v11, %v8650_v45  ;;  %8161 = vmatmul.bf16.gmra.mxu2 %v6523_v50  ;;  %v5424_v47 = vpack.c.bf16 %v10187_v15, %v10187_v15  ;;  %v4798_v15 = vpop.permute.xlu0 %4797 }
 0xa03   : > { %vm5041_vm0 = vcmp.eq.s32.totalorder %v4798_v15, %v11093_v8 }
 0xa04   : > { %v9127_v9 = vmax.f32 %v8779_v41, %v8780_v14  ;;  %v6832_v45 = vunpack.c.l.b16 %v5424_v47 }
 0xa05   : > { %v8137_v44 = vpop.f32.mrf.mxu2 }
 0xa06   : > { %v9128_v63 = vrot.slane %v9127_v9, 4  ;;  %v8138_v6 = vadd.f32 %v8137_v44, %v16020_v22 }
 0xa07   : > { %3559 = vperm.xlu1 %10731, %v15954_v30   ;;  %v3524_v43 = vpop.permute.xlu2 %3523 }
 0xa08   : > { %v9129_v56 = vmax.f32 %v9127_v9, %v9128_v63  ;;  %4851 = vperm.xlu2 %10737, %v15958_v42   ;;  %vm3762_vm14 = vcmp.eq.s32.totalorder %v3524_v43, %v11093_v8 }
 0xa09   : > { %v4780_v49 = vpop.permute.xlu1 %4779  ;;  %v10061_v3 = vsel %vm3762_vm14, 1.0, %v15365_v51 }
 0xa0a   : > { %v9130_v17 = vrot.slane %v9129_v56, 2  ;;  %vm5038_vm7 = vcmp.eq.s32.totalorder %v4780_v49, %v11093_v8  ;;  %v4146_v44 = vpack.c.bf16 %v10061_v3, %v10061_v3 }
 0xa0b   : > { %v10185_v39 = vsel %vm5038_vm7, 1.0, %v15365_v51 }
 0xa0c   : > { %v9131_v58 = vmax.f32 %v9129_v56, %v9130_v17  ;;  %v5422_v5 = vpack.c.bf16 %v10185_v39, %v10185_v39  ;;  %v16022_v17 = vld [vmem:[#allocation9_spill] sm:$0xff] }
 0xa0d   : > { %v8139_v4 = vpop.f32.mrf.mxu2 }
 0xa0e   : > { %v9132_v54 = vrot.slane %v9131_v58, 1  ;;  %v6830_v38 = vunpack.c.l.b16 %v5422_v5  ;;  %v8140_v0 = vadd.f32 %v8139_v4, %v16021_v57 }
 0xa0f   : > { %10733 = vset.pattern.permute.xlu1 %v12989_v2 }
 0xa10   : > { %v9133_v32 = vmax.f32 %v9131_v58, %v9132_v54  ;;  %v6907_v10 = vpack.c.b16 %v6830_v38, %v6829_v34  ;;  %10739 = vset.pattern.permute.xlu2 %v12704_v19  ;;  %v16023_v38 = vld [vmem:[#allocation124_spill] sm:$0xff] }
 0xa12   : > { %v9311_v28 = vpack.c.bf16 %v9133_v32, %v9133_v32  ;;  %8166 = vmatmul.bf16.gmra.mxu2 %v6524_v13  ;;  %8490 = vmatmul.bf16.gmra.mxu3 %v6907_v10  ;;  %v6450_v32 = vunpack.c.l.b16 %v4146_v44 }
 0xa14   : > { %v9459_v62 = vunpack.c.l.b16 %v9311_v28 }
 0xa15   : > { %v8466_v1 = vpop.f32.mrf.mxu3 }
 0xa16   : > { %v14836_v59 = vsel %vm9485_vm12, %v9459_v62, %v14811_v23  ;;  %v8467_v20 = vadd.f32 %v8466_v1, %v8138_v6 }
 0xa17   : > { %4839 = vperm.xlu1 %10733, %v15954_v30   ;;  %v8142_v30 = vpop.f32.mrf.mxu2 }
 0xa18   : > { %3583 = vperm.xlu2 %10739, %v15960_v60   ;;  %v8651_v23 = vmax.f32 %v8467_v20, 0.0  ;;  %v8143_v26 = vadd.f32 %v8142_v30, %v16022_v17 }
 0xa19   : > { %v4786_v35 = vpop.permute.xlu1 %4785 }
 0xa1a   : > { %vm5039_vm10 = vcmp.eq.s32.totalorder %v4786_v35, %v11093_v8  ;;  %v8781_v63 = vmul.f32 %v14747_v16, %v8651_v23 }
 0xa1b   : > { %v10186_v48 = vsel %vm5039_vm10, 1.0, %v15365_v51 }
 0xa1c   : > { %v5423_v50 = vpack.c.bf16 %v10186_v48, %v10186_v48 }
 0xa1d   : > { %v8468_v41 = vpop.f32.mrf.mxu3 }
 0xa1e   : > { %v6831_v14 = vunpack.c.l.b16 %v5423_v50  ;;  %v8469_v7 = vadd.f32 %v8468_v41, %v8140_v0  ;;  %v3530_v50 = vpop.permute.xlu2 %3529 }
 0xa1f   : > { %10736 = vset.pattern.permute.xlu1 %v13003_v37  ;;  %v8144_v39 = vpop.f32.mrf.mxu2  ;;  %vm3763_vm7 = vcmp.eq.s32.totalorder %v3530_v50, %v11093_v8 }
 0xa20   : > { %v8652_v9 = vmax.f32 %v8469_v7, 0.0  ;;  %v6908_v46 = vpack.c.b16 %v6832_v45, %v6831_v14  ;;  %10742 = vset.pattern.permute.xlu2 %v12673_v31  ;;  %v8145_v13 = vadd.f32 %v8144_v39, %v16023_v38  ;;  %v10188_v45 = vsel %vm5041_vm0, 1.0, %v15365_v51 }
 0xa21   : > { %v5425_v7 = vpack.c.bf16 %v10188_v45, %v10188_v45 }
 0xa22   : > { %v8782_v18 = vmul.f32 %v14753_v11, %v8652_v9  ;;  %8495 = vmatmul.bf16.gmra.mxu3 %v6908_v46 }
 0xa24   : > { %v9134_v33 = vmax.f32 %v8781_v63, %v8782_v18  ;;  %v6833_v18 = vunpack.c.l.b16 %v5425_v7 }
 0xa25   : > { %v8471_v56 = vpop.f32.mrf.mxu3 }
 0xa26   : > { %v9135_v49 = vrot.slane %v9134_v33, 4  ;;  %v8472_v34 = vadd.f32 %v8471_v56, %v8143_v26  ;;  %v4816_v56 = vpop.permute.xlu0 %4815 }
 0xa27   : > { %4845 = vperm.xlu1 %10736, %v15958_v42   ;;  %vm5044_vm5 = vcmp.eq.s32.totalorder %v4816_v56, %v11093_v8 }
 0xa28   : > { %v9136_v12 = vmax.f32 %v9134_v33, %v9135_v49  ;;  %3589 = vperm.xlu2 %10742, %v15964_v27   ;;  %v8653_v62 = vmax.f32 %v8472_v34, 0.0  ;;  %v4810_v33 = vpop.permute.xlu2 %4809  ;;  %v10191_v39 = vsel %vm5044_vm5, 1.0, %v15365_v51  ;;  %v10062_v34 = vsel %vm3763_vm7, 1.0, %v15365_v51 }
 0xa29   : > { %v3518_v58 = vpop.permute.xlu1 %3517  ;;  %vm5043_vm4 = vcmp.eq.s32.totalorder %v4810_v33, %v11093_v8  ;;  %v5428_v38 = vpack.c.bf16 %v10191_v39, %v10191_v39 }
 0xa2a   : > { %v9137_v5 = vrot.slane %v9136_v12, 2  ;;  %vm3761_vm15 = vcmp.eq.s32.totalorder %v3518_v58, %v11093_v8  ;;  %v8783_v20 = vmul.f32 %v14747_v16, %v8653_v62  ;;  %v10190_v44 = vsel %vm5043_vm4, 1.0, %v15365_v51 }
 0xa2b   : > { %v10060_v54 = vsel %vm3761_vm15, 1.0, %v15365_v51  ;;  %v6836_v15 = vunpack.c.l.b16 %v5428_v38 }
 0xa2c   : > { %v9138_v53 = vmax.f32 %v9136_v12, %v9137_v5  ;;  %v4145_v10 = vpack.c.bf16 %v10060_v54, %v10060_v54  ;;  %v5427_v54 = vpack.c.bf16 %v10190_v44, %v10190_v44 }
 0xa2d   : > { %v8473_v42 = vpop.f32.mrf.mxu3 }
 0xa2e   : > { %v9139_v28 = vrot.slane %v9138_v53, 1  ;;  %v6449_v4 = vunpack.c.l.b16 %v4145_v10  ;;  %v8474_v1 = vadd.f32 %v8473_v42, %v8145_v13  ;;  %v16025_v10 = vld [vmem:[#allocation23_spill] sm:$0xff]  ;;  %v4147_v42 = vpack.c.bf16 %v10062_v34, %v10062_v34 }
 0xa2f   : > { %10738 = vset.pattern.permute.xlu1 %v12673_v31 }
 0xa30   : > { %v9140_v22 = vmax.f32 %v9138_v53, %v9139_v28  ;;  %v8654_v6 = vmax.f32 %v8474_v1, 0.0  ;;  %v6525_v47 = vpack.c.b16 %v6450_v32, %v6449_v4  ;;  %10744 = vset.pattern.permute.xlu2 %v13003_v37  ;;  %v16024_v53 = vld [vmem:[#allocation39_spill] sm:$0xff]  ;;  %v6835_v1 = vunpack.c.l.b16 %v5427_v54  ;;  %v3548_v50 = vpop.permute.xlu2 %3547 }
 0xa31   : > { %vm3766_vm10 = vcmp.eq.s32.totalorder %v3548_v50, %v11093_v8  ;;  %v16028_v54 = vld [vmem:[#allocation123_spill] sm:$0xff] }
 0xa32   : > { %v9312_v35 = vpack.c.bf16 %v9140_v22, %v9140_v22  ;;  %v8784_v48 = vmul.f32 %v14753_v11, %v8654_v6  ;;  %8171 = vmatmul.bf16.gmra.mxu2 %v6525_v47  ;;  %v16026_v6 = vld [vmem:[#allocation157_spill] sm:$0xff]  ;;  %v6910_v45 = vpack.c.b16 %v6836_v15, %v6835_v1 }
 0xa34   : > { %v9460_v57 = vunpack.c.l.b16 %v9312_v35  ;;  %v9141_v0 = vmax.f32 %v8783_v20, %v8784_v48  ;;  %v6451_v20 = vunpack.c.l.b16 %v4147_v42 }
 0xa36   : > { %v9142_v41 = vrot.slane %v9141_v0, 4  ;;  %v9525_v23 = vsel %vm9487_vm2, %v9460_v57, %v14836_v59  ;;  %v8147_v59 = vpop.f32.mrf.mxu2 }
 0xa37   : > { %3577 = vperm.xlu1 %10738, %v15960_v60   ;;  %v8148_v32 = vadd.f32 %v8147_v59, %v16024_v53 }
 0xa38   : > { %v9143_v14 = vmax.f32 %v9141_v0, %v9142_v41  ;;  %4869 = vperm.xlu2 %10744, %v15964_v27   ;;  %v4828_v53 = vpop.permute.xlu2 %4827 }
 0xa39   : > { %v4804_v30 = vpop.permute.xlu1 %4803  ;;  %vm5046_vm15 = vcmp.eq.s32.totalorder %v4828_v53, %v11093_v8 }
 0xa3a   : > { %v9144_v43 = vrot.slane %v9143_v14, 2  ;;  %vm5042_vm3 = vcmp.eq.s32.totalorder %v4804_v30, %v11093_v8 }
 0xa3b   : > { %v10189_v9 = vsel %vm5042_vm3, 1.0, %v15365_v51 }
 0xa3c   : > { %v9145_v46 = vmax.f32 %v9143_v14, %v9144_v43  ;;  %v5426_v63 = vpack.c.bf16 %v10189_v9, %v10189_v9 }
 0xa3e   : > { %v9146_v3 = vrot.slane %v9145_v46, 1  ;;  %v6834_v49 = vunpack.c.l.b16 %v5426_v63  ;;  %v8149_v28 = vpop.f32.mrf.mxu2 }
 0xa3f   : > { %10741 = vset.pattern.permute.xlu1 %v12989_v2  ;;  %v8150_v47 = vadd.f32 %v8149_v28, %v16026_v6 }
 0xa40   : > { %v9147_v17 = vmax.f32 %v9145_v46, %v9146_v3  ;;  %v6909_v26 = vpack.c.b16 %v6834_v49, %v6833_v18  ;;  %10747 = vset.pattern.permute.xlu2 %v12704_v19  ;;  %v10065_v46 = vsel %vm3766_vm10, 1.0, %v15365_v51  ;;  %v16027_v18 = vld [vmem:[#allocation152_spill] sm:$0xff] }
 0xa41   : > { %v4150_v49 = vpack.c.bf16 %v10065_v46, %v10065_v46 }
 0xa42   : > { %8500 = vmatmul.bf16.gmra.mxu3 %v6909_v26  ;;  %v9313_v12 = vpack.c.bf16 %v9147_v17, %v9147_v17 }
 0xa43   : > { %v6454_v44 = vunpack.c.l.b16 %v4150_v49 }
 0xa44   : > { %v9461_v58 = vunpack.c.l.b16 %v9313_v12 }
 0xa45   : > { %v8476_v5 = vpop.f32.mrf.mxu3 }
 0xa46   : > { %v14877_v13 = vsel %vm9489_vm8, %v9461_v58, %v9525_v23  ;;  %v8477_v4 = vadd.f32 %v8476_v5, %v8148_v32 }
 0xa47   : > { %4863 = vperm.xlu1 %10741, %v15960_v60  }
 0xa48   : > { %3607 = vperm.xlu2 %10747, %v16025_v10   ;;  %v8655_v60 = vmax.f32 %v8477_v4, 0.0 }
 0xa49   : > { %v3536_v62 = vpop.permute.xlu1 %3535 }
 0xa4a   : > { %vm3764_vm9 = vcmp.eq.s32.totalorder %v3536_v62, %v11093_v8  ;;  %v8785_v14 = vmul.f32 %v14747_v16, %v8655_v60 }
 0xa4b   : > { %v10063_v22 = vsel %vm3764_vm9, 1.0, %v15365_v51 }
 0xa4c   : > { %v4148_v35 = vpack.c.bf16 %v10063_v22, %v10063_v22 }
 0xa4d   : > { %v8478_v48 = vpop.f32.mrf.mxu3 }
 0xa4e   : > { %v6452_v57 = vunpack.c.l.b16 %v4148_v35  ;;  %v8479_v0 = vadd.f32 %v8478_v48, %v8150_v47  ;;  %v10193_v35 = vsel %vm5046_vm15, 1.0, %v15365_v51  ;;  %v16029_v48 = vld [vmem:[#allocation40_spill] sm:$0xff] }
 0xa4f   : > { %10743 = vset.pattern.permute.xlu1 %v12704_v19 }
 0xa50   : > { %v8656_v41 = vmax.f32 %v8479_v0, 0.0  ;;  %v6526_v23 = vpack.c.b16 %v6452_v57, %v6451_v20  ;;  %10749 = vset.pattern.permute.xlu2 %v12989_v2 }
 0xa52   : > { %v8786_v7 = vmul.f32 %v14753_v11, %v8656_v41  ;;  %8176 = vmatmul.bf16.gmra.mxu2 %v6526_v23  ;;  %8505 = vmatmul.bf16.gmra.mxu3 %v6910_v45  ;;  %v5430_v45 = vpack.c.bf16 %v10193_v35, %v10193_v35 }
 0xa54   : > { %v9148_v30 = vmax.f32 %v8785_v14, %v8786_v7  ;;  %v6838_v23 = vunpack.c.l.b16 %v5430_v45 }
 0xa55   : > { %v8152_v43 = vpop.f32.mrf.mxu2  ;;  %v8481_v9 = vpop.f32.mrf.mxu3 }
 0xa56   : > { %v9149_v63 = vrot.slane %v9148_v30, 4  ;;  %v8153_v33 = vadd.f32 %v8152_v43, %v16027_v18  ;;  %v16030_v18 = vld [vmem:[#allocation101_spill] sm:$0xff] }
 0xa57   : > { %3595 = vperm.xlu1 %10743, %v15964_v27  }
 0xa58   : > { %v9150_v56 = vmax.f32 %v9148_v30, %v9149_v63  ;;  %v8482_v3 = vadd.f32 %v8481_v9, %v8153_v33  ;;  %4887 = vperm.xlu2 %10749, %v16025_v10   ;;  %v3554_v30 = vpop.permute.xlu0 %3553  ;;  %v14919_v63 = vld [vmem:[%s15144_s2] ss:$0 sm:$0xff] }
 0xa59   : > { %v3542_v59 = vpop.permute.xlu1 %3541  ;;  %vm3767_vm3 = vcmp.eq.s32.totalorder %v3554_v30, %v11093_v8  ;;  %v7502_v33 = vadd.f32 %v14919_v63, %v16030_v18 }
 0xa5a   : > { %v9151_v17 = vrot.slane %v9150_v56, 2  ;;  %vm3765_vm14 = vcmp.eq.s32.totalorder %v3542_v59, %v11093_v8  ;;  %v8657_v32 = vmax.f32 %v8482_v3, 0.0  ;;  %v10066_v9 = vsel %vm3767_vm3, 1.0, %v15365_v51 }
 0xa5b   : > { %v10064_v26 = vsel %vm3765_vm14, 1.0, %v15365_v51  ;;  %v4151_v3 = vpack.c.bf16 %v10066_v9, %v10066_v9 }
 0xa5c   : > { %v9152_v12 = vmax.f32 %v9150_v56, %v9151_v17  ;;  %v4149_v39 = vpack.c.bf16 %v10064_v26, %v10064_v26  ;;  %v8787_v15 = vmul.f32 %v14747_v16, %v8657_v32  ;;  %v16031_v17 = vld [vmem:[#allocation4_spill] sm:$0xff] }
 0xa5d   : > { %v8154_v58 = vpop.f32.mrf.mxu2  ;;  %v8483_v27 = vpop.f32.mrf.mxu3  ;;  %v7831_v26 = vadd.f32 %v16031_v17, %v7502_v33 }
 0xa5e   : > { %v9153_v5 = vrot.slane %v9152_v12, 1  ;;  %v6453_v34 = vunpack.c.l.b16 %v4149_v39  ;;  %v8155_v38 = vadd.f32 %v8154_v58, %v16028_v54  ;;  %v6455_v58 = vunpack.c.l.b16 %v4151_v3 }
 0xa5f   : > { %10746 = vset.pattern.permute.xlu1 %v12673_v31 }
 0xa60   : > { %v8484_v42 = vadd.f32 %v8483_v27, %v8155_v38  ;;  %v6527_v28 = vpack.c.b16 %v6454_v44, %v6453_v34  ;;  %v9154_v62 = vmax.f32 %v9152_v12, %v9153_v5  ;;  %10752 = vset.pattern.permute.xlu2 %v13003_v37  ;;  %v3572_v54 = vpop.permute.xlu0 %3571 }
 0xa61   : > { %vm3770_vm7 = vcmp.eq.s32.totalorder %v3572_v54, %v11093_v8  ;;  %v16033_v54 = vld [vmem:[#allocation42_spill] sm:$0xff] }
 0xa62   : > { %v8658_v4 = vmax.f32 %v8484_v42, 0.0  ;;  %8181 = vmatmul.bf16.gmra.mxu2 %v6527_v28  ;;  %v9314_v1 = vpack.c.bf16 %v9154_v62, %v9154_v62 }
 0xa64   : > { %v8788_v22 = vmul.f32 %v14753_v11, %v8658_v4  ;;  %v9462_v6 = vunpack.c.l.b16 %v9314_v1 }
 0xa65   : > { %v8157_v47 = vpop.f32.mrf.mxu2 }
 0xa66   : > { %v9155_v20 = vmax.f32 %v8787_v15, %v8788_v22  ;;  %v8158_v60 = vadd.f32 %v8157_v47, %v16029_v48  ;;  %v9527_v57 = vsel %vm9491_vm13, %v9462_v6, %v14877_v13  ;;  %v10069_v15 = vsel %vm3770_vm7, 1.0, %v15365_v51  ;;  %v16032_v48 = vld [vmem:[#allocation161_spill] sm:$0xff] }
 0xa67   : > { %3601 = vperm.xlu1 %10746, %v16025_v10   ;;  %v9544_v0 = vpack.c.b16 %v9527_v57, %v14724_v29  ;;  %v4834_v29 = vpop.permute.xlu2 %4833 }
 0xa68   : > { %4893 = vperm.xlu2 %10752, %v15967_v21   ;;  %v9156_v56 = vrot.slane %v9155_v20, 4  ;;  %vm5047_vm9 = vcmp.eq.s32.totalorder %v4834_v29, %v11093_v8 }
 0xa69   : > { %v4822_v50 = vpop.permute.xlu1 %4821  ;;  %9616 = vmatmul.bf16.gmra.mxu0 %v9544_v0  ;;  %v10194_v47 = vsel %vm5047_vm9, 1.0, %v15365_v51  ;;  %v4154_v0 = vpack.c.bf16 %v10069_v15, %v10069_v15 }
 0xa6a   : > { %vm5045_vm0 = vcmp.eq.s32.totalorder %v4822_v50, %v11093_v8  ;;  %v9157_v12 = vmax.f32 %v9155_v20, %v9156_v56 }
 0xa6b   : > { %v10192_v41 = vsel %vm5045_vm0, 1.0, %v15365_v51  ;;  %v6458_v30 = vunpack.c.l.b16 %v4154_v0 }
 0xa6c   : > { %v5429_v14 = vpack.c.bf16 %v10192_v41, %v10192_v41  ;;  %v9158_v32 = vrot.slane %v9157_v12, 2  ;;  %v5431_v41 = vpack.c.bf16 %v10194_v47, %v10194_v47 }
 0xa6d   : > { %v8159_v49 = vpop.f32.mrf.mxu2 }
 0xa6e   : > { %v6837_v7 = vunpack.c.l.b16 %v5429_v14  ;;  %v8160_v44 = vadd.f32 %v8159_v49, %v7831_v26  ;;  %v9159_v22 = vmax.f32 %v9157_v12, %v9158_v32  ;;  %v6839_v18 = vunpack.c.l.b16 %v5431_v41 }
 0xa6f   : > { %10748 = vset.pattern.permute.xlu1 %v13003_v37  ;;  %v3566_v5 = vpop.permute.xlu2 %3565 }
 0xa70   : > { %v6911_v13 = vpack.c.b16 %v6838_v23, %v6837_v7  ;;  %10754 = vset.pattern.permute.xlu2 %v12673_v31  ;;  %vm3769_vm5 = vcmp.eq.s32.totalorder %v3566_v5, %v11093_v8  ;;  %v9160_v45 = vrot.slane %v9159_v22, 1 }
 0xa71   : > { %v10068_v1 = vsel %vm3769_vm5, 1.0, %v15365_v51 }
 0xa72   : > { %8510 = vmatmul.bf16.gmra.mxu3 %v6911_v13  ;;  %v4153_v57 = vpack.c.bf16 %v10068_v1, %v10068_v1  ;;  %v9161_v29 = vmax.f32 %v9159_v22, %v9160_v45 }
 0xa74   : > { %v6457_v7 = vunpack.c.l.b16 %v4153_v57 }
 0xa75   : > { %v8486_v43 = vpop.f32.mrf.mxu3 }
 0xa76   : > { %v8487_v46 = vadd.f32 %v8486_v43, %v8158_v60  ;;  %v6529_v3 = vpack.c.b16 %v6458_v30, %v6457_v7  ;;  %v16036_v30 = vld [vmem:[#allocation107_spill] sm:$0xff] }
 0xa77   : > { %4881 = vperm.xlu1 %10748, %v16025_v10   ;;  %v4852_v49 = vpop.permute.xlu2 %4851 }
 0xa78   : > { %3625 = vperm.xlu2 %10754, %v15969_v40   ;;  %v8659_v38 = vmax.f32 %v8487_v46, 0.0  ;;  %vm5050_vm14 = vcmp.eq.s32.totalorder %v4852_v49, %v11093_v8 }
 0xa79   : > { %v3560_v59 = vpop.permute.xlu1 %3559  ;;  %v10197_v5 = vsel %vm5050_vm14, 1.0, %v15365_v51 }
 0xa7a   : > { %vm3768_vm4 = vcmp.eq.s32.totalorder %v3560_v59, %v11093_v8  ;;  %v8789_v62 = vmul.f32 %v14747_v16, %v8659_v38  ;;  %v9315_v59 = vpack.c.bf16 %v9161_v29, %v9161_v29 }
 0xa7b   : > { %v10067_v10 = vsel %vm3768_vm4, 1.0, %v15365_v51 }
 0xa7c   : > { %v4152_v39 = vpack.c.bf16 %v10067_v10, %v10067_v10  ;;  %v9463_v12 = vunpack.c.l.b16 %v9315_v59 }
 0xa7d   : > { %v8488_v34 = vpop.f32.mrf.mxu3 }
 0xa7e   : > { %v6456_v27 = vunpack.c.l.b16 %v4152_v39  ;;  %v8489_v53 = vadd.f32 %v8488_v34, %v8160_v44 }
 0xa7f   : > { %10751 = vset.pattern.permute.xlu1 %v12704_v19 }
 0xa80   : > { %v8660_v42 = vmax.f32 %v8489_v53, 0.0  ;;  %v6528_v28 = vpack.c.b16 %v6456_v27, %v6455_v58  ;;  %10757 = vset.pattern.permute.xlu2 %v12989_v2  ;;  %v16034_v53 = vld [vmem:[#allocation59_spill] sm:$0xff] }
 0xa81   : > { %v7507_v32 = vadd.f32 %v14919_v63, %v16034_v53  ;;  %v14981_v53 = vld [vmem:[%s15145_s3 + $0x8] sm:$0xff] }
 0xa82   : > { %v8790_v4 = vmul.f32 %v14753_v11, %v8660_v42  ;;  %8186 = vmatmul.bf16.gmra.mxu2 %v6528_v28  ;;  %v5434_v42 = vpack.c.bf16 %v10197_v5, %v10197_v5 }
 0xa84   : > { %v9162_v6 = vmax.f32 %v8789_v62, %v8790_v4  ;;  %v16035_v62 = vld [vmem:[#allocation138_spill] sm:$0xff]  ;;  %v6842_v22 = vunpack.c.l.b16 %v5434_v42 }
 0xa85   : > { %v8162_v35 = vpop.f32.mrf.mxu2  ;;  %v7836_v4 = vadd.f32 %v16035_v62, %v7507_v32 }
 0xa86   : > { %v9163_v20 = vrot.slane %v9162_v6, 4  ;;  %v8163_v60 = vadd.f32 %v8162_v35, %v16032_v48  ;;  %v3584_v48 = vpop.permute.xlu2 %3583 }
 0xa87   : > { %3619 = vperm.xlu1 %10751, %v15967_v21   ;;  %vm3772_vm0 = vcmp.eq.s32.totalorder %v3584_v48, %v11093_v8 }
 0xa88   : > { %v9164_v50 = vmax.f32 %v9162_v6, %v9163_v20  ;;  %4911 = vperm.xlu2 %10757, %v15969_v40  }
 0xa89   : > { %v4840_v23 = vpop.permute.xlu1 %4839 }
 0xa8a   : > { %v9165_v14 = vrot.slane %v9164_v50, 2  ;;  %vm5048_vm10 = vcmp.eq.s32.totalorder %v4840_v23, %v11093_v8  ;;  %v10071_v23 = vsel %vm3772_vm0, 1.0, %v15365_v51 }
 0xa8b   : > { %v10195_v13 = vsel %vm5048_vm10, 1.0, %v15365_v51 }
 0xa8c   : > { %v9166_v43 = vmax.f32 %v9164_v50, %v9165_v14  ;;  %v5432_v9 = vpack.c.bf16 %v10195_v13, %v10195_v13  ;;  %v7512_v13 = vadd.f32 %v14919_v63, %v16036_v30 }
 0xa8d   : > { %v8164_v46 = vpop.f32.mrf.mxu2 }
 0xa8e   : > { %v9167_v33 = vrot.slane %v9166_v43, 1  ;;  %v6840_v56 = vunpack.c.l.b16 %v5432_v9  ;;  %v8165_v15 = vadd.f32 %v8164_v46, %v7836_v4  ;;  %v16037_v9 = vld [vmem:[#allocation115_spill] sm:$0xff]  ;;  %v3590_v42 = vpop.permute.xlu2 %3589 }
 0xa8f   : > { %10753 = vset.pattern.permute.xlu1 %v12989_v2  ;;  %v7841_v46 = vadd.f32 %v16037_v9, %v7512_v13  ;;  %vm3773_vm10 = vcmp.eq.s32.totalorder %v3590_v42, %v11093_v8 }
 0xa90   : > { %v9168_v17 = vmax.f32 %v9166_v43, %v9167_v33  ;;  %v6912_v26 = vpack.c.b16 %v6840_v56, %v6839_v18  ;;  %10759 = vset.pattern.permute.xlu2 %v12704_v19  ;;  %v4156_v43 = vpack.c.bf16 %v10071_v23, %v10071_v23 }
 0xa92   : > { %v9316_v10 = vpack.c.bf16 %v9168_v17, %v9168_v17  ;;  %8191 = vmatmul.bf16.gmra.mxu2 %v6529_v3  ;;  %8515 = vmatmul.bf16.gmra.mxu3 %v6912_v26  ;;  %v6460_v49 = vunpack.c.l.b16 %v4156_v43 }
 0xa94   : > { %v9464_v44 = vunpack.c.l.b16 %v9316_v10 }
 0xa95   : > { %v8167_v39 = vpop.f32.mrf.mxu2  ;;  %v8491_v58 = vpop.f32.mrf.mxu3 }
 0xa96   : > { %v14947_v34 = vsel %vm9479_vm11, %v9464_v44, %v9463_v12  ;;  %v8168_v38 = vadd.f32 %v8167_v39, %v16033_v54  ;;  %v8492_v27 = vadd.f32 %v8491_v58, %v8163_v60  ;;  %v4858_v44 = vpop.permute.xlu0 %4857 }
 0xa97   : > { %4899 = vperm.xlu1 %10753, %v15967_v21   ;;  %vm5051_vm4 = vcmp.eq.s32.totalorder %v4858_v44, %v11093_v8 }
 0xa98   : > { %3643 = vperm.xlu2 %10759, %v15972_v25   ;;  %v8661_v35 = vmax.f32 %v8492_v27, 0.0  ;;  %v10198_v62 = vsel %vm5051_vm4, 1.0, %v15365_v51 }
 0xa99   : > { %v4846_v28 = vpop.permute.xlu1 %4845 }
 0xa9a   : > { %vm5049_vm15 = vcmp.eq.s32.totalorder %v4846_v28, %v11093_v8  ;;  %v8791_v0 = vmul.f32 %v14747_v16, %v8661_v35 }
 0xa9b   : > { %v10196_v1 = vsel %vm5049_vm15, 1.0, %v15365_v51 }
 0xa9c   : > { %v5433_v6 = vpack.c.bf16 %v10196_v1, %v10196_v1  ;;  %v16038_v1 = vld [vmem:[#allocation68_spill] sm:$0xff] }
 0xa9d   : > { %v8493_v47 = vpop.f32.mrf.mxu3  ;;  %v8169_v16 = vpop.f32.mrf.mxu2 }
 0xa9e   : > { %v6841_v20 = vunpack.c.l.b16 %v5433_v6  ;;  %v8494_v21 = vadd.f32 %v8493_v47, %v8165_v15  ;;  %v8170_v56 = vadd.f32 %v8169_v16, %v7841_v46  ;;  %v5435_v47 = vpack.c.bf16 %v10198_v62, %v10198_v62 }
 0xa9f   : > { %10756 = vset.pattern.permute.xlu1 %v13003_v37 }
 0xaa0   : > { %v8662_v60 = vmax.f32 %v8494_v21, 0.0  ;;  %v6913_v57 = vpack.c.b16 %v6842_v22, %v6841_v20  ;;  %10762 = vset.pattern.permute.xlu2 %v12673_v31  ;;  %v16039_v20 = vld [vmem:[#allocation36_spill] sm:$0xff] }
 0xaa1   : > { %v7517_v21 = vadd.f32 %v14919_v63, %v16039_v20 }
 0xaa2   : > { %v8792_v45 = vmul.f32 %v14753_v11, %v8662_v60  ;;  %8520 = vmatmul.bf16.gmra.mxu3 %v6913_v57  ;;  %v16040_v57 = vld [vmem:[#allocation5_spill] sm:$0xff] }
 0xaa4   : > { %v9169_v50 = vmax.f32 %v8791_v0, %v8792_v45  ;;  %v7846_v0 = vadd.f32 %v16040_v57, %v7517_v21 }
 0xaa5   : > { %v8496_v41 = vpop.f32.mrf.mxu3 }
 0xaa6   : > { %v9170_v14 = vrot.slane %v9169_v50, 4  ;;  %v8497_v7 = vadd.f32 %v8496_v41, %v8168_v38  ;;  %v14975_v38 = vld [vmem:[%s15145_s3] sm:$0xff]  ;;  %v4870_v41 = vpop.permute.xlu2 %4869 }
 0xaa7   : > { %4905 = vperm.xlu1 %10756, %v15969_v40   ;;  %vm5053_vm7 = vcmp.eq.s32.totalorder %v4870_v41, %v11093_v8  ;;  %v16042_v41 = vld [vmem:[#allocation70_spill] sm:$0xff] }
 0xaa8   : > { %v9171_v29 = vmax.f32 %v9169_v50, %v9170_v14  ;;  %3649 = vperm.xlu2 %10762, %v15975_v55   ;;  %v8663_v26 = vmax.f32 %v8497_v7, 0.0  ;;  %v4876_v14 = vpop.permute.xlu0 %4875 }
 0xaa9   : > { %v3578_v11 = vpop.permute.xlu1 %3577  ;;  %vm5054_vm9 = vcmp.eq.s32.totalorder %v4876_v14, %v11093_v8 }
 0xaaa   : > { %v9172_v18 = vrot.slane %v9171_v29, 2  ;;  %vm3771_vm3 = vcmp.eq.s32.totalorder %v3578_v11, %v11093_v8  ;;  %v8793_v27 = vmul.f32 %v14975_v38, %v8663_v26  ;;  %v10200_v11 = vsel %vm5053_vm7, 1.0, %v15365_v51 }
 0xaab   : > { %v10070_v33 = vsel %vm3771_vm3, 1.0, %v15365_v51  ;;  %v10201_v9 = vsel %vm5054_vm9, 1.0, %v15365_v51 }
 0xaac   : > { %v9173_v3 = vmax.f32 %v9171_v29, %v9172_v18  ;;  %v4155_v40 = vpack.c.bf16 %v10070_v33, %v10070_v33  ;;  %v10072_v18 = vsel %vm3773_vm10, 1.0, %v15365_v51 }
 0xaad   : > { %v8498_v59 = vpop.f32.mrf.mxu3 }
 0xaae   : > { %v9174_v17 = vrot.slane %v9173_v3, 1  ;;  %v6459_v10 = vunpack.c.l.b16 %v4155_v40  ;;  %v8499_v12 = vadd.f32 %v8498_v59, %v8170_v56  ;;  %v4157_v40 = vpack.c.bf16 %v10072_v18, %v10072_v18 }
 0xaaf   : > { %10758 = vset.pattern.permute.xlu1 %v12673_v31 }
 0xab0   : > { %v9175_v39 = vmax.f32 %v9173_v3, %v9174_v17  ;;  %v8664_v58 = vmax.f32 %v8499_v12, 0.0  ;;  %v6530_v5 = vpack.c.b16 %v6460_v49, %v6459_v10  ;;  %10764 = vset.pattern.permute.xlu2 %v13003_v37  ;;  %v5438_v3 = vpack.c.bf16 %v10201_v9, %v10201_v9 }
 0xab1   : > { %v6461_v44 = vunpack.c.l.b16 %v4157_v40 }
 0xab2   : > { %v9317_v54 = vpack.c.bf16 %v9175_v39, %v9175_v39  ;;  %v8794_v31 = vmul.f32 %v14981_v53, %v8664_v58  ;;  %8196 = vmatmul.bf16.gmra.mxu2 %v6530_v5  ;;  %v6846_v26 = vunpack.c.l.b16 %v5438_v3 }
 0xab4   : > { %v9465_v32 = vunpack.c.l.b16 %v9317_v54  ;;  %v9176_v37 = vmax.f32 %v8793_v27, %v8794_v31  ;;  %v3608_v31 = vpop.permute.xlu2 %3607 }
 0xab5   : > { %v8172_v28 = vpop.f32.mrf.mxu2  ;;  %vm3776_vm15 = vcmp.eq.s32.totalorder %v3608_v31, %v11093_v8 }
 0xab6   : > { %v9177_v4 = vrot.slane %v9176_v37, 4  ;;  %v8173_v15 = vadd.f32 %v8172_v28, %v16038_v1  ;;  %v9529_v22 = vsel %vm9481_vm1, %v9465_v32, %v14947_v34  ;;  %v6843_v34 = vunpack.c.l.b16 %v5435_v47 }
 0xab7   : > { %3637 = vperm.xlu1 %10758, %v15972_v25   ;;  %v10075_v1 = vsel %vm3776_vm15, 1.0, %v15365_v51 }
 0xab8   : > { %v9178_v6 = vmax.f32 %v9176_v37, %v9177_v4  ;;  %4929 = vperm.xlu2 %10764, %v15975_v55  }
 0xab9   : > { %v4864_v35 = vpop.permute.xlu1 %4863 }
 0xaba   : > { %v9179_v48 = vrot.slane %v9178_v6, 2  ;;  %vm5052_vm5 = vcmp.eq.s32.totalorder %v4864_v35, %v11093_v8  ;;  %v4160_v35 = vpack.c.bf16 %v10075_v1, %v10075_v1 }
 0xabb   : > { %v10199_v60 = vsel %vm5052_vm5, 1.0, %v15365_v51 }
 0xabc   : > { %v9180_v45 = vmax.f32 %v9178_v6, %v9179_v48  ;;  %v5436_v50 = vpack.c.bf16 %v10199_v60, %v10199_v60  ;;  %v6464_v57 = vunpack.c.l.b16 %v4160_v35 }
 0xabd   : > { %v8174_v23 = vpop.f32.mrf.mxu2 }
 0xabe   : > { %v9181_v7 = vrot.slane %v9180_v45, 1  ;;  %v6844_v30 = vunpack.c.l.b16 %v5436_v50  ;;  %v8175_v13 = vadd.f32 %v8174_v23, %v7846_v0 }
 0xabf   : > { %10761 = vset.pattern.permute.xlu1 %v12989_v2  ;;  %v5437_v2 = vpack.c.bf16 %v10200_v11, %v10200_v11 }
 0xac0   : > { %v9182_v29 = vmax.f32 %v9180_v45, %v9181_v7  ;;  %v6914_v43 = vpack.c.b16 %v6844_v30, %v6843_v34  ;;  %v4888_v7 = vpop.permute.xlu2 %4887 }
 0xac1   : > { %v6845_v17 = vunpack.c.l.b16 %v5437_v2  ;;  %vm5056_vm3 = vcmp.eq.s32.totalorder %v4888_v7, %v11093_v8  ;;  %v16043_v2 = vld [vmem:[#allocation43_spill] sm:$0xff] }
 0xac2   : > { %v9318_v16 = vpack.c.bf16 %v9182_v29, %v9182_v29  ;;  %8525 = vmatmul.bf16.gmra.mxu3 %v6914_v43 }
 0xac3   : > { %v6915_v27 = vpack.c.b16 %v6846_v26, %v6845_v17  ;;  %v15029_v17 = vld [vmem:[%s15147_s5] ss:$0 sm:$0xff] }
 0xac4   : > { %v9466_v46 = vunpack.c.l.b16 %v9318_v16 }
 0xac5   : > { %v8501_v33 = vpop.f32.mrf.mxu3 }
 0xac6   : > { %v8502_v56 = vadd.f32 %v8501_v33, %v8173_v15  ;;  %v15004_v49 = vsel %vm9483_vm6, %v9466_v46, %v9529_v22  ;;  %v16041_v22 = vld [vmem:[#allocation141_spill] sm:$0xff]  ;;  %v10203_v33 = vsel %vm5056_vm3, 1.0, %v15365_v51 }
 0xac7   : > { %4923 = vperm.xlu1 %10761, %v15972_v25  }
 0xac8   : > { %v8665_v58 = vmax.f32 %v8502_v56, 0.0 }
 0xac9   : > { %v3596_v59 = vpop.permute.xlu1 %3595 }
 0xaca   : > { %vm3774_vm14 = vcmp.eq.s32.totalorder %v3596_v59, %v11093_v8  ;;  %v8795_v37 = vmul.f32 %v14975_v38, %v8665_v58 }
 0xacb   : > { %v10073_v10 = vsel %vm3774_vm14, 1.0, %v15365_v51 }
 0xacc   : > { %v4158_v12 = vpack.c.bf16 %v10073_v10, %v10073_v10 }
 0xacd   : > { %v8503_v39 = vpop.f32.mrf.mxu3 }
 0xace   : > { %v6462_v5 = vunpack.c.l.b16 %v4158_v12  ;;  %v8504_v54 = vadd.f32 %v8503_v39, %v8175_v13  ;;  %v5440_v12 = vpack.c.bf16 %v10203_v33, %v10203_v33  ;;  %v16045_v33 = vld [vmem:[#allocation71_spill] sm:$0xff] }
 0xacf   : > { %10763 = vset.pattern.permute.xlu1 %v12704_v19 }
 0xad0   : > { %v8666_v32 = vmax.f32 %v8504_v54, 0.0  ;;  %v6531_v25 = vpack.c.b16 %v6462_v5, %v6461_v44  ;;  %v6848_v54 = vunpack.c.l.b16 %v5440_v12 }
 0xad2   : > { %v8796_v42 = vmul.f32 %v14981_v53, %v8666_v32  ;;  %8201 = vmatmul.bf16.gmra.mxu2 %v6531_v25  ;;  %8530 = vmatmul.bf16.gmra.mxu3 %v6915_v27  ;;  %v16044_v25 = vld [vmem:[#allocation118_spill] sm:$0xff] }
 0xad4   : > { %v9183_v28 = vmax.f32 %v8795_v37, %v8796_v42 }
 0xad5   : > { %v8177_v62 = vpop.f32.mrf.mxu2  ;;  %v8506_v4 = vpop.f32.mrf.mxu3 }
 0xad6   : > { %v9184_v15 = vrot.slane %v9183_v28, 4  ;;  %v8178_v6 = vadd.f32 %v8177_v62, %v16041_v22  ;;  %v3614_v62 = vpop.permute.xlu0 %3613 }
 0xad7   : > { %3655 = vperm.xlu1 %10763, %v15975_v55   ;;  %vm3777_vm5 = vcmp.eq.s32.totalorder %v3614_v62, %v11093_v8 }
 0xad8   : > { %v9185_v19 = vmax.f32 %v9183_v28, %v9184_v15  ;;  %v8507_v47 = vadd.f32 %v8506_v4, %v8178_v6  ;;  %v4894_v6 = vpop.permute.xlu2 %4893 }
 0xad9   : > { %v3602_v20 = vpop.permute.xlu1 %3601  ;;  %vm5057_vm14 = vcmp.eq.s32.totalorder %v4894_v6, %v11093_v8 }
 0xada   : > { %v9186_v21 = vrot.slane %v9185_v19, 2  ;;  %vm3775_vm0 = vcmp.eq.s32.totalorder %v3602_v20, %v11093_v8  ;;  %v8667_v30 = vmax.f32 %v8507_v47, 0.0  ;;  %v10076_v47 = vsel %vm3777_vm5, 1.0, %v15365_v51 }
 0xadb   : > { %v10074_v48 = vsel %vm3775_vm0, 1.0, %v15365_v51 }
 0xadc   : > { %v9187_v60 = vmax.f32 %v9185_v19, %v9186_v21  ;;  %v4159_v0 = vpack.c.bf16 %v10074_v48, %v10074_v48  ;;  %v8797_v9 = vmul.f32 %v14975_v38, %v8667_v30  ;;  %v4161_v21 = vpack.c.bf16 %v10076_v47, %v10076_v47 }
 0xadd   : > { %v8179_v45 = vpop.f32.mrf.mxu2  ;;  %v8508_v14 = vpop.f32.mrf.mxu3 }
 0xade   : > { %v9188_v50 = vrot.slane %v9187_v60, 1  ;;  %v6463_v34 = vunpack.c.l.b16 %v4159_v0  ;;  %v8180_v23 = vadd.f32 %v8179_v45, %v16042_v41  ;;  %v6465_v45 = vunpack.c.l.b16 %v4161_v21  ;;  %v3632_v41 = vpop.permute.xlu0 %3631 }
 0xadf   : > { %vm3780_vm10 = vcmp.eq.s32.totalorder %v3632_v41, %v11093_v8 }
 0xae0   : > { %v9189_v55 = vmax.f32 %v9187_v60, %v9188_v50  ;;  %v8509_v13 = vadd.f32 %v8508_v14, %v8180_v23  ;;  %v6532_v29 = vpack.c.b16 %v6464_v57, %v6463_v34  ;;  %v3626_v50 = vpop.permute.xlu2 %3625 }
 0xae1   : > { %vm3779_vm9 = vcmp.eq.s32.totalorder %v3626_v50, %v11093_v8 }
 0xae2   : > { %v9319_v43 = vpack.c.bf16 %v9189_v55, %v9189_v55  ;;  %v8668_v16 = vmax.f32 %v8509_v13, 0.0  ;;  %8206 = vmatmul.bf16.gmra.mxu2 %v6532_v29 }
 0xae4   : > { %v9467_v11 = vunpack.c.l.b16 %v9319_v43  ;;  %v8798_v46 = vmul.f32 %v14981_v53, %v8668_v16  ;;  %v10078_v43 = vsel %vm3779_vm9, 1.0, %v15365_v51  ;;  %v10079_v16 = vsel %vm3780_vm10, 1.0, %v15365_v51 }
 0xae5   : > { %v8182_v18 = vpop.f32.mrf.mxu2 }
 0xae6   : > { %v9190_v56 = vmax.f32 %v8797_v9, %v8798_v46  ;;  %v8183_v3 = vadd.f32 %v8182_v18, %v16043_v2  ;;  %v9617_v40 = vpop.f32.mrf.mxu0  ;;  %v9531_v59 = vsel %vm9485_vm12, %v9467_v11, %v15004_v49  ;;  %v10204_v9 = vsel %vm5057_vm14, 1.0, %v15365_v51 }
 0xae7   : > { %v9618_v26 = vadd.f32 %v15029_v17, %v9617_v40  ;;  %v4163_v2 = vpack.c.bf16 %v10078_v43, %v10078_v43 }
 0xae8   : > { %v9191_v10 = vrot.slane %v9190_v56, 4 }
 0xae9   : > { %9631 = vst [vmem:[%s14390_s29 + $0x20] sm:$0xff] %v9618_v26  ;;  %v4882_v44 = vpop.permute.xlu1 %4881  ;;  %v6467_v12 = vunpack.c.l.b16 %v4163_v2 }
 0xaea   : > { %v9192_v39 = vmax.f32 %v9190_v56, %v9191_v10  ;;  %vm5055_vm4 = vcmp.eq.s32.totalorder %v4882_v44, %v11093_v8 }
 0xaeb   : > { %v10202_v58 = vsel %vm5055_vm4, 1.0, %v15365_v51 }
 0xaec   : > { %v9193_v5 = vrot.slane %v9192_v39, 2  ;;  %v5439_v49 = vpack.c.bf16 %v10202_v58, %v10202_v58 }
 0xaed   : > { %v8184_v27 = vpop.f32.mrf.mxu2 }
 0xaee   : > { %v9194_v31 = vmax.f32 %v9192_v39, %v9193_v5  ;;  %v6847_v32 = vunpack.c.l.b16 %v5439_v49  ;;  %v8185_v37 = vadd.f32 %v8184_v27, %v16044_v25  ;;  %v9619_v42 = vpop.f32.mrf.mxu0 }
 0xaef   : > { %v9620_v28 = vadd.f32 %v15029_v17, %v9619_v42  ;;  %v4912_v42 = vpop.permute.xlu2 %4911 }
 0xaf0   : > { %v9195_v4 = vrot.slane %v9194_v31, 1  ;;  %v6916_v1 = vpack.c.b16 %v6848_v54, %v6847_v32  ;;  %v16046_v32 = vld [vmem:[#allocation160_spill] sm:$0xff]  ;;  %vm5060_vm0 = vcmp.eq.s32.totalorder %v4912_v42, %v11093_v8 }
 0xaf1   : > { %9632 = vst [vmem:[%s14390_s29 + $0x28] sm:$0xff] %v9620_v28  ;;  %v10207_v6 = vsel %vm5060_vm0, 1.0, %v15365_v51 }
 0xaf2   : > { %v9196_v15 = vmax.f32 %v9194_v31, %v9195_v4  ;;  %8535 = vmatmul.bf16.gmra.mxu3 %v6916_v1  ;;  %v5444_v21 = vpack.c.bf16 %v10207_v6, %v10207_v6 }
 0xaf4   : > { %v9320_v22 = vpack.c.bf16 %v9196_v15, %v9196_v15 }
 0xaf5   : > { %v8511_v19 = vpop.f32.mrf.mxu3 }
 0xaf6   : > { %v9468_v35 = vunpack.c.l.b16 %v9320_v22  ;;  %v8512_v20 = vadd.f32 %v8511_v19, %v8183_v3  ;;  %v4164_v3 = vpack.c.bf16 %v10079_v16, %v10079_v16  ;;  %v16047_v19 = vld [vmem:[#allocation27_spill] sm:$0xff] }
 0xaf8   : > { %v9532_v48 = vsel %vm9487_vm2, %v9468_v35, %v9531_v59  ;;  %v8669_v23 = vmax.f32 %v8512_v20, 0.0  ;;  %v5441_v59 = vpack.c.bf16 %v10204_v9, %v10204_v9  ;;  %v6468_v44 = vunpack.c.l.b16 %v4164_v3 }
 0xaf9   : > { %v3620_v60 = vpop.permute.xlu1 %3619 }
 0xafa   : > { %vm3778_vm7 = vcmp.eq.s32.totalorder %v3620_v60, %v11093_v8  ;;  %v8799_v13 = vmul.f32 %v14975_v38, %v8669_v23  ;;  %v6849_v54 = vunpack.c.l.b16 %v5441_v59 }
 0xafb   : > { %v10077_v57 = vsel %vm3778_vm7, 1.0, %v15365_v51 }
 0xafc   : > { %v4162_v0 = vpack.c.bf16 %v10077_v57, %v10077_v57 }
 0xafd   : > { %v8513_v34 = vpop.f32.mrf.mxu3 }
 0xafe   : > { %v6466_v14 = vunpack.c.l.b16 %v4162_v0  ;;  %v8514_v7 = vadd.f32 %v8513_v34, %v8185_v37  ;;  %v6534_v37 = vpack.c.b16 %v6468_v44, %v6467_v12  ;;  %v6852_v0 = vunpack.c.l.b16 %v5444_v21 }
 0xb00   : > { %v8670_v55 = vmax.f32 %v8514_v7, 0.0  ;;  %v6533_v30 = vpack.c.b16 %v6466_v14, %v6465_v45  ;;  %v16048_v14 = vld [vmem:[#allocation120_spill] sm:$0xff] }
 0xb02   : > { %v8800_v29 = vmul.f32 %v14981_v53, %v8670_v55  ;;  %8211 = vmatmul.bf16.gmra.mxu2 %v6533_v30  ;;  %v3644_v30 = vpop.permute.xlu2 %3643 }
 0xb03   : > { %vm3782_vm4 = vcmp.eq.s32.totalorder %v3644_v30, %v11093_v8 }
 0xb04   : > { %v9197_v11 = vmax.f32 %v8799_v13, %v8800_v29  ;;  %v10081_v9 = vsel %vm3782_vm4, 1.0, %v15365_v51 }
 0xb05   : > { %v8187_v46 = vpop.f32.mrf.mxu2 }
 0xb06   : > { %v9198_v18 = vrot.slane %v9197_v11, 4  ;;  %v8188_v56 = vadd.f32 %v8187_v46, %v16045_v33 }
 0xb08   : > { %v9199_v40 = vmax.f32 %v9197_v11, %v9198_v18 }
 0xb09   : > { %v4900_v26 = vpop.permute.xlu1 %4899 }
 0xb0a   : > { %v9200_v10 = vrot.slane %v9199_v40, 2  ;;  %vm5058_vm15 = vcmp.eq.s32.totalorder %v4900_v26, %v11093_v8 }
 0xb0b   : > { %v10205_v39 = vsel %vm5058_vm15, 1.0, %v15365_v51 }
 0xb0c   : > { %v9201_v58 = vmax.f32 %v9199_v40, %v9200_v10  ;;  %v5442_v5 = vpack.c.bf16 %v10205_v39, %v10205_v39 }
 0xb0d   : > { %v8189_v49 = vpop.f32.mrf.mxu2 }
 0xb0e   : > { %v9202_v27 = vrot.slane %v9201_v58, 1  ;;  %v6850_v31 = vunpack.c.l.b16 %v5442_v5  ;;  %v8190_v25 = vadd.f32 %v8189_v49, %v16046_v32 }
 0xb10   : > { %v9203_v28 = vmax.f32 %v9201_v58, %v9202_v27  ;;  %v6917_v62 = vpack.c.b16 %v6850_v31, %v6849_v54  ;;  %v4918_v54 = vpop.permute.xlu0 %4917 }
 0xb11   : > { %vm5061_vm7 = vcmp.eq.s32.totalorder %v4918_v54, %v11093_v8 }
 0xb12   : > { %v9321_v4 = vpack.c.bf16 %v9203_v28, %v9203_v28  ;;  %8216 = vmatmul.bf16.gmra.mxu2 %v6534_v37  ;;  %8540 = vmatmul.bf16.gmra.mxu3 %v6917_v62  ;;  %v3650_v28 = vpop.permute.xlu2 %3649 }
 0xb13   : > { %vm3783_vm15 = vcmp.eq.s32.totalorder %v3650_v28, %v11093_v8 }
 0xb14   : > { %v9469_v1 = vunpack.c.l.b16 %v9321_v4 }
 0xb15   : > { %v8192_v15 = vpop.f32.mrf.mxu2  ;;  %v8516_v22 = vpop.f32.mrf.mxu3 }
 0xb16   : > { %v8193_v47 = vadd.f32 %v8192_v15, %v16047_v19  ;;  %v8517_v35 = vadd.f32 %v8516_v22, %v8188_v56  ;;  %v9533_v20 = vsel %vm9489_vm8, %v9469_v1, %v9532_v48  ;;  %v4166_v56 = vpack.c.bf16 %v10081_v9, %v10081_v9  ;;  %v16049_v15 = vld [vmem:[#allocation74_spill] sm:$0xff] }
 0xb17   : > { %v10208_v1 = vsel %vm5061_vm7, 1.0, %v15365_v51 }
 0xb18   : > { %v8671_v41 = vmax.f32 %v8517_v35, 0.0  ;;  %v6470_v26 = vunpack.c.l.b16 %v4166_v56  ;;  %v5445_v19 = vpack.c.bf16 %v10208_v1, %v10208_v1 }
 0xb19   : > { %v4906_v60 = vpop.permute.xlu1 %4905 }
 0xb1a   : > { %vm5059_vm3 = vcmp.eq.s32.totalorder %v4906_v60, %v11093_v8  ;;  %v8801_v48 = vmul.f32 %v14975_v38, %v8671_v41  ;;  %v6853_v60 = vunpack.c.l.b16 %v5445_v19 }
 0xb1b   : > { %v10206_v57 = vsel %vm5059_vm3, 1.0, %v15365_v51 }
 0xb1c   : > { %v5443_v45 = vpack.c.bf16 %v10206_v57, %v10206_v57  ;;  %v4930_v57 = vpop.permute.xlu2 %4929 }
 0xb1d   : > { %v8194_v50 = vpop.f32.mrf.mxu2  ;;  %v8518_v34 = vpop.f32.mrf.mxu3  ;;  %vm5063_vm10 = vcmp.eq.s32.totalorder %v4930_v57, %v11093_v8 }
 0xb1e   : > { %v6851_v23 = vunpack.c.l.b16 %v5443_v45  ;;  %v8195_v7 = vadd.f32 %v8194_v50, %v16048_v14  ;;  %v8519_v55 = vadd.f32 %v8518_v34, %v8190_v25  ;;  %v4936_v45 = vpop.permute.xlu0 %4935  ;;  %v16050_v34 = vld [vmem:[#allocation126_spill] sm:$0xff] }
 0xb1f   : > { %vm5064_vm14 = vcmp.eq.s32.totalorder %v4936_v45, %v11093_v8 }
 0xb20   : > { %v8672_v13 = vmax.f32 %v8519_v55, 0.0  ;;  %v6918_v29 = vpack.c.b16 %v6852_v0, %v6851_v23  ;;  %v10211_v14 = vsel %vm5064_vm14, 1.0, %v15365_v51  ;;  %v10082_v55 = vsel %vm3783_vm15, 1.0, %v15365_v51 }
 0xb22   : > { %v8802_v43 = vmul.f32 %v14981_v53, %v8672_v13  ;;  %8545 = vmatmul.bf16.gmra.mxu3 %v6918_v29  ;;  %v5448_v29 = vpack.c.bf16 %v10211_v14, %v10211_v14 }
 0xb24   : > { %v9204_v16 = vmax.f32 %v8801_v48, %v8802_v43  ;;  %v4167_v43 = vpack.c.bf16 %v10082_v55, %v10082_v55  ;;  %v6856_v9 = vunpack.c.l.b16 %v5448_v29 }
 0xb25   : > { %v8521_v11 = vpop.f32.mrf.mxu3 }
 0xb26   : > { %v9205_v46 = vrot.slane %v9204_v16, 4  ;;  %v8522_v18 = vadd.f32 %v8521_v11, %v8193_v47  ;;  %v6471_v56 = vunpack.c.l.b16 %v4167_v43 }
 0xb28   : > { %v9206_v33 = vmax.f32 %v9204_v16, %v9205_v46  ;;  %v8673_v39 = vmax.f32 %v8522_v18, 0.0 }
 0xb29   : > { %v3638_v2 = vpop.permute.xlu1 %3637 }
 0xb2a   : > { %v9207_v3 = vrot.slane %v9206_v33, 2  ;;  %vm3781_vm5 = vcmp.eq.s32.totalorder %v3638_v2, %v11093_v8  ;;  %v8803_v32 = vmul.f32 %v14975_v38, %v8673_v39 }
 0xb2b   : > { %v10080_v40 = vsel %vm3781_vm5, 1.0, %v15365_v51 }
 0xb2c   : > { %v9208_v59 = vmax.f32 %v9206_v33, %v9207_v3  ;;  %v4165_v10 = vpack.c.bf16 %v10080_v40, %v10080_v40 }
 0xb2d   : > { %v8523_v12 = vpop.f32.mrf.mxu3 }
 0xb2e   : > { %v9209_v44 = vrot.slane %v9208_v59, 1  ;;  %v6469_v58 = vunpack.c.l.b16 %v4165_v10  ;;  %v8524_v5 = vadd.f32 %v8523_v12, %v8195_v7 }
 0xb30   : > { %v8674_v49 = vmax.f32 %v8524_v5, 0.0  ;;  %v6535_v27 = vpack.c.b16 %v6470_v26, %v6469_v58  ;;  %v9210_v31 = vmax.f32 %v9208_v59, %v9209_v44 }
 0xb32   : > { %v8804_v25 = vmul.f32 %v14981_v53, %v8674_v49  ;;  %8221 = vmatmul.bf16.gmra.mxu2 %v6535_v27  ;;  %v9322_v37 = vpack.c.bf16 %v9210_v31, %v9210_v31  ;;  %v16051_v27 = vld [vmem:[#allocation77_spill] sm:$0xff] }
 0xb34   : > { %v9211_v42 = vmax.f32 %v8803_v32, %v8804_v25  ;;  %v9470_v62 = vunpack.c.l.b16 %v9322_v37 }
 0xb35   : > { %v8197_v4 = vpop.f32.mrf.mxu2 }
 0xb36   : > { %v8198_v22 = vadd.f32 %v8197_v4, %v16049_v15  ;;  %v15074_v6 = vsel %vm9491_vm13, %v9470_v62, %v9533_v20  ;;  %v10210_v20 = vsel %vm5063_vm10, 1.0, %v15365_v51  ;;  %v9212_v48 = vrot.slane %v9211_v42, 4  ;;  %v16052_v15 = vld [vmem:[#allocation162_spill] sm:$0xff] }
 0xb37   : > { %v5447_v13 = vpack.c.bf16 %v10210_v20, %v10210_v20 }
 0xb38   : > { %v9213_v18 = vmax.f32 %v9211_v42, %v9212_v48 }
 0xb39   : > { %v4924_v47 = vpop.permute.xlu1 %4923  ;;  %v6855_v11 = vunpack.c.l.b16 %v5447_v13 }
 0xb3a   : > { %vm5062_vm9 = vcmp.eq.s32.totalorder %v4924_v47, %v11093_v8  ;;  %v9214_v10 = vrot.slane %v9213_v18, 2 }
 0xb3b   : > { %v10209_v35 = vsel %vm5062_vm9, 1.0, %v15365_v51  ;;  %v6920_v26 = vpack.c.b16 %v6856_v9, %v6855_v11 }
 0xb3c   : > { %v5446_v21 = vpack.c.bf16 %v10209_v35, %v10209_v35 }
 0xb3d   : > { %v8199_v0 = vpop.f32.mrf.mxu2 }
 0xb3e   : > { %v6854_v50 = vunpack.c.l.b16 %v5446_v21  ;;  %v8200_v41 = vadd.f32 %v8199_v0, %v16050_v34 }
 0xb40   : > { %v6919_v23 = vpack.c.b16 %v6854_v50, %v6853_v60 }
 0xb42   : > { %8550 = vmatmul.bf16.gmra.mxu3 %v6919_v23 }
 0xb45   : > { %v8526_v7 = vpop.f32.mrf.mxu3 }
 0xb46   : > { %v8527_v30 = vadd.f32 %v8526_v7, %v8198_v22 }
 0xb48   : > { %v8675_v3 = vmax.f32 %v8527_v30, 0.0 }
 0xb49   : > { %v3656_v16 = vpop.permute.xlu1 %3655 }
 0xb4a   : > { %vm3784_vm0 = vcmp.eq.s32.totalorder %v3656_v16, %v11093_v8  ;;  %v8805_v39 = vmul.f32 %v14975_v38, %v8675_v3  ;;  %v9215_v8 = vmax.f32 %v9213_v18, %v9214_v10  ;;  %v7880_v18 = vpop.f32.mrf.mxu1 }
 0xb4b   : > { %v10083_v46 = vsel %vm3784_vm0, 1.0, %v15365_v51 }
 0xb4c   : > { %v4168_v33 = vpack.c.bf16 %v10083_v46, %v10083_v46  ;;  %v9216_v32 = vrot.slane %v9215_v8, 1 }
 0xb4d   : > { %v8528_v2 = vpop.f32.mrf.mxu3 }
 0xb4e   : > { %v6472_v40 = vunpack.c.l.b16 %v4168_v33  ;;  %v8529_v59 = vadd.f32 %v8528_v2, %v8200_v41  ;;  %v9217_v28 = vmax.f32 %v9215_v8, %v9216_v32  ;;  %v7552_v33 = vadd.f32 %v14919_v63, %v14344_v36 }
 0xb50   : > { %v8676_v12 = vmax.f32 %v8529_v59, 0.0  ;;  %v6536_v44 = vpack.c.b16 %v6472_v40, %v6471_v56  ;;  %v9323_v47 = vpack.c.bf16 %v9217_v28, %v9217_v28  ;;  %v7881_v3 = vadd.f32 %v7880_v18, %v7552_v33 }
 0xb52   : > { %v8806_v58 = vmul.f32 %v14981_v53, %v8676_v12  ;;  %8226 = vmatmul.bf16.gmra.mxu2 %v6536_v44  ;;  %8555 = vmatmul.bf16.gmra.mxu3 %v6920_v26  ;;  %v9471_v45 = vunpack.c.l.b16 %v9323_v47 }
 0xb54   : > { %v9218_v5 = vmax.f32 %v8805_v39, %v8806_v58 }
 0xb55   : > { %v8202_v51 = vpop.f32.mrf.mxu2  ;;  %v8531_v54 = vpop.f32.mrf.mxu3 }
 0xb56   : > { %v9219_v49 = vrot.slane %v9218_v5, 4  ;;  %v8203_v31 = vadd.f32 %v8202_v51, %v16051_v27 }
 0xb58   : > { %v9220_v25 = vmax.f32 %v9218_v5, %v9219_v49  ;;  %v8532_v37 = vadd.f32 %v8531_v54, %v8203_v31  ;;  %v7883_v5 = vpop.f32.mrf.mxu1 }
 0xb5a   : > { %v9221_v42 = vrot.slane %v9220_v25, 2  ;;  %v8677_v21 = vmax.f32 %v8532_v37, 0.0 }
 0xb5c   : > { %v9222_v62 = vmax.f32 %v9220_v25, %v9221_v42  ;;  %v8807_v34 = vmul.f32 %v14975_v38, %v8677_v21  ;;  %v7555_v25 = vadd.f32 %v14919_v63, %v14359_v61 }
 0xb5d   : > { %v8204_v4 = vpop.f32.mrf.mxu2  ;;  %v8533_v19 = vpop.f32.mrf.mxu3 }
 0xb5e   : > { %v9223_v1 = vrot.slane %v9222_v62, 1  ;;  %v8205_v22 = vadd.f32 %v8204_v4, %v16052_v15 }
 0xb60   : > { %v9224_v35 = vmax.f32 %v9222_v62, %v9223_v1  ;;  %v8534_v60 = vadd.f32 %v8533_v19, %v8205_v22  ;;  %v7885_v32 = vpop.f32.mrf.mxu1  ;;  %v7884_v62 = vadd.f32 %v7883_v5, %v7555_v25  ;;  %v7557_v1 = vadd.f32 %v14919_v63, %v14372_v52  ;;  %v16053_v52 = vld [vmem:[#allocation84_spill] sm:$0xff] }
 0xb62   : > { %v9324_v57 = vpack.c.bf16 %v9224_v35, %v9224_v35  ;;  %v8678_v0 = vmax.f32 %v8534_v60, 0.0  ;;  %v7886_v22 = vadd.f32 %v7885_v32, %v7557_v1  ;;  %v16056_v1 = vld [vmem:[#allocation106_spill] sm:$0xff] }
 0xb64   : > { %v9472_v50 = vunpack.c.l.b16 %v9324_v57  ;;  %v8808_v41 = vmul.f32 %v14981_v53, %v8678_v0 }
 0xb65   : > { %v8207_v23 = vpop.f32.mrf.mxu2 }
 0xb66   : > { %v9535_v20 = vsel %vm9479_vm11, %v9472_v50, %v9471_v45  ;;  %v9225_v14 = vmax.f32 %v8807_v34, %v8808_v41  ;;  %v8208_v7 = vadd.f32 %v8207_v23, %v14040_v24  ;;  %v15110_v34 = vld [vmem:[%s15144_s2] ss:$0 sm:$0xff] }
 0xb67   : > { %v7560_v63 = vadd.f32 %v15110_v34, %v16053_v52  ;;  %v16057_v52 = vld [vmem:[#allocation72_spill] sm:$0xff] }
 0xb68   : > { %v9226_v55 = vrot.slane %v9225_v14, 4  ;;  %v7888_v35 = vpop.f32.mrf.mxu1 }
 0xb6a   : > { %v9227_v30 = vmax.f32 %v9225_v14, %v9226_v55  ;;  %v16054_v55 = vld [vmem:[#allocation89_spill] sm:$0xff] }
 0xb6c   : > { %v9228_v13 = vrot.slane %v9227_v30, 2 }
 0xb6d   : > { %v8209_v2 = vpop.f32.mrf.mxu2 }
 0xb6e   : > { %v9229_v29 = vmax.f32 %v9227_v30, %v9228_v13  ;;  %v8210_v40 = vadd.f32 %v8209_v2, %v7881_v3  ;;  %v7562_v30 = vadd.f32 %v15110_v34, %v16054_v55 }
 0xb70   : > { %v9230_v48 = vrot.slane %v9229_v29, 1 }
 0xb72   : > { %v9231_v43 = vmax.f32 %v9229_v29, %v9230_v48 }
 0xb74   : > { %v9325_v16 = vpack.c.bf16 %v9231_v43, %v9231_v43 }
 0xb75   : > { %v8536_v11 = vpop.f32.mrf.mxu3 }
 0xb76   : > { %v9473_v9 = vunpack.c.l.b16 %v9325_v16  ;;  %v8537_v46 = vadd.f32 %v8536_v11, %v8208_v7  ;;  %v7890_v7 = vpop.f32.mrf.mxu1 }
 0xb77   : > { %v7891_v43 = vadd.f32 %v7890_v7, %v7562_v30 }
 0xb78   : > { %v9536_v56 = vsel %vm9481_vm1, %v9473_v9, %v9535_v20  ;;  %v8679_v59 = vmax.f32 %v8537_v46, 0.0  ;;  %v7889_v20 = vadd.f32 %v7888_v35, %v7560_v63  ;;  %v7570_v63 = vadd.f32 %v15110_v34, %v16057_v52 }
 0xb7a   : > { %v8809_v12 = vmul.f32 %v14975_v38, %v8679_v59 }
 0xb7d   : > { %v8538_v24 = vpop.f32.mrf.mxu3 }
 0xb7e   : > { %v8539_v26 = vadd.f32 %v8538_v24, %v8210_v40  ;;  %v7893_v5 = vpop.f32.mrf.mxu1 }
 0xb80   : > { %v8680_v10 = vmax.f32 %v8539_v26, 0.0 }
 0xb82   : > { %v8810_v44 = vmul.f32 %v14981_v53, %v8680_v10 }
 0xb84   : > { %v9232_v39 = vmax.f32 %v8809_v12, %v8810_v44 }
 0xb85   : > { %v8212_v54 = vpop.f32.mrf.mxu2 }
 0xb86   : > { %v9233_v58 = vrot.slane %v9232_v39, 4  ;;  %v8213_v15 = vadd.f32 %v8212_v54, %v7884_v62 }
 0xb88   : > { %v9234_v8 = vmax.f32 %v9232_v39, %v9233_v58 }
 0xb8a   : > { %v9235_v51 = vrot.slane %v9234_v8, 2 }
 0xb8c   : > { %v9236_v36 = vmax.f32 %v9234_v8, %v9235_v51 }
 0xb8d   : > { %v8214_v42 = vpop.f32.mrf.mxu2 }
 0xb8e   : > { %v9237_v49 = vrot.slane %v9236_v36, 1  ;;  %v8215_v47 = vadd.f32 %v8214_v42, %v7886_v22 }
 0xb90   : > { %v9238_v27 = vmax.f32 %v9236_v36, %v9237_v49 }
 0xb92   : > { %v9326_v31 = vpack.c.bf16 %v9238_v27, %v9238_v27 }
 0xb94   : > { %v9474_v37 = vunpack.c.l.b16 %v9326_v31  ;;  %v16055_v31 = vld [vmem:[#allocation93_spill] sm:$0xff] }
 0xb95   : > { %v8541_v28 = vpop.f32.mrf.mxu3  ;;  %v8217_v0 = vpop.f32.mrf.mxu2  ;;  %v7565_v32 = vadd.f32 %v15110_v34, %v16055_v31 }
 0xb96   : > { %v9537_v4 = vsel %vm9483_vm6, %v9474_v37, %v9536_v56  ;;  %v8542_v19 = vadd.f32 %v8541_v28, %v8213_v15  ;;  %v8218_v13 = vadd.f32 %v8217_v0, %v7889_v20  ;;  %v7895_v37 = vpop.f32.mrf.mxu1 }
 0xb97   : > { %v7894_v28 = vadd.f32 %v7893_v5, %v7565_v32 }
 0xb98   : > { %v8681_v60 = vmax.f32 %v8542_v19, 0.0 }
 0xb9a   : > { %v8811_v61 = vmul.f32 %v14975_v38, %v8681_v60 }
 0xb9d   : > { %v8543_v21 = vpop.f32.mrf.mxu3  ;;  %v8219_v48 = vpop.f32.mrf.mxu2 }
 0xb9e   : > { %v8544_v57 = vadd.f32 %v8543_v21, %v8215_v47  ;;  %v8220_v9 = vadd.f32 %v8219_v48, %v7891_v43  ;;  %v7898_v0 = vpop.f32.mrf.mxu1 }
 0xba0   : > { %v8682_v45 = vmax.f32 %v8544_v57, 0.0 }
 0xba2   : > { %v8812_v50 = vmul.f32 %v14981_v53, %v8682_v45 }
 0xba4   : > { %v9239_v41 = vmax.f32 %v8811_v61, %v8812_v50 }
 0xba5   : > { %v8546_v23 = vpop.f32.mrf.mxu3 }
 0xba6   : > { %v9240_v14 = vrot.slane %v9239_v41, 4  ;;  %v8547_v11 = vadd.f32 %v8546_v23, %v8218_v13  ;;  %v7900_v13 = vpop.f32.mrf.mxu1 }
 0xba8   : > { %v9241_v29 = vmax.f32 %v9239_v41, %v9240_v14  ;;  %v8683_v56 = vmax.f32 %v8547_v11, 0.0  ;;  %v7899_v14 = vadd.f32 %v7898_v0, %v7570_v63 }
 0xbaa   : > { %v9242_v16 = vrot.slane %v9241_v29, 2  ;;  %v8813_v59 = vmul.f32 %v14975_v38, %v8683_v56 }
 0xbac   : > { %v9243_v46 = vmax.f32 %v9241_v29, %v9242_v16  ;;  %v16058_v29 = vld [vmem:[#allocation10_spill] sm:$0xff] }
 0xbad   : > { %v8548_v18 = vpop.f32.mrf.mxu3  ;;  %v7572_v48 = vadd.f32 %v15110_v34, %v16058_v29 }
 0xbae   : > { %v9244_v33 = vrot.slane %v9243_v46, 1  ;;  %v8549_v2 = vadd.f32 %v8548_v18, %v8220_v9 }
 0xbaf   : > { %v7901_v16 = vadd.f32 %v7900_v13, %v7572_v48 }
 0xbb0   : > { %v9245_v3 = vmax.f32 %v9243_v46, %v9244_v33  ;;  %v8684_v40 = vmax.f32 %v8549_v2, 0.0 }
 0xbb2   : > { %v9327_v24 = vpack.c.bf16 %v9245_v3, %v9245_v3  ;;  %v8814_v26 = vmul.f32 %v14981_v53, %v8684_v40 }
 0xbb4   : > { %v9475_v10 = vunpack.c.l.b16 %v9327_v24  ;;  %v9246_v12 = vmax.f32 %v8813_v59, %v8814_v26 }
 0xbb5   : > { %v8222_v36 = vpop.f32.mrf.mxu2 }
 0xbb6   : > { %v9247_v44 = vrot.slane %v9246_v12, 4  ;;  %v9538_v39 = vsel %vm9485_vm12, %v9475_v10, %v9537_v4  ;;  %v7567_v4 = vadd.f32 %v15110_v34, %v16056_v1  ;;  %v8223_v15 = vadd.f32 %v8222_v36, %v7894_v28 }
 0xbb8   : > { %v9248_v58 = vmax.f32 %v9246_v12, %v9247_v44  ;;  %v7896_v19 = vadd.f32 %v7895_v37, %v7567_v4 }
 0xbba   : > { %v9249_v8 = vrot.slane %v9248_v58, 2 }
 0xbbc   : > { %v9250_v51 = vmax.f32 %v9248_v58, %v9249_v8 }
 0xbbd   : > { %v8224_v22 = vpop.f32.mrf.mxu2 }
 0xbbe   : > { %v9251_v54 = vrot.slane %v9250_v51, 1  ;;  %v8225_v35 = vadd.f32 %v8224_v22, %v7896_v19 }
 0xbc0   : > { %v9252_v49 = vmax.f32 %v9250_v51, %v9251_v54 }
 0xbc2   : > { %v9328_v27 = vpack.c.bf16 %v9252_v49, %v9252_v49 }
 0xbc4   : > { %v9476_v25 = vunpack.c.l.b16 %v9328_v27 }
 0xbc5   : > { %v8551_v42 = vpop.f32.mrf.mxu3 }
 0xbc6   : > { %v9539_v62 = vsel %vm9487_vm2, %v9476_v25, %v9538_v39  ;;  %v8552_v47 = vadd.f32 %v8551_v42, %v8223_v15 }
 0xbc8   : > { %v8685_v60 = vmax.f32 %v8552_v47, 0.0 }
 0xbca   : > { %v8815_v61 = vmul.f32 %v14975_v38, %v8685_v60 }
 0xbcd   : > { %v8553_v21 = vpop.f32.mrf.mxu3 }
 0xbce   : > { %v8554_v57 = vadd.f32 %v8553_v21, %v8225_v35 }
 0xbd0   : > { %v8686_v45 = vmax.f32 %v8554_v57, 0.0 }
 0xbd2   : > { %v8816_v50 = vmul.f32 %v14981_v53, %v8686_v45 }
 0xbd4   : > { %v9253_v41 = vmax.f32 %v8815_v61, %v8816_v50 }
 0xbd5   : > { %v8227_v23 = vpop.f32.mrf.mxu2  ;;  %v8556_v20 = vpop.f32.mrf.mxu3 }
 0xbd6   : > { %v9254_v7 = vrot.slane %v9253_v41, 4  ;;  %v8228_v30 = vadd.f32 %v8227_v23, %v7899_v14 }
 0xbd8   : > { %v9255_v55 = vmax.f32 %v9253_v41, %v9254_v7  ;;  %v8557_v9 = vadd.f32 %v8556_v20, %v8228_v30 }
 0xbda   : > { %v9256_v43 = vrot.slane %v9255_v55, 2  ;;  %v8687_v3 = vmax.f32 %v8557_v9, 0.0 }
 0xbdc   : > { %v9257_v11 = vmax.f32 %v9255_v55, %v9256_v43  ;;  %v8817_v26 = vmul.f32 %v14975_v38, %v8687_v3 }
 0xbdd   : > { %v8229_v46 = vpop.f32.mrf.mxu2  ;;  %v8558_v56 = vpop.f32.mrf.mxu3 }
 0xbde   : > { %v9258_v18 = vrot.slane %v9257_v11, 1  ;;  %v8230_v33 = vadd.f32 %v8229_v46, %v7901_v16 }
 0xbe0   : > { %v9259_v2 = vmax.f32 %v9257_v11, %v9258_v18  ;;  %v8559_v40 = vadd.f32 %v8558_v56, %v8230_v33 }
 0xbe2   : > { %v9329_v24 = vpack.c.bf16 %v9259_v2, %v9259_v2  ;;  %v8688_v59 = vmax.f32 %v8559_v40, 0.0 }
 0xbe4   : > { %v8818_v10 = vmul.f32 %v14981_v53, %v8688_v59  ;;  %v9477_v12 = vunpack.c.l.b16 %v9329_v24 }
 0xbe6   : > { %v9260_v34 = vmax.f32 %v8817_v26, %v8818_v10  ;;  %v9540_v44 = vsel %vm9489_vm8, %v9477_v12, %v9539_v62 }
 0xbe8   : > { %v9261_v39 = vrot.slane %v9260_v34, 4 }
 0xbea   : > { %v9262_v58 = vmax.f32 %v9260_v34, %v9261_v39 }
 0xbec   : > { %v9263_v8 = vrot.slane %v9262_v58, 2 }
 0xbee   : > { %v9264_v5 = vmax.f32 %v9262_v58, %v9263_v8 }
 0xbf0   : > { %v9265_v51 = vrot.slane %v9264_v5, 1 }
 0xbf2   : > { %v9266_v54 = vmax.f32 %v9264_v5, %v9265_v51 }
 0xbf4   : > { %v9330_v36 = vpack.c.bf16 %v9266_v54, %v9266_v54 }
 0xbf6   : > { %v9478_v49 = vunpack.c.l.b16 %v9330_v36 }
 0xbf8   : > { %v9541_v27 = vsel %vm9491_vm13, %v9478_v49, %v9540_v44 }
 0xbf9   : > { %v9545_v38 = vpack.c.b16 %v9541_v27, %v15074_v6 }
 0xbfb   : > { %9621 = vmatmul.bf16.gmra.mxu0 %v9545_v38 }
 0xc78   : > { %v9622_v53 = vpop.f32.mrf.mxu0 }
 0xc79   : > { %v9623_v31 = vadd.f32 %v15029_v17, %v9622_v53 }
 0xc7b   : > { %9633 = vst [vmem:[%s14390_s29 + $0x30] sm:$0xff] %v9623_v31 }
 0xc80   : > { %v9624_v32 = vpop.f32.mrf.mxu0 }
 0xc81   : > { %v9625_v25 = vadd.f32 %v15029_v17, %v9624_v32 }
 0xc83   : > { %9634 = vst [vmem:[%s14390_s29 + $0x38] sm:$0xff] %v9625_v25 }
 0xc84 PF: > { %s16_s21 = sadd.s32 1, %s10793_s21  }
 0xc85   : > { %p13_p4 = scmp.ge.s32.totalorder %s16_s21, 6  }
 0xc87   :  { %15 = sbr.rel (!%p13_p4) target bundleno = 1 (0x1), region = 74 }

</bundles_post_ra>
